<compile_context>
chip_gen: v7x
topology: tpu7x:2x2x1
jax: 0.10.0
libtpu: 0.0.40
codegen_flags: <defaults>
</compile_context>

<pallas_src>
import functools

import jax
import jax.numpy as jnp
import numpy as np
from jax.experimental import pallas as pl
from jax.experimental.pallas import tpu as pltpu

_LANE = 128     # output-channel padding (lane-dense stores / MXU columns)
_SUB = 8        # input-channel / row-tile padding


def _round_up(x, m):
    return ((x + m - 1) // m) * m


def _vmem_capacity_bytes():
    try:
        return int(pltpu.get_tpu_info().vmem_capacity_bytes)
    except Exception:                       # no TPU info available -> v7x-safe default
        return 64 * 1024 * 1024


# ----------------------------- Pallas kernels ------------------------------

def _accum_taps(ph_ref, w_ref, acc_ref, *, ksize, stride, pw, rows):
    """acc_ref (rows, Coutp) f32 <- sum of ksize^2 shifted-tap bf16 MXU matmuls.

    ph_ref: (stride*stride, rows+halo, Cinp) bf16 flattened polyphase tile
    w_ref : (ksize*ksize, Cinp, Coutp)       bf16 per-tap conv weights
    """
    first = True
    for kh in range(ksize):
        qh, rh = kh // stride, kh % stride
        for kw in range(ksize):
            qw, rw = kw // stride, kw % stride
            pidx = rh * stride + rw            # polyphase plane (static)
            off = qh * pw + qw                 # flat shift inside the tile (static)
            xt = ph_ref[pidx, off:off + rows, :]          # (rows, Cinp) bf16
            wt = w_ref[kh * ksize + kw]                   # (Cinp, Coutp) bf16
            d = jnp.dot(xt, wt, preferred_element_type=jnp.float32)
            if first:
                acc_ref[...] = d
                first = False
            else:
                acc_ref[...] += d


def _conv_gdn_kernel(ph_ref, w_ref, b_ref, gt_ref, beta_ref, o_ref, acc_ref, *,
                     ksize, stride, pw, rows):
    _accum_taps(ph_ref, w_ref, acc_ref, ksize=ksize, stride=stride, pw=pw, rows=rows)
    conv = acc_ref[...] + b_ref[...]                           # f32
    # GDN: norm_i = beta_i + sum_j gamma[i, j] * x_j^2 ; matmul in bf16, rest f32.
    norm = jnp.dot((conv * conv).astype(jnp.bfloat16), gt_ref[...],
                   preferred_element_type=jnp.float32) + beta_ref[...]
    o_ref[...] = (conv * jax.lax.rsqrt(norm)).astype(o_ref.dtype)


def _conv_kernel(ph_ref, w_ref, b_ref, o_ref, acc_ref, *, ksize, stride, pw, rows):
    _accum_taps(ph_ref, w_ref, acc_ref, ksize=ksize, stride=stride, pw=pw, rows=rows)
    o_ref[...] = (acc_ref[...] + b_ref[...]).astype(o_ref.dtype)


# ------------------------------ layer wrapper -------------------------------

def _conv_layer(x, w, b, stride, gamma=None, beta=None, *, row_tile=None):
    """x: (B, H, W, Cin) float -> conv(+bias)(+fused GDN) -> (B, OH, OW, Cout) bf16."""
    B, H, W, Cin = x.shape
    KH, KW, _, Cout = w.shape
    assert KH == KW, "square kernels only"
    pad = (KH - 1) // 2
    s = stride
    Hp, Wp = H + 2 * pad, W + 2 * pad
    OH = (Hp - KH) // s + 1
    OW = (Wp - KW) // s + 1
    qh_max, qw_max = (KH - 1) // s, (KW - 1) // s

    Cinp = _round_up(max(Cin, _SUB), _SUB)
    Coutp = _round_up(Cout, _LANE)
    PW = max(-(-Wp // s), qw_max + OW)            # polyphase plane width
    PH = -(-Hp // s)                              # polyphase plane height
    ROWS = OH * PW                                # flattened output rows
    HALO = qh_max * PW + qw_max                   # extra flat input rows per tile

    cinp_v = _round_up(Cinp, _LANE)               # VMEM lane-padded width (budget only)
    if row_tile is None:
        # size row tiles so double-buffered in/out blocks + f32 acc fit ~45% of VMEM
        budget = int(0.45 * _vmem_capacity_bytes())
        per_row = 2 * s * s * cinp_v * 2 + 2 * Coutp * 2 + Coutp * 4
        fixed = 2 * s * s * HALO * cinp_v * 2
        row_tile = max(8, (budget - fixed) // per_row)
    TR = max(_SUB, min(_round_up(int(row_tile), _SUB), _round_up(ROWS, _SUB), 4096))
    n_tiles = -(-ROWS // TR)
    ROWS_P = n_tiles * TR
    FLAT = max(ROWS_P + HALO, PH * PW)

    # -- input relayout (single pass): conv pad + channel pad + polyphase split
    #    + flatten + halo'd row tiles, all in bf16.
    xp = jnp.pad(x.astype(jnp.bfloat16),
                 ((0, 0), (pad, pad), (pad, pad), (0, Cinp - Cin)))
    xp = jnp.pad(xp, ((0, 0), (0, PH * s - Hp), (0, PW * s - Wp), (0, 0)))
    phases = jnp.stack([xp[:, rh::s, rw::s, :] for rh in range(s) for rw in range(s)],
                       axis=1)                                 # (B, s*s, PH, PW, Cinp)
    flat = phases.reshape(B, s * s, PH * PW, Cinp)
    flat = jnp.pad(flat, ((0, 0), (0, 0), (0, FLAT - PH * PW), (0, 0)))
    tiles = jnp.stack([flat[:, :, t * TR: t * TR + TR + HALO, :]
                       for t in range(n_tiles)], axis=1)       # (B, nt, s*s, TR+HALO, Cinp)

    w2 = jnp.pad(w, ((0, 0), (0, 0), (0, Cinp - Cin), (0, Coutp - Cout)))
    w2 = w2.reshape(KH * KW, Cinp, Coutp).astype(jnp.bfloat16)
    b2 = jnp.pad(b, (0, Coutp - Cout)).reshape(1, Coutp).astype(jnp.float32)

    in_specs = [
        pl.BlockSpec((None, None, s * s, TR + HALO, Cinp),
                     lambda bi, ti: (bi, ti, 0, 0, 0)),
        pl.BlockSpec((KH * KW, Cinp, Coutp), lambda bi, ti: (0, 0, 0)),
        pl.BlockSpec((1, Coutp), lambda bi, ti: (0, 0)),
    ]
    args = [tiles, w2, b2]

    with_gdn = gamma is not None
    if with_gdn:
        gt = jnp.pad(gamma, ((0, Coutp - Cout), (0, Coutp - Cout)))
        gt = gt.T.astype(jnp.bfloat16)                          # (Coutp, Coutp) bf16
        beta2 = jnp.pad(beta, (0, Coutp - Cout), constant_values=1.0)
        beta2 = beta2.reshape(1, Coutp).astype(jnp.float32)
        in_specs += [pl.BlockSpec((Coutp, Coutp), lambda bi, ti: (0, 0)),
                     pl.BlockSpec((1, Coutp), lambda bi, ti: (0, 0))]
        args += [gt, beta2]
        kern = functools.partial(_conv_gdn_kernel, ksize=KH, stride=s, pw=PW, rows=TR)
    else:
        kern = functools.partial(_conv_kernel, ksize=KH, stride=s, pw=PW, rows=TR)

    # VMEM budget: double-buffered in/out blocks + weights + f32 accumulator.
    in_blk = s * s * (TR + HALO) * cinp_v * 2
    out_blk = TR * Coutp * 2
    wts = KH * KW * cinp_v * Coutp * 2 + 2 * Coutp * 4 + (Coutp * Coutp * 2 if with_gdn else 0)
    need = 2 * (in_blk + out_blk) + 2 * wts + TR * Coutp * 4
    vmem_limit = int(min(max(need + (8 << 20), 32 << 20),
                         int(0.92 * _vmem_capacity_bytes())))

    out = pl.pallas_call(
        kern,
        out_shape=jax.ShapeDtypeStruct((B, ROWS_P, Coutp), jnp.bfloat16),
        grid=(B, n_tiles),
        in_specs=in_specs,
        out_specs=pl.BlockSpec((None, TR, Coutp), lambda bi, ti: (bi, ti, 0)),
        scratch_shapes=[pltpu.VMEM((TR, Coutp), jnp.float32)],
        compiler_params=pltpu.CompilerParams(
            dimension_semantics=("parallel", "parallel"),
            vmem_limit_bytes=vmem_limit),
    )(*args)

    # TODO(synk): fuse this crop / next-layer relayout into the producing kernel.
    out = out[:, :ROWS, :].reshape(B, OH, PW, Coutp)[:, :, :OW, :Cout]
    return out


def _conv1_layer(x, w, b, gamma, beta, *, row_tile=None):
    """Stride-1 5x5 conv.  For small Cin, all 25 taps are folded into the MXU
    contraction dim (cheap wrapper-side im2col of a tiny-channel input) so the
    layer is a single K=25*Cin matmul per row tile."""
    KH, KW, Cin, Cout = w.shape
    if KH * KW * Cin <= 2 * _LANE:
        pad = (KH - 1) // 2
        B, H, W, _ = x.shape
        xp = jnp.pad(x.astype(jnp.bfloat16), ((0, 0), (pad, pad), (pad, pad), (0, 0)))
        cols = [xp[:, kh:kh + H, kw:kw + W, :] for kh in range(KH) for kw in range(KW)]
        xf = jnp.concatenate(cols, axis=-1)                    # (B, H, W, 25*Cin)
        wf = w.reshape(1, 1, KH * KW * Cin, Cout)              # matches (kh, kw, cin) order
        return _conv_layer(xf, wf, b, 1, gamma, beta, row_tile=row_tile)
    return _conv_layer(x, w, b, 1, gamma, beta, row_tile=row_tile)


# ----------------------------- IREncoder model ------------------------------

def init_ir_encoder_params(key, in_channel2=1, out_channel_N=32, out_channel_M=64):
    """Deterministic synthetic parameters (GDN: beta=1, gamma positive)."""
    ks = jax.random.split(key, 11)
    N, M, Ci = out_channel_N, out_channel_M, in_channel2

    def conv_init(kw_, kb_, cin, cout):
        fan_in = 5 * 5 * cin
        w = jax.random.normal(kw_, (5, 5, cin, cout), jnp.float32) / np.sqrt(fan_in)
        b = 0.1 * jax.random.normal(kb_, (cout,), jnp.float32)
        return w, b

    def gdn_init(kg_, c):
        gamma = (0.1 * jnp.eye(c, dtype=jnp.float32)
                 + 0.01 * jax.random.uniform(kg_, (c, c), jnp.float32))
        beta = jnp.ones((c,), jnp.float32)
        return gamma, beta

    p = {}
    p["conv1_w"], p["conv1_b"] = conv_init(ks[0], ks[1], Ci, N)
    p["gdn1_g"], p["gdn1_b"] = gdn_init(ks[2], N)
    p["conv2_w"], p["conv2_b"] = conv_init(ks[3], ks[4], N, N)
    p["gdn2_g"], p["gdn2_b"] = gdn_init(ks[5], N)
    p["conv3_w"], p["conv3_b"] = conv_init(ks[6], ks[7], N, N)
    p["gdn3_g"], p["gdn3_b"] = gdn_init(ks[8], N)
    p["conv4_w"], p["conv4_b"] = conv_init(ks[9], ks[10], N, M)
    return p


@functools.partial(jax.jit, static_argnames=("row_tile",))
def ir_encoder_forward(params, ir_nchw, row_tile=None):
    """Matches IREncoder.forward (NCHW in / NCHW f32 out); NHWC bf16 internally."""
    x = jnp.transpose(ir_nchw, (0, 2, 3, 1))                  # NCHW -> NHWC
    irs = []
    x = _conv1_layer(x, params["conv1_w"], params["conv1_b"],
                     params["gdn1_g"], params["gdn1_b"], row_tile=row_tile); irs.append(x)
    x = _conv_layer(x, params["conv2_w"], params["conv2_b"], 2,
                    params["gdn2_g"], params["gdn2_b"], row_tile=row_tile); irs.append(x)
    x = _conv_layer(x, params["conv3_w"], params["conv3_b"], 2,
                    params["gdn3_g"], params["gdn3_b"], row_tile=row_tile); irs.append(x)
    x = _conv_layer(x, params["conv4_w"], params["conv4_b"], 2, row_tile=row_tile)
    to_nchw = lambda t: jnp.transpose(t.astype(jnp.float32), (0, 3, 1, 2))
    return to_nchw(x), [to_nchw(t) for t in irs]


# ------------------------------ reference -----------------------------------
# Mirrors the kernel's mixed precision: conv & GDN matmul operands in bf16,
# f32 accumulation / bias / rsqrt, layer outputs rounded to bf16.

def _q16(t):
    return t.astype(jnp.bfloat16).astype(jnp.float32)


def _ref_conv(x, w, b, stride):
    y = jax.lax.conv_general_dilated(
        _q16(x), _q16(w), window_strides=(stride, stride),
        padding=[(2, 2), (2, 2)], dimension_numbers=("NHWC", "HWIO", "NHWC"),
        precision=jax.lax.Precision.HIGHEST)
    return y + b[None, None, None, :]


def _ref_gdn(x, gamma, beta):
    norm = jnp.einsum("bhwj,ij->bhwi", _q16(x * x), _q16(gamma),
                      precision=jax.lax.Precision.HIGHEST)
    return x * jax.lax.rsqrt(norm + beta[None, None, None, :])


def ir_encoder_reference(params, ir_nchw):
    x = jnp.transpose(ir_nchw, (0, 2, 3, 1))
    irs = []
    x = _q16(_ref_gdn(_ref_conv(x, params["conv1_w"], params["conv1_b"], 1),
                      params["gdn1_g"], params["gdn1_b"])); irs.append(x)
    x = _q16(_ref_gdn(_ref_conv(x, params["conv2_w"], params["conv2_b"], 2),
                      params["gdn2_g"], params["gdn2_b"])); irs.append(x)
    x = _q16(_ref_gdn(_ref_conv(x, params["conv3_w"], params["conv3_b"], 2),
                      params["gdn3_g"], params["gdn3_b"])); irs.append(x)
    x = _q16(_ref_conv(x, params["conv4_w"], params["conv4_b"], 2))
    to_nchw = lambda t: jnp.transpose(t, (0, 3, 1, 2))
    return to_nchw(x), [to_nchw(t) for t in irs]


# -------------------------------- main ---------------------------------------

if __name__ == "__main__":
    key = jax.random.PRNGKey(0)
    k_param, k_in = jax.random.split(key)

    B, Ci, H, W = 2, 1, 16, 16
    N, M = 32, 64          # small stand-ins for out_channel_N=192, out_channel_M=320

    params = init_ir_encoder_params(k_param, in_channel2=Ci,
                                    out_channel_N=N, out_channel_M=M)
    ir = jax.random.normal(k_in, (B, Ci, H, W), jnp.float32)

    # Small explicit row tile -> exercises the multi-tile (halo'd) path.
    out, irs = ir_encoder_forward(params, ir, row_tile=64)
    out = jax.block_until_ready(out)
    irs = [jax.block_until_ready(t) for t in irs]

    # shapes: conv1(s1)->16x16, conv2(s2)->8x8, conv3(s2)->4x4, conv4(s2)->2x2
    assert out.shape == (B, M, 2, 2)
    assert irs[0].shape == (B, N, 16, 16)
    assert irs[1].shape == (B, N, 8, 8)
    assert irs[2].shape == (B, N, 4, 4)

    ref_out, ref_irs = ir_encoder_reference(params, ir)
    np.testing.assert_allclose(np.asarray(out), np.asarray(ref_out),
                               rtol=2e-3, atol=2e-3)
    for got, want in zip(irs, ref_irs):
        np.testing.assert_allclose(np.asarray(got), np.asarray(want),
                                   rtol=2e-3, atol=2e-3)

    # Default (auto VMEM-budgeted) row tiles — single-tile path at these sizes.
    out2, _ = ir_encoder_forward(params, ir)
    out2 = jax.block_until_ready(out2)
    np.testing.assert_allclose(np.asarray(out2), np.asarray(ref_out),
                               rtol=2e-3, atol=2e-3)

    print("KERNEL_OK")
</pallas_src>

<mosaic_0001>
module attributes {stable_mosaic.version = 11 : i64} {
  func.func @_conv_gdn_kernel(%arg0: i32, %arg1: i32, %arg2: memref<1x1x1x64x32xbf16, #tpu.memory_space<vmem>>, %arg3: memref<1x32x128xbf16, #tpu.memory_space<vmem>>, %arg4: memref<1x128xf32, #tpu.memory_space<vmem>>, %arg5: memref<128x128xbf16, #tpu.memory_space<vmem>>, %arg6: memref<1x128xf32, #tpu.memory_space<vmem>>, %arg7: memref<1x64x128xbf16, #tpu.memory_space<vmem>>, %arg8: memref<64x128xf32, #tpu.memory_space<vmem>>) attributes {dimension_semantics = [#tpu.dimension_semantics<parallel>, #tpu.dimension_semantics<parallel>], iteration_bounds = array<i64: 2, 4>, scalar_prefetch = 0 : i64, scratch_operands = 1 : i64, tpu.core_type = #tpu.core_type<tc>, window_params = [{transform_indices = @transform_0, window_bounds = array<i64: 1, 1, 1, 64, 32>}, {pipeline_mode = #tpu.pipeline_mode<synchronous>, transform_indices = @transform_1, window_bounds = array<i64: 1, 32, 128>}, {pipeline_mode = #tpu.pipeline_mode<synchronous>, transform_indices = @transform_2, window_bounds = array<i64: 1, 128>}, {pipeline_mode = #tpu.pipeline_mode<synchronous>, transform_indices = @transform_3, window_bounds = array<i64: 128, 128>}, {pipeline_mode = #tpu.pipeline_mode<synchronous>, transform_indices = @transform_4, window_bounds = array<i64: 1, 128>}, {transform_indices = @transform_5, window_bounds = array<i64: 1, 64, 128>}]} {
    %c0 = arith.constant 0 : index
    %c0_0 = arith.constant 0 : index
    %c0_1 = arith.constant 0 : index
    %c0_2 = arith.constant 0 : index
    %c0_3 = arith.constant 0 : index
    %0 = vector.load %arg2[%c0, %c0_0, %c0_1, %c0_2, %c0_3] : memref<1x1x1x64x32xbf16, #tpu.memory_space<vmem>>, vector<1x1x1x64x32xbf16>
    %1 = vector.shape_cast %0 : vector<1x1x1x64x32xbf16> to vector<64x32xbf16>
    %c0_4 = arith.constant 0 : index
    %c0_5 = arith.constant 0 : index
    %c0_6 = arith.constant 0 : index
    %2 = vector.load %arg3[%c0_4, %c0_5, %c0_6] : memref<1x32x128xbf16, #tpu.memory_space<vmem>>, vector<1x32x128xbf16>
    %3 = vector.shape_cast %2 : vector<1x32x128xbf16> to vector<32x128xbf16>
    %cst = arith.constant dense<0.000000e+00> : vector<64x128xf32>
    %4 = tpu.matmul %1, %3, %cst {dimension_numbers = #tpu.dot_dimension_numbers<[1], [0], [0], [1], [0, 0, 1, 1], [], []>} : vector<64x32xbf16>, vector<32x128xbf16>, vector<64x128xf32> -> vector<64x128xf32>
    %c0_7 = arith.constant 0 : index
    %c0_8 = arith.constant 0 : index
    %5 = vector.load %arg8[%c0_7, %c0_8] : memref<64x128xf32, #tpu.memory_space<vmem>>, vector<64x128xf32>
    tpu.vector_store %arg8[%c0_7, %c0_8], %4 {strides = array<i32>} : memref<64x128xf32, #tpu.memory_space<vmem>>, vector<64x128xf32>,
    %c0_9 = arith.constant 0 : index
    %c0_10 = arith.constant 0 : index
    %6 = vector.load %arg8[%c0_9, %c0_10] : memref<64x128xf32, #tpu.memory_space<vmem>>, vector<64x128xf32>
    %c0_11 = arith.constant 0 : index
    %c0_12 = arith.constant 0 : index
    %7 = vector.load %arg4[%c0_11, %c0_12] : memref<1x128xf32, #tpu.memory_space<vmem>>, vector<1x128xf32>
    %8 = vector.broadcast %7 : vector<1x128xf32> to vector<64x128xf32>
    %9 = arith.addf %6, %8 : vector<64x128xf32>
    %10 = arith.mulf %9, %9 : vector<64x128xf32>
    %11 = arith.truncf %10 : vector<64x128xf32> to vector<64x128xbf16>
    %c0_13 = arith.constant 0 : index
    %c0_14 = arith.constant 0 : index
    %12 = vector.load %arg5[%c0_13, %c0_14] : memref<128x128xbf16, #tpu.memory_space<vmem>>, vector<128x128xbf16>
    %cst_15 = arith.constant dense<0.000000e+00> : vector<64x128xf32>
    %13 = tpu.matmul %11, %12, %cst_15 {dimension_numbers = #tpu.dot_dimension_numbers<[1], [0], [0], [1], [0, 0, 1, 1], [], []>} : vector<64x128xbf16>, vector<128x128xbf16>, vector<64x128xf32> -> vector<64x128xf32>
    %c0_16 = arith.constant 0 : index
    %c0_17 = arith.constant 0 : index
    %14 = vector.load %arg6[%c0_16, %c0_17] : memref<1x128xf32, #tpu.memory_space<vmem>>, vector<1x128xf32>
    %15 = vector.broadcast %14 : vector<1x128xf32> to vector<64x128xf32>
    %16 = arith.addf %13, %15 : vector<64x128xf32>
    %17 = math.rsqrt %16 : vector<64x128xf32>
    %18 = arith.mulf %9, %17 : vector<64x128xf32>
    %19 = arith.truncf %18 : vector<64x128xf32> to vector<64x128xbf16>
    %c0_18 = arith.constant 0 : index
    %c0_19 = arith.constant 0 : index
    %c0_20 = arith.constant 0 : index
    %20 = vector.load %arg7[%c0_18, %c0_19, %c0_20] : memref<1x64x128xbf16, #tpu.memory_space<vmem>>, vector<1x64x128xbf16>
    %21 = vector.shape_cast %20 : vector<1x64x128xbf16> to vector<64x128xbf16>
    %22 = vector.shape_cast %19 : vector<64x128xbf16> to vector<1x64x128xbf16>
    tpu.vector_store %arg7[%c0_18, %c0_19, %c0_20], %22 {strides = array<i32>} : memref<1x64x128xbf16, #tpu.memory_space<vmem>>, vector<1x64x128xbf16>,
    return
  }
  func.func @transform_0(%arg0: i32, %arg1: i32) -> (i32, i32, i32, i32, i32) {
    %c0_i32 = arith.constant 0 : i32
    %c0_i32_0 = arith.constant 0 : i32
    %c0_i32_1 = arith.constant 0 : i32
    %c0_i32_2 = arith.constant 0 : i32
    return %arg0, %arg1, %c0_i32, %c0_i32_0, %c0_i32_1 : i32, i32, i32, i32, i32
  }
  func.func @transform_1(%arg0: i32, %arg1: i32) -> (i32, i32, i32) {
    %c0_i32 = arith.constant 0 : i32
    %c0_i32_0 = arith.constant 0 : i32
    %c0_i32_1 = arith.constant 0 : i32
    %c0_i32_2 = arith.constant 0 : i32
    return %c0_i32, %c0_i32_0, %c0_i32_1 : i32, i32, i32
  }
  func.func @transform_2(%arg0: i32, %arg1: i32) -> (i32, i32) {
    %c0_i32 = arith.constant 0 : i32
    %c0_i32_0 = arith.constant 0 : i32
    %c0_i32_1 = arith.constant 0 : i32
    return %c0_i32, %c0_i32_0 : i32, i32
  }
  func.func @transform_3(%arg0: i32, %arg1: i32) -> (i32, i32) {
    %c0_i32 = arith.constant 0 : i32
    %c0_i32_0 = arith.constant 0 : i32
    %c0_i32_1 = arith.constant 0 : i32
    return %c0_i32, %c0_i32_0 : i32, i32
  }
  func.func @transform_4(%arg0: i32, %arg1: i32) -> (i32, i32) {
    %c0_i32 = arith.constant 0 : i32
    %c0_i32_0 = arith.constant 0 : i32
    %c0_i32_1 = arith.constant 0 : i32
    return %c0_i32, %c0_i32_0 : i32, i32
  }
  func.func @transform_5(%arg0: i32, %arg1: i32) -> (i32, i32, i32) {
    %c0_i32 = arith.constant 0 : i32
    %c0_i32_0 = arith.constant 0 : i32
    return %arg0, %arg1, %c0_i32 : i32, i32, i32
  }
}

module attributes {stable_mosaic.version = 11 : i64} {
  func.func @_conv_gdn_kernel(%arg0: i32, %arg1: i32, %arg2: memref<1x1x4x86x32xbf16, #tpu.memory_space<vmem>>, %arg3: memref<25x32x128xbf16, #tpu.memory_space<vmem>>, %arg4: memref<1x128xf32, #tpu.memory_space<vmem>>, %arg5: memref<128x128xbf16, #tpu.memory_space<vmem>>, %arg6: memref<1x128xf32, #tpu.memory_space<vmem>>, %arg7: memref<1x64x128xbf16, #tpu.memory_space<vmem>>, %arg8: memref<64x128xf32, #tpu.memory_space<vmem>>) attributes {dimension_semantics = [#tpu.dimension_semantics<parallel>, #tpu.dimension_semantics<parallel>], iteration_bounds = array<i64: 2, 2>, scalar_prefetch = 0 : i64, scratch_operands = 1 : i64, tpu.core_type = #tpu.core_type<tc>, window_params = [{transform_indices = @transform_0, window_bounds = array<i64: 1, 1, 4, 86, 32>}, {pipeline_mode = #tpu.pipeline_mode<synchronous>, transform_indices = @transform_1, window_bounds = array<i64: 25, 32, 128>}, {pipeline_mode = #tpu.pipeline_mode<synchronous>, transform_indices = @transform_2, window_bounds = array<i64: 1, 128>}, {pipeline_mode = #tpu.pipeline_mode<synchronous>, transform_indices = @transform_3, window_bounds = array<i64: 128, 128>}, {pipeline_mode = #tpu.pipeline_mode<synchronous>, transform_indices = @transform_4, window_bounds = array<i64: 1, 128>}, {transform_indices = @transform_5, window_bounds = array<i64: 1, 64, 128>}]} {
    %c0 = arith.constant 0 : index
    %c0_0 = arith.constant 0 : index
    %c0_1 = arith.constant 0 : index
    %c0_2 = arith.constant 0 : index
    %c0_3 = arith.constant 0 : index
    %0 = vector.load %arg2[%c0, %c0_0, %c0_1, %c0_2, %c0_3] : memref<1x1x4x86x32xbf16, #tpu.memory_space<vmem>>, vector<1x1x1x64x32xbf16>
    %1 = vector.shape_cast %0 : vector<1x1x1x64x32xbf16> to vector<64x32xbf16>
    %c0_4 = arith.constant 0 : index
    %c0_5 = arith.constant 0 : index
    %c0_6 = arith.constant 0 : index
    %2 = vector.load %arg3[%c0_4, %c0_5, %c0_6] : memref<25x32x128xbf16, #tpu.memory_space<vmem>>, vector<1x32x128xbf16>
    %3 = vector.shape_cast %2 : vector<1x32x128xbf16> to vector<32x128xbf16>
    %cst = arith.constant dense<0.000000e+00> : vector<64x128xf32>
    %4 = tpu.matmul %1, %3, %cst {dimension_numbers = #tpu.dot_dimension_numbers<[1], [0], [0], [1], [0, 0, 1, 1], [], []>} : vector<64x32xbf16>, vector<32x128xbf16>, vector<64x128xf32> -> vector<64x128xf32>
    %c0_7 = arith.constant 0 : index
    %c0_8 = arith.constant 0 : index
    %5 = vector.load %arg8[%c0_7, %c0_8] : memref<64x128xf32, #tpu.memory_space<vmem>>, vector<64x128xf32>
    tpu.vector_store %arg8[%c0_7, %c0_8], %4 {strides = array<i32>} : memref<64x128xf32, #tpu.memory_space<vmem>>, vector<64x128xf32>,
    %c0_9 = arith.constant 0 : index
    %c0_10 = arith.constant 0 : index
    %c1 = arith.constant 1 : index
    %c0_11 = arith.constant 0 : index
    %c0_12 = arith.constant 0 : index
    %6 = vector.load %arg2[%c0_9, %c0_10, %c1, %c0_11, %c0_12] : memref<1x1x4x86x32xbf16, #tpu.memory_space<vmem>>, vector<1x1x1x64x32xbf16>
    %7 = vector.shape_cast %6 : vector<1x1x1x64x32xbf16> to vector<64x32xbf16>
    %c1_13 = arith.constant 1 : index
    %c0_14 = arith.constant 0 : index
    %c0_15 = arith.constant 0 : index
    %8 = vector.load %arg3[%c1_13, %c0_14, %c0_15] : memref<25x32x128xbf16, #tpu.memory_space<vmem>>, vector<1x32x128xbf16>
    %9 = vector.shape_cast %8 : vector<1x32x128xbf16> to vector<32x128xbf16>
    %cst_16 = arith.constant dense<0.000000e+00> : vector<64x128xf32>
    %10 = tpu.matmul %7, %9, %cst_16 {dimension_numbers = #tpu.dot_dimension_numbers<[1], [0], [0], [1], [0, 0, 1, 1], [], []>} : vector<64x32xbf16>, vector<32x128xbf16>, vector<64x128xf32> -> vector<64x128xf32>
    %c0_17 = arith.constant 0 : index
    %c0_18 = arith.constant 0 : index
    %11 = vector.load %arg8[%c0_17, %c0_18] : memref<64x128xf32, #tpu.memory_space<vmem>>, vector<64x128xf32>
    %12 = arith.addf %11, %10 : vector<64x128xf32>
    %c0_19 = arith.constant 0 : index
    %c0_20 = arith.constant 0 : index
    %13 = vector.load %arg8[%c0_19, %c0_20] : memref<64x128xf32, #tpu.memory_space<vmem>>, vector<64x128xf32>
    tpu.vector_store %arg8[%c0_19, %c0_20], %12 {strides = array<i32>} : memref<64x128xf32, #tpu.memory_space<vmem>>, vector<64x128xf32>,
    %c0_21 = arith.constant 0 : index
    %c0_22 = arith.constant 0 : index
    %c0_23 = arith.constant 0 : index
    %c1_24 = arith.constant 1 : index
    %c0_25 = arith.constant 0 : index
    %14 = vector.load %arg2[%c0_21, %c0_22, %c0_23, %c1_24, %c0_25] : memref<1x1x4x86x32xbf16, #tpu.memory_space<vmem>>, vector<1x1x1x64x32xbf16>
    %15 = vector.shape_cast %14 : vector<1x1x1x64x32xbf16> to vector<64x32xbf16>
    %c2 = arith.constant 2 : index
    %c0_26 = arith.constant 0 : index
    %c0_27 = arith.constant 0 : index
    %16 = vector.load %arg3[%c2, %c0_26, %c0_27] : memref<25x32x128xbf16, #tpu.memory_space<vmem>>, vector<1x32x128xbf16>
    %17 = vector.shape_cast %16 : vector<1x32x128xbf16> to vector<32x128xbf16>
    %cst_28 = arith.constant dense<0.000000e+00> : vector<64x128xf32>
    %18 = tpu.matmul %15, %17, %cst_28 {dimension_numbers = #tpu.dot_dimension_numbers<[1], [0], [0], [1], [0, 0, 1, 1], [], []>} : vector<64x32xbf16>, vector<32x128xbf16>, vector<64x128xf32> -> vector<64x128xf32>
    %c0_29 = arith.constant 0 : index
    %c0_30 = arith.constant 0 : index
    %19 = vector.load %arg8[%c0_29, %c0_30] : memref<64x128xf32, #tpu.memory_space<vmem>>, vector<64x128xf32>
    %20 = arith.addf %19, %18 : vector<64x128xf32>
    %c0_31 = arith.constant 0 : index
    %c0_32 = arith.constant 0 : index
    %21 = vector.load %arg8[%c0_31, %c0_32] : memref<64x128xf32, #tpu.memory_space<vmem>>, vector<64x128xf32>
    tpu.vector_store %arg8[%c0_31, %c0_32], %20 {strides = array<i32>} : memref<64x128xf32, #tpu.memory_space<vmem>>, vector<64x128xf32>,
    %c0_33 = arith.constant 0 : index
    %c0_34 = arith.constant 0 : index
    %c1_35 = arith.constant 1 : index
    %c1_36 = arith.constant 1 : index
    %c0_37 = arith.constant 0 : index
    %22 = vector.load %arg2[%c0_33, %c0_34, %c1_35, %c1_36, %c0_37] : memref<1x1x4x86x32xbf16, #tpu.memory_space<vmem>>, vector<1x1x1x64x32xbf16>
    %23 = vector.shape_cast %22 : vector<1x1x1x64x32xbf16> to vector<64x32xbf16>
    %c3 = arith.constant 3 : index
    %c0_38 = arith.constant 0 : index
    %c0_39 = arith.constant 0 : index
    %24 = vector.load %arg3[%c3, %c0_38, %c0_39] : memref<25x32x128xbf16, #tpu.memory_space<vmem>>, vector<1x32x128xbf16>
    %25 = vector.shape_cast %24 : vector<1x32x128xbf16> to vector<32x128xbf16>
    %cst_40 = arith.constant dense<0.000000e+00> : vector<64x128xf32>
    %26 = tpu.matmul %23, %25, %cst_40 {dimension_numbers = #tpu.dot_dimension_numbers<[1], [0], [0], [1], [0, 0, 1, 1], [], []>} : vector<64x32xbf16>, vector<32x128xbf16>, vector<64x128xf32> -> vector<64x128xf32>
    %c0_41 = arith.constant 0 : index
    %c0_42 = arith.constant 0 : index
    %27 = vector.load %arg8[%c0_41, %c0_42] : memref<64x128xf32, #tpu.memory_space<vmem>>, vector<64x128xf32>
    %28 = arith.addf %27, %26 : vector<64x128xf32>
    %c0_43 = arith.constant 0 : index
    %c0_44 = arith.constant 0 : index
    %29 = vector.load %arg8[%c0_43, %c0_44] : memref<64x128xf32, #tpu.memory_space<vmem>>, vector<64x128xf32>
    tpu.vector_store %arg8[%c0_43, %c0_44], %28 {strides = array<i32>} : memref<64x128xf32, #tpu.memory_space<vmem>>, vector<64x128xf32>,
    %c0_45 = arith.constant 0 : index
    %c0_46 = arith.constant 0 : index
    %c0_47 = arith.constant 0 : index
    %c2_48 = arith.constant 2 : index
    %c0_49 = arith.constant 0 : index
    %30 = vector.load %arg2[%c0_45, %c0_46, %c0_47, %c2_48, %c0_49] : memref<1x1x4x86x32xbf16, #tpu.memory_space<vmem>>, vector<1x1x1x64x32xbf16>
    %31 = vector.shape_cast %30 : vector<1x1x1x64x32xbf16> to vector<64x32xbf16>
    %c4 = arith.constant 4 : index
    %c0_50 = arith.constant 0 : index
    %c0_51 = arith.constant 0 : index
    %32 = vector.load %arg3[%c4, %c0_50, %c0_51] : memref<25x32x128xbf16, #tpu.memory_space<vmem>>, vector<1x32x128xbf16>
    %33 = vector.shape_cast %32 : vector<1x32x128xbf16> to vector<32x128xbf16>
    %cst_52 = arith.constant dense<0.000000e+00> : vector<64x128xf32>
    %34 = tpu.matmul %31, %33, %cst_52 {dimension_numbers = #tpu.dot_dimension_numbers<[1], [0], [0], [1], [0, 0, 1, 1], [], []>} : vector<64x32xbf16>, vector<32x128xbf16>, vector<64x128xf32> -> vector<64x128xf32>
    %c0_53 = arith.constant 0 : index
    %c0_54 = arith.constant 0 : index
    %35 = vector.load %arg8[%c0_53, %c0_54] : memref<64x128xf32, #tpu.memory_space<vmem>>, vector<64x128xf32>
    %36 = arith.addf %35, %34 : vector<64x128xf32>
    %c0_55 = arith.constant 0 : index
    %c0_56 = arith.constant 0 : index
    %37 = vector.load %arg8[%c0_55, %c0_56] : memref<64x128xf32, #tpu.memory_space<vmem>>, vector<64x128xf32>
    tpu.vector_store %arg8[%c0_55, %c0_56], %36 {strides = array<i32>} : memref<64x128xf32, #tpu.memory_space<vmem>>, vector<64x128xf32>,
    %c0_57 = arith.constant 0 : index
    %c0_58 = arith.constant 0 : index
    %c2_59 = arith.constant 2 : index
    %c0_60 = arith.constant 0 : index
    %c0_61 = arith.constant 0 : index
    %38 = vector.load %arg2[%c0_57, %c0_58, %c2_59, %c0_60, %c0_61] : memref<1x1x4x86x32xbf16, #tpu.memory_space<vmem>>, vector<1x1x1x64x32xbf16>
    %39 = vector.shape_cast %38 : vector<1x1x1x64x32xbf16> to vector<64x32xbf16>
    %c5 = arith.constant 5 : index
    %c0_62 = arith.constant 0 : index
    %c0_63 = arith.constant 0 : index
    %40 = vector.load %arg3[%c5, %c0_62, %c0_63] : memref<25x32x128xbf16, #tpu.memory_space<vmem>>, vector<1x32x128xbf16>
    %41 = vector.shape_cast %40 : vector<1x32x128xbf16> to vector<32x128xbf16>
    %cst_64 = arith.constant dense<0.000000e+00> : vector<64x128xf32>
    %42 = tpu.matmul %39, %41, %cst_64 {dimension_numbers = #tpu.dot_dimension_numbers<[1], [0], [0], [1], [0, 0, 1, 1], [], []>} : vector<64x32xbf16>, vector<32x128xbf16>, vector<64x128xf32> -> vector<64x128xf32>
    %c0_65 = arith.constant 0 : index
    %c0_66 = arith.constant 0 : index
    %43 = vector.load %arg8[%c0_65, %c0_66] : memref<64x128xf32, #tpu.memory_space<vmem>>, vector<64x128xf32>
    %44 = arith.addf %43, %42 : vector<64x128xf32>
    %c0_67 = arith.constant 0 : index
    %c0_68 = arith.constant 0 : index
    %45 = vector.load %arg8[%c0_67, %c0_68] : memref<64x128xf32, #tpu.memory_space<vmem>>, vector<64x128xf32>
    tpu.vector_store %arg8[%c0_67, %c0_68], %44 {strides = array<i32>} : memref<64x128xf32, #tpu.memory_space<vmem>>, vector<64x128xf32>,
    %c0_69 = arith.constant 0 : index
    %c0_70 = arith.constant 0 : index
    %c3_71 = arith.constant 3 : index
    %c0_72 = arith.constant 0 : index
    %c0_73 = arith.constant 0 : index
    %46 = vector.load %arg2[%c0_69, %c0_70, %c3_71, %c0_72, %c0_73] : memref<1x1x4x86x32xbf16, #tpu.memory_space<vmem>>, vector<1x1x1x64x32xbf16>
    %47 = vector.shape_cast %46 : vector<1x1x1x64x32xbf16> to vector<64x32xbf16>
    %c6 = arith.constant 6 : index
    %c0_74 = arith.constant 0 : index
    %c0_75 = arith.constant 0 : index
    %48 = vector.load %arg3[%c6, %c0_74, %c0_75] : memref<25x32x128xbf16, #tpu.memory_space<vmem>>, vector<1x32x128xbf16>
    %49 = vector.shape_cast %48 : vector<1x32x128xbf16> to vector<32x128xbf16>
    %cst_76 = arith.constant dense<0.000000e+00> : vector<64x128xf32>
    %50 = tpu.matmul %47, %49, %cst_76 {dimension_numbers = #tpu.dot_dimension_numbers<[1], [0], [0], [1], [0, 0, 1, 1], [], []>} : vector<64x32xbf16>, vector<32x128xbf16>, vector<64x128xf32> -> vector<64x128xf32>
    %c0_77 = arith.constant 0 : index
    %c0_78 = arith.constant 0 : index
    %51 = vector.load %arg8[%c0_77, %c0_78] : memref<64x128xf32, #tpu.memory_space<vmem>>, vector<64x128xf32>
    %52 = arith.addf %51, %50 : vector<64x128xf32>
    %c0_79 = arith.constant 0 : index
    %c0_80 = arith.constant 0 : index
    %53 = vector.load %arg8[%c0_79, %c0_80] : memref<64x128xf32, #tpu.memory_space<vmem>>, vector<64x128xf32>
    tpu.vector_store %arg8[%c0_79, %c0_80], %52 {strides = array<i32>} : memref<64x128xf32, #tpu.memory_space<vmem>>, vector<64x128xf32>,
    %c0_81 = arith.constant 0 : index
    %c0_82 = arith.constant 0 : index
    %c2_83 = arith.constant 2 : index
    %c1_84 = arith.constant 1 : index
    %c0_85 = arith.constant 0 : index
    %54 = vector.load %arg2[%c0_81, %c0_82, %c2_83, %c1_84, %c0_85] : memref<1x1x4x86x32xbf16, #tpu.memory_space<vmem>>, vector<1x1x1x64x32xbf16>
    %55 = vector.shape_cast %54 : vector<1x1x1x64x32xbf16> to vector<64x32xbf16>
    %c7 = arith.constant 7 : index
    %c0_86 = arith.constant 0 : index
    %c0_87 = arith.constant 0 : index
    %56 = vector.load %arg3[%c7, %c0_86, %c0_87] : memref<25x32x128xbf16, #tpu.memory_space<vmem>>, vector<1x32x128xbf16>
    %57 = vector.shape_cast %56 : vector<1x32x128xbf16> to vector<32x128xbf16>
    %cst_88 = arith.constant dense<0.000000e+00> : vector<64x128xf32>
    %58 = tpu.matmul %55, %57, %cst_88 {dimension_numbers = #tpu.dot_dimension_numbers<[1], [0], [0], [1], [0, 0, 1, 1], [], []>} : vector<64x32xbf16>, vector<32x128xbf16>, vector<64x128xf32> -> vector<64x128xf32>
    %c0_89 = arith.constant 0 : index
    %c0_90 = arith.constant 0 : index
    %59 = vector.load %arg8[%c0_89, %c0_90] : memref<64x128xf32, #tpu.memory_space<vmem>>, vector<64x128xf32>
    %60 = arith.addf %59, %58 : vector<64x128xf32>
    %c0_91 = arith.constant 0 : index
    %c0_92 = arith.constant 0 : index
    %61 = vector.load %arg8[%c0_91, %c0_92] : memref<64x128xf32, #tpu.memory_space<vmem>>, vector<64x128xf32>
    tpu.vector_store %arg8[%c0_91, %c0_92], %60 {strides = array<i32>} : memref<64x128xf32, #tpu.memory_space<vmem>>, vector<64x128xf32>,
    %c0_93 = arith.constant 0 : index
    %c0_94 = arith.constant 0 : index
    %c3_95 = arith.constant 3 : index
    %c1_96 = arith.constant 1 : index
    %c0_97 = arith.constant 0 : index
    %62 = vector.load %arg2[%c0_93, %c0_94, %c3_95, %c1_96, %c0_97] : memref<1x1x4x86x32xbf16, #tpu.memory_space<vmem>>, vector<1x1x1x64x32xbf16>
    %63 = vector.shape_cast %62 : vector<1x1x1x64x32xbf16> to vector<64x32xbf16>
    %c8 = arith.constant 8 : index
    %c0_98 = arith.constant 0 : index
    %c0_99 = arith.constant 0 : index
    %64 = vector.load %arg3[%c8, %c0_98, %c0_99] : memref<25x32x128xbf16, #tpu.memory_space<vmem>>, vector<1x32x128xbf16>
    %65 = vector.shape_cast %64 : vector<1x32x128xbf16> to vector<32x128xbf16>
    %cst_100 = arith.constant dense<0.000000e+00> : vector<64x128xf32>
    %66 = tpu.matmul %63, %65, %cst_100 {dimension_numbers = #tpu.dot_dimension_numbers<[1], [0], [0], [1], [0, 0, 1, 1], [], []>} : vector<64x32xbf16>, vector<32x128xbf16>, vector<64x128xf32> -> vector<64x128xf32>
    %c0_101 = arith.constant 0 : index
    %c0_102 = arith.constant 0 : index
    %67 = vector.load %arg8[%c0_101, %c0_102] : memref<64x128xf32, #tpu.memory_space<vmem>>, vector<64x128xf32>
    %68 = arith.addf %67, %66 : vector<64x128xf32>
    %c0_103 = arith.constant 0 : index
    %c0_104 = arith.constant 0 : index
    %69 = vector.load %arg8[%c0_103, %c0_104] : memref<64x128xf32, #tpu.memory_space<vmem>>, vector<64x128xf32>
    tpu.vector_store %arg8[%c0_103, %c0_104], %68 {strides = array<i32>} : memref<64x128xf32, #tpu.memory_space<vmem>>, vector<64x128xf32>,
    %c0_105 = arith.constant 0 : index
    %c0_106 = arith.constant 0 : index
    %c2_107 = arith.constant 2 : index
    %c2_108 = arith.constant 2 : index
    %c0_109 = arith.constant 0 : index
    %70 = vector.load %arg2[%c0_105, %c0_106, %c2_107, %c2_108, %c0_109] : memref<1x1x4x86x32xbf16, #tpu.memory_space<vmem>>, vector<1x1x1x64x32xbf16>
    %71 = vector.shape_cast %70 : vector<1x1x1x64x32xbf16> to vector<64x32xbf16>
    %c9 = arith.constant 9 : index
    %c0_110 = arith.constant 0 : index
    %c0_111 = arith.constant 0 : index
    %72 = vector.load %arg3[%c9, %c0_110, %c0_111] : memref<25x32x128xbf16, #tpu.memory_space<vmem>>, vector<1x32x128xbf16>
    %73 = vector.shape_cast %72 : vector<1x32x128xbf16> to vector<32x128xbf16>
    %cst_112 = arith.constant dense<0.000000e+00> : vector<64x128xf32>
    %74 = tpu.matmul %71, %73, %cst_112 {dimension_numbers = #tpu.dot_dimension_numbers<[1], [0], [0], [1], [0, 0, 1, 1], [], []>} : vector<64x32xbf16>, vector<32x128xbf16>, vector<64x128xf32> -> vector<64x128xf32>
    %c0_113 = arith.constant 0 : index
    %c0_114 = arith.constant 0 : index
    %75 = vector.load %arg8[%c0_113, %c0_114] : memref<64x128xf32, #tpu.memory_space<vmem>>, vector<64x128xf32>
    %76 = arith.addf %75, %74 : vector<64x128xf32>
    %c0_115 = arith.constant 0 : index
    %c0_116 = arith.constant 0 : index
    %77 = vector.load %arg8[%c0_115, %c0_116] : memref<64x128xf32, #tpu.memory_space<vmem>>, vector<64x128xf32>
    tpu.vector_store %arg8[%c0_115, %c0_116], %76 {strides = array<i32>} : memref<64x128xf32, #tpu.memory_space<vmem>>, vector<64x128xf32>,
    %c0_117 = arith.constant 0 : index
    %c0_118 = arith.constant 0 : index
    %c0_119 = arith.constant 0 : index
    %c10 = arith.constant 10 : index
    %c0_120 = arith.constant 0 : index
    %78 = vector.load %arg2[%c0_117, %c0_118, %c0_119, %c10, %c0_120] : memref<1x1x4x86x32xbf16, #tpu.memory_space<vmem>>, vector<1x1x1x64x32xbf16>
    %79 = vector.shape_cast %78 : vector<1x1x1x64x32xbf16> to vector<64x32xbf16>
    %c10_121 = arith.constant 10 : index
    %c0_122 = arith.constant 0 : index
    %c0_123 = arith.constant 0 : index
    %80 = vector.load %arg3[%c10_121, %c0_122, %c0_123] : memref<25x32x128xbf16, #tpu.memory_space<vmem>>, vector<1x32x128xbf16>
    %81 = vector.shape_cast %80 : vector<1x32x128xbf16> to vector<32x128xbf16>
    %cst_124 = arith.constant dense<0.000000e+00> : vector<64x128xf32>
    %82 = tpu.matmul %79, %81, %cst_124 {dimension_numbers = #tpu.dot_dimension_numbers<[1], [0], [0], [1], [0, 0, 1, 1], [], []>} : vector<64x32xbf16>, vector<32x128xbf16>, vector<64x128xf32> -> vector<64x128xf32>
    %c0_125 = arith.constant 0 : index
    %c0_126 = arith.constant 0 : index
    %83 = vector.load %arg8[%c0_125, %c0_126] : memref<64x128xf32, #tpu.memory_space<vmem>>, vector<64x128xf32>
    %84 = arith.addf %83, %82 : vector<64x128xf32>
    %c0_127 = arith.constant 0 : index
    %c0_128 = arith.constant 0 : index
    %85 = vector.load %arg8[%c0_127, %c0_128] : memref<64x128xf32, #tpu.memory_space<vmem>>, vector<64x128xf32>
    tpu.vector_store %arg8[%c0_127, %c0_128], %84 {strides = array<i32>} : memref<64x128xf32, #tpu.memory_space<vmem>>, vector<64x128xf32>,
    %c0_129 = arith.constant 0 : index
    %c0_130 = arith.constant 0 : index
    %c1_131 = arith.constant 1 : index
    %c10_132 = arith.constant 10 : index
    %c0_133 = arith.constant 0 : index
    %86 = vector.load %arg2[%c0_129, %c0_130, %c1_131, %c10_132, %c0_133] : memref<1x1x4x86x32xbf16, #tpu.memory_space<vmem>>, vector<1x1x1x64x32xbf16>
    %87 = vector.shape_cast %86 : vector<1x1x1x64x32xbf16> to vector<64x32xbf16>
    %c11 = arith.constant 11 : index
    %c0_134 = arith.constant 0 : index
    %c0_135 = arith.constant 0 : index
    %88 = vector.load %arg3[%c11, %c0_134, %c0_135] : memref<25x32x128xbf16, #tpu.memory_space<vmem>>, vector<1x32x128xbf16>
    %89 = vector.shape_cast %88 : vector<1x32x128xbf16> to vector<32x128xbf16>
    %cst_136 = arith.constant dense<0.000000e+00> : vector<64x128xf32>
    %90 = tpu.matmul %87, %89, %cst_136 {dimension_numbers = #tpu.dot_dimension_numbers<[1], [0], [0], [1], [0, 0, 1, 1], [], []>} : vector<64x32xbf16>, vector<32x128xbf16>, vector<64x128xf32> -> vector<64x128xf32>
    %c0_137 = arith.constant 0 : index
    %c0_138 = arith.constant 0 : index
    %91 = vector.load %arg8[%c0_137, %c0_138] : memref<64x128xf32, #tpu.memory_space<vmem>>, vector<64x128xf32>
    %92 = arith.addf %91, %90 : vector<64x128xf32>
    %c0_139 = arith.constant 0 : index
    %c0_140 = arith.constant 0 : index
    %93 = vector.load %arg8[%c0_139, %c0_140] : memref<64x128xf32, #tpu.memory_space<vmem>>, vector<64x128xf32>
    tpu.vector_store %arg8[%c0_139, %c0_140], %92 {strides = array<i32>} : memref<64x128xf32, #tpu.memory_space<vmem>>, vector<64x128xf32>,
    %c0_141 = arith.constant 0 : index
    %c0_142 = arith.constant 0 : index
    %c0_143 = arith.constant 0 : index
    %c11_144 = arith.constant 11 : index
    %c0_145 = arith.constant 0 : index
    %94 = vector.load %arg2[%c0_141, %c0_142, %c0_143, %c11_144, %c0_145] : memref<1x1x4x86x32xbf16, #tpu.memory_space<vmem>>, vector<1x1x1x64x32xbf16>
    %95 = vector.shape_cast %94 : vector<1x1x1x64x32xbf16> to vector<64x32xbf16>
    %c12 = arith.constant 12 : index
    %c0_146 = arith.constant 0 : index
    %c0_147 = arith.constant 0 : index
    %96 = vector.load %arg3[%c12, %c0_146, %c0_147] : memref<25x32x128xbf16, #tpu.memory_space<vmem>>, vector<1x32x128xbf16>
    %97 = vector.shape_cast %96 : vector<1x32x128xbf16> to vector<32x128xbf16>
    %cst_148 = arith.constant dense<0.000000e+00> : vector<64x128xf32>
    %98 = tpu.matmul %95, %97, %cst_148 {dimension_numbers = #tpu.dot_dimension_numbers<[1], [0], [0], [1], [0, 0, 1, 1], [], []>} : vector<64x32xbf16>, vector<32x128xbf16>, vector<64x128xf32> -> vector<64x128xf32>
    %c0_149 = arith.constant 0 : index
    %c0_150 = arith.constant 0 : index
    %99 = vector.load %arg8[%c0_149, %c0_150] : memref<64x128xf32, #tpu.memory_space<vmem>>, vector<64x128xf32>
    %100 = arith.addf %99, %98 : vector<64x128xf32>
    %c0_151 = arith.constant 0 : index
    %c0_152 = arith.constant 0 : index
    %101 = vector.load %arg8[%c0_151, %c0_152] : memref<64x128xf32, #tpu.memory_space<vmem>>, vector<64x128xf32>
    tpu.vector_store %arg8[%c0_151, %c0_152], %100 {strides = array<i32>} : memref<64x128xf32, #tpu.memory_space<vmem>>, vector<64x128xf32>,
    %c0_153 = arith.constant 0 : index
    %c0_154 = arith.constant 0 : index
    %c1_155 = arith.constant 1 : index
    %c11_156 = arith.constant 11 : index
    %c0_157 = arith.constant 0 : index
    %102 = vector.load %arg2[%c0_153, %c0_154, %c1_155, %c11_156, %c0_157] : memref<1x1x4x86x32xbf16, #tpu.memory_space<vmem>>, vector<1x1x1x64x32xbf16>
    %103 = vector.shape_cast %102 : vector<1x1x1x64x32xbf16> to vector<64x32xbf16>
    %c13 = arith.constant 13 : index
    %c0_158 = arith.constant 0 : index
    %c0_159 = arith.constant 0 : index
    %104 = vector.load %arg3[%c13, %c0_158, %c0_159] : memref<25x32x128xbf16, #tpu.memory_space<vmem>>, vector<1x32x128xbf16>
    %105 = vector.shape_cast %104 : vector<1x32x128xbf16> to vector<32x128xbf16>
    %cst_160 = arith.constant dense<0.000000e+00> : vector<64x128xf32>
    %106 = tpu.matmul %103, %105, %cst_160 {dimension_numbers = #tpu.dot_dimension_numbers<[1], [0], [0], [1], [0, 0, 1, 1], [], []>} : vector<64x32xbf16>, vector<32x128xbf16>, vector<64x128xf32> -> vector<64x128xf32>
    %c0_161 = arith.constant 0 : index
    %c0_162 = arith.constant 0 : index
    %107 = vector.load %arg8[%c0_161, %c0_162] : memref<64x128xf32, #tpu.memory_space<vmem>>, vector<64x128xf32>
    %108 = arith.addf %107, %106 : vector<64x128xf32>
    %c0_163 = arith.constant 0 : index
    %c0_164 = arith.constant 0 : index
    %109 = vector.load %arg8[%c0_163, %c0_164] : memref<64x128xf32, #tpu.memory_space<vmem>>, vector<64x128xf32>
    tpu.vector_store %arg8[%c0_163, %c0_164], %108 {strides = array<i32>} : memref<64x128xf32, #tpu.memory_space<vmem>>, vector<64x128xf32>,
    %c0_165 = arith.constant 0 : index
    %c0_166 = arith.constant 0 : index
    %c0_167 = arith.constant 0 : index
    %c12_168 = arith.constant 12 : index
    %c0_169 = arith.constant 0 : index
    %110 = vector.load %arg2[%c0_165, %c0_166, %c0_167, %c12_168, %c0_169] : memref<1x1x4x86x32xbf16, #tpu.memory_space<vmem>>, vector<1x1x1x64x32xbf16>
    %111 = vector.shape_cast %110 : vector<1x1x1x64x32xbf16> to vector<64x32xbf16>
    %c14 = arith.constant 14 : index
    %c0_170 = arith.constant 0 : index
    %c0_171 = arith.constant 0 : index
    %112 = vector.load %arg3[%c14, %c0_170, %c0_171] : memref<25x32x128xbf16, #tpu.memory_space<vmem>>, vector<1x32x128xbf16>
    %113 = vector.shape_cast %112 : vector<1x32x128xbf16> to vector<32x128xbf16>
    %cst_172 = arith.constant dense<0.000000e+00> : vector<64x128xf32>
    %114 = tpu.matmul %111, %113, %cst_172 {dimension_numbers = #tpu.dot_dimension_numbers<[1], [0], [0], [1], [0, 0, 1, 1], [], []>} : vector<64x32xbf16>, vector<32x128xbf16>, vector<64x128xf32> -> vector<64x128xf32>
    %c0_173 = arith.constant 0 : index
    %c0_174 = arith.constant 0 : index
    %115 = vector.load %arg8[%c0_173, %c0_174] : memref<64x128xf32, #tpu.memory_space<vmem>>, vector<64x128xf32>
    %116 = arith.addf %115, %114 : vector<64x128xf32>
    %c0_175 = arith.constant 0 : index
    %c0_176 = arith.constant 0 : index
    %117 = vector.load %arg8[%c0_175, %c0_176] : memref<64x128xf32, #tpu.memory_space<vmem>>, vector<64x128xf32>
    tpu.vector_store %arg8[%c0_175, %c0_176], %116 {strides = array<i32>} : memref<64x128xf32, #tpu.memory_space<vmem>>, vector<64x128xf32>,
    %c0_177 = arith.constant 0 : index
    %c0_178 = arith.constant 0 : index
    %c2_179 = arith.constant 2 : index
    %c10_180 = arith.constant 10 : index
    %c0_181 = arith.constant 0 : index
    %118 = vector.load %arg2[%c0_177, %c0_178, %c2_179, %c10_180, %c0_181] : memref<1x1x4x86x32xbf16, #tpu.memory_space<vmem>>, vector<1x1x1x64x32xbf16>
    %119 = vector.shape_cast %118 : vector<1x1x1x64x32xbf16> to vector<64x32xbf16>
    %c15 = arith.constant 15 : index
    %c0_182 = arith.constant 0 : index
    %c0_183 = arith.constant 0 : index
    %120 = vector.load %arg3[%c15, %c0_182, %c0_183] : memref<25x32x128xbf16, #tpu.memory_space<vmem>>, vector<1x32x128xbf16>
    %121 = vector.shape_cast %120 : vector<1x32x128xbf16> to vector<32x128xbf16>
    %cst_184 = arith.constant dense<0.000000e+00> : vector<64x128xf32>
    %122 = tpu.matmul %119, %121, %cst_184 {dimension_numbers = #tpu.dot_dimension_numbers<[1], [0], [0], [1], [0, 0, 1, 1], [], []>} : vector<64x32xbf16>, vector<32x128xbf16>, vector<64x128xf32> -> vector<64x128xf32>
    %c0_185 = arith.constant 0 : index
    %c0_186 = arith.constant 0 : index
    %123 = vector.load %arg8[%c0_185, %c0_186] : memref<64x128xf32, #tpu.memory_space<vmem>>, vector<64x128xf32>
    %124 = arith.addf %123, %122 : vector<64x128xf32>
    %c0_187 = arith.constant 0 : index
    %c0_188 = arith.constant 0 : index
    %125 = vector.load %arg8[%c0_187, %c0_188] : memref<64x128xf32, #tpu.memory_space<vmem>>, vector<64x128xf32>
    tpu.vector_store %arg8[%c0_187, %c0_188], %124 {strides = array<i32>} : memref<64x128xf32, #tpu.memory_space<vmem>>, vector<64x128xf32>,
    %c0_189 = arith.constant 0 : index
    %c0_190 = arith.constant 0 : index
    %c3_191 = arith.constant 3 : index
    %c10_192 = arith.constant 10 : index
    %c0_193 = arith.constant 0 : index
    %126 = vector.load %arg2[%c0_189, %c0_190, %c3_191, %c10_192, %c0_193] : memref<1x1x4x86x32xbf16, #tpu.memory_space<vmem>>, vector<1x1x1x64x32xbf16>
    %127 = vector.shape_cast %126 : vector<1x1x1x64x32xbf16> to vector<64x32xbf16>
    %c16 = arith.constant 16 : index
    %c0_194 = arith.constant 0 : index
    %c0_195 = arith.constant 0 : index
    %128 = vector.load %arg3[%c16, %c0_194, %c0_195] : memref<25x32x128xbf16, #tpu.memory_space<vmem>>, vector<1x32x128xbf16>
    %129 = vector.shape_cast %128 : vector<1x32x128xbf16> to vector<32x128xbf16>
    %cst_196 = arith.constant dense<0.000000e+00> : vector<64x128xf32>
    %130 = tpu.matmul %127, %129, %cst_196 {dimension_numbers = #tpu.dot_dimension_numbers<[1], [0], [0], [1], [0, 0, 1, 1], [], []>} : vector<64x32xbf16>, vector<32x128xbf16>, vector<64x128xf32> -> vector<64x128xf32>
    %c0_197 = arith.constant 0 : index
    %c0_198 = arith.constant 0 : index
    %131 = vector.load %arg8[%c0_197, %c0_198] : memref<64x128xf32, #tpu.memory_space<vmem>>, vector<64x128xf32>
    %132 = arith.addf %131, %130 : vector<64x128xf32>
    %c0_199 = arith.constant 0 : index
    %c0_200 = arith.constant 0 : index
    %133 = vector.load %arg8[%c0_199, %c0_200] : memref<64x128xf32, #tpu.memory_space<vmem>>, vector<64x128xf32>
    tpu.vector_store %arg8[%c0_199, %c0_200], %132 {strides = array<i32>} : memref<64x128xf32, #tpu.memory_space<vmem>>, vector<64x128xf32>,
    %c0_201 = arith.constant 0 : index
    %c0_202 = arith.constant 0 : index
    %c2_203 = arith.constant 2 : index
    %c11_204 = arith.constant 11 : index
    %c0_205 = arith.constant 0 : index
    %134 = vector.load %arg2[%c0_201, %c0_202, %c2_203, %c11_204, %c0_205] : memref<1x1x4x86x32xbf16, #tpu.memory_space<vmem>>, vector<1x1x1x64x32xbf16>
    %135 = vector.shape_cast %134 : vector<1x1x1x64x32xbf16> to vector<64x32xbf16>
    %c17 = arith.constant 17 : index
    %c0_206 = arith.constant 0 : index
    %c0_207 = arith.constant 0 : index
    %136 = vector.load %arg3[%c17, %c0_206, %c0_207] : memref<25x32x128xbf16, #tpu.memory_space<vmem>>, vector<1x32x128xbf16>
    %137 = vector.shape_cast %136 : vector<1x32x128xbf16> to vector<32x128xbf16>
    %cst_208 = arith.constant dense<0.000000e+00> : vector<64x128xf32>
    %138 = tpu.matmul %135, %137, %cst_208 {dimension_numbers = #tpu.dot_dimension_numbers<[1], [0], [0], [1], [0, 0, 1, 1], [], []>} : vector<64x32xbf16>, vector<32x128xbf16>, vector<64x128xf32> -> vector<64x128xf32>
    %c0_209 = arith.constant 0 : index
    %c0_210 = arith.constant 0 : index
    %139 = vector.load %arg8[%c0_209, %c0_210] : memref<64x128xf32, #tpu.memory_space<vmem>>, vector<64x128xf32>
    %140 = arith.addf %139, %138 : vector<64x128xf32>
    %c0_211 = arith.constant 0 : index
    %c0_212 = arith.constant 0 : index
    %141 = vector.load %arg8[%c0_211, %c0_212] : memref<64x128xf32, #tpu.memory_space<vmem>>, vector<64x128xf32>
    tpu.vector_store %arg8[%c0_211, %c0_212], %140 {strides = array<i32>} : memref<64x128xf32, #tpu.memory_space<vmem>>, vector<64x128xf32>,
    %c0_213 = arith.constant 0 : index
    %c0_214 = arith.constant 0 : index
    %c3_215 = arith.constant 3 : index
    %c11_216 = arith.constant 11 : index
    %c0_217 = arith.constant 0 : index
    %142 = vector.load %arg2[%c0_213, %c0_214, %c3_215, %c11_216, %c0_217] : memref<1x1x4x86x32xbf16, #tpu.memory_space<vmem>>, vector<1x1x1x64x32xbf16>
    %143 = vector.shape_cast %142 : vector<1x1x1x64x32xbf16> to vector<64x32xbf16>
    %c18 = arith.constant 18 : index
    %c0_218 = arith.constant 0 : index
    %c0_219 = arith.constant 0 : index
    %144 = vector.load %arg3[%c18, %c0_218, %c0_219] : memref<25x32x128xbf16, #tpu.memory_space<vmem>>, vector<1x32x128xbf16>
    %145 = vector.shape_cast %144 : vector<1x32x128xbf16> to vector<32x128xbf16>
    %cst_220 = arith.constant dense<0.000000e+00> : vector<64x128xf32>
    %146 = tpu.matmul %143, %145, %cst_220 {dimension_numbers = #tpu.dot_dimension_numbers<[1], [0], [0], [1], [0, 0, 1, 1], [], []>} : vector<64x32xbf16>, vector<32x128xbf16>, vector<64x128xf32> -> vector<64x128xf32>
    %c0_221 = arith.constant 0 : index
    %c0_222 = arith.constant 0 : index
    %147 = vector.load %arg8[%c0_221, %c0_222] : memref<64x128xf32, #tpu.memory_space<vmem>>, vector<64x128xf32>
    %148 = arith.addf %147, %146 : vector<64x128xf32>
    %c0_223 = arith.constant 0 : index
    %c0_224 = arith.constant 0 : index
    %149 = vector.load %arg8[%c0_223, %c0_224] : memref<64x128xf32, #tpu.memory_space<vmem>>, vector<64x128xf32>
    tpu.vector_store %arg8[%c0_223, %c0_224], %148 {strides = array<i32>} : memref<64x128xf32, #tpu.memory_space<vmem>>, vector<64x128xf32>,
    %c0_225 = arith.constant 0 : index
    %c0_226 = arith.constant 0 : index
    %c2_227 = arith.constant 2 : index
    %c12_228 = arith.constant 12 : index
    %c0_229 = arith.constant 0 : index
    %150 = vector.load %arg2[%c0_225, %c0_226, %c2_227, %c12_228, %c0_229] : memref<1x1x4x86x32xbf16, #tpu.memory_space<vmem>>, vector<1x1x1x64x32xbf16>
    %151 = vector.shape_cast %150 : vector<1x1x1x64x32xbf16> to vector<64x32xbf16>
    %c19 = arith.constant 19 : index
    %c0_230 = arith.constant 0 : index
    %c0_231 = arith.constant 0 : index
    %152 = vector.load %arg3[%c19, %c0_230, %c0_231] : memref<25x32x128xbf16, #tpu.memory_space<vmem>>, vector<1x32x128xbf16>
    %153 = vector.shape_cast %152 : vector<1x32x128xbf16> to vector<32x128xbf16>
    %cst_232 = arith.constant dense<0.000000e+00> : vector<64x128xf32>
    %154 = tpu.matmul %151, %153, %cst_232 {dimension_numbers = #tpu.dot_dimension_numbers<[1], [0], [0], [1], [0, 0, 1, 1], [], []>} : vector<64x32xbf16>, vector<32x128xbf16>, vector<64x128xf32> -> vector<64x128xf32>
    %c0_233 = arith.constant 0 : index
    %c0_234 = arith.constant 0 : index
    %155 = vector.load %arg8[%c0_233, %c0_234] : memref<64x128xf32, #tpu.memory_space<vmem>>, vector<64x128xf32>
    %156 = arith.addf %155, %154 : vector<64x128xf32>
    %c0_235 = arith.constant 0 : index
    %c0_236 = arith.constant 0 : index
    %157 = vector.load %arg8[%c0_235, %c0_236] : memref<64x128xf32, #tpu.memory_space<vmem>>, vector<64x128xf32>
    tpu.vector_store %arg8[%c0_235, %c0_236], %156 {strides = array<i32>} : memref<64x128xf32, #tpu.memory_space<vmem>>, vector<64x128xf32>,
    %c0_237 = arith.constant 0 : index
    %c0_238 = arith.constant 0 : index
    %c0_239 = arith.constant 0 : index
    %c20 = arith.constant 20 : index
    %c0_240 = arith.constant 0 : index
    %158 = vector.load %arg2[%c0_237, %c0_238, %c0_239, %c20, %c0_240] : memref<1x1x4x86x32xbf16, #tpu.memory_space<vmem>>, vector<1x1x1x64x32xbf16>
    %159 = vector.shape_cast %158 : vector<1x1x1x64x32xbf16> to vector<64x32xbf16>
    %c20_241 = arith.constant 20 : index
    %c0_242 = arith.constant 0 : index
    %c0_243 = arith.constant 0 : index
    %160 = vector.load %arg3[%c20_241, %c0_242, %c0_243] : memref<25x32x128xbf16, #tpu.memory_space<vmem>>, vector<1x32x128xbf16>
    %161 = vector.shape_cast %160 : vector<1x32x128xbf16> to vector<32x128xbf16>
    %cst_244 = arith.constant dense<0.000000e+00> : vector<64x128xf32>
    %162 = tpu.matmul %159, %161, %cst_244 {dimension_numbers = #tpu.dot_dimension_numbers<[1], [0], [0], [1], [0, 0, 1, 1], [], []>} : vector<64x32xbf16>, vector<32x128xbf16>, vector<64x128xf32> -> vector<64x128xf32>
    %c0_245 = arith.constant 0 : index
    %c0_246 = arith.constant 0 : index
    %163 = vector.load %arg8[%c0_245, %c0_246] : memref<64x128xf32, #tpu.memory_space<vmem>>, vector<64x128xf32>
    %164 = arith.addf %163, %162 : vector<64x128xf32>
    %c0_247 = arith.constant 0 : index
    %c0_248 = arith.constant 0 : index
    %165 = vector.load %arg8[%c0_247, %c0_248] : memref<64x128xf32, #tpu.memory_space<vmem>>, vector<64x128xf32>
    tpu.vector_store %arg8[%c0_247, %c0_248], %164 {strides = array<i32>} : memref<64x128xf32, #tpu.memory_space<vmem>>, vector<64x128xf32>,
    %c0_249 = arith.constant 0 : index
    %c0_250 = arith.constant 0 : index
    %c1_251 = arith.constant 1 : index
    %c20_252 = arith.constant 20 : index
    %c0_253 = arith.constant 0 : index
    %166 = vector.load %arg2[%c0_249, %c0_250, %c1_251, %c20_252, %c0_253] : memref<1x1x4x86x32xbf16, #tpu.memory_space<vmem>>, vector<1x1x1x64x32xbf16>
    %167 = vector.shape_cast %166 : vector<1x1x1x64x32xbf16> to vector<64x32xbf16>
    %c21 = arith.constant 21 : index
    %c0_254 = arith.constant 0 : index
    %c0_255 = arith.constant 0 : index
    %168 = vector.load %arg3[%c21, %c0_254, %c0_255] : memref<25x32x128xbf16, #tpu.memory_space<vmem>>, vector<1x32x128xbf16>
    %169 = vector.shape_cast %168 : vector<1x32x128xbf16> to vector<32x128xbf16>
    %cst_256 = arith.constant dense<0.000000e+00> : vector<64x128xf32>
    %170 = tpu.matmul %167, %169, %cst_256 {dimension_numbers = #tpu.dot_dimension_numbers<[1], [0], [0], [1], [0, 0, 1, 1], [], []>} : vector<64x32xbf16>, vector<32x128xbf16>, vector<64x128xf32> -> vector<64x128xf32>
    %c0_257 = arith.constant 0 : index
    %c0_258 = arith.constant 0 : index
    %171 = vector.load %arg8[%c0_257, %c0_258] : memref<64x128xf32, #tpu.memory_space<vmem>>, vector<64x128xf32>
    %172 = arith.addf %171, %170 : vector<64x128xf32>
    %c0_259 = arith.constant 0 : index
    %c0_260 = arith.constant 0 : index
    %173 = vector.load %arg8[%c0_259, %c0_260] : memref<64x128xf32, #tpu.memory_space<vmem>>, vector<64x128xf32>
    tpu.vector_store %arg8[%c0_259, %c0_260], %172 {strides = array<i32>} : memref<64x128xf32, #tpu.memory_space<vmem>>, vector<64x128xf32>,
    %c0_261 = arith.constant 0 : index
    %c0_262 = arith.constant 0 : index
    %c0_263 = arith.constant 0 : index
    %c21_264 = arith.constant 21 : index
    %c0_265 = arith.constant 0 : index
    %174 = vector.load %arg2[%c0_261, %c0_262, %c0_263, %c21_264, %c0_265] : memref<1x1x4x86x32xbf16, #tpu.memory_space<vmem>>, vector<1x1x1x64x32xbf16>
    %175 = vector.shape_cast %174 : vector<1x1x1x64x32xbf16> to vector<64x32xbf16>
    %c22 = arith.constant 22 : index
    %c0_266 = arith.constant 0 : index
    %c0_267 = arith.constant 0 : index
    %176 = vector.load %arg3[%c22, %c0_266, %c0_267] : memref<25x32x128xbf16, #tpu.memory_space<vmem>>, vector<1x32x128xbf16>
    %177 = vector.shape_cast %176 : vector<1x32x128xbf16> to vector<32x128xbf16>
    %cst_268 = arith.constant dense<0.000000e+00> : vector<64x128xf32>
    %178 = tpu.matmul %175, %177, %cst_268 {dimension_numbers = #tpu.dot_dimension_numbers<[1], [0], [0], [1], [0, 0, 1, 1], [], []>} : vector<64x32xbf16>, vector<32x128xbf16>, vector<64x128xf32> -> vector<64x128xf32>
    %c0_269 = arith.constant 0 : index
    %c0_270 = arith.constant 0 : index
    %179 = vector.load %arg8[%c0_269, %c0_270] : memref<64x128xf32, #tpu.memory_space<vmem>>, vector<64x128xf32>
    %180 = arith.addf %179, %178 : vector<64x128xf32>
    %c0_271 = arith.constant 0 : index
    %c0_272 = arith.constant 0 : index
    %181 = vector.load %arg8[%c0_271, %c0_272] : memref<64x128xf32, #tpu.memory_space<vmem>>, vector<64x128xf32>
    tpu.vector_store %arg8[%c0_271, %c0_272], %180 {strides = array<i32>} : memref<64x128xf32, #tpu.memory_space<vmem>>, vector<64x128xf32>,
    %c0_273 = arith.constant 0 : index
    %c0_274 = arith.constant 0 : index
    %c1_275 = arith.constant 1 : index
    %c21_276 = arith.constant 21 : index
    %c0_277 = arith.constant 0 : index
    %182 = vector.load %arg2[%c0_273, %c0_274, %c1_275, %c21_276, %c0_277] : memref<1x1x4x86x32xbf16, #tpu.memory_space<vmem>>, vector<1x1x1x64x32xbf16>
    %183 = vector.shape_cast %182 : vector<1x1x1x64x32xbf16> to vector<64x32xbf16>
    %c23 = arith.constant 23 : index
    %c0_278 = arith.constant 0 : index
    %c0_279 = arith.constant 0 : index
    %184 = vector.load %arg3[%c23, %c0_278, %c0_279] : memref<25x32x128xbf16, #tpu.memory_space<vmem>>, vector<1x32x128xbf16>
    %185 = vector.shape_cast %184 : vector<1x32x128xbf16> to vector<32x128xbf16>
    %cst_280 = arith.constant dense<0.000000e+00> : vector<64x128xf32>
    %186 = tpu.matmul %183, %185, %cst_280 {dimension_numbers = #tpu.dot_dimension_numbers<[1], [0], [0], [1], [0, 0, 1, 1], [], []>} : vector<64x32xbf16>, vector<32x128xbf16>, vector<64x128xf32> -> vector<64x128xf32>
    %c0_281 = arith.constant 0 : index
    %c0_282 = arith.constant 0 : index
    %187 = vector.load %arg8[%c0_281, %c0_282] : memref<64x128xf32, #tpu.memory_space<vmem>>, vector<64x128xf32>
    %188 = arith.addf %187, %186 : vector<64x128xf32>
    %c0_283 = arith.constant 0 : index
    %c0_284 = arith.constant 0 : index
    %189 = vector.load %arg8[%c0_283, %c0_284] : memref<64x128xf32, #tpu.memory_space<vmem>>, vector<64x128xf32>
    tpu.vector_store %arg8[%c0_283, %c0_284], %188 {strides = array<i32>} : memref<64x128xf32, #tpu.memory_space<vmem>>, vector<64x128xf32>,
    %c0_285 = arith.constant 0 : index
    %c0_286 = arith.constant 0 : index
    %c0_287 = arith.constant 0 : index
    %c22_288 = arith.constant 22 : index
    %c0_289 = arith.constant 0 : index
    %190 = vector.load %arg2[%c0_285, %c0_286, %c0_287, %c22_288, %c0_289] : memref<1x1x4x86x32xbf16, #tpu.memory_space<vmem>>, vector<1x1x1x64x32xbf16>
    %191 = vector.shape_cast %190 : vector<1x1x1x64x32xbf16> to vector<64x32xbf16>
    %c24 = arith.constant 24 : index
    %c0_290 = arith.constant 0 : index
    %c0_291 = arith.constant 0 : index
    %192 = vector.load %arg3[%c24, %c0_290, %c0_291] : memref<25x32x128xbf16, #tpu.memory_space<vmem>>, vector<1x32x128xbf16>
    %193 = vector.shape_cast %192 : vector<1x32x128xbf16> to vector<32x128xbf16>
    %cst_292 = arith.constant dense<0.000000e+00> : vector<64x128xf32>
    %194 = tpu.matmul %191, %193, %cst_292 {dimension_numbers = #tpu.dot_dimension_numbers<[1], [0], [0], [1], [0, 0, 1, 1], [], []>} : vector<64x32xbf16>, vector<32x128xbf16>, vector<64x128xf32> -> vector<64x128xf32>
    %c0_293 = arith.constant 0 : index
    %c0_294 = arith.constant 0 : index
    %195 = vector.load %arg8[%c0_293, %c0_294] : memref<64x128xf32, #tpu.memory_space<vmem>>, vector<64x128xf32>
    %196 = arith.addf %195, %194 : vector<64x128xf32>
    %c0_295 = arith.constant 0 : index
    %c0_296 = arith.constant 0 : index
    %197 = vector.load %arg8[%c0_295, %c0_296] : memref<64x128xf32, #tpu.memory_space<vmem>>, vector<64x128xf32>
    tpu.vector_store %arg8[%c0_295, %c0_296], %196 {strides = array<i32>} : memref<64x128xf32, #tpu.memory_space<vmem>>, vector<64x128xf32>,
    %c0_297 = arith.constant 0 : index
    %c0_298 = arith.constant 0 : index
    %198 = vector.load %arg8[%c0_297, %c0_298] : memref<64x128xf32, #tpu.memory_space<vmem>>, vector<64x128xf32>
    %c0_299 = arith.constant 0 : index
    %c0_300 = arith.constant 0 : index
    %199 = vector.load %arg4[%c0_299, %c0_300] : memref<1x128xf32, #tpu.memory_space<vmem>>, vector<1x128xf32>
    %200 = vector.broadcast %199 : vector<1x128xf32> to vector<64x128xf32>
    %201 = arith.addf %198, %200 : vector<64x128xf32>
    %202 = arith.mulf %201, %201 : vector<64x128xf32>
    %203 = arith.truncf %202 : vector<64x128xf32> to vector<64x128xbf16>
    %c0_301 = arith.constant 0 : index
    %c0_302 = arith.constant 0 : index
    %204 = vector.load %arg5[%c0_301, %c0_302] : memref<128x128xbf16, #tpu.memory_space<vmem>>, vector<128x128xbf16>
    %cst_303 = arith.constant dense<0.000000e+00> : vector<64x128xf32>
    %205 = tpu.matmul %203, %204, %cst_303 {dimension_numbers = #tpu.dot_dimension_numbers<[1], [0], [0], [1], [0, 0, 1, 1], [], []>} : vector<64x128xbf16>, vector<128x128xbf16>, vector<64x128xf32> -> vector<64x128xf32>
    %c0_304 = arith.constant 0 : index
    %c0_305 = arith.constant 0 : index
    %206 = vector.load %arg6[%c0_304, %c0_305] : memref<1x128xf32, #tpu.memory_space<vmem>>, vector<1x128xf32>
    %207 = vector.broadcast %206 : vector<1x128xf32> to vector<64x128xf32>
    %208 = arith.addf %205, %207 : vector<64x128xf32>
    %209 = math.rsqrt %208 : vector<64x128xf32>
    %210 = arith.mulf %201, %209 : vector<64x128xf32>
    %211 = arith.truncf %210 : vector<64x128xf32> to vector<64x128xbf16>
    %c0_306 = arith.constant 0 : index
    %c0_307 = arith.constant 0 : index
    %c0_308 = arith.constant 0 : index
    %212 = vector.load %arg7[%c0_306, %c0_307, %c0_308] : memref<1x64x128xbf16, #tpu.memory_space<vmem>>, vector<1x64x128xbf16>
    %213 = vector.shape_cast %212 : vector<1x64x128xbf16> to vector<64x128xbf16>
    %214 = vector.shape_cast %211 : vector<64x128xbf16> to vector<1x64x128xbf16>
    tpu.vector_store %arg7[%c0_306, %c0_307, %c0_308], %214 {strides = array<i32>} : memref<1x64x128xbf16, #tpu.memory_space<vmem>>, vector<1x64x128xbf16>,
    return
  }
  func.func @transform_0(%arg0: i32, %arg1: i32) -> (i32, i32, i32, i32, i32) {
    %c0_i32 = arith.constant 0 : i32
    %c0_i32_0 = arith.constant 0 : i32
    %c0_i32_1 = arith.constant 0 : i32
    %c0_i32_2 = arith.constant 0 : i32
    return %arg0, %arg1, %c0_i32, %c0_i32_0, %c0_i32_1 : i32, i32, i32, i32, i32
  }
  func.func @transform_1(%arg0: i32, %arg1: i32) -> (i32, i32, i32) {
    %c0_i32 = arith.constant 0 : i32
    %c0_i32_0 = arith.constant 0 : i32
    %c0_i32_1 = arith.constant 0 : i32
    %c0_i32_2 = arith.constant 0 : i32
    return %c0_i32, %c0_i32_0, %c0_i32_1 : i32, i32, i32
  }
  func.func @transform_2(%arg0: i32, %arg1: i32) -> (i32, i32) {
    %c0_i32 = arith.constant 0 : i32
    %c0_i32_0 = arith.constant 0 : i32
    %c0_i32_1 = arith.constant 0 : i32
    return %c0_i32, %c0_i32_0 : i32, i32
  }
  func.func @transform_3(%arg0: i32, %arg1: i32) -> (i32, i32) {
    %c0_i32 = arith.constant 0 : i32
    %c0_i32_0 = arith.constant 0 : i32
    %c0_i32_1 = arith.constant 0 : i32
    return %c0_i32, %c0_i32_0 : i32, i32
  }
  func.func @transform_4(%arg0: i32, %arg1: i32) -> (i32, i32) {
    %c0_i32 = arith.constant 0 : i32
    %c0_i32_0 = arith.constant 0 : i32
    %c0_i32_1 = arith.constant 0 : i32
    return %c0_i32, %c0_i32_0 : i32, i32
  }
  func.func @transform_5(%arg0: i32, %arg1: i32) -> (i32, i32, i32) {
    %c0_i32 = arith.constant 0 : i32
    %c0_i32_0 = arith.constant 0 : i32
    return %arg0, %arg1, %c0_i32 : i32, i32, i32
  }
}

module attributes {stable_mosaic.version = 11 : i64} {
  func.func @_conv_gdn_kernel(%arg0: i32, %arg1: i32, %arg2: memref<1x1x4x38x32xbf16, #tpu.memory_space<vmem>>, %arg3: memref<25x32x128xbf16, #tpu.memory_space<vmem>>, %arg4: memref<1x128xf32, #tpu.memory_space<vmem>>, %arg5: memref<128x128xbf16, #tpu.memory_space<vmem>>, %arg6: memref<1x128xf32, #tpu.memory_space<vmem>>, %arg7: memref<1x24x128xbf16, #tpu.memory_space<vmem>>, %arg8: memref<24x128xf32, #tpu.memory_space<vmem>>) attributes {dimension_semantics = [#tpu.dimension_semantics<parallel>, #tpu.dimension_semantics<parallel>], iteration_bounds = array<i64: 2, 1>, scalar_prefetch = 0 : i64, scratch_operands = 1 : i64, tpu.core_type = #tpu.core_type<tc>, window_params = [{transform_indices = @transform_0, window_bounds = array<i64: 1, 1, 4, 38, 32>}, {pipeline_mode = #tpu.pipeline_mode<synchronous>, transform_indices = @transform_1, window_bounds = array<i64: 25, 32, 128>}, {pipeline_mode = #tpu.pipeline_mode<synchronous>, transform_indices = @transform_2, window_bounds = array<i64: 1, 128>}, {pipeline_mode = #tpu.pipeline_mode<synchronous>, transform_indices = @transform_3, window_bounds = array<i64: 128, 128>}, {pipeline_mode = #tpu.pipeline_mode<synchronous>, transform_indices = @transform_4, window_bounds = array<i64: 1, 128>}, {transform_indices = @transform_5, window_bounds = array<i64: 1, 24, 128>}]} {
    %c0 = arith.constant 0 : index
    %c0_0 = arith.constant 0 : index
    %c0_1 = arith.constant 0 : index
    %c0_2 = arith.constant 0 : index
    %c0_3 = arith.constant 0 : index
    %0 = vector.load %arg2[%c0, %c0_0, %c0_1, %c0_2, %c0_3] : memref<1x1x4x38x32xbf16, #tpu.memory_space<vmem>>, vector<1x1x1x24x32xbf16>
    %1 = vector.shape_cast %0 : vector<1x1x1x24x32xbf16> to vector<24x32xbf16>
    %c0_4 = arith.constant 0 : index
    %c0_5 = arith.constant 0 : index
    %c0_6 = arith.constant 0 : index
    %2 = vector.load %arg3[%c0_4, %c0_5, %c0_6] : memref<25x32x128xbf16, #tpu.memory_space<vmem>>, vector<1x32x128xbf16>
    %3 = vector.shape_cast %2 : vector<1x32x128xbf16> to vector<32x128xbf16>
    %cst = arith.constant dense<0.000000e+00> : vector<24x128xf32>
    %4 = tpu.matmul %1, %3, %cst {dimension_numbers = #tpu.dot_dimension_numbers<[1], [0], [0], [1], [0, 0, 1, 1], [], []>} : vector<24x32xbf16>, vector<32x128xbf16>, vector<24x128xf32> -> vector<24x128xf32>
    %c0_7 = arith.constant 0 : index
    %c0_8 = arith.constant 0 : index
    %5 = vector.load %arg8[%c0_7, %c0_8] : memref<24x128xf32, #tpu.memory_space<vmem>>, vector<24x128xf32>
    tpu.vector_store %arg8[%c0_7, %c0_8], %4 {strides = array<i32>} : memref<24x128xf32, #tpu.memory_space<vmem>>, vector<24x128xf32>,
    %c0_9 = arith.constant 0 : index
    %c0_10 = arith.constant 0 : index
    %c1 = arith.constant 1 : index
    %c0_11 = arith.constant 0 : index
    %c0_12 = arith.constant 0 : index
    %6 = vector.load %arg2[%c0_9, %c0_10, %c1, %c0_11, %c0_12] : memref<1x1x4x38x32xbf16, #tpu.memory_space<vmem>>, vector<1x1x1x24x32xbf16>
    %7 = vector.shape_cast %6 : vector<1x1x1x24x32xbf16> to vector<24x32xbf16>
    %c1_13 = arith.constant 1 : index
    %c0_14 = arith.constant 0 : index
    %c0_15 = arith.constant 0 : index
    %8 = vector.load %arg3[%c1_13, %c0_14, %c0_15] : memref<25x32x128xbf16, #tpu.memory_space<vmem>>, vector<1x32x128xbf16>
    %9 = vector.shape_cast %8 : vector<1x32x128xbf16> to vector<32x128xbf16>
    %cst_16 = arith.constant dense<0.000000e+00> : vector<24x128xf32>
    %10 = tpu.matmul %7, %9, %cst_16 {dimension_numbers = #tpu.dot_dimension_numbers<[1], [0], [0], [1], [0, 0, 1, 1], [], []>} : vector<24x32xbf16>, vector<32x128xbf16>, vector<24x128xf32> -> vector<24x128xf32>
    %c0_17 = arith.constant 0 : index
    %c0_18 = arith.constant 0 : index
    %11 = vector.load %arg8[%c0_17, %c0_18] : memref<24x128xf32, #tpu.memory_space<vmem>>, vector<24x128xf32>
    %12 = arith.addf %11, %10 : vector<24x128xf32>
    %c0_19 = arith.constant 0 : index
    %c0_20 = arith.constant 0 : index
    %13 = vector.load %arg8[%c0_19, %c0_20] : memref<24x128xf32, #tpu.memory_space<vmem>>, vector<24x128xf32>
    tpu.vector_store %arg8[%c0_19, %c0_20], %12 {strides = array<i32>} : memref<24x128xf32, #tpu.memory_space<vmem>>, vector<24x128xf32>,
    %c0_21 = arith.constant 0 : index
    %c0_22 = arith.constant 0 : index
    %c0_23 = arith.constant 0 : index
    %c1_24 = arith.constant 1 : index
    %c0_25 = arith.constant 0 : index
    %14 = vector.load %arg2[%c0_21, %c0_22, %c0_23, %c1_24, %c0_25] : memref<1x1x4x38x32xbf16, #tpu.memory_space<vmem>>, vector<1x1x1x24x32xbf16>
    %15 = vector.shape_cast %14 : vector<1x1x1x24x32xbf16> to vector<24x32xbf16>
    %c2 = arith.constant 2 : index
    %c0_26 = arith.constant 0 : index
    %c0_27 = arith.constant 0 : index
    %16 = vector.load %arg3[%c2, %c0_26, %c0_27] : memref<25x32x128xbf16, #tpu.memory_space<vmem>>, vector<1x32x128xbf16>
    %17 = vector.shape_cast %16 : vector<1x32x128xbf16> to vector<32x128xbf16>
    %cst_28 = arith.constant dense<0.000000e+00> : vector<24x128xf32>
    %18 = tpu.matmul %15, %17, %cst_28 {dimension_numbers = #tpu.dot_dimension_numbers<[1], [0], [0], [1], [0, 0, 1, 1], [], []>} : vector<24x32xbf16>, vector<32x128xbf16>, vector<24x128xf32> -> vector<24x128xf32>
    %c0_29 = arith.constant 0 : index
    %c0_30 = arith.constant 0 : index
    %19 = vector.load %arg8[%c0_29, %c0_30] : memref<24x128xf32, #tpu.memory_space<vmem>>, vector<24x128xf32>
    %20 = arith.addf %19, %18 : vector<24x128xf32>
    %c0_31 = arith.constant 0 : index
    %c0_32 = arith.constant 0 : index
    %21 = vector.load %arg8[%c0_31, %c0_32] : memref<24x128xf32, #tpu.memory_space<vmem>>, vector<24x128xf32>
    tpu.vector_store %arg8[%c0_31, %c0_32], %20 {strides = array<i32>} : memref<24x128xf32, #tpu.memory_space<vmem>>, vector<24x128xf32>,
    %c0_33 = arith.constant 0 : index
    %c0_34 = arith.constant 0 : index
    %c1_35 = arith.constant 1 : index
    %c1_36 = arith.constant 1 : index
    %c0_37 = arith.constant 0 : index
    %22 = vector.load %arg2[%c0_33, %c0_34, %c1_35, %c1_36, %c0_37] : memref<1x1x4x38x32xbf16, #tpu.memory_space<vmem>>, vector<1x1x1x24x32xbf16>
    %23 = vector.shape_cast %22 : vector<1x1x1x24x32xbf16> to vector<24x32xbf16>
    %c3 = arith.constant 3 : index
    %c0_38 = arith.constant 0 : index
    %c0_39 = arith.constant 0 : index
    %24 = vector.load %arg3[%c3, %c0_38, %c0_39] : memref<25x32x128xbf16, #tpu.memory_space<vmem>>, vector<1x32x128xbf16>
    %25 = vector.shape_cast %24 : vector<1x32x128xbf16> to vector<32x128xbf16>
    %cst_40 = arith.constant dense<0.000000e+00> : vector<24x128xf32>
    %26 = tpu.matmul %23, %25, %cst_40 {dimension_numbers = #tpu.dot_dimension_numbers<[1], [0], [0], [1], [0, 0, 1, 1], [], []>} : vector<24x32xbf16>, vector<32x128xbf16>, vector<24x128xf32> -> vector<24x128xf32>
    %c0_41 = arith.constant 0 : index
    %c0_42 = arith.constant 0 : index
    %27 = vector.load %arg8[%c0_41, %c0_42] : memref<24x128xf32, #tpu.memory_space<vmem>>, vector<24x128xf32>
    %28 = arith.addf %27, %26 : vector<24x128xf32>
    %c0_43 = arith.constant 0 : index
    %c0_44 = arith.constant 0 : index
    %29 = vector.load %arg8[%c0_43, %c0_44] : memref<24x128xf32, #tpu.memory_space<vmem>>, vector<24x128xf32>
    tpu.vector_store %arg8[%c0_43, %c0_44], %28 {strides = array<i32>} : memref<24x128xf32, #tpu.memory_space<vmem>>, vector<24x128xf32>,
    %c0_45 = arith.constant 0 : index
    %c0_46 = arith.constant 0 : index
    %c0_47 = arith.constant 0 : index
    %c2_48 = arith.constant 2 : index
    %c0_49 = arith.constant 0 : index
    %30 = vector.load %arg2[%c0_45, %c0_46, %c0_47, %c2_48, %c0_49] : memref<1x1x4x38x32xbf16, #tpu.memory_space<vmem>>, vector<1x1x1x24x32xbf16>
    %31 = vector.shape_cast %30 : vector<1x1x1x24x32xbf16> to vector<24x32xbf16>
    %c4 = arith.constant 4 : index
    %c0_50 = arith.constant 0 : index
    %c0_51 = arith.constant 0 : index
    %32 = vector.load %arg3[%c4, %c0_50, %c0_51] : memref<25x32x128xbf16, #tpu.memory_space<vmem>>, vector<1x32x128xbf16>
    %33 = vector.shape_cast %32 : vector<1x32x128xbf16> to vector<32x128xbf16>
    %cst_52 = arith.constant dense<0.000000e+00> : vector<24x128xf32>
    %34 = tpu.matmul %31, %33, %cst_52 {dimension_numbers = #tpu.dot_dimension_numbers<[1], [0], [0], [1], [0, 0, 1, 1], [], []>} : vector<24x32xbf16>, vector<32x128xbf16>, vector<24x128xf32> -> vector<24x128xf32>
    %c0_53 = arith.constant 0 : index
    %c0_54 = arith.constant 0 : index
    %35 = vector.load %arg8[%c0_53, %c0_54] : memref<24x128xf32, #tpu.memory_space<vmem>>, vector<24x128xf32>
    %36 = arith.addf %35, %34 : vector<24x128xf32>
    %c0_55 = arith.constant 0 : index
    %c0_56 = arith.constant 0 : index
    %37 = vector.load %arg8[%c0_55, %c0_56] : memref<24x128xf32, #tpu.memory_space<vmem>>, vector<24x128xf32>
    tpu.vector_store %arg8[%c0_55, %c0_56], %36 {strides = array<i32>} : memref<24x128xf32, #tpu.memory_space<vmem>>, vector<24x128xf32>,
    %c0_57 = arith.constant 0 : index
    %c0_58 = arith.constant 0 : index
    %c2_59 = arith.constant 2 : index
    %c0_60 = arith.constant 0 : index
    %c0_61 = arith.constant 0 : index
    %38 = vector.load %arg2[%c0_57, %c0_58, %c2_59, %c0_60, %c0_61] : memref<1x1x4x38x32xbf16, #tpu.memory_space<vmem>>, vector<1x1x1x24x32xbf16>
    %39 = vector.shape_cast %38 : vector<1x1x1x24x32xbf16> to vector<24x32xbf16>
    %c5 = arith.constant 5 : index
    %c0_62 = arith.constant 0 : index
    %c0_63 = arith.constant 0 : index
    %40 = vector.load %arg3[%c5, %c0_62, %c0_63] : memref<25x32x128xbf16, #tpu.memory_space<vmem>>, vector<1x32x128xbf16>
    %41 = vector.shape_cast %40 : vector<1x32x128xbf16> to vector<32x128xbf16>
    %cst_64 = arith.constant dense<0.000000e+00> : vector<24x128xf32>
    %42 = tpu.matmul %39, %41, %cst_64 {dimension_numbers = #tpu.dot_dimension_numbers<[1], [0], [0], [1], [0, 0, 1, 1], [], []>} : vector<24x32xbf16>, vector<32x128xbf16>, vector<24x128xf32> -> vector<24x128xf32>
    %c0_65 = arith.constant 0 : index
    %c0_66 = arith.constant 0 : index
    %43 = vector.load %arg8[%c0_65, %c0_66] : memref<24x128xf32, #tpu.memory_space<vmem>>, vector<24x128xf32>
    %44 = arith.addf %43, %42 : vector<24x128xf32>
    %c0_67 = arith.constant 0 : index
    %c0_68 = arith.constant 0 : index
    %45 = vector.load %arg8[%c0_67, %c0_68] : memref<24x128xf32, #tpu.memory_space<vmem>>, vector<24x128xf32>
    tpu.vector_store %arg8[%c0_67, %c0_68], %44 {strides = array<i32>} : memref<24x128xf32, #tpu.memory_space<vmem>>, vector<24x128xf32>,
    %c0_69 = arith.constant 0 : index
    %c0_70 = arith.constant 0 : index
    %c3_71 = arith.constant 3 : index
    %c0_72 = arith.constant 0 : index
    %c0_73 = arith.constant 0 : index
    %46 = vector.load %arg2[%c0_69, %c0_70, %c3_71, %c0_72, %c0_73] : memref<1x1x4x38x32xbf16, #tpu.memory_space<vmem>>, vector<1x1x1x24x32xbf16>
    %47 = vector.shape_cast %46 : vector<1x1x1x24x32xbf16> to vector<24x32xbf16>
    %c6 = arith.constant 6 : index
    %c0_74 = arith.constant 0 : index
    %c0_75 = arith.constant 0 : index
    %48 = vector.load %arg3[%c6, %c0_74, %c0_75] : memref<25x32x128xbf16, #tpu.memory_space<vmem>>, vector<1x32x128xbf16>
    %49 = vector.shape_cast %48 : vector<1x32x128xbf16> to vector<32x128xbf16>
    %cst_76 = arith.constant dense<0.000000e+00> : vector<24x128xf32>
    %50 = tpu.matmul %47, %49, %cst_76 {dimension_numbers = #tpu.dot_dimension_numbers<[1], [0], [0], [1], [0, 0, 1, 1], [], []>} : vector<24x32xbf16>, vector<32x128xbf16>, vector<24x128xf32> -> vector<24x128xf32>
    %c0_77 = arith.constant 0 : index
    %c0_78 = arith.constant 0 : index
    %51 = vector.load %arg8[%c0_77, %c0_78] : memref<24x128xf32, #tpu.memory_space<vmem>>, vector<24x128xf32>
    %52 = arith.addf %51, %50 : vector<24x128xf32>
    %c0_79 = arith.constant 0 : index
    %c0_80 = arith.constant 0 : index
    %53 = vector.load %arg8[%c0_79, %c0_80] : memref<24x128xf32, #tpu.memory_space<vmem>>, vector<24x128xf32>
    tpu.vector_store %arg8[%c0_79, %c0_80], %52 {strides = array<i32>} : memref<24x128xf32, #tpu.memory_space<vmem>>, vector<24x128xf32>,
    %c0_81 = arith.constant 0 : index
    %c0_82 = arith.constant 0 : index
    %c2_83 = arith.constant 2 : index
    %c1_84 = arith.constant 1 : index
    %c0_85 = arith.constant 0 : index
    %54 = vector.load %arg2[%c0_81, %c0_82, %c2_83, %c1_84, %c0_85] : memref<1x1x4x38x32xbf16, #tpu.memory_space<vmem>>, vector<1x1x1x24x32xbf16>
    %55 = vector.shape_cast %54 : vector<1x1x1x24x32xbf16> to vector<24x32xbf16>
    %c7 = arith.constant 7 : index
    %c0_86 = arith.constant 0 : index
    %c0_87 = arith.constant 0 : index
    %56 = vector.load %arg3[%c7, %c0_86, %c0_87] : memref<25x32x128xbf16, #tpu.memory_space<vmem>>, vector<1x32x128xbf16>
    %57 = vector.shape_cast %56 : vector<1x32x128xbf16> to vector<32x128xbf16>
    %cst_88 = arith.constant dense<0.000000e+00> : vector<24x128xf32>
    %58 = tpu.matmul %55, %57, %cst_88 {dimension_numbers = #tpu.dot_dimension_numbers<[1], [0], [0], [1], [0, 0, 1, 1], [], []>} : vector<24x32xbf16>, vector<32x128xbf16>, vector<24x128xf32> -> vector<24x128xf32>
    %c0_89 = arith.constant 0 : index
    %c0_90 = arith.constant 0 : index
    %59 = vector.load %arg8[%c0_89, %c0_90] : memref<24x128xf32, #tpu.memory_space<vmem>>, vector<24x128xf32>
    %60 = arith.addf %59, %58 : vector<24x128xf32>
    %c0_91 = arith.constant 0 : index
    %c0_92 = arith.constant 0 : index
    %61 = vector.load %arg8[%c0_91, %c0_92] : memref<24x128xf32, #tpu.memory_space<vmem>>, vector<24x128xf32>
    tpu.vector_store %arg8[%c0_91, %c0_92], %60 {strides = array<i32>} : memref<24x128xf32, #tpu.memory_space<vmem>>, vector<24x128xf32>,
    %c0_93 = arith.constant 0 : index
    %c0_94 = arith.constant 0 : index
    %c3_95 = arith.constant 3 : index
    %c1_96 = arith.constant 1 : index
    %c0_97 = arith.constant 0 : index
    %62 = vector.load %arg2[%c0_93, %c0_94, %c3_95, %c1_96, %c0_97] : memref<1x1x4x38x32xbf16, #tpu.memory_space<vmem>>, vector<1x1x1x24x32xbf16>
    %63 = vector.shape_cast %62 : vector<1x1x1x24x32xbf16> to vector<24x32xbf16>
    %c8 = arith.constant 8 : index
    %c0_98 = arith.constant 0 : index
    %c0_99 = arith.constant 0 : index
    %64 = vector.load %arg3[%c8, %c0_98, %c0_99] : memref<25x32x128xbf16, #tpu.memory_space<vmem>>, vector<1x32x128xbf16>
    %65 = vector.shape_cast %64 : vector<1x32x128xbf16> to vector<32x128xbf16>
    %cst_100 = arith.constant dense<0.000000e+00> : vector<24x128xf32>
    %66 = tpu.matmul %63, %65, %cst_100 {dimension_numbers = #tpu.dot_dimension_numbers<[1], [0], [0], [1], [0, 0, 1, 1], [], []>} : vector<24x32xbf16>, vector<32x128xbf16>, vector<24x128xf32> -> vector<24x128xf32>
    %c0_101 = arith.constant 0 : index
    %c0_102 = arith.constant 0 : index
    %67 = vector.load %arg8[%c0_101, %c0_102] : memref<24x128xf32, #tpu.memory_space<vmem>>, vector<24x128xf32>
    %68 = arith.addf %67, %66 : vector<24x128xf32>
    %c0_103 = arith.constant 0 : index
    %c0_104 = arith.constant 0 : index
    %69 = vector.load %arg8[%c0_103, %c0_104] : memref<24x128xf32, #tpu.memory_space<vmem>>, vector<24x128xf32>
    tpu.vector_store %arg8[%c0_103, %c0_104], %68 {strides = array<i32>} : memref<24x128xf32, #tpu.memory_space<vmem>>, vector<24x128xf32>,
    %c0_105 = arith.constant 0 : index
    %c0_106 = arith.constant 0 : index
    %c2_107 = arith.constant 2 : index
    %c2_108 = arith.constant 2 : index
    %c0_109 = arith.constant 0 : index
    %70 = vector.load %arg2[%c0_105, %c0_106, %c2_107, %c2_108, %c0_109] : memref<1x1x4x38x32xbf16, #tpu.memory_space<vmem>>, vector<1x1x1x24x32xbf16>
    %71 = vector.shape_cast %70 : vector<1x1x1x24x32xbf16> to vector<24x32xbf16>
    %c9 = arith.constant 9 : index
    %c0_110 = arith.constant 0 : index
    %c0_111 = arith.constant 0 : index
    %72 = vector.load %arg3[%c9, %c0_110, %c0_111] : memref<25x32x128xbf16, #tpu.memory_space<vmem>>, vector<1x32x128xbf16>
    %73 = vector.shape_cast %72 : vector<1x32x128xbf16> to vector<32x128xbf16>
    %cst_112 = arith.constant dense<0.000000e+00> : vector<24x128xf32>
    %74 = tpu.matmul %71, %73, %cst_112 {dimension_numbers = #tpu.dot_dimension_numbers<[1], [0], [0], [1], [0, 0, 1, 1], [], []>} : vector<24x32xbf16>, vector<32x128xbf16>, vector<24x128xf32> -> vector<24x128xf32>
    %c0_113 = arith.constant 0 : index
    %c0_114 = arith.constant 0 : index
    %75 = vector.load %arg8[%c0_113, %c0_114] : memref<24x128xf32, #tpu.memory_space<vmem>>, vector<24x128xf32>
    %76 = arith.addf %75, %74 : vector<24x128xf32>
    %c0_115 = arith.constant 0 : index
    %c0_116 = arith.constant 0 : index
    %77 = vector.load %arg8[%c0_115, %c0_116] : memref<24x128xf32, #tpu.memory_space<vmem>>, vector<24x128xf32>
    tpu.vector_store %arg8[%c0_115, %c0_116], %76 {strides = array<i32>} : memref<24x128xf32, #tpu.memory_space<vmem>>, vector<24x128xf32>,
    %c0_117 = arith.constant 0 : index
    %c0_118 = arith.constant 0 : index
    %c0_119 = arith.constant 0 : index
    %c6_120 = arith.constant 6 : index
    %c0_121 = arith.constant 0 : index
    %78 = vector.load %arg2[%c0_117, %c0_118, %c0_119, %c6_120, %c0_121] : memref<1x1x4x38x32xbf16, #tpu.memory_space<vmem>>, vector<1x1x1x24x32xbf16>
    %79 = vector.shape_cast %78 : vector<1x1x1x24x32xbf16> to vector<24x32xbf16>
    %c10 = arith.constant 10 : index
    %c0_122 = arith.constant 0 : index
    %c0_123 = arith.constant 0 : index
    %80 = vector.load %arg3[%c10, %c0_122, %c0_123] : memref<25x32x128xbf16, #tpu.memory_space<vmem>>, vector<1x32x128xbf16>
    %81 = vector.shape_cast %80 : vector<1x32x128xbf16> to vector<32x128xbf16>
    %cst_124 = arith.constant dense<0.000000e+00> : vector<24x128xf32>
    %82 = tpu.matmul %79, %81, %cst_124 {dimension_numbers = #tpu.dot_dimension_numbers<[1], [0], [0], [1], [0, 0, 1, 1], [], []>} : vector<24x32xbf16>, vector<32x128xbf16>, vector<24x128xf32> -> vector<24x128xf32>
    %c0_125 = arith.constant 0 : index
    %c0_126 = arith.constant 0 : index
    %83 = vector.load %arg8[%c0_125, %c0_126] : memref<24x128xf32, #tpu.memory_space<vmem>>, vector<24x128xf32>
    %84 = arith.addf %83, %82 : vector<24x128xf32>
    %c0_127 = arith.constant 0 : index
    %c0_128 = arith.constant 0 : index
    %85 = vector.load %arg8[%c0_127, %c0_128] : memref<24x128xf32, #tpu.memory_space<vmem>>, vector<24x128xf32>
    tpu.vector_store %arg8[%c0_127, %c0_128], %84 {strides = array<i32>} : memref<24x128xf32, #tpu.memory_space<vmem>>, vector<24x128xf32>,
    %c0_129 = arith.constant 0 : index
    %c0_130 = arith.constant 0 : index
    %c1_131 = arith.constant 1 : index
    %c6_132 = arith.constant 6 : index
    %c0_133 = arith.constant 0 : index
    %86 = vector.load %arg2[%c0_129, %c0_130, %c1_131, %c6_132, %c0_133] : memref<1x1x4x38x32xbf16, #tpu.memory_space<vmem>>, vector<1x1x1x24x32xbf16>
    %87 = vector.shape_cast %86 : vector<1x1x1x24x32xbf16> to vector<24x32xbf16>
    %c11 = arith.constant 11 : index
    %c0_134 = arith.constant 0 : index
    %c0_135 = arith.constant 0 : index
    %88 = vector.load %arg3[%c11, %c0_134, %c0_135] : memref<25x32x128xbf16, #tpu.memory_space<vmem>>, vector<1x32x128xbf16>
    %89 = vector.shape_cast %88 : vector<1x32x128xbf16> to vector<32x128xbf16>
    %cst_136 = arith.constant dense<0.000000e+00> : vector<24x128xf32>
    %90 = tpu.matmul %87, %89, %cst_136 {dimension_numbers = #tpu.dot_dimension_numbers<[1], [0], [0], [1], [0, 0, 1, 1], [], []>} : vector<24x32xbf16>, vector<32x128xbf16>, vector<24x128xf32> -> vector<24x128xf32>
    %c0_137 = arith.constant 0 : index
    %c0_138 = arith.constant 0 : index
    %91 = vector.load %arg8[%c0_137, %c0_138] : memref<24x128xf32, #tpu.memory_space<vmem>>, vector<24x128xf32>
    %92 = arith.addf %91, %90 : vector<24x128xf32>
    %c0_139 = arith.constant 0 : index
    %c0_140 = arith.constant 0 : index
    %93 = vector.load %arg8[%c0_139, %c0_140] : memref<24x128xf32, #tpu.memory_space<vmem>>, vector<24x128xf32>
    tpu.vector_store %arg8[%c0_139, %c0_140], %92 {strides = array<i32>} : memref<24x128xf32, #tpu.memory_space<vmem>>, vector<24x128xf32>,
    %c0_141 = arith.constant 0 : index
    %c0_142 = arith.constant 0 : index
    %c0_143 = arith.constant 0 : index
    %c7_144 = arith.constant 7 : index
    %c0_145 = arith.constant 0 : index
    %94 = vector.load %arg2[%c0_141, %c0_142, %c0_143, %c7_144, %c0_145] : memref<1x1x4x38x32xbf16, #tpu.memory_space<vmem>>, vector<1x1x1x24x32xbf16>
    %95 = vector.shape_cast %94 : vector<1x1x1x24x32xbf16> to vector<24x32xbf16>
    %c12 = arith.constant 12 : index
    %c0_146 = arith.constant 0 : index
    %c0_147 = arith.constant 0 : index
    %96 = vector.load %arg3[%c12, %c0_146, %c0_147] : memref<25x32x128xbf16, #tpu.memory_space<vmem>>, vector<1x32x128xbf16>
    %97 = vector.shape_cast %96 : vector<1x32x128xbf16> to vector<32x128xbf16>
    %cst_148 = arith.constant dense<0.000000e+00> : vector<24x128xf32>
    %98 = tpu.matmul %95, %97, %cst_148 {dimension_numbers = #tpu.dot_dimension_numbers<[1], [0], [0], [1], [0, 0, 1, 1], [], []>} : vector<24x32xbf16>, vector<32x128xbf16>, vector<24x128xf32> -> vector<24x128xf32>
    %c0_149 = arith.constant 0 : index
    %c0_150 = arith.constant 0 : index
    %99 = vector.load %arg8[%c0_149, %c0_150] : memref<24x128xf32, #tpu.memory_space<vmem>>, vector<24x128xf32>
    %100 = arith.addf %99, %98 : vector<24x128xf32>
    %c0_151 = arith.constant 0 : index
    %c0_152 = arith.constant 0 : index
    %101 = vector.load %arg8[%c0_151, %c0_152] : memref<24x128xf32, #tpu.memory_space<vmem>>, vector<24x128xf32>
    tpu.vector_store %arg8[%c0_151, %c0_152], %100 {strides = array<i32>} : memref<24x128xf32, #tpu.memory_space<vmem>>, vector<24x128xf32>,
    %c0_153 = arith.constant 0 : index
    %c0_154 = arith.constant 0 : index
    %c1_155 = arith.constant 1 : index
    %c7_156 = arith.constant 7 : index
    %c0_157 = arith.constant 0 : index
    %102 = vector.load %arg2[%c0_153, %c0_154, %c1_155, %c7_156, %c0_157] : memref<1x1x4x38x32xbf16, #tpu.memory_space<vmem>>, vector<1x1x1x24x32xbf16>
    %103 = vector.shape_cast %102 : vector<1x1x1x24x32xbf16> to vector<24x32xbf16>
    %c13 = arith.constant 13 : index
    %c0_158 = arith.constant 0 : index
    %c0_159 = arith.constant 0 : index
    %104 = vector.load %arg3[%c13, %c0_158, %c0_159] : memref<25x32x128xbf16, #tpu.memory_space<vmem>>, vector<1x32x128xbf16>
    %105 = vector.shape_cast %104 : vector<1x32x128xbf16> to vector<32x128xbf16>
    %cst_160 = arith.constant dense<0.000000e+00> : vector<24x128xf32>
    %106 = tpu.matmul %103, %105, %cst_160 {dimension_numbers = #tpu.dot_dimension_numbers<[1], [0], [0], [1], [0, 0, 1, 1], [], []>} : vector<24x32xbf16>, vector<32x128xbf16>, vector<24x128xf32> -> vector<24x128xf32>
    %c0_161 = arith.constant 0 : index
    %c0_162 = arith.constant 0 : index
    %107 = vector.load %arg8[%c0_161, %c0_162] : memref<24x128xf32, #tpu.memory_space<vmem>>, vector<24x128xf32>
    %108 = arith.addf %107, %106 : vector<24x128xf32>
    %c0_163 = arith.constant 0 : index
    %c0_164 = arith.constant 0 : index
    %109 = vector.load %arg8[%c0_163, %c0_164] : memref<24x128xf32, #tpu.memory_space<vmem>>, vector<24x128xf32>
    tpu.vector_store %arg8[%c0_163, %c0_164], %108 {strides = array<i32>} : memref<24x128xf32, #tpu.memory_space<vmem>>, vector<24x128xf32>,
    %c0_165 = arith.constant 0 : index
    %c0_166 = arith.constant 0 : index
    %c0_167 = arith.constant 0 : index
    %c8_168 = arith.constant 8 : index
    %c0_169 = arith.constant 0 : index
    %110 = vector.load %arg2[%c0_165, %c0_166, %c0_167, %c8_168, %c0_169] : memref<1x1x4x38x32xbf16, #tpu.memory_space<vmem>>, vector<1x1x1x24x32xbf16>
    %111 = vector.shape_cast %110 : vector<1x1x1x24x32xbf16> to vector<24x32xbf16>
    %c14 = arith.constant 14 : index
    %c0_170 = arith.constant 0 : index
    %c0_171 = arith.constant 0 : index
    %112 = vector.load %arg3[%c14, %c0_170, %c0_171] : memref<25x32x128xbf16, #tpu.memory_space<vmem>>, vector<1x32x128xbf16>
    %113 = vector.shape_cast %112 : vector<1x32x128xbf16> to vector<32x128xbf16>
    %cst_172 = arith.constant dense<0.000000e+00> : vector<24x128xf32>
    %114 = tpu.matmul %111, %113, %cst_172 {dimension_numbers = #tpu.dot_dimension_numbers<[1], [0], [0], [1], [0, 0, 1, 1], [], []>} : vector<24x32xbf16>, vector<32x128xbf16>, vector<24x128xf32> -> vector<24x128xf32>
    %c0_173 = arith.constant 0 : index
    %c0_174 = arith.constant 0 : index
    %115 = vector.load %arg8[%c0_173, %c0_174] : memref<24x128xf32, #tpu.memory_space<vmem>>, vector<24x128xf32>
    %116 = arith.addf %115, %114 : vector<24x128xf32>
    %c0_175 = arith.constant 0 : index
    %c0_176 = arith.constant 0 : index
    %117 = vector.load %arg8[%c0_175, %c0_176] : memref<24x128xf32, #tpu.memory_space<vmem>>, vector<24x128xf32>
    tpu.vector_store %arg8[%c0_175, %c0_176], %116 {strides = array<i32>} : memref<24x128xf32, #tpu.memory_space<vmem>>, vector<24x128xf32>,
    %c0_177 = arith.constant 0 : index
    %c0_178 = arith.constant 0 : index
    %c2_179 = arith.constant 2 : index
    %c6_180 = arith.constant 6 : index
    %c0_181 = arith.constant 0 : index
    %118 = vector.load %arg2[%c0_177, %c0_178, %c2_179, %c6_180, %c0_181] : memref<1x1x4x38x32xbf16, #tpu.memory_space<vmem>>, vector<1x1x1x24x32xbf16>
    %119 = vector.shape_cast %118 : vector<1x1x1x24x32xbf16> to vector<24x32xbf16>
    %c15 = arith.constant 15 : index
    %c0_182 = arith.constant 0 : index
    %c0_183 = arith.constant 0 : index
    %120 = vector.load %arg3[%c15, %c0_182, %c0_183] : memref<25x32x128xbf16, #tpu.memory_space<vmem>>, vector<1x32x128xbf16>
    %121 = vector.shape_cast %120 : vector<1x32x128xbf16> to vector<32x128xbf16>
    %cst_184 = arith.constant dense<0.000000e+00> : vector<24x128xf32>
    %122 = tpu.matmul %119, %121, %cst_184 {dimension_numbers = #tpu.dot_dimension_numbers<[1], [0], [0], [1], [0, 0, 1, 1], [], []>} : vector<24x32xbf16>, vector<32x128xbf16>, vector<24x128xf32> -> vector<24x128xf32>
    %c0_185 = arith.constant 0 : index
    %c0_186 = arith.constant 0 : index
    %123 = vector.load %arg8[%c0_185, %c0_186] : memref<24x128xf32, #tpu.memory_space<vmem>>, vector<24x128xf32>
    %124 = arith.addf %123, %122 : vector<24x128xf32>
    %c0_187 = arith.constant 0 : index
    %c0_188 = arith.constant 0 : index
    %125 = vector.load %arg8[%c0_187, %c0_188] : memref<24x128xf32, #tpu.memory_space<vmem>>, vector<24x128xf32>
    tpu.vector_store %arg8[%c0_187, %c0_188], %124 {strides = array<i32>} : memref<24x128xf32, #tpu.memory_space<vmem>>, vector<24x128xf32>,
    %c0_189 = arith.constant 0 : index
    %c0_190 = arith.constant 0 : index
    %c3_191 = arith.constant 3 : index
    %c6_192 = arith.constant 6 : index
    %c0_193 = arith.constant 0 : index
    %126 = vector.load %arg2[%c0_189, %c0_190, %c3_191, %c6_192, %c0_193] : memref<1x1x4x38x32xbf16, #tpu.memory_space<vmem>>, vector<1x1x1x24x32xbf16>
    %127 = vector.shape_cast %126 : vector<1x1x1x24x32xbf16> to vector<24x32xbf16>
    %c16 = arith.constant 16 : index
    %c0_194 = arith.constant 0 : index
    %c0_195 = arith.constant 0 : index
    %128 = vector.load %arg3[%c16, %c0_194, %c0_195] : memref<25x32x128xbf16, #tpu.memory_space<vmem>>, vector<1x32x128xbf16>
    %129 = vector.shape_cast %128 : vector<1x32x128xbf16> to vector<32x128xbf16>
    %cst_196 = arith.constant dense<0.000000e+00> : vector<24x128xf32>
    %130 = tpu.matmul %127, %129, %cst_196 {dimension_numbers = #tpu.dot_dimension_numbers<[1], [0], [0], [1], [0, 0, 1, 1], [], []>} : vector<24x32xbf16>, vector<32x128xbf16>, vector<24x128xf32> -> vector<24x128xf32>
    %c0_197 = arith.constant 0 : index
    %c0_198 = arith.constant 0 : index
    %131 = vector.load %arg8[%c0_197, %c0_198] : memref<24x128xf32, #tpu.memory_space<vmem>>, vector<24x128xf32>
    %132 = arith.addf %131, %130 : vector<24x128xf32>
    %c0_199 = arith.constant 0 : index
    %c0_200 = arith.constant 0 : index
    %133 = vector.load %arg8[%c0_199, %c0_200] : memref<24x128xf32, #tpu.memory_space<vmem>>, vector<24x128xf32>
    tpu.vector_store %arg8[%c0_199, %c0_200], %132 {strides = array<i32>} : memref<24x128xf32, #tpu.memory_space<vmem>>, vector<24x128xf32>,
    %c0_201 = arith.constant 0 : index
    %c0_202 = arith.constant 0 : index
    %c2_203 = arith.constant 2 : index
    %c7_204 = arith.constant 7 : index
    %c0_205 = arith.constant 0 : index
    %134 = vector.load %arg2[%c0_201, %c0_202, %c2_203, %c7_204, %c0_205] : memref<1x1x4x38x32xbf16, #tpu.memory_space<vmem>>, vector<1x1x1x24x32xbf16>
    %135 = vector.shape_cast %134 : vector<1x1x1x24x32xbf16> to vector<24x32xbf16>
    %c17 = arith.constant 17 : index
    %c0_206 = arith.constant 0 : index
    %c0_207 = arith.constant 0 : index
    %136 = vector.load %arg3[%c17, %c0_206, %c0_207] : memref<25x32x128xbf16, #tpu.memory_space<vmem>>, vector<1x32x128xbf16>
    %137 = vector.shape_cast %136 : vector<1x32x128xbf16> to vector<32x128xbf16>
    %cst_208 = arith.constant dense<0.000000e+00> : vector<24x128xf32>
    %138 = tpu.matmul %135, %137, %cst_208 {dimension_numbers = #tpu.dot_dimension_numbers<[1], [0], [0], [1], [0, 0, 1, 1], [], []>} : vector<24x32xbf16>, vector<32x128xbf16>, vector<24x128xf32> -> vector<24x128xf32>
    %c0_209 = arith.constant 0 : index
    %c0_210 = arith.constant 0 : index
    %139 = vector.load %arg8[%c0_209, %c0_210] : memref<24x128xf32, #tpu.memory_space<vmem>>, vector<24x128xf32>
    %140 = arith.addf %139, %138 : vector<24x128xf32>
    %c0_211 = arith.constant 0 : index
    %c0_212 = arith.constant 0 : index
    %141 = vector.load %arg8[%c0_211, %c0_212] : memref<24x128xf32, #tpu.memory_space<vmem>>, vector<24x128xf32>
    tpu.vector_store %arg8[%c0_211, %c0_212], %140 {strides = array<i32>} : memref<24x128xf32, #tpu.memory_space<vmem>>, vector<24x128xf32>,
    %c0_213 = arith.constant 0 : index
    %c0_214 = arith.constant 0 : index
    %c3_215 = arith.constant 3 : index
    %c7_216 = arith.constant 7 : index
    %c0_217 = arith.constant 0 : index
    %142 = vector.load %arg2[%c0_213, %c0_214, %c3_215, %c7_216, %c0_217] : memref<1x1x4x38x32xbf16, #tpu.memory_space<vmem>>, vector<1x1x1x24x32xbf16>
    %143 = vector.shape_cast %142 : vector<1x1x1x24x32xbf16> to vector<24x32xbf16>
    %c18 = arith.constant 18 : index
    %c0_218 = arith.constant 0 : index
    %c0_219 = arith.constant 0 : index
    %144 = vector.load %arg3[%c18, %c0_218, %c0_219] : memref<25x32x128xbf16, #tpu.memory_space<vmem>>, vector<1x32x128xbf16>
    %145 = vector.shape_cast %144 : vector<1x32x128xbf16> to vector<32x128xbf16>
    %cst_220 = arith.constant dense<0.000000e+00> : vector<24x128xf32>
    %146 = tpu.matmul %143, %145, %cst_220 {dimension_numbers = #tpu.dot_dimension_numbers<[1], [0], [0], [1], [0, 0, 1, 1], [], []>} : vector<24x32xbf16>, vector<32x128xbf16>, vector<24x128xf32> -> vector<24x128xf32>
    %c0_221 = arith.constant 0 : index
    %c0_222 = arith.constant 0 : index
    %147 = vector.load %arg8[%c0_221, %c0_222] : memref<24x128xf32, #tpu.memory_space<vmem>>, vector<24x128xf32>
    %148 = arith.addf %147, %146 : vector<24x128xf32>
    %c0_223 = arith.constant 0 : index
    %c0_224 = arith.constant 0 : index
    %149 = vector.load %arg8[%c0_223, %c0_224] : memref<24x128xf32, #tpu.memory_space<vmem>>, vector<24x128xf32>
    tpu.vector_store %arg8[%c0_223, %c0_224], %148 {strides = array<i32>} : memref<24x128xf32, #tpu.memory_space<vmem>>, vector<24x128xf32>,
    %c0_225 = arith.constant 0 : index
    %c0_226 = arith.constant 0 : index
    %c2_227 = arith.constant 2 : index
    %c8_228 = arith.constant 8 : index
    %c0_229 = arith.constant 0 : index
    %150 = vector.load %arg2[%c0_225, %c0_226, %c2_227, %c8_228, %c0_229] : memref<1x1x4x38x32xbf16, #tpu.memory_space<vmem>>, vector<1x1x1x24x32xbf16>
    %151 = vector.shape_cast %150 : vector<1x1x1x24x32xbf16> to vector<24x32xbf16>
    %c19 = arith.constant 19 : index
    %c0_230 = arith.constant 0 : index
    %c0_231 = arith.constant 0 : index
    %152 = vector.load %arg3[%c19, %c0_230, %c0_231] : memref<25x32x128xbf16, #tpu.memory_space<vmem>>, vector<1x32x128xbf16>
    %153 = vector.shape_cast %152 : vector<1x32x128xbf16> to vector<32x128xbf16>
    %cst_232 = arith.constant dense<0.000000e+00> : vector<24x128xf32>
    %154 = tpu.matmul %151, %153, %cst_232 {dimension_numbers = #tpu.dot_dimension_numbers<[1], [0], [0], [1], [0, 0, 1, 1], [], []>} : vector<24x32xbf16>, vector<32x128xbf16>, vector<24x128xf32> -> vector<24x128xf32>
    %c0_233 = arith.constant 0 : index
    %c0_234 = arith.constant 0 : index
    %155 = vector.load %arg8[%c0_233, %c0_234] : memref<24x128xf32, #tpu.memory_space<vmem>>, vector<24x128xf32>
    %156 = arith.addf %155, %154 : vector<24x128xf32>
    %c0_235 = arith.constant 0 : index
    %c0_236 = arith.constant 0 : index
    %157 = vector.load %arg8[%c0_235, %c0_236] : memref<24x128xf32, #tpu.memory_space<vmem>>, vector<24x128xf32>
    tpu.vector_store %arg8[%c0_235, %c0_236], %156 {strides = array<i32>} : memref<24x128xf32, #tpu.memory_space<vmem>>, vector<24x128xf32>,
    %c0_237 = arith.constant 0 : index
    %c0_238 = arith.constant 0 : index
    %c0_239 = arith.constant 0 : index
    %c12_240 = arith.constant 12 : index
    %c0_241 = arith.constant 0 : index
    %158 = vector.load %arg2[%c0_237, %c0_238, %c0_239, %c12_240, %c0_241] : memref<1x1x4x38x32xbf16, #tpu.memory_space<vmem>>, vector<1x1x1x24x32xbf16>
    %159 = vector.shape_cast %158 : vector<1x1x1x24x32xbf16> to vector<24x32xbf16>
    %c20 = arith.constant 20 : index
    %c0_242 = arith.constant 0 : index
    %c0_243 = arith.constant 0 : index
    %160 = vector.load %arg3[%c20, %c0_242, %c0_243] : memref<25x32x128xbf16, #tpu.memory_space<vmem>>, vector<1x32x128xbf16>
    %161 = vector.shape_cast %160 : vector<1x32x128xbf16> to vector<32x128xbf16>
    %cst_244 = arith.constant dense<0.000000e+00> : vector<24x128xf32>
    %162 = tpu.matmul %159, %161, %cst_244 {dimension_numbers = #tpu.dot_dimension_numbers<[1], [0], [0], [1], [0, 0, 1, 1], [], []>} : vector<24x32xbf16>, vector<32x128xbf16>, vector<24x128xf32> -> vector<24x128xf32>
    %c0_245 = arith.constant 0 : index
    %c0_246 = arith.constant 0 : index
    %163 = vector.load %arg8[%c0_245, %c0_246] : memref<24x128xf32, #tpu.memory_space<vmem>>, vector<24x128xf32>
    %164 = arith.addf %163, %162 : vector<24x128xf32>
    %c0_247 = arith.constant 0 : index
    %c0_248 = arith.constant 0 : index
    %165 = vector.load %arg8[%c0_247, %c0_248] : memref<24x128xf32, #tpu.memory_space<vmem>>, vector<24x128xf32>
    tpu.vector_store %arg8[%c0_247, %c0_248], %164 {strides = array<i32>} : memref<24x128xf32, #tpu.memory_space<vmem>>, vector<24x128xf32>,
    %c0_249 = arith.constant 0 : index
    %c0_250 = arith.constant 0 : index
    %c1_251 = arith.constant 1 : index
    %c12_252 = arith.constant 12 : index
    %c0_253 = arith.constant 0 : index
    %166 = vector.load %arg2[%c0_249, %c0_250, %c1_251, %c12_252, %c0_253] : memref<1x1x4x38x32xbf16, #tpu.memory_space<vmem>>, vector<1x1x1x24x32xbf16>
    %167 = vector.shape_cast %166 : vector<1x1x1x24x32xbf16> to vector<24x32xbf16>
    %c21 = arith.constant 21 : index
    %c0_254 = arith.constant 0 : index
    %c0_255 = arith.constant 0 : index
    %168 = vector.load %arg3[%c21, %c0_254, %c0_255] : memref<25x32x128xbf16, #tpu.memory_space<vmem>>, vector<1x32x128xbf16>
    %169 = vector.shape_cast %168 : vector<1x32x128xbf16> to vector<32x128xbf16>
    %cst_256 = arith.constant dense<0.000000e+00> : vector<24x128xf32>
    %170 = tpu.matmul %167, %169, %cst_256 {dimension_numbers = #tpu.dot_dimension_numbers<[1], [0], [0], [1], [0, 0, 1, 1], [], []>} : vector<24x32xbf16>, vector<32x128xbf16>, vector<24x128xf32> -> vector<24x128xf32>
    %c0_257 = arith.constant 0 : index
    %c0_258 = arith.constant 0 : index
    %171 = vector.load %arg8[%c0_257, %c0_258] : memref<24x128xf32, #tpu.memory_space<vmem>>, vector<24x128xf32>
    %172 = arith.addf %171, %170 : vector<24x128xf32>
    %c0_259 = arith.constant 0 : index
    %c0_260 = arith.constant 0 : index
    %173 = vector.load %arg8[%c0_259, %c0_260] : memref<24x128xf32, #tpu.memory_space<vmem>>, vector<24x128xf32>
    tpu.vector_store %arg8[%c0_259, %c0_260], %172 {strides = array<i32>} : memref<24x128xf32, #tpu.memory_space<vmem>>, vector<24x128xf32>,
    %c0_261 = arith.constant 0 : index
    %c0_262 = arith.constant 0 : index
    %c0_263 = arith.constant 0 : index
    %c13_264 = arith.constant 13 : index
    %c0_265 = arith.constant 0 : index
    %174 = vector.load %arg2[%c0_261, %c0_262, %c0_263, %c13_264, %c0_265] : memref<1x1x4x38x32xbf16, #tpu.memory_space<vmem>>, vector<1x1x1x24x32xbf16>
    %175 = vector.shape_cast %174 : vector<1x1x1x24x32xbf16> to vector<24x32xbf16>
    %c22 = arith.constant 22 : index
    %c0_266 = arith.constant 0 : index
    %c0_267 = arith.constant 0 : index
    %176 = vector.load %arg3[%c22, %c0_266, %c0_267] : memref<25x32x128xbf16, #tpu.memory_space<vmem>>, vector<1x32x128xbf16>
    %177 = vector.shape_cast %176 : vector<1x32x128xbf16> to vector<32x128xbf16>
    %cst_268 = arith.constant dense<0.000000e+00> : vector<24x128xf32>
    %178 = tpu.matmul %175, %177, %cst_268 {dimension_numbers = #tpu.dot_dimension_numbers<[1], [0], [0], [1], [0, 0, 1, 1], [], []>} : vector<24x32xbf16>, vector<32x128xbf16>, vector<24x128xf32> -> vector<24x128xf32>
    %c0_269 = arith.constant 0 : index
    %c0_270 = arith.constant 0 : index
    %179 = vector.load %arg8[%c0_269, %c0_270] : memref<24x128xf32, #tpu.memory_space<vmem>>, vector<24x128xf32>
    %180 = arith.addf %179, %178 : vector<24x128xf32>
    %c0_271 = arith.constant 0 : index
    %c0_272 = arith.constant 0 : index
    %181 = vector.load %arg8[%c0_271, %c0_272] : memref<24x128xf32, #tpu.memory_space<vmem>>, vector<24x128xf32>
    tpu.vector_store %arg8[%c0_271, %c0_272], %180 {strides = array<i32>} : memref<24x128xf32, #tpu.memory_space<vmem>>, vector<24x128xf32>,
    %c0_273 = arith.constant 0 : index
    %c0_274 = arith.constant 0 : index
    %c1_275 = arith.constant 1 : index
    %c13_276 = arith.constant 13 : index
    %c0_277 = arith.constant 0 : index
    %182 = vector.load %arg2[%c0_273, %c0_274, %c1_275, %c13_276, %c0_277] : memref<1x1x4x38x32xbf16, #tpu.memory_space<vmem>>, vector<1x1x1x24x32xbf16>
    %183 = vector.shape_cast %182 : vector<1x1x1x24x32xbf16> to vector<24x32xbf16>
    %c23 = arith.constant 23 : index
    %c0_278 = arith.constant 0 : index
    %c0_279 = arith.constant 0 : index
    %184 = vector.load %arg3[%c23, %c0_278, %c0_279] : memref<25x32x128xbf16, #tpu.memory_space<vmem>>, vector<1x32x128xbf16>
    %185 = vector.shape_cast %184 : vector<1x32x128xbf16> to vector<32x128xbf16>
    %cst_280 = arith.constant dense<0.000000e+00> : vector<24x128xf32>
    %186 = tpu.matmul %183, %185, %cst_280 {dimension_numbers = #tpu.dot_dimension_numbers<[1], [0], [0], [1], [0, 0, 1, 1], [], []>} : vector<24x32xbf16>, vector<32x128xbf16>, vector<24x128xf32> -> vector<24x128xf32>
    %c0_281 = arith.constant 0 : index
    %c0_282 = arith.constant 0 : index
    %187 = vector.load %arg8[%c0_281, %c0_282] : memref<24x128xf32, #tpu.memory_space<vmem>>, vector<24x128xf32>
    %188 = arith.addf %187, %186 : vector<24x128xf32>
    %c0_283 = arith.constant 0 : index
    %c0_284 = arith.constant 0 : index
    %189 = vector.load %arg8[%c0_283, %c0_284] : memref<24x128xf32, #tpu.memory_space<vmem>>, vector<24x128xf32>
    tpu.vector_store %arg8[%c0_283, %c0_284], %188 {strides = array<i32>} : memref<24x128xf32, #tpu.memory_space<vmem>>, vector<24x128xf32>,
    %c0_285 = arith.constant 0 : index
    %c0_286 = arith.constant 0 : index
    %c0_287 = arith.constant 0 : index
    %c14_288 = arith.constant 14 : index
    %c0_289 = arith.constant 0 : index
    %190 = vector.load %arg2[%c0_285, %c0_286, %c0_287, %c14_288, %c0_289] : memref<1x1x4x38x32xbf16, #tpu.memory_space<vmem>>, vector<1x1x1x24x32xbf16>
    %191 = vector.shape_cast %190 : vector<1x1x1x24x32xbf16> to vector<24x32xbf16>
    %c24 = arith.constant 24 : index
    %c0_290 = arith.constant 0 : index
    %c0_291 = arith.constant 0 : index
    %192 = vector.load %arg3[%c24, %c0_290, %c0_291] : memref<25x32x128xbf16, #tpu.memory_space<vmem>>, vector<1x32x128xbf16>
    %193 = vector.shape_cast %192 : vector<1x32x128xbf16> to vector<32x128xbf16>
    %cst_292 = arith.constant dense<0.000000e+00> : vector<24x128xf32>
    %194 = tpu.matmul %191, %193, %cst_292 {dimension_numbers = #tpu.dot_dimension_numbers<[1], [0], [0], [1], [0, 0, 1, 1], [], []>} : vector<24x32xbf16>, vector<32x128xbf16>, vector<24x128xf32> -> vector<24x128xf32>
    %c0_293 = arith.constant 0 : index
    %c0_294 = arith.constant 0 : index
    %195 = vector.load %arg8[%c0_293, %c0_294] : memref<24x128xf32, #tpu.memory_space<vmem>>, vector<24x128xf32>
    %196 = arith.addf %195, %194 : vector<24x128xf32>
    %c0_295 = arith.constant 0 : index
    %c0_296 = arith.constant 0 : index
    %197 = vector.load %arg8[%c0_295, %c0_296] : memref<24x128xf32, #tpu.memory_space<vmem>>, vector<24x128xf32>
    tpu.vector_store %arg8[%c0_295, %c0_296], %196 {strides = array<i32>} : memref<24x128xf32, #tpu.memory_space<vmem>>, vector<24x128xf32>,
    %c0_297 = arith.constant 0 : index
    %c0_298 = arith.constant 0 : index
    %198 = vector.load %arg8[%c0_297, %c0_298] : memref<24x128xf32, #tpu.memory_space<vmem>>, vector<24x128xf32>
    %c0_299 = arith.constant 0 : index
    %c0_300 = arith.constant 0 : index
    %199 = vector.load %arg4[%c0_299, %c0_300] : memref<1x128xf32, #tpu.memory_space<vmem>>, vector<1x128xf32>
    %200 = vector.broadcast %199 : vector<1x128xf32> to vector<24x128xf32>
    %201 = arith.addf %198, %200 : vector<24x128xf32>
    %202 = arith.mulf %201, %201 : vector<24x128xf32>
    %203 = arith.truncf %202 : vector<24x128xf32> to vector<24x128xbf16>
    %c0_301 = arith.constant 0 : index
    %c0_302 = arith.constant 0 : index
    %204 = vector.load %arg5[%c0_301, %c0_302] : memref<128x128xbf16, #tpu.memory_space<vmem>>, vector<128x128xbf16>
    %cst_303 = arith.constant dense<0.000000e+00> : vector<24x128xf32>
    %205 = tpu.matmul %203, %204, %cst_303 {dimension_numbers = #tpu.dot_dimension_numbers<[1], [0], [0], [1], [0, 0, 1, 1], [], []>} : vector<24x128xbf16>, vector<128x128xbf16>, vector<24x128xf32> -> vector<24x128xf32>
    %c0_304 = arith.constant 0 : index
    %c0_305 = arith.constant 0 : index
    %206 = vector.load %arg6[%c0_304, %c0_305] : memref<1x128xf32, #tpu.memory_space<vmem>>, vector<1x128xf32>
    %207 = vector.broadcast %206 : vector<1x128xf32> to vector<24x128xf32>
    %208 = arith.addf %205, %207 : vector<24x128xf32>
    %209 = math.rsqrt %208 : vector<24x128xf32>
    %210 = arith.mulf %201, %209 : vector<24x128xf32>
    %211 = arith.truncf %210 : vector<24x128xf32> to vector<24x128xbf16>
    %c0_306 = arith.constant 0 : index
    %c0_307 = arith.constant 0 : index
    %c0_308 = arith.constant 0 : index
    %212 = vector.load %arg7[%c0_306, %c0_307, %c0_308] : memref<1x24x128xbf16, #tpu.memory_space<vmem>>, vector<1x24x128xbf16>
    %213 = vector.shape_cast %212 : vector<1x24x128xbf16> to vector<24x128xbf16>
    %214 = vector.shape_cast %211 : vector<24x128xbf16> to vector<1x24x128xbf16>
    tpu.vector_store %arg7[%c0_306, %c0_307, %c0_308], %214 {strides = array<i32>} : memref<1x24x128xbf16, #tpu.memory_space<vmem>>, vector<1x24x128xbf16>,
    return
  }
  func.func @transform_0(%arg0: i32, %arg1: i32) -> (i32, i32, i32, i32, i32) {
    %c0_i32 = arith.constant 0 : i32
    %c0_i32_0 = arith.constant 0 : i32
    %c0_i32_1 = arith.constant 0 : i32
    %c0_i32_2 = arith.constant 0 : i32
    return %arg0, %arg1, %c0_i32, %c0_i32_0, %c0_i32_1 : i32, i32, i32, i32, i32
  }
  func.func @transform_1(%arg0: i32, %arg1: i32) -> (i32, i32, i32) {
    %c0_i32 = arith.constant 0 : i32
    %c0_i32_0 = arith.constant 0 : i32
    %c0_i32_1 = arith.constant 0 : i32
    %c0_i32_2 = arith.constant 0 : i32
    return %c0_i32, %c0_i32_0, %c0_i32_1 : i32, i32, i32
  }
  func.func @transform_2(%arg0: i32, %arg1: i32) -> (i32, i32) {
    %c0_i32 = arith.constant 0 : i32
    %c0_i32_0 = arith.constant 0 : i32
    %c0_i32_1 = arith.constant 0 : i32
    return %c0_i32, %c0_i32_0 : i32, i32
  }
  func.func @transform_3(%arg0: i32, %arg1: i32) -> (i32, i32) {
    %c0_i32 = arith.constant 0 : i32
    %c0_i32_0 = arith.constant 0 : i32
    %c0_i32_1 = arith.constant 0 : i32
    return %c0_i32, %c0_i32_0 : i32, i32
  }
  func.func @transform_4(%arg0: i32, %arg1: i32) -> (i32, i32) {
    %c0_i32 = arith.constant 0 : i32
    %c0_i32_0 = arith.constant 0 : i32
    %c0_i32_1 = arith.constant 0 : i32
    return %c0_i32, %c0_i32_0 : i32, i32
  }
  func.func @transform_5(%arg0: i32, %arg1: i32) -> (i32, i32, i32) {
    %c0_i32 = arith.constant 0 : i32
    %c0_i32_0 = arith.constant 0 : i32
    return %arg0, %arg1, %c0_i32 : i32, i32, i32
  }
}

module attributes {stable_mosaic.version = 11 : i64} {
  func.func @_conv_kernel(%arg0: i32, %arg1: i32, %arg2: memref<1x1x4x18x32xbf16, #tpu.memory_space<vmem>>, %arg3: memref<25x32x128xbf16, #tpu.memory_space<vmem>>, %arg4: memref<1x128xf32, #tpu.memory_space<vmem>>, %arg5: memref<1x8x128xbf16, #tpu.memory_space<vmem>>, %arg6: memref<8x128xf32, #tpu.memory_space<vmem>>) attributes {dimension_semantics = [#tpu.dimension_semantics<parallel>, #tpu.dimension_semantics<parallel>], iteration_bounds = array<i64: 2, 1>, scalar_prefetch = 0 : i64, scratch_operands = 1 : i64, tpu.core_type = #tpu.core_type<tc>, window_params = [{transform_indices = @transform_0, window_bounds = array<i64: 1, 1, 4, 18, 32>}, {pipeline_mode = #tpu.pipeline_mode<synchronous>, transform_indices = @transform_1, window_bounds = array<i64: 25, 32, 128>}, {pipeline_mode = #tpu.pipeline_mode<synchronous>, transform_indices = @transform_2, window_bounds = array<i64: 1, 128>}, {transform_indices = @transform_3, window_bounds = array<i64: 1, 8, 128>}]} {
    %c0 = arith.constant 0 : index
    %c0_0 = arith.constant 0 : index
    %c0_1 = arith.constant 0 : index
    %c0_2 = arith.constant 0 : index
    %c0_3 = arith.constant 0 : index
    %0 = vector.load %arg2[%c0, %c0_0, %c0_1, %c0_2, %c0_3] : memref<1x1x4x18x32xbf16, #tpu.memory_space<vmem>>, vector<1x1x1x8x32xbf16>
    %1 = vector.shape_cast %0 : vector<1x1x1x8x32xbf16> to vector<8x32xbf16>
    %c0_4 = arith.constant 0 : index
    %c0_5 = arith.constant 0 : index
    %c0_6 = arith.constant 0 : index
    %2 = vector.load %arg3[%c0_4, %c0_5, %c0_6] : memref<25x32x128xbf16, #tpu.memory_space<vmem>>, vector<1x32x128xbf16>
    %3 = vector.shape_cast %2 : vector<1x32x128xbf16> to vector<32x128xbf16>
    %cst = arith.constant dense<0.000000e+00> : vector<8x128xf32>
    %4 = tpu.matmul %1, %3, %cst {dimension_numbers = #tpu.dot_dimension_numbers<[1], [0], [0], [1], [0, 0, 1, 1], [], []>} : vector<8x32xbf16>, vector<32x128xbf16>, vector<8x128xf32> -> vector<8x128xf32>
    %c0_7 = arith.constant 0 : index
    %c0_8 = arith.constant 0 : index
    %5 = vector.load %arg6[%c0_7, %c0_8] : memref<8x128xf32, #tpu.memory_space<vmem>>, vector<8x128xf32>
    tpu.vector_store %arg6[%c0_7, %c0_8], %4 {strides = array<i32>} : memref<8x128xf32, #tpu.memory_space<vmem>>, vector<8x128xf32>,
    %c0_9 = arith.constant 0 : index
    %c0_10 = arith.constant 0 : index
    %c1 = arith.constant 1 : index
    %c0_11 = arith.constant 0 : index
    %c0_12 = arith.constant 0 : index
    %6 = vector.load %arg2[%c0_9, %c0_10, %c1, %c0_11, %c0_12] : memref<1x1x4x18x32xbf16, #tpu.memory_space<vmem>>, vector<1x1x1x8x32xbf16>
    %7 = vector.shape_cast %6 : vector<1x1x1x8x32xbf16> to vector<8x32xbf16>
    %c1_13 = arith.constant 1 : index
    %c0_14 = arith.constant 0 : index
    %c0_15 = arith.constant 0 : index
    %8 = vector.load %arg3[%c1_13, %c0_14, %c0_15] : memref<25x32x128xbf16, #tpu.memory_space<vmem>>, vector<1x32x128xbf16>
    %9 = vector.shape_cast %8 : vector<1x32x128xbf16> to vector<32x128xbf16>
    %cst_16 = arith.constant dense<0.000000e+00> : vector<8x128xf32>
    %10 = tpu.matmul %7, %9, %cst_16 {dimension_numbers = #tpu.dot_dimension_numbers<[1], [0], [0], [1], [0, 0, 1, 1], [], []>} : vector<8x32xbf16>, vector<32x128xbf16>, vector<8x128xf32> -> vector<8x128xf32>
    %c0_17 = arith.constant 0 : index
    %c0_18 = arith.constant 0 : index
    %11 = vector.load %arg6[%c0_17, %c0_18] : memref<8x128xf32, #tpu.memory_space<vmem>>, vector<8x128xf32>
    %12 = arith.addf %11, %10 : vector<8x128xf32>
    %c0_19 = arith.constant 0 : index
    %c0_20 = arith.constant 0 : index
    %13 = vector.load %arg6[%c0_19, %c0_20] : memref<8x128xf32, #tpu.memory_space<vmem>>, vector<8x128xf32>
    tpu.vector_store %arg6[%c0_19, %c0_20], %12 {strides = array<i32>} : memref<8x128xf32, #tpu.memory_space<vmem>>, vector<8x128xf32>,
    %c0_21 = arith.constant 0 : index
    %c0_22 = arith.constant 0 : index
    %c0_23 = arith.constant 0 : index
    %c1_24 = arith.constant 1 : index
    %c0_25 = arith.constant 0 : index
    %14 = vector.load %arg2[%c0_21, %c0_22, %c0_23, %c1_24, %c0_25] : memref<1x1x4x18x32xbf16, #tpu.memory_space<vmem>>, vector<1x1x1x8x32xbf16>
    %15 = vector.shape_cast %14 : vector<1x1x1x8x32xbf16> to vector<8x32xbf16>
    %c2 = arith.constant 2 : index
    %c0_26 = arith.constant 0 : index
    %c0_27 = arith.constant 0 : index
    %16 = vector.load %arg3[%c2, %c0_26, %c0_27] : memref<25x32x128xbf16, #tpu.memory_space<vmem>>, vector<1x32x128xbf16>
    %17 = vector.shape_cast %16 : vector<1x32x128xbf16> to vector<32x128xbf16>
    %cst_28 = arith.constant dense<0.000000e+00> : vector<8x128xf32>
    %18 = tpu.matmul %15, %17, %cst_28 {dimension_numbers = #tpu.dot_dimension_numbers<[1], [0], [0], [1], [0, 0, 1, 1], [], []>} : vector<8x32xbf16>, vector<32x128xbf16>, vector<8x128xf32> -> vector<8x128xf32>
    %c0_29 = arith.constant 0 : index
    %c0_30 = arith.constant 0 : index
    %19 = vector.load %arg6[%c0_29, %c0_30] : memref<8x128xf32, #tpu.memory_space<vmem>>, vector<8x128xf32>
    %20 = arith.addf %19, %18 : vector<8x128xf32>
    %c0_31 = arith.constant 0 : index
    %c0_32 = arith.constant 0 : index
    %21 = vector.load %arg6[%c0_31, %c0_32] : memref<8x128xf32, #tpu.memory_space<vmem>>, vector<8x128xf32>
    tpu.vector_store %arg6[%c0_31, %c0_32], %20 {strides = array<i32>} : memref<8x128xf32, #tpu.memory_space<vmem>>, vector<8x128xf32>,
    %c0_33 = arith.constant 0 : index
    %c0_34 = arith.constant 0 : index
    %c1_35 = arith.constant 1 : index
    %c1_36 = arith.constant 1 : index
    %c0_37 = arith.constant 0 : index
    %22 = vector.load %arg2[%c0_33, %c0_34, %c1_35, %c1_36, %c0_37] : memref<1x1x4x18x32xbf16, #tpu.memory_space<vmem>>, vector<1x1x1x8x32xbf16>
    %23 = vector.shape_cast %22 : vector<1x1x1x8x32xbf16> to vector<8x32xbf16>
    %c3 = arith.constant 3 : index
    %c0_38 = arith.constant 0 : index
    %c0_39 = arith.constant 0 : index
    %24 = vector.load %arg3[%c3, %c0_38, %c0_39] : memref<25x32x128xbf16, #tpu.memory_space<vmem>>, vector<1x32x128xbf16>
    %25 = vector.shape_cast %24 : vector<1x32x128xbf16> to vector<32x128xbf16>
    %cst_40 = arith.constant dense<0.000000e+00> : vector<8x128xf32>
    %26 = tpu.matmul %23, %25, %cst_40 {dimension_numbers = #tpu.dot_dimension_numbers<[1], [0], [0], [1], [0, 0, 1, 1], [], []>} : vector<8x32xbf16>, vector<32x128xbf16>, vector<8x128xf32> -> vector<8x128xf32>
    %c0_41 = arith.constant 0 : index
    %c0_42 = arith.constant 0 : index
    %27 = vector.load %arg6[%c0_41, %c0_42] : memref<8x128xf32, #tpu.memory_space<vmem>>, vector<8x128xf32>
    %28 = arith.addf %27, %26 : vector<8x128xf32>
    %c0_43 = arith.constant 0 : index
    %c0_44 = arith.constant 0 : index
    %29 = vector.load %arg6[%c0_43, %c0_44] : memref<8x128xf32, #tpu.memory_space<vmem>>, vector<8x128xf32>
    tpu.vector_store %arg6[%c0_43, %c0_44], %28 {strides = array<i32>} : memref<8x128xf32, #tpu.memory_space<vmem>>, vector<8x128xf32>,
    %c0_45 = arith.constant 0 : index
    %c0_46 = arith.constant 0 : index
    %c0_47 = arith.constant 0 : index
    %c2_48 = arith.constant 2 : index
    %c0_49 = arith.constant 0 : index
    %30 = vector.load %arg2[%c0_45, %c0_46, %c0_47, %c2_48, %c0_49] : memref<1x1x4x18x32xbf16, #tpu.memory_space<vmem>>, vector<1x1x1x8x32xbf16>
    %31 = vector.shape_cast %30 : vector<1x1x1x8x32xbf16> to vector<8x32xbf16>
    %c4 = arith.constant 4 : index
    %c0_50 = arith.constant 0 : index
    %c0_51 = arith.constant 0 : index
    %32 = vector.load %arg3[%c4, %c0_50, %c0_51] : memref<25x32x128xbf16, #tpu.memory_space<vmem>>, vector<1x32x128xbf16>
    %33 = vector.shape_cast %32 : vector<1x32x128xbf16> to vector<32x128xbf16>
    %cst_52 = arith.constant dense<0.000000e+00> : vector<8x128xf32>
    %34 = tpu.matmul %31, %33, %cst_52 {dimension_numbers = #tpu.dot_dimension_numbers<[1], [0], [0], [1], [0, 0, 1, 1], [], []>} : vector<8x32xbf16>, vector<32x128xbf16>, vector<8x128xf32> -> vector<8x128xf32>
    %c0_53 = arith.constant 0 : index
    %c0_54 = arith.constant 0 : index
    %35 = vector.load %arg6[%c0_53, %c0_54] : memref<8x128xf32, #tpu.memory_space<vmem>>, vector<8x128xf32>
    %36 = arith.addf %35, %34 : vector<8x128xf32>
    %c0_55 = arith.constant 0 : index
    %c0_56 = arith.constant 0 : index
    %37 = vector.load %arg6[%c0_55, %c0_56] : memref<8x128xf32, #tpu.memory_space<vmem>>, vector<8x128xf32>
    tpu.vector_store %arg6[%c0_55, %c0_56], %36 {strides = array<i32>} : memref<8x128xf32, #tpu.memory_space<vmem>>, vector<8x128xf32>,
    %c0_57 = arith.constant 0 : index
    %c0_58 = arith.constant 0 : index
    %c2_59 = arith.constant 2 : index
    %c0_60 = arith.constant 0 : index
    %c0_61 = arith.constant 0 : index
    %38 = vector.load %arg2[%c0_57, %c0_58, %c2_59, %c0_60, %c0_61] : memref<1x1x4x18x32xbf16, #tpu.memory_space<vmem>>, vector<1x1x1x8x32xbf16>
    %39 = vector.shape_cast %38 : vector<1x1x1x8x32xbf16> to vector<8x32xbf16>
    %c5 = arith.constant 5 : index
    %c0_62 = arith.constant 0 : index
    %c0_63 = arith.constant 0 : index
    %40 = vector.load %arg3[%c5, %c0_62, %c0_63] : memref<25x32x128xbf16, #tpu.memory_space<vmem>>, vector<1x32x128xbf16>
    %41 = vector.shape_cast %40 : vector<1x32x128xbf16> to vector<32x128xbf16>
    %cst_64 = arith.constant dense<0.000000e+00> : vector<8x128xf32>
    %42 = tpu.matmul %39, %41, %cst_64 {dimension_numbers = #tpu.dot_dimension_numbers<[1], [0], [0], [1], [0, 0, 1, 1], [], []>} : vector<8x32xbf16>, vector<32x128xbf16>, vector<8x128xf32> -> vector<8x128xf32>
    %c0_65 = arith.constant 0 : index
    %c0_66 = arith.constant 0 : index
    %43 = vector.load %arg6[%c0_65, %c0_66] : memref<8x128xf32, #tpu.memory_space<vmem>>, vector<8x128xf32>
    %44 = arith.addf %43, %42 : vector<8x128xf32>
    %c0_67 = arith.constant 0 : index
    %c0_68 = arith.constant 0 : index
    %45 = vector.load %arg6[%c0_67, %c0_68] : memref<8x128xf32, #tpu.memory_space<vmem>>, vector<8x128xf32>
    tpu.vector_store %arg6[%c0_67, %c0_68], %44 {strides = array<i32>} : memref<8x128xf32, #tpu.memory_space<vmem>>, vector<8x128xf32>,
    %c0_69 = arith.constant 0 : index
    %c0_70 = arith.constant 0 : index
    %c3_71 = arith.constant 3 : index
    %c0_72 = arith.constant 0 : index
    %c0_73 = arith.constant 0 : index
    %46 = vector.load %arg2[%c0_69, %c0_70, %c3_71, %c0_72, %c0_73] : memref<1x1x4x18x32xbf16, #tpu.memory_space<vmem>>, vector<1x1x1x8x32xbf16>
    %47 = vector.shape_cast %46 : vector<1x1x1x8x32xbf16> to vector<8x32xbf16>
    %c6 = arith.constant 6 : index
    %c0_74 = arith.constant 0 : index
    %c0_75 = arith.constant 0 : index
    %48 = vector.load %arg3[%c6, %c0_74, %c0_75] : memref<25x32x128xbf16, #tpu.memory_space<vmem>>, vector<1x32x128xbf16>
    %49 = vector.shape_cast %48 : vector<1x32x128xbf16> to vector<32x128xbf16>
    %cst_76 = arith.constant dense<0.000000e+00> : vector<8x128xf32>
    %50 = tpu.matmul %47, %49, %cst_76 {dimension_numbers = #tpu.dot_dimension_numbers<[1], [0], [0], [1], [0, 0, 1, 1], [], []>} : vector<8x32xbf16>, vector<32x128xbf16>, vector<8x128xf32> -> vector<8x128xf32>
    %c0_77 = arith.constant 0 : index
    %c0_78 = arith.constant 0 : index
    %51 = vector.load %arg6[%c0_77, %c0_78] : memref<8x128xf32, #tpu.memory_space<vmem>>, vector<8x128xf32>
    %52 = arith.addf %51, %50 : vector<8x128xf32>
    %c0_79 = arith.constant 0 : index
    %c0_80 = arith.constant 0 : index
    %53 = vector.load %arg6[%c0_79, %c0_80] : memref<8x128xf32, #tpu.memory_space<vmem>>, vector<8x128xf32>
    tpu.vector_store %arg6[%c0_79, %c0_80], %52 {strides = array<i32>} : memref<8x128xf32, #tpu.memory_space<vmem>>, vector<8x128xf32>,
    %c0_81 = arith.constant 0 : index
    %c0_82 = arith.constant 0 : index
    %c2_83 = arith.constant 2 : index
    %c1_84 = arith.constant 1 : index
    %c0_85 = arith.constant 0 : index
    %54 = vector.load %arg2[%c0_81, %c0_82, %c2_83, %c1_84, %c0_85] : memref<1x1x4x18x32xbf16, #tpu.memory_space<vmem>>, vector<1x1x1x8x32xbf16>
    %55 = vector.shape_cast %54 : vector<1x1x1x8x32xbf16> to vector<8x32xbf16>
    %c7 = arith.constant 7 : index
    %c0_86 = arith.constant 0 : index
    %c0_87 = arith.constant 0 : index
    %56 = vector.load %arg3[%c7, %c0_86, %c0_87] : memref<25x32x128xbf16, #tpu.memory_space<vmem>>, vector<1x32x128xbf16>
    %57 = vector.shape_cast %56 : vector<1x32x128xbf16> to vector<32x128xbf16>
    %cst_88 = arith.constant dense<0.000000e+00> : vector<8x128xf32>
    %58 = tpu.matmul %55, %57, %cst_88 {dimension_numbers = #tpu.dot_dimension_numbers<[1], [0], [0], [1], [0, 0, 1, 1], [], []>} : vector<8x32xbf16>, vector<32x128xbf16>, vector<8x128xf32> -> vector<8x128xf32>
    %c0_89 = arith.constant 0 : index
    %c0_90 = arith.constant 0 : index
    %59 = vector.load %arg6[%c0_89, %c0_90] : memref<8x128xf32, #tpu.memory_space<vmem>>, vector<8x128xf32>
    %60 = arith.addf %59, %58 : vector<8x128xf32>
    %c0_91 = arith.constant 0 : index
    %c0_92 = arith.constant 0 : index
    %61 = vector.load %arg6[%c0_91, %c0_92] : memref<8x128xf32, #tpu.memory_space<vmem>>, vector<8x128xf32>
    tpu.vector_store %arg6[%c0_91, %c0_92], %60 {strides = array<i32>} : memref<8x128xf32, #tpu.memory_space<vmem>>, vector<8x128xf32>,
    %c0_93 = arith.constant 0 : index
    %c0_94 = arith.constant 0 : index
    %c3_95 = arith.constant 3 : index
    %c1_96 = arith.constant 1 : index
    %c0_97 = arith.constant 0 : index
    %62 = vector.load %arg2[%c0_93, %c0_94, %c3_95, %c1_96, %c0_97] : memref<1x1x4x18x32xbf16, #tpu.memory_space<vmem>>, vector<1x1x1x8x32xbf16>
    %63 = vector.shape_cast %62 : vector<1x1x1x8x32xbf16> to vector<8x32xbf16>
    %c8 = arith.constant 8 : index
    %c0_98 = arith.constant 0 : index
    %c0_99 = arith.constant 0 : index
    %64 = vector.load %arg3[%c8, %c0_98, %c0_99] : memref<25x32x128xbf16, #tpu.memory_space<vmem>>, vector<1x32x128xbf16>
    %65 = vector.shape_cast %64 : vector<1x32x128xbf16> to vector<32x128xbf16>
    %cst_100 = arith.constant dense<0.000000e+00> : vector<8x128xf32>
    %66 = tpu.matmul %63, %65, %cst_100 {dimension_numbers = #tpu.dot_dimension_numbers<[1], [0], [0], [1], [0, 0, 1, 1], [], []>} : vector<8x32xbf16>, vector<32x128xbf16>, vector<8x128xf32> -> vector<8x128xf32>
    %c0_101 = arith.constant 0 : index
    %c0_102 = arith.constant 0 : index
    %67 = vector.load %arg6[%c0_101, %c0_102] : memref<8x128xf32, #tpu.memory_space<vmem>>, vector<8x128xf32>
    %68 = arith.addf %67, %66 : vector<8x128xf32>
    %c0_103 = arith.constant 0 : index
    %c0_104 = arith.constant 0 : index
    %69 = vector.load %arg6[%c0_103, %c0_104] : memref<8x128xf32, #tpu.memory_space<vmem>>, vector<8x128xf32>
    tpu.vector_store %arg6[%c0_103, %c0_104], %68 {strides = array<i32>} : memref<8x128xf32, #tpu.memory_space<vmem>>, vector<8x128xf32>,
    %c0_105 = arith.constant 0 : index
    %c0_106 = arith.constant 0 : index
    %c2_107 = arith.constant 2 : index
    %c2_108 = arith.constant 2 : index
    %c0_109 = arith.constant 0 : index
    %70 = vector.load %arg2[%c0_105, %c0_106, %c2_107, %c2_108, %c0_109] : memref<1x1x4x18x32xbf16, #tpu.memory_space<vmem>>, vector<1x1x1x8x32xbf16>
    %71 = vector.shape_cast %70 : vector<1x1x1x8x32xbf16> to vector<8x32xbf16>
    %c9 = arith.constant 9 : index
    %c0_110 = arith.constant 0 : index
    %c0_111 = arith.constant 0 : index
    %72 = vector.load %arg3[%c9, %c0_110, %c0_111] : memref<25x32x128xbf16, #tpu.memory_space<vmem>>, vector<1x32x128xbf16>
    %73 = vector.shape_cast %72 : vector<1x32x128xbf16> to vector<32x128xbf16>
    %cst_112 = arith.constant dense<0.000000e+00> : vector<8x128xf32>
    %74 = tpu.matmul %71, %73, %cst_112 {dimension_numbers = #tpu.dot_dimension_numbers<[1], [0], [0], [1], [0, 0, 1, 1], [], []>} : vector<8x32xbf16>, vector<32x128xbf16>, vector<8x128xf32> -> vector<8x128xf32>
    %c0_113 = arith.constant 0 : index
    %c0_114 = arith.constant 0 : index
    %75 = vector.load %arg6[%c0_113, %c0_114] : memref<8x128xf32, #tpu.memory_space<vmem>>, vector<8x128xf32>
    %76 = arith.addf %75, %74 : vector<8x128xf32>
    %c0_115 = arith.constant 0 : index
    %c0_116 = arith.constant 0 : index
    %77 = vector.load %arg6[%c0_115, %c0_116] : memref<8x128xf32, #tpu.memory_space<vmem>>, vector<8x128xf32>
    tpu.vector_store %arg6[%c0_115, %c0_116], %76 {strides = array<i32>} : memref<8x128xf32, #tpu.memory_space<vmem>>, vector<8x128xf32>,
    %c0_117 = arith.constant 0 : index
    %c0_118 = arith.constant 0 : index
    %c0_119 = arith.constant 0 : index
    %c4_120 = arith.constant 4 : index
    %c0_121 = arith.constant 0 : index
    %78 = vector.load %arg2[%c0_117, %c0_118, %c0_119, %c4_120, %c0_121] : memref<1x1x4x18x32xbf16, #tpu.memory_space<vmem>>, vector<1x1x1x8x32xbf16>
    %79 = vector.shape_cast %78 : vector<1x1x1x8x32xbf16> to vector<8x32xbf16>
    %c10 = arith.constant 10 : index
    %c0_122 = arith.constant 0 : index
    %c0_123 = arith.constant 0 : index
    %80 = vector.load %arg3[%c10, %c0_122, %c0_123] : memref<25x32x128xbf16, #tpu.memory_space<vmem>>, vector<1x32x128xbf16>
    %81 = vector.shape_cast %80 : vector<1x32x128xbf16> to vector<32x128xbf16>
    %cst_124 = arith.constant dense<0.000000e+00> : vector<8x128xf32>
    %82 = tpu.matmul %79, %81, %cst_124 {dimension_numbers = #tpu.dot_dimension_numbers<[1], [0], [0], [1], [0, 0, 1, 1], [], []>} : vector<8x32xbf16>, vector<32x128xbf16>, vector<8x128xf32> -> vector<8x128xf32>
    %c0_125 = arith.constant 0 : index
    %c0_126 = arith.constant 0 : index
    %83 = vector.load %arg6[%c0_125, %c0_126] : memref<8x128xf32, #tpu.memory_space<vmem>>, vector<8x128xf32>
    %84 = arith.addf %83, %82 : vector<8x128xf32>
    %c0_127 = arith.constant 0 : index
    %c0_128 = arith.constant 0 : index
    %85 = vector.load %arg6[%c0_127, %c0_128] : memref<8x128xf32, #tpu.memory_space<vmem>>, vector<8x128xf32>
    tpu.vector_store %arg6[%c0_127, %c0_128], %84 {strides = array<i32>} : memref<8x128xf32, #tpu.memory_space<vmem>>, vector<8x128xf32>,
    %c0_129 = arith.constant 0 : index
    %c0_130 = arith.constant 0 : index
    %c1_131 = arith.constant 1 : index
    %c4_132 = arith.constant 4 : index
    %c0_133 = arith.constant 0 : index
    %86 = vector.load %arg2[%c0_129, %c0_130, %c1_131, %c4_132, %c0_133] : memref<1x1x4x18x32xbf16, #tpu.memory_space<vmem>>, vector<1x1x1x8x32xbf16>
    %87 = vector.shape_cast %86 : vector<1x1x1x8x32xbf16> to vector<8x32xbf16>
    %c11 = arith.constant 11 : index
    %c0_134 = arith.constant 0 : index
    %c0_135 = arith.constant 0 : index
    %88 = vector.load %arg3[%c11, %c0_134, %c0_135] : memref<25x32x128xbf16, #tpu.memory_space<vmem>>, vector<1x32x128xbf16>
    %89 = vector.shape_cast %88 : vector<1x32x128xbf16> to vector<32x128xbf16>
    %cst_136 = arith.constant dense<0.000000e+00> : vector<8x128xf32>
    %90 = tpu.matmul %87, %89, %cst_136 {dimension_numbers = #tpu.dot_dimension_numbers<[1], [0], [0], [1], [0, 0, 1, 1], [], []>} : vector<8x32xbf16>, vector<32x128xbf16>, vector<8x128xf32> -> vector<8x128xf32>
    %c0_137 = arith.constant 0 : index
    %c0_138 = arith.constant 0 : index
    %91 = vector.load %arg6[%c0_137, %c0_138] : memref<8x128xf32, #tpu.memory_space<vmem>>, vector<8x128xf32>
    %92 = arith.addf %91, %90 : vector<8x128xf32>
    %c0_139 = arith.constant 0 : index
    %c0_140 = arith.constant 0 : index
    %93 = vector.load %arg6[%c0_139, %c0_140] : memref<8x128xf32, #tpu.memory_space<vmem>>, vector<8x128xf32>
    tpu.vector_store %arg6[%c0_139, %c0_140], %92 {strides = array<i32>} : memref<8x128xf32, #tpu.memory_space<vmem>>, vector<8x128xf32>,
    %c0_141 = arith.constant 0 : index
    %c0_142 = arith.constant 0 : index
    %c0_143 = arith.constant 0 : index
    %c5_144 = arith.constant 5 : index
    %c0_145 = arith.constant 0 : index
    %94 = vector.load %arg2[%c0_141, %c0_142, %c0_143, %c5_144, %c0_145] : memref<1x1x4x18x32xbf16, #tpu.memory_space<vmem>>, vector<1x1x1x8x32xbf16>
    %95 = vector.shape_cast %94 : vector<1x1x1x8x32xbf16> to vector<8x32xbf16>
    %c12 = arith.constant 12 : index
    %c0_146 = arith.constant 0 : index
    %c0_147 = arith.constant 0 : index
    %96 = vector.load %arg3[%c12, %c0_146, %c0_147] : memref<25x32x128xbf16, #tpu.memory_space<vmem>>, vector<1x32x128xbf16>
    %97 = vector.shape_cast %96 : vector<1x32x128xbf16> to vector<32x128xbf16>
    %cst_148 = arith.constant dense<0.000000e+00> : vector<8x128xf32>
    %98 = tpu.matmul %95, %97, %cst_148 {dimension_numbers = #tpu.dot_dimension_numbers<[1], [0], [0], [1], [0, 0, 1, 1], [], []>} : vector<8x32xbf16>, vector<32x128xbf16>, vector<8x128xf32> -> vector<8x128xf32>
    %c0_149 = arith.constant 0 : index
    %c0_150 = arith.constant 0 : index
    %99 = vector.load %arg6[%c0_149, %c0_150] : memref<8x128xf32, #tpu.memory_space<vmem>>, vector<8x128xf32>
    %100 = arith.addf %99, %98 : vector<8x128xf32>
    %c0_151 = arith.constant 0 : index
    %c0_152 = arith.constant 0 : index
    %101 = vector.load %arg6[%c0_151, %c0_152] : memref<8x128xf32, #tpu.memory_space<vmem>>, vector<8x128xf32>
    tpu.vector_store %arg6[%c0_151, %c0_152], %100 {strides = array<i32>} : memref<8x128xf32, #tpu.memory_space<vmem>>, vector<8x128xf32>,
    %c0_153 = arith.constant 0 : index
    %c0_154 = arith.constant 0 : index
    %c1_155 = arith.constant 1 : index
    %c5_156 = arith.constant 5 : index
    %c0_157 = arith.constant 0 : index
    %102 = vector.load %arg2[%c0_153, %c0_154, %c1_155, %c5_156, %c0_157] : memref<1x1x4x18x32xbf16, #tpu.memory_space<vmem>>, vector<1x1x1x8x32xbf16>
    %103 = vector.shape_cast %102 : vector<1x1x1x8x32xbf16> to vector<8x32xbf16>
    %c13 = arith.constant 13 : index
    %c0_158 = arith.constant 0 : index
    %c0_159 = arith.constant 0 : index
    %104 = vector.load %arg3[%c13, %c0_158, %c0_159] : memref<25x32x128xbf16, #tpu.memory_space<vmem>>, vector<1x32x128xbf16>
    %105 = vector.shape_cast %104 : vector<1x32x128xbf16> to vector<32x128xbf16>
    %cst_160 = arith.constant dense<0.000000e+00> : vector<8x128xf32>
    %106 = tpu.matmul %103, %105, %cst_160 {dimension_numbers = #tpu.dot_dimension_numbers<[1], [0], [0], [1], [0, 0, 1, 1], [], []>} : vector<8x32xbf16>, vector<32x128xbf16>, vector<8x128xf32> -> vector<8x128xf32>
    %c0_161 = arith.constant 0 : index
    %c0_162 = arith.constant 0 : index
    %107 = vector.load %arg6[%c0_161, %c0_162] : memref<8x128xf32, #tpu.memory_space<vmem>>, vector<8x128xf32>
    %108 = arith.addf %107, %106 : vector<8x128xf32>
    %c0_163 = arith.constant 0 : index
    %c0_164 = arith.constant 0 : index
    %109 = vector.load %arg6[%c0_163, %c0_164] : memref<8x128xf32, #tpu.memory_space<vmem>>, vector<8x128xf32>
    tpu.vector_store %arg6[%c0_163, %c0_164], %108 {strides = array<i32>} : memref<8x128xf32, #tpu.memory_space<vmem>>, vector<8x128xf32>,
    %c0_165 = arith.constant 0 : index
    %c0_166 = arith.constant 0 : index
    %c0_167 = arith.constant 0 : index
    %c6_168 = arith.constant 6 : index
    %c0_169 = arith.constant 0 : index
    %110 = vector.load %arg2[%c0_165, %c0_166, %c0_167, %c6_168, %c0_169] : memref<1x1x4x18x32xbf16, #tpu.memory_space<vmem>>, vector<1x1x1x8x32xbf16>
    %111 = vector.shape_cast %110 : vector<1x1x1x8x32xbf16> to vector<8x32xbf16>
    %c14 = arith.constant 14 : index
    %c0_170 = arith.constant 0 : index
    %c0_171 = arith.constant 0 : index
    %112 = vector.load %arg3[%c14, %c0_170, %c0_171] : memref<25x32x128xbf16, #tpu.memory_space<vmem>>, vector<1x32x128xbf16>
    %113 = vector.shape_cast %112 : vector<1x32x128xbf16> to vector<32x128xbf16>
    %cst_172 = arith.constant dense<0.000000e+00> : vector<8x128xf32>
    %114 = tpu.matmul %111, %113, %cst_172 {dimension_numbers = #tpu.dot_dimension_numbers<[1], [0], [0], [1], [0, 0, 1, 1], [], []>} : vector<8x32xbf16>, vector<32x128xbf16>, vector<8x128xf32> -> vector<8x128xf32>
    %c0_173 = arith.constant 0 : index
    %c0_174 = arith.constant 0 : index
    %115 = vector.load %arg6[%c0_173, %c0_174] : memref<8x128xf32, #tpu.memory_space<vmem>>, vector<8x128xf32>
    %116 = arith.addf %115, %114 : vector<8x128xf32>
    %c0_175 = arith.constant 0 : index
    %c0_176 = arith.constant 0 : index
    %117 = vector.load %arg6[%c0_175, %c0_176] : memref<8x128xf32, #tpu.memory_space<vmem>>, vector<8x128xf32>
    tpu.vector_store %arg6[%c0_175, %c0_176], %116 {strides = array<i32>} : memref<8x128xf32, #tpu.memory_space<vmem>>, vector<8x128xf32>,
    %c0_177 = arith.constant 0 : index
    %c0_178 = arith.constant 0 : index
    %c2_179 = arith.constant 2 : index
    %c4_180 = arith.constant 4 : index
    %c0_181 = arith.constant 0 : index
    %118 = vector.load %arg2[%c0_177, %c0_178, %c2_179, %c4_180, %c0_181] : memref<1x1x4x18x32xbf16, #tpu.memory_space<vmem>>, vector<1x1x1x8x32xbf16>
    %119 = vector.shape_cast %118 : vector<1x1x1x8x32xbf16> to vector<8x32xbf16>
    %c15 = arith.constant 15 : index
    %c0_182 = arith.constant 0 : index
    %c0_183 = arith.constant 0 : index
    %120 = vector.load %arg3[%c15, %c0_182, %c0_183] : memref<25x32x128xbf16, #tpu.memory_space<vmem>>, vector<1x32x128xbf16>
    %121 = vector.shape_cast %120 : vector<1x32x128xbf16> to vector<32x128xbf16>
    %cst_184 = arith.constant dense<0.000000e+00> : vector<8x128xf32>
    %122 = tpu.matmul %119, %121, %cst_184 {dimension_numbers = #tpu.dot_dimension_numbers<[1], [0], [0], [1], [0, 0, 1, 1], [], []>} : vector<8x32xbf16>, vector<32x128xbf16>, vector<8x128xf32> -> vector<8x128xf32>
    %c0_185 = arith.constant 0 : index
    %c0_186 = arith.constant 0 : index
    %123 = vector.load %arg6[%c0_185, %c0_186] : memref<8x128xf32, #tpu.memory_space<vmem>>, vector<8x128xf32>
    %124 = arith.addf %123, %122 : vector<8x128xf32>
    %c0_187 = arith.constant 0 : index
    %c0_188 = arith.constant 0 : index
    %125 = vector.load %arg6[%c0_187, %c0_188] : memref<8x128xf32, #tpu.memory_space<vmem>>, vector<8x128xf32>
    tpu.vector_store %arg6[%c0_187, %c0_188], %124 {strides = array<i32>} : memref<8x128xf32, #tpu.memory_space<vmem>>, vector<8x128xf32>,
    %c0_189 = arith.constant 0 : index
    %c0_190 = arith.constant 0 : index
    %c3_191 = arith.constant 3 : index
    %c4_192 = arith.constant 4 : index
    %c0_193 = arith.constant 0 : index
    %126 = vector.load %arg2[%c0_189, %c0_190, %c3_191, %c4_192, %c0_193] : memref<1x1x4x18x32xbf16, #tpu.memory_space<vmem>>, vector<1x1x1x8x32xbf16>
    %127 = vector.shape_cast %126 : vector<1x1x1x8x32xbf16> to vector<8x32xbf16>
    %c16 = arith.constant 16 : index
    %c0_194 = arith.constant 0 : index
    %c0_195 = arith.constant 0 : index
    %128 = vector.load %arg3[%c16, %c0_194, %c0_195] : memref<25x32x128xbf16, #tpu.memory_space<vmem>>, vector<1x32x128xbf16>
    %129 = vector.shape_cast %128 : vector<1x32x128xbf16> to vector<32x128xbf16>
    %cst_196 = arith.constant dense<0.000000e+00> : vector<8x128xf32>
    %130 = tpu.matmul %127, %129, %cst_196 {dimension_numbers = #tpu.dot_dimension_numbers<[1], [0], [0], [1], [0, 0, 1, 1], [], []>} : vector<8x32xbf16>, vector<32x128xbf16>, vector<8x128xf32> -> vector<8x128xf32>
    %c0_197 = arith.constant 0 : index
    %c0_198 = arith.constant 0 : index
    %131 = vector.load %arg6[%c0_197, %c0_198] : memref<8x128xf32, #tpu.memory_space<vmem>>, vector<8x128xf32>
    %132 = arith.addf %131, %130 : vector<8x128xf32>
    %c0_199 = arith.constant 0 : index
    %c0_200 = arith.constant 0 : index
    %133 = vector.load %arg6[%c0_199, %c0_200] : memref<8x128xf32, #tpu.memory_space<vmem>>, vector<8x128xf32>
    tpu.vector_store %arg6[%c0_199, %c0_200], %132 {strides = array<i32>} : memref<8x128xf32, #tpu.memory_space<vmem>>, vector<8x128xf32>,
    %c0_201 = arith.constant 0 : index
    %c0_202 = arith.constant 0 : index
    %c2_203 = arith.constant 2 : index
    %c5_204 = arith.constant 5 : index
    %c0_205 = arith.constant 0 : index
    %134 = vector.load %arg2[%c0_201, %c0_202, %c2_203, %c5_204, %c0_205] : memref<1x1x4x18x32xbf16, #tpu.memory_space<vmem>>, vector<1x1x1x8x32xbf16>
    %135 = vector.shape_cast %134 : vector<1x1x1x8x32xbf16> to vector<8x32xbf16>
    %c17 = arith.constant 17 : index
    %c0_206 = arith.constant 0 : index
    %c0_207 = arith.constant 0 : index
    %136 = vector.load %arg3[%c17, %c0_206, %c0_207] : memref<25x32x128xbf16, #tpu.memory_space<vmem>>, vector<1x32x128xbf16>
    %137 = vector.shape_cast %136 : vector<1x32x128xbf16> to vector<32x128xbf16>
    %cst_208 = arith.constant dense<0.000000e+00> : vector<8x128xf32>
    %138 = tpu.matmul %135, %137, %cst_208 {dimension_numbers = #tpu.dot_dimension_numbers<[1], [0], [0], [1], [0, 0, 1, 1], [], []>} : vector<8x32xbf16>, vector<32x128xbf16>, vector<8x128xf32> -> vector<8x128xf32>
    %c0_209 = arith.constant 0 : index
    %c0_210 = arith.constant 0 : index
    %139 = vector.load %arg6[%c0_209, %c0_210] : memref<8x128xf32, #tpu.memory_space<vmem>>, vector<8x128xf32>
    %140 = arith.addf %139, %138 : vector<8x128xf32>
    %c0_211 = arith.constant 0 : index
    %c0_212 = arith.constant 0 : index
    %141 = vector.load %arg6[%c0_211, %c0_212] : memref<8x128xf32, #tpu.memory_space<vmem>>, vector<8x128xf32>
    tpu.vector_store %arg6[%c0_211, %c0_212], %140 {strides = array<i32>} : memref<8x128xf32, #tpu.memory_space<vmem>>, vector<8x128xf32>,
    %c0_213 = arith.constant 0 : index
    %c0_214 = arith.constant 0 : index
    %c3_215 = arith.constant 3 : index
    %c5_216 = arith.constant 5 : index
    %c0_217 = arith.constant 0 : index
    %142 = vector.load %arg2[%c0_213, %c0_214, %c3_215, %c5_216, %c0_217] : memref<1x1x4x18x32xbf16, #tpu.memory_space<vmem>>, vector<1x1x1x8x32xbf16>
    %143 = vector.shape_cast %142 : vector<1x1x1x8x32xbf16> to vector<8x32xbf16>
    %c18 = arith.constant 18 : index
    %c0_218 = arith.constant 0 : index
    %c0_219 = arith.constant 0 : index
    %144 = vector.load %arg3[%c18, %c0_218, %c0_219] : memref<25x32x128xbf16, #tpu.memory_space<vmem>>, vector<1x32x128xbf16>
    %145 = vector.shape_cast %144 : vector<1x32x128xbf16> to vector<32x128xbf16>
    %cst_220 = arith.constant dense<0.000000e+00> : vector<8x128xf32>
    %146 = tpu.matmul %143, %145, %cst_220 {dimension_numbers = #tpu.dot_dimension_numbers<[1], [0], [0], [1], [0, 0, 1, 1], [], []>} : vector<8x32xbf16>, vector<32x128xbf16>, vector<8x128xf32> -> vector<8x128xf32>
    %c0_221 = arith.constant 0 : index
    %c0_222 = arith.constant 0 : index
    %147 = vector.load %arg6[%c0_221, %c0_222] : memref<8x128xf32, #tpu.memory_space<vmem>>, vector<8x128xf32>
    %148 = arith.addf %147, %146 : vector<8x128xf32>
    %c0_223 = arith.constant 0 : index
    %c0_224 = arith.constant 0 : index
    %149 = vector.load %arg6[%c0_223, %c0_224] : memref<8x128xf32, #tpu.memory_space<vmem>>, vector<8x128xf32>
    tpu.vector_store %arg6[%c0_223, %c0_224], %148 {strides = array<i32>} : memref<8x128xf32, #tpu.memory_space<vmem>>, vector<8x128xf32>,
    %c0_225 = arith.constant 0 : index
    %c0_226 = arith.constant 0 : index
    %c2_227 = arith.constant 2 : index
    %c6_228 = arith.constant 6 : index
    %c0_229 = arith.constant 0 : index
    %150 = vector.load %arg2[%c0_225, %c0_226, %c2_227, %c6_228, %c0_229] : memref<1x1x4x18x32xbf16, #tpu.memory_space<vmem>>, vector<1x1x1x8x32xbf16>
    %151 = vector.shape_cast %150 : vector<1x1x1x8x32xbf16> to vector<8x32xbf16>
    %c19 = arith.constant 19 : index
    %c0_230 = arith.constant 0 : index
    %c0_231 = arith.constant 0 : index
    %152 = vector.load %arg3[%c19, %c0_230, %c0_231] : memref<25x32x128xbf16, #tpu.memory_space<vmem>>, vector<1x32x128xbf16>
    %153 = vector.shape_cast %152 : vector<1x32x128xbf16> to vector<32x128xbf16>
    %cst_232 = arith.constant dense<0.000000e+00> : vector<8x128xf32>
    %154 = tpu.matmul %151, %153, %cst_232 {dimension_numbers = #tpu.dot_dimension_numbers<[1], [0], [0], [1], [0, 0, 1, 1], [], []>} : vector<8x32xbf16>, vector<32x128xbf16>, vector<8x128xf32> -> vector<8x128xf32>
    %c0_233 = arith.constant 0 : index
    %c0_234 = arith.constant 0 : index
    %155 = vector.load %arg6[%c0_233, %c0_234] : memref<8x128xf32, #tpu.memory_space<vmem>>, vector<8x128xf32>
    %156 = arith.addf %155, %154 : vector<8x128xf32>
    %c0_235 = arith.constant 0 : index
    %c0_236 = arith.constant 0 : index
    %157 = vector.load %arg6[%c0_235, %c0_236] : memref<8x128xf32, #tpu.memory_space<vmem>>, vector<8x128xf32>
    tpu.vector_store %arg6[%c0_235, %c0_236], %156 {strides = array<i32>} : memref<8x128xf32, #tpu.memory_space<vmem>>, vector<8x128xf32>,
    %c0_237 = arith.constant 0 : index
    %c0_238 = arith.constant 0 : index
    %c0_239 = arith.constant 0 : index
    %c8_240 = arith.constant 8 : index
    %c0_241 = arith.constant 0 : index
    %158 = vector.load %arg2[%c0_237, %c0_238, %c0_239, %c8_240, %c0_241] : memref<1x1x4x18x32xbf16, #tpu.memory_space<vmem>>, vector<1x1x1x8x32xbf16>
    %159 = vector.shape_cast %158 : vector<1x1x1x8x32xbf16> to vector<8x32xbf16>
    %c20 = arith.constant 20 : index
    %c0_242 = arith.constant 0 : index
    %c0_243 = arith.constant 0 : index
    %160 = vector.load %arg3[%c20, %c0_242, %c0_243] : memref<25x32x128xbf16, #tpu.memory_space<vmem>>, vector<1x32x128xbf16>
    %161 = vector.shape_cast %160 : vector<1x32x128xbf16> to vector<32x128xbf16>
    %cst_244 = arith.constant dense<0.000000e+00> : vector<8x128xf32>
    %162 = tpu.matmul %159, %161, %cst_244 {dimension_numbers = #tpu.dot_dimension_numbers<[1], [0], [0], [1], [0, 0, 1, 1], [], []>} : vector<8x32xbf16>, vector<32x128xbf16>, vector<8x128xf32> -> vector<8x128xf32>
    %c0_245 = arith.constant 0 : index
    %c0_246 = arith.constant 0 : index
    %163 = vector.load %arg6[%c0_245, %c0_246] : memref<8x128xf32, #tpu.memory_space<vmem>>, vector<8x128xf32>
    %164 = arith.addf %163, %162 : vector<8x128xf32>
    %c0_247 = arith.constant 0 : index
    %c0_248 = arith.constant 0 : index
    %165 = vector.load %arg6[%c0_247, %c0_248] : memref<8x128xf32, #tpu.memory_space<vmem>>, vector<8x128xf32>
    tpu.vector_store %arg6[%c0_247, %c0_248], %164 {strides = array<i32>} : memref<8x128xf32, #tpu.memory_space<vmem>>, vector<8x128xf32>,
    %c0_249 = arith.constant 0 : index
    %c0_250 = arith.constant 0 : index
    %c1_251 = arith.constant 1 : index
    %c8_252 = arith.constant 8 : index
    %c0_253 = arith.constant 0 : index
    %166 = vector.load %arg2[%c0_249, %c0_250, %c1_251, %c8_252, %c0_253] : memref<1x1x4x18x32xbf16, #tpu.memory_space<vmem>>, vector<1x1x1x8x32xbf16>
    %167 = vector.shape_cast %166 : vector<1x1x1x8x32xbf16> to vector<8x32xbf16>
    %c21 = arith.constant 21 : index
    %c0_254 = arith.constant 0 : index
    %c0_255 = arith.constant 0 : index
    %168 = vector.load %arg3[%c21, %c0_254, %c0_255] : memref<25x32x128xbf16, #tpu.memory_space<vmem>>, vector<1x32x128xbf16>
    %169 = vector.shape_cast %168 : vector<1x32x128xbf16> to vector<32x128xbf16>
    %cst_256 = arith.constant dense<0.000000e+00> : vector<8x128xf32>
    %170 = tpu.matmul %167, %169, %cst_256 {dimension_numbers = #tpu.dot_dimension_numbers<[1], [0], [0], [1], [0, 0, 1, 1], [], []>} : vector<8x32xbf16>, vector<32x128xbf16>, vector<8x128xf32> -> vector<8x128xf32>
    %c0_257 = arith.constant 0 : index
    %c0_258 = arith.constant 0 : index
    %171 = vector.load %arg6[%c0_257, %c0_258] : memref<8x128xf32, #tpu.memory_space<vmem>>, vector<8x128xf32>
    %172 = arith.addf %171, %170 : vector<8x128xf32>
    %c0_259 = arith.constant 0 : index
    %c0_260 = arith.constant 0 : index
    %173 = vector.load %arg6[%c0_259, %c0_260] : memref<8x128xf32, #tpu.memory_space<vmem>>, vector<8x128xf32>
    tpu.vector_store %arg6[%c0_259, %c0_260], %172 {strides = array<i32>} : memref<8x128xf32, #tpu.memory_space<vmem>>, vector<8x128xf32>,
    %c0_261 = arith.constant 0 : index
    %c0_262 = arith.constant 0 : index
    %c0_263 = arith.constant 0 : index
    %c9_264 = arith.constant 9 : index
    %c0_265 = arith.constant 0 : index
    %174 = vector.load %arg2[%c0_261, %c0_262, %c0_263, %c9_264, %c0_265] : memref<1x1x4x18x32xbf16, #tpu.memory_space<vmem>>, vector<1x1x1x8x32xbf16>
    %175 = vector.shape_cast %174 : vector<1x1x1x8x32xbf16> to vector<8x32xbf16>
    %c22 = arith.constant 22 : index
    %c0_266 = arith.constant 0 : index
    %c0_267 = arith.constant 0 : index
    %176 = vector.load %arg3[%c22, %c0_266, %c0_267] : memref<25x32x128xbf16, #tpu.memory_space<vmem>>, vector<1x32x128xbf16>
    %177 = vector.shape_cast %176 : vector<1x32x128xbf16> to vector<32x128xbf16>
    %cst_268 = arith.constant dense<0.000000e+00> : vector<8x128xf32>
    %178 = tpu.matmul %175, %177, %cst_268 {dimension_numbers = #tpu.dot_dimension_numbers<[1], [0], [0], [1], [0, 0, 1, 1], [], []>} : vector<8x32xbf16>, vector<32x128xbf16>, vector<8x128xf32> -> vector<8x128xf32>
    %c0_269 = arith.constant 0 : index
    %c0_270 = arith.constant 0 : index
    %179 = vector.load %arg6[%c0_269, %c0_270] : memref<8x128xf32, #tpu.memory_space<vmem>>, vector<8x128xf32>
    %180 = arith.addf %179, %178 : vector<8x128xf32>
    %c0_271 = arith.constant 0 : index
    %c0_272 = arith.constant 0 : index
    %181 = vector.load %arg6[%c0_271, %c0_272] : memref<8x128xf32, #tpu.memory_space<vmem>>, vector<8x128xf32>
    tpu.vector_store %arg6[%c0_271, %c0_272], %180 {strides = array<i32>} : memref<8x128xf32, #tpu.memory_space<vmem>>, vector<8x128xf32>,
    %c0_273 = arith.constant 0 : index
    %c0_274 = arith.constant 0 : index
    %c1_275 = arith.constant 1 : index
    %c9_276 = arith.constant 9 : index
    %c0_277 = arith.constant 0 : index
    %182 = vector.load %arg2[%c0_273, %c0_274, %c1_275, %c9_276, %c0_277] : memref<1x1x4x18x32xbf16, #tpu.memory_space<vmem>>, vector<1x1x1x8x32xbf16>
    %183 = vector.shape_cast %182 : vector<1x1x1x8x32xbf16> to vector<8x32xbf16>
    %c23 = arith.constant 23 : index
    %c0_278 = arith.constant 0 : index
    %c0_279 = arith.constant 0 : index
    %184 = vector.load %arg3[%c23, %c0_278, %c0_279] : memref<25x32x128xbf16, #tpu.memory_space<vmem>>, vector<1x32x128xbf16>
    %185 = vector.shape_cast %184 : vector<1x32x128xbf16> to vector<32x128xbf16>
    %cst_280 = arith.constant dense<0.000000e+00> : vector<8x128xf32>
    %186 = tpu.matmul %183, %185, %cst_280 {dimension_numbers = #tpu.dot_dimension_numbers<[1], [0], [0], [1], [0, 0, 1, 1], [], []>} : vector<8x32xbf16>, vector<32x128xbf16>, vector<8x128xf32> -> vector<8x128xf32>
    %c0_281 = arith.constant 0 : index
    %c0_282 = arith.constant 0 : index
    %187 = vector.load %arg6[%c0_281, %c0_282] : memref<8x128xf32, #tpu.memory_space<vmem>>, vector<8x128xf32>
    %188 = arith.addf %187, %186 : vector<8x128xf32>
    %c0_283 = arith.constant 0 : index
    %c0_284 = arith.constant 0 : index
    %189 = vector.load %arg6[%c0_283, %c0_284] : memref<8x128xf32, #tpu.memory_space<vmem>>, vector<8x128xf32>
    tpu.vector_store %arg6[%c0_283, %c0_284], %188 {strides = array<i32>} : memref<8x128xf32, #tpu.memory_space<vmem>>, vector<8x128xf32>,
    %c0_285 = arith.constant 0 : index
    %c0_286 = arith.constant 0 : index
    %c0_287 = arith.constant 0 : index
    %c10_288 = arith.constant 10 : index
    %c0_289 = arith.constant 0 : index
    %190 = vector.load %arg2[%c0_285, %c0_286, %c0_287, %c10_288, %c0_289] : memref<1x1x4x18x32xbf16, #tpu.memory_space<vmem>>, vector<1x1x1x8x32xbf16>
    %191 = vector.shape_cast %190 : vector<1x1x1x8x32xbf16> to vector<8x32xbf16>
    %c24 = arith.constant 24 : index
    %c0_290 = arith.constant 0 : index
    %c0_291 = arith.constant 0 : index
    %192 = vector.load %arg3[%c24, %c0_290, %c0_291] : memref<25x32x128xbf16, #tpu.memory_space<vmem>>, vector<1x32x128xbf16>
    %193 = vector.shape_cast %192 : vector<1x32x128xbf16> to vector<32x128xbf16>
    %cst_292 = arith.constant dense<0.000000e+00> : vector<8x128xf32>
    %194 = tpu.matmul %191, %193, %cst_292 {dimension_numbers = #tpu.dot_dimension_numbers<[1], [0], [0], [1], [0, 0, 1, 1], [], []>} : vector<8x32xbf16>, vector<32x128xbf16>, vector<8x128xf32> -> vector<8x128xf32>
    %c0_293 = arith.constant 0 : index
    %c0_294 = arith.constant 0 : index
    %195 = vector.load %arg6[%c0_293, %c0_294] : memref<8x128xf32, #tpu.memory_space<vmem>>, vector<8x128xf32>
    %196 = arith.addf %195, %194 : vector<8x128xf32>
    %c0_295 = arith.constant 0 : index
    %c0_296 = arith.constant 0 : index
    %197 = vector.load %arg6[%c0_295, %c0_296] : memref<8x128xf32, #tpu.memory_space<vmem>>, vector<8x128xf32>
    tpu.vector_store %arg6[%c0_295, %c0_296], %196 {strides = array<i32>} : memref<8x128xf32, #tpu.memory_space<vmem>>, vector<8x128xf32>,
    %c0_297 = arith.constant 0 : index
    %c0_298 = arith.constant 0 : index
    %198 = vector.load %arg6[%c0_297, %c0_298] : memref<8x128xf32, #tpu.memory_space<vmem>>, vector<8x128xf32>
    %c0_299 = arith.constant 0 : index
    %c0_300 = arith.constant 0 : index
    %199 = vector.load %arg4[%c0_299, %c0_300] : memref<1x128xf32, #tpu.memory_space<vmem>>, vector<1x128xf32>
    %200 = vector.broadcast %199 : vector<1x128xf32> to vector<8x128xf32>
    %201 = arith.addf %198, %200 : vector<8x128xf32>
    %202 = arith.truncf %201 : vector<8x128xf32> to vector<8x128xbf16>
    %c0_301 = arith.constant 0 : index
    %c0_302 = arith.constant 0 : index
    %c0_303 = arith.constant 0 : index
    %203 = vector.load %arg5[%c0_301, %c0_302, %c0_303] : memref<1x8x128xbf16, #tpu.memory_space<vmem>>, vector<1x8x128xbf16>
    %204 = vector.shape_cast %203 : vector<1x8x128xbf16> to vector<8x128xbf16>
    %205 = vector.shape_cast %202 : vector<8x128xbf16> to vector<1x8x128xbf16>
    tpu.vector_store %arg5[%c0_301, %c0_302, %c0_303], %205 {strides = array<i32>} : memref<1x8x128xbf16, #tpu.memory_space<vmem>>, vector<1x8x128xbf16>,
    return
  }
  func.func @transform_0(%arg0: i32, %arg1: i32) -> (i32, i32, i32, i32, i32) {
    %c0_i32 = arith.constant 0 : i32
    %c0_i32_0 = arith.constant 0 : i32
    %c0_i32_1 = arith.constant 0 : i32
    %c0_i32_2 = arith.constant 0 : i32
    return %arg0, %arg1, %c0_i32, %c0_i32_0, %c0_i32_1 : i32, i32, i32, i32, i32
  }
  func.func @transform_1(%arg0: i32, %arg1: i32) -> (i32, i32, i32) {
    %c0_i32 = arith.constant 0 : i32
    %c0_i32_0 = arith.constant 0 : i32
    %c0_i32_1 = arith.constant 0 : i32
    %c0_i32_2 = arith.constant 0 : i32
    return %c0_i32, %c0_i32_0, %c0_i32_1 : i32, i32, i32
  }
  func.func @transform_2(%arg0: i32, %arg1: i32) -> (i32, i32) {
    %c0_i32 = arith.constant 0 : i32
    %c0_i32_0 = arith.constant 0 : i32
    %c0_i32_1 = arith.constant 0 : i32
    return %c0_i32, %c0_i32_0 : i32, i32
  }
  func.func @transform_3(%arg0: i32, %arg1: i32) -> (i32, i32, i32) {
    %c0_i32 = arith.constant 0 : i32
    %c0_i32_0 = arith.constant 0 : i32
    return %arg0, %arg1, %c0_i32 : i32, i32, i32
  }
}

</mosaic_0001>

<bundles_post_ra>
// kernel: ir_encoder_forward.4
= control target key start
LH: loop header
LB: loop body
LE: loop exit
PB: predicated region body
PF: predicated region fallthrough
CT: control target
= control target key end

     0   :  { %s979_s18 = smov 0   ;;  %s981_s19 = smov 0   ;;  %s1097_s0 = inlined_call_operand.vmem [shape: bf16[2,4,1,64,32], index: 0, kind: input, shape index: {}]   ;;  %s1098_s1 = inlined_call_operand.vmem [shape: bf16[1,32,128], index: 1, kind: input, shape index: {}]   ;;  %s1099_s2 = inlined_call_operand.vmem [shape: f32[1,128], index: 2, kind: input, shape index: {}]   ;;  %s1100_s3 = inlined_call_operand.vmem [shape: bf16[128,128], index: 3, kind: input, shape index: {}]   ;;  %s1101_s4 = inlined_call_operand.vmem [shape: f32[1,128], index: 4, kind: input, shape index: {}]   ;;  %s1102_s5 = inlined_call_operand.vmem [shape: bf16[2,256,128], index: 5, kind: output, shape index: {}]  }
   0x1   :  { %s983_s20 = smov 0   ;;  %s985_s21 = smov 0  }
   0x2   :  { %s987_s22 = smov 0  }
   0x3 LB: > { %s24_s23 = sadd.s32 1, %s939_s20  ;;  %s27_s24 = sadd.s32 1, %s943_s21  ;;  %s947_s22 = sphi %s987_s22, %s15_s22   ;;  %s943_s21 = sphi %s985_s21, %s1106_s21   ;;  %s939_s20 = sphi %s983_s20, %s1105_s20   ;;  %s935_s19 = sphi %s981_s19, %s1104_s19   ;;  %s931_s18 = sphi %s979_s18, %s1103_s18  }
   0x4   : > { %p25_p0 = scmp.ge.s32.totalorder %s24_s23, 4  ;;  %p717_p1 = scmp.ge.s32.totalorder %s947_s22, 1 }
   0x5   : > { %p207_p2 = scmp.lt.s32.totalorder %s947_s22, 9 }
   0x6   : > { %s1108_s23 = smov (%p25_p0, %s24_s23), 0  ;;  %s1110_s24 = smov (!%p25_p0, %s27_s24), %s943_s21 }
   0x7   : > { %p208_p3 = pnand %p717_p1, %p207_p2  ;;  %p29_p4 = scmp.ge.s32.totalorder %s1110_s24, 2 }
   0x8   : > { %v879_v0 = vld [vmem:[%s1098_s1] sm:$0xff] (!%p208_p3)   ;;  %p243_p5 = scmp.lt.s32.totalorder (!%p208_p3), %s935_s19, 1  ;;  %v880_v1 = vld [vmem:[%s1098_s1 + $0x8] sm:$0xff] (!%p208_p3)   ;;  %p245_p6 = scmp.lt.s32.totalorder (!%p208_p3), %s931_s18, 3  ;;  %v887_v4 = vld [vmem:[%s1100_s3 + $0x10] sm:$0xff] (!%p208_p3)   ;;  %vm307_vm0 = vcmask (!%p208_p3), 261120  }
   0x9   : > { %s1112_s24 = smov (%p29_p4, %s1110_s24), 0  ;;  %211 = sbr.rel (%p208_p3) target bundleno = 488 (0x1e8), region = 40 }
   0xa   : > { %803 = vmatprep.subr.bf16.mxu0 (!%p208_p3), %v879_v0  ;;  %v885_v2 = vld [vmem:[%s1100_s3] sm:$0xff] (!%p208_p3)   ;;  %v886_v3 = vld [vmem:[%s1100_s3 + $0x8] sm:$0xff] (!%p208_p3)   ;;  %v888_v6 = vld [vmem:[%s1100_s3 + $0x18] sm:$0xff] (!%p208_p3)   ;;  %s721_s15 = sshll.u32 (!%p208_p3), %s931_s18, 3 }
   0xb   : > { %804 = vmatpush3.bf16.msra.mxu0 (!%p208_p3), %v879_v0  ;;  %815 = vmatprep.subr.bf16.mxu1 (!%p208_p3), %v885_v2  ;;  %v889_v9 = vld [vmem:[%s1100_s3 + $0x20] sm:$0xff] (!%p208_p3)   ;;  %v890_v11 = vld [vmem:[%s1100_s3 + $0x28] sm:$0xff] (!%p208_p3)   ;;  %v891_v12 = vld [vmem:[%s1100_s3 + $0x30] sm:$0xff] (!%p208_p3)   ;;  %p255_p7 = scmp.lt.s32.totalorder (!%p208_p3), %s721_s15, 31 }
   0xc   : > { %805 = vmatprep.subr.bf16.mxu0 (!%p208_p3), %v880_v1  ;;  %816 = vmatpush3.bf16.msra.mxu1 (!%p208_p3), %v885_v2  ;;  %v892_v13 = vld [vmem:[%s1100_s3 + $0x38] sm:$0xff] (!%p208_p3)   ;;  %v734_v14 = vld [vmem:[%s1099_s2] ss:$0 sm:$0xff] (!%p208_p3) }
   0xd   : > { %817 = vmatprep.subr.bf16.mxu1 (!%p208_p3), %v886_v3  ;;  %v735_v43 = vld [vmem:[%s1101_s4] ss:$0 sm:$0xff] (!%p208_p3) }
   0xf   : > { %806 = vmatpush3.bf16.msra.mxu0 (!%p208_p3), %v880_v1 }
  0x10   : > { %s1114_s19 = smov (!%p243_p5, %s935_s19), 1  ;;  %818 = vmatpush3.bf16.msra.mxu1 %v886_v3  ;;  %s1116_s15 = smov (!%p255_p7, %s721_s15), 31 }
  0x11   : > { %s246_s29 = scalar_select %p245_p6, %s931_s18, 3  ;;  %819 = vmatprep.subr.bf16.mxu1 %v887_v4 }
  0x12   : > { %s719_s7 = sshll.u32 %s1114_s19, 5 }
  0x13   : > { %s718_s10 = sshll.u32 %s246_s29, 3  ;;  %s258_s18 = sadd.s32 %s719_s7, %s1116_s15 }
  0x14   : > { %s249_s11 = sadd.s32 %s719_s7, %s718_s10  ;;  %820 = vmatpush3.bf16.msra.mxu1 %v887_v4  ;;  %s723_s16 = sshll.u32 %s258_s18, 2 }
  0x15   : > { %s720_s12 = sshll.u32 %s249_s11, 2  ;;  %821 = vmatprep.subr.bf16.mxu1 %v888_v6  ;;  %s260_s19 = scalar_lea.vmem %s1102_s5, %s723_s16 }
  0x16   : > { %s251_s17 = scalar_lea.vmem %s1097_s0, %s720_s12 }
  0x17   : > { %v881_v5 = vld [vmem:[%s251_s17] sm:$0xff]   ;;  %v882_v7 = vld [vmem:[%s251_s17 + $0x8] sm:$0xff]   ;;  %v883_v8 = vld [vmem:[%s251_s17 + $0x10] sm:$0xff]  }
  0x18   : > { %807 = vmatprep.mubr.msk.bf16.mxu0 %vm307_vm0, %v881_v5  ;;  %v884_v10 = vld [vmem:[%s251_s17 + $0x18] sm:$0xff]   ;;  %822 = vmatpush3.bf16.msra.mxu1 %v888_v6 }
  0x19   : > { %808 = vmatmul.mubr.msk.bf16.vlgmr.msra.gmra.mrb[0].mxu0 %vm307_vm0, %v882_v7  ;;  %823 = vmatprep.subr.bf16.mxu1 %v889_v9 }
  0x1a   : > { %811 = vmatprep.mubr.msk.bf16.mxu0 %vm307_vm0, %v883_v8 }
  0x1c   : > { %824 = vmatpush3.bf16.msra.mxu1 %v889_v9 }
  0x1d   : > { %825 = vmatprep.subr.bf16.mxu1 %v890_v11 }
  0x20   : > { %826 = vmatpush3.bf16.msra.mxu1 %v890_v11 }
  0x21   : > { %812 = vmatmul.mubr.msk.bf16.gmra.mrb[4].mxu0 %vm307_vm0, %v884_v10  ;;  %827 = vmatprep.subr.bf16.mxu1 %v891_v12 }
  0x24   : > { %828 = vmatpush3.bf16.msra.mxu1 %v891_v12 }
  0x25   : > { %829 = vmatprep.subr.bf16.mxu1 %v892_v13 }
  0x28   : > { %830 = vmatpush3.bf16.msra.mxu1 %v892_v13 }
  0xec   : > { %v809_v15 = vpop.f32.mrb[0].mxu0 }
  0xed   : > { %v354_v16 = vpop.f32.mrb[1].mxu0  ;;  %v410_v19 = vadd.f32 %v809_v15, %v734_v14 }
  0xee   : > { %v1058_v17 = vadd.f32 %v734_v14, %v354_v16  ;;  %v810_v18 = vpop.f32.mrb[2].mxu0 }
  0xef   : > { %v411_v20 = vadd.f32 %v810_v18, %v734_v14  ;;  %v357_v21 = vpop.f32.mrb[3].mxu0  ;;  %v418_v26 = vmul.f32 %v410_v19, %v410_v19 }
  0xf0   : > { %v1060_v22 = vadd.f32 %v734_v14, %v357_v21  ;;  %v416_v24 = vmul.f32 %v1058_v17, %v1058_v17 }
  0xf1   : > { %v419_v23 = vmul.f32 %v411_v20, %v411_v20 }
  0xf2   : > { %v417_v25 = vmul.f32 %v1060_v22, %v1060_v22 }
  0xf3   : > { %v425_v30 = vpack.c.bf16 %v419_v23, %v418_v26 }
  0xf4   : > { %v813_v27 = vpop.f32.mrb[4].mxu0  ;;  %v424_v28 = vpack.c.bf16 %v417_v25, %v416_v24 }
  0xf5   : > { %v370_v29 = vpop.f32.mrb[5].mxu0  ;;  %v414_v33 = vadd.f32 %v813_v27, %v734_v14 }
  0xf6   : > { %v1066_v31 = vadd.f32 %v734_v14, %v370_v29  ;;  %v814_v32 = vpop.f32.mrb[6].mxu0  ;;  %831 = vmatprep.mubr.bf16.mxu1 %v424_v28 }
  0xf7   : > { %v415_v34 = vadd.f32 %v814_v32, %v734_v14  ;;  %v373_v35 = vpop.f32.mrb[7].mxu0  ;;  %832 = vmatmul.mubr.bf16.vlgmr.msra.gmra.mrb[0].mxu1 %v425_v30  ;;  %v422_v40 = vmul.f32 %v414_v33, %v414_v33 }
  0xf8   : > { %v413_v36 = vadd.f32 %v734_v14, %v373_v35  ;;  %v420_v38 = vmul.f32 %v1066_v31, %v1066_v31 }
  0xf9   : > { %v423_v37 = vmul.f32 %v415_v34, %v415_v34 }
  0xfa   : > { %v421_v39 = vmul.f32 %v413_v36, %v413_v36 }
  0xfb   : > { %v427_v42 = vpack.c.bf16 %v423_v37, %v422_v40 }
  0xfc   : > { %v426_v41 = vpack.c.bf16 %v421_v39, %v420_v38 }
  0xfe   : > { %835 = vmatprep.mubr.bf16.mxu1 %v426_v41 }
  0xff   : > { %836 = vmatmul.mubr.bf16.gmra.mrb[4].mxu1 %v427_v42 }
 0x1ca   : > { %v833_v44 = vpop.f32.mrb[0].mxu1 }
 0x1cb   : > { %v542_v45 = vadd.f32 %v833_v44, %v735_v43  ;;  %v533_v46 = vpop.f32.mrb[1].mxu1 }
 0x1cc   : > { %v534_v47 = vadd.f32 %v735_v43, %v533_v46  ;;  %v834_v48 = vpop.f32.mrb[2].mxu1 }
 0x1cd   : > { %893 = vrsqrt.f32 %v542_v45  ;;  %v545_v49 = vadd.f32 %v834_v48, %v735_v43  ;;  %v536_v50 = vpop.f32.mrb[3].mxu1 }
 0x1ce   : > { %895 = vrsqrt.f32 %v534_v47  ;;  %v537_v51 = vadd.f32 %v735_v43, %v536_v50 }
 0x1cf   : > { %897 = vrsqrt.f32 %v545_v49 }
 0x1d0   : > { %899 = vrsqrt.f32 %v537_v51 }
 0x1d2   : > { %v837_v52 = vpop.f32.mrb[4].mxu1 }
 0x1d3   : > { %v558_v53 = vadd.f32 %v837_v52, %v735_v43  ;;  %v549_v54 = vpop.f32.mrb[5].mxu1 }
 0x1d4   : > { %v550_v55 = vadd.f32 %v735_v43, %v549_v54  ;;  %v838_v56 = vpop.f32.mrb[6].mxu1 }
 0x1d5   : > { %901 = vrsqrt.f32 %v558_v53  ;;  %v561_v57 = vadd.f32 %v838_v56, %v735_v43  ;;  %v552_v58 = vpop.f32.mrb[7].mxu1 }
 0x1d6   : > { %903 = vrsqrt.f32 %v550_v55  ;;  %v553_v59 = vadd.f32 %v735_v43, %v552_v58 }
 0x1d7   : > { %v894_v60 = vpop.eup %893  ;;  %905 = vrsqrt.f32 %v561_v57 }
 0x1d8   : > { %v896_v61 = vpop.eup %895  ;;  %907 = vrsqrt.f32 %v553_v59  ;;  %v574_v0 = vmul.f32 %v894_v60, %v410_v19 }
 0x1d9   : > { %v898_v62 = vpop.eup %897  ;;  %v572_v2 = vmul.f32 %v896_v61, %v1058_v17 }
 0x1da   : > { %v900_v63 = vpop.eup %899  ;;  %v575_v1 = vmul.f32 %v898_v62, %v411_v20 }
 0x1db   : > { %v573_v3 = vmul.f32 %v900_v63, %v1060_v22 }
 0x1dc   : > { %v770_v4 = vpack.c.bf16 %v575_v1, %v574_v0 }
 0x1dd   : > { %v765_v5 = vpack.c.bf16 %v573_v3, %v572_v2 }
 0x1de   : > { %782 = vst [vmem:[%s260_s19 + $0x8] sm:$0xff] %v770_v4  }
 0x1df   : > { %v902_v6 = vpop.eup %901  ;;  %766 = vst [vmem:[%s260_s19] sm:$0xff] %v765_v5  }
 0x1e0   : > { %v904_v7 = vpop.eup %903  ;;  %v578_v10 = vmul.f32 %v902_v6, %v414_v33 }
 0x1e1   : > { %v906_v8 = vpop.eup %905  ;;  %v576_v12 = vmul.f32 %v904_v7, %v1066_v31 }
 0x1e2   : > { %v908_v9 = vpop.eup %907  ;;  %v579_v11 = vmul.f32 %v906_v8, %v415_v34 }
 0x1e3   : > { %v577_v13 = vmul.f32 %v908_v9, %v413_v36 }
 0x1e4   : > { %v780_v14 = vpack.c.bf16 %v579_v11, %v578_v10 }
 0x1e5   : > { %v775_v15 = vpack.c.bf16 %v577_v13, %v576_v12 }
 0x1e6   : > { %784 = vst [vmem:[%s260_s19 + $0x18] sm:$0xff] %v780_v14  }
 0x1e7   : > { %783 = vst [vmem:[%s260_s19 + $0x10] sm:$0xff] %v775_v15  }
 0x1e8 PF: > { %s15_s22 = sadd.s32 1, %s947_s22   ;;  %s1103_s18 = smov %s939_s20 }
 0x1e9   : > { %p12_p8 = scmp.ge.s32.totalorder %s15_s22, 10   ;;  %s1104_s19 = smov %s943_s21 }
 0x1ea   : > { %s1105_s20 = smov %s1108_s23  ;;  %s1106_s21 = smov %s1112_s24 }
 0x1eb   :  { %14 = sbr.rel (!%p12_p8) target bundleno = 3 (0x3), region = 70 }

// kernel: ir_encoder_forward.6
= control target key start
LH: loop header
LB: loop body
LE: loop exit
PB: predicated region body
PF: predicated region fallthrough
CT: control target
= control target key end

     0   :  { %s3896_s18 = smov 0   ;;  %s3898_s19 = smov 0   ;;  %s4234_s0 = inlined_call_operand.vmem [shape: bf16[2,1,4,38,32], index: 0, kind: input, shape index: {}]   ;;  %s4235_s1 = inlined_call_operand.vmem [shape: bf16[25,32,128], index: 1, kind: input, shape index: {}]   ;;  %s4236_s2 = inlined_call_operand.vmem [shape: f32[1,128], index: 2, kind: input, shape index: {}]   ;;  %s4237_s3 = inlined_call_operand.vmem [shape: bf16[128,128], index: 3, kind: input, shape index: {}]   ;;  %s4238_s4 = inlined_call_operand.vmem [shape: f32[1,128], index: 4, kind: input, shape index: {}]   ;;  %s4239_s5 = inlined_call_operand.vmem [shape: bf16[2,24,128], index: 5, kind: output, shape index: {}]  }
   0x1   :  { %s3900_s20 = smov 0  }
   0x2 LB: > { %s27_s21 = sadd.s32 1, %s3860_s19  ;;  %p3040_p0 = scmp.ge.s32.totalorder %s3864_s20, 1  ;;  %s3864_s20 = sphi %s3900_s20, %s15_s20   ;;  %s3860_s19 = sphi %s3898_s19, %s4241_s19   ;;  %s3856_s18 = sphi %s3896_s18, %s4240_s18  }
   0x3   : > { %p29_p1 = scmp.ge.s32.totalorder %s27_s21, 2  ;;  %p207_p2 = scmp.lt.s32.totalorder %s3864_s20, 3 }
   0x5   : > { %s4243_s21 = smov (%p29_p1, %s27_s21), 0  ;;  %p208_p3 = pnand %p3040_p0, %p207_p2 }
   0x6   : > { %v3728_v0 = vld [vmem:[%s4235_s1] sm:$0xff] (!%p208_p3)   ;;  %p243_p4 = scmp.lt.s32.totalorder (!%p208_p3), %s3856_s18, 1  ;;  %v3729_v1 = vld [vmem:[%s4235_s1 + $0x8] sm:$0xff] (!%p208_p3)   ;;  %v3732_v2 = vld [vmem:[%s4235_s1 + $0x10] sm:$0xff] (!%p208_p3)   ;;  %vm290_vm0 = vcmask (!%p208_p3), 261120   ;;  %vm678_vm2 = vcmask (!%p208_p3), 1046528  }
   0x7   : > { %211 = sbr.rel (%p208_p3) target bundleno = 581 (0x245), region = 40  ;;  %3482 = vmatprep.subr.bf16.mxu0 (!%p208_p3), %v3728_v0  ;;  %v3737_v3 = vld [vmem:[%s4235_s1 + $0x30] sm:$0xff] (!%p208_p3)   ;;  %v3733_v4 = vld [vmem:[%s4235_s1 + $0x18] sm:$0xff] (!%p208_p3)   ;;  %v3736_v8 = vld [vmem:[%s4235_s1 + $0x20] sm:$0xff] (!%p208_p3)   ;;  %vm459_vm1 = vsmask.f32 (!%p208_p3), 7424 }
   0x8   : > { %3483 = vmatpush3.bf16.msra.mxu0 (!%p208_p3), %v3728_v0  ;;  %3506 = vmatprep.subr.bf16.mxu1 (!%p208_p3), %v3737_v3  ;;  %v3739_v9 = vld [vmem:[%s4235_s1 + $0x38] sm:$0xff] (!%p208_p3)   ;;  %v3738_v16 = vld [vmem:[%s4235_s1 + $0x28] sm:$0xff] (!%p208_p3)   ;;  %v3745_v25 = vld [vmem:[%s4235_s1 + $0x50] sm:$0xff] (!%p208_p3)   ;;  %vm1275_vm3 = vcmask (!%p208_p3), 1044480   ;;  %vm1470_vm4 = vsmask.f32 (!%p208_p3), 4352 }
   0x9   : > { %3484 = vmatprep.subr.bf16.mxu0 (!%p208_p3), %v3729_v1  ;;  %3507 = vmatpush3.bf16.msra.mxu1 (!%p208_p3), %v3737_v3  ;;  %v3742_v30 = vld [vmem:[%s4235_s1 + $0x40] sm:$0xff] (!%p208_p3)   ;;  %v3747_v33 = vld [vmem:[%s4235_s1 + $0x58] sm:$0xff] (!%p208_p3)   ;;  %v3746_v39 = vld [vmem:[%s4235_s1 + $0x48] sm:$0xff] (!%p208_p3)   ;;  %vm2291_vm5 = vcmask (!%p208_p3), 1045504   ;;  %vm2486_vm6 = vsmask.f32 (!%p208_p3), 5376 }
   0xa   : > { %3508 = vmatprep.subr.bf16.mxu1 (!%p208_p3), %v3739_v9  ;;  %v3753_v44 = vld [vmem:[%s4235_s1 + $0x70] sm:$0xff] (!%p208_p3)   ;;  %v3750_v45 = vld [vmem:[%s4235_s1 + $0x60] sm:$0xff] (!%p208_p3)   ;;  %v3754_v47 = vld [vmem:[%s4235_s1 + $0x68] sm:$0xff] (!%p208_p3)  }
   0xb   : > { %v3755_v48 = vld [vmem:[%s4235_s1 + $0x78] sm:$0xff] (!%p208_p3)   ;;  %v3761_v54 = vld [vmem:[%s4235_s1 + $0x90] sm:$0xff] (!%p208_p3)   ;;  %v3758_v58 = vld [vmem:[%s4235_s1 + $0x80] sm:$0xff] (!%p208_p3)  }
   0xc   : > { %3485 = vmatpush3.bf16.msra.mxu0 (!%p208_p3), %v3729_v1  ;;  %v3762_v1 = vld [vmem:[%s4235_s1 + $0x88] sm:$0xff] (!%p208_p3)  }
   0xd   : > { %3490 = vmatprep.subr.bf16.mxu0 (!%p208_p3), %v3732_v2  ;;  %3509 = vmatpush3.bf16.msra.mxu1 (!%p208_p3), %v3739_v9 }
   0xe   : > { %s4245_s18 = smov (!%p243_p4, %s3856_s18), 1  ;;  %3522 = vmatprep.subr.bf16.mxu1 %v3745_v25 }
   0xf   : > { %s3702_s26 = smul.u32 80, %s4245_s18 }
  0x10   : > { %s3703_s24 = smul.u32 12, %s4245_s18 }
  0x11   : > { %s3932_s8 = scalar_lea.vmem %s4234_s0, %s3702_s26 }
  0x12   : > { %v3730_v5 = vld [vmem:[%s3932_s8] sm:$0xff]   ;;  %v3731_v6 = vld [vmem:[%s3932_s8 + $0x8] ss:$0 sps:$4 sm:$0xff]   ;;  %v3734_v7 = vld [vmem:[%s3932_s8 + $0x14] sm:$0xff]   ;;  %s260_s26 = scalar_lea.vmem %s4239_s5, %s3703_s24 }
  0x13   : > { %3486 = vmatprep.mubr.msk.bf16.mxu0 %vm290_vm0, %v3730_v5  ;;  %v3735_v10 = vld [vmem:[%s3932_s8 + $0x1c] ss:$0 sps:$4 sm:$0xff]   ;;  %v3740_v11 = vld [vmem:[%s3932_s8] sm:$0xff]   ;;  %v3741_v12 = vld [vmem:[%s3932_s8 + $0x8] sm:$0x1f]  }
  0x14   : > { %3487 = vmatmul.mubr.msk.bf16.vlgmr.msra.gmra.mrb[0].mxu0 %vm290_vm0, %v3731_v6  ;;  %v461_v13 = vshrl.u32 %v3740_v11, 16  ;;  %v463_v14 = vshll.u32 %v3740_v11, 16  ;;  %v3743_v15 = vld [vmem:[%s3932_s8 + $0x14] sm:$0xff]   ;;  %v468_v17 = vshll.u32 %v3741_v12, 16  ;;  %v3744_v21 = vld [vmem:[%s3932_s8 + $0x1c] sm:$0x1f]  }
  0x15   : > { %3491 = vmatpush3.bf16.msra.mxu0 %v3732_v2  ;;  %3494 = vmatprep.mubr.msk.bf16.mxu0 %vm290_vm0, %v3734_v7  ;;  %v570_v19 = vshrl.u32 %v3743_v15, 16  ;;  %v572_v22 = vshll.u32 %v3743_v15, 16  ;;  %v472_v24 = vshrl.u32 %v3741_v12, 16  ;;  %v577_v27 = vshll.u32 %v3744_v21, 16  ;;  %v3748_v35 = vld [vmem:[%s3932_s8] sm:$0xfe]  }
  0x16   : > { %3492 = vmatprep.subr.bf16.mxu0 %v3733_v4  ;;  %v465_v18 = vrot.slane %v463_v14, 1  ;;  %v470_v20 = vrot.slane %v468_v17, 1  ;;  %v581_v28 = vshrl.u32 %v3744_v21, 16  ;;  %v3749_v38 = vld [vmem:[%s3932_s8 + $0x8] sm:$0x1f]   ;;  %v679_v40 = vrot.slane %v3748_v35, 1 }
  0x17   : > { %v574_v26 = vrot.slane %v572_v22, 1  ;;  %v579_v32 = vrot.slane %v577_v27, 1  ;;  %v680_v41 = vrot.slane %v3749_v38, 1  ;;  %v3751_v42 = vld [vmem:[%s3932_s8 + $0x28] sm:$0xff]   ;;  %v3752_v46 = vld [vmem:[%s3932_s8 + $0x30] ss:$0 sps:$4 sm:$0xff]  }
  0x18   : > { %v466_v23 = vor.u32 %v465_v18, %v461_v13  ;;  %v474_v34 = vor.u32 %v472_v24, %v470_v20  ;;  %v3756_v49 = vld [vmem:[%s3932_s8 + $0x3c] sm:$0xff]   ;;  %v3759_v50 = vld [vmem:[%s3932_s8 + $0x28] sm:$0xff]   ;;  %v3760_v51 = vld [vmem:[%s3932_s8 + $0x30] sm:$0x1f]  }
  0x19   : > { %3493 = vmatpush3.bf16.msra.mxu0 %v3733_v4  ;;  %v575_v31 = vor.u32 %v574_v26, %v570_v19  ;;  %v583_v37 = vor.u32 %v581_v28, %v579_v32  ;;  %v681_v43 = vsel %vm678_vm2, %v679_v40, %v680_v41  ;;  %v961_v52 = vshrl.u32 %v3759_v50, 16  ;;  %v3757_v57 = vld [vmem:[%s3932_s8 + $0x44] ss:$0 sps:$4 sm:$0xff]   ;;  %v3764_v61 = vld [vmem:[%s3932_s8 + $0x3c] sm:$0xff]   ;;  %v3767_v11 = vld [vmem:[%s3932_s8 + $0x28] sm:$0xfe]  }
  0x1a   : > { %3498 = vmatprep.subr.bf16.mxu0 %v3736_v8  ;;  %v471_v29 = vsel %vm459_vm1, %v466_v23, %v470_v20  ;;  %v963_v53 = vshll.u32 %v3759_v50, 16  ;;  %v968_v55 = vshll.u32 %v3760_v51, 16  ;;  %v972_v56 = vshrl.u32 %v3760_v51, 16  ;;  %v3765_v63 = vld [vmem:[%s3932_s8 + $0x44] sm:$0x1f]   ;;  %v3763_v5 = vld [vmem:[%s4235_s1 + $0x98] sm:$0xff]  }
  0x1b   : > { %v580_v36 = vsel %vm459_vm1, %v575_v31, %v579_v32  ;;  %v1070_v2 = vshrl.u32 %v3764_v61, 16  ;;  %v1072_v3 = vshll.u32 %v3764_v61, 16  ;;  %v1077_v6 = vshll.u32 %v3765_v63, 16  ;;  %v3768_v12 = vld [vmem:[%s3932_s8 + $0x30] sm:$0x1f]   ;;  %v3770_v20 = vld [vmem:[%s4235_s1 + $0xa8] sm:$0xff]  }
  0x1c   : > { %3495 = vmatmul.mubr.msk.bf16.vlgmr.msra.gmra.mrb[4].mxu0 %vm290_vm0, %v3735_v10  ;;  %3510 = vmatprep.mubr.msk.bf16.mxu1 %vm290_vm0, %v580_v36  ;;  %v965_v59 = vrot.slane %v963_v53, 1  ;;  %v970_v60 = vrot.slane %v968_v55, 1  ;;  %v1081_v9 = vshrl.u32 %v3765_v63, 16  ;;  %v3766_v10 = vld [vmem:[%s4235_s1 + $0xa0] sm:$0xff]   ;;  %v3769_v14 = vld [vmem:[%s4235_s1 + $0xb0] sm:$0xff]   ;;  %v1178_v15 = vrot.slane %v3767_v11, 1 }
  0x1d   : > { %3499 = vmatpush3.bf16.msra.mxu0 %v3736_v8  ;;  %3502 = vmatprep.mubr.msk.bf16.mxu0 %vm290_vm0, %v471_v29  ;;  %v1074_v7 = vrot.slane %v1072_v3, 1  ;;  %v1079_v8 = vrot.slane %v1077_v6, 1  ;;  %v3772_v21 = vld [vmem:[%s3932_s8] sm:$0xf8]   ;;  %v3773_v22 = vld [vmem:[%s3932_s8 + $0x8] sm:$0x7f]  }
  0x1e   : > { %3500 = vmatprep.subr.bf16.mxu0 %v3738_v16  ;;  %3511 = vmatmul.mubr.msk.bf16.vlgmr.msra.gmra.mrb[0].mxu1 %vm290_vm0, %v583_v37  ;;  %v966_v62 = vor.u32 %v965_v59, %v961_v52  ;;  %v974_v0 = vor.u32 %v972_v56, %v970_v60  ;;  %v3771_v23 = vld [vmem:[%s4235_s1 + $0xb8] sm:$0xff]   ;;  %v1276_v24 = vrot.slane %v3772_v21, 3  ;;  %v3774_v29 = vld [vmem:[%s4235_s1 + $0xc0] sm:$0xff]   ;;  %v3777_v32 = vld [vmem:[%s4235_s1 + $0xd0] sm:$0xff]  }
  0x1f   : > { %3523 = vmatpush3.bf16.msra.mxu1 %v3745_v25  ;;  %3526 = vmatprep.mubr.msk.bf16.mxu1 %vm290_vm0, %v3751_v42  ;;  %v1075_v13 = vor.u32 %v1074_v7, %v1070_v2  ;;  %v1083_v18 = vor.u32 %v1081_v9, %v1079_v8  ;;  %v1277_v25 = vrot.slane %v3773_v22, 3  ;;  %v3775_v26 = vld [vmem:[%s3932_s8 + $0x14] sm:$0xf8]   ;;  %v3776_v27 = vld [vmem:[%s3932_s8 + $0x1c] sm:$0x7f]   ;;  %v3781_v37 = vld [vmem:[%s3932_s8 + $0x8] sm:$0xff]  }
  0x20   : > { %3524 = vmatprep.subr.bf16.mxu1 %v3747_v33  ;;  %v971_v4 = vsel %vm459_vm1, %v966_v62, %v970_v60  ;;  %v1374_v31 = vrot.slane %v3776_v27, 3  ;;  %v3780_v35 = vld [vmem:[%s3932_s8] sm:$0xf8]   ;;  %v3779_v36 = vld [vmem:[%s4235_s1 + $0xd8] sm:$0xff]   ;;  %v1480_v40 = vshrl.u32 %v3781_v37, 16  ;;  %v3785_v55 = vld [vmem:[%s4235_s1 + $0xf0] sm:$0xff]  }
  0x21   : > { %3501 = vmatpush3.bf16.msra.mxu0 %v3738_v16  ;;  %v1179_v16 = vrot.slane %v3768_v12, 1  ;;  %v1080_v17 = vsel %vm459_vm1, %v1075_v13, %v1079_v8  ;;  %v1278_v28 = vsel %vm1275_vm3, %v1276_v24, %v1277_v25  ;;  %v1472_v38 = vshrl.u32 %v3780_v35, 16  ;;  %v3786_v62 = vld [vmem:[%s4235_s1 + $0xe8] sm:$0xff]   ;;  %v3790_v6 = vld [vmem:[%s4235_s1 + $0x100] sm:$0xff]   ;;  %v3793_v9 = vld [vmem:[%s4235_s1 + $0x110] sm:$0xff]  }
  0x22   : > { %3514 = vmatprep.subr.bf16.mxu0 %v3742_v30  ;;  %v3788_v63 = vld [vmem:[%s3932_s8 + $0x4] sm:$0xff]   ;;  %v3796_v12 = vld [vmem:[%s3932_s8 + $0x3c] sm:$0xf8]  }
  0x23   : > { %3525 = vmatpush3.bf16.msra.mxu1 %v3747_v33  ;;  %v1180_v19 = vsel %vm678_vm2, %v1178_v15, %v1179_v16  ;;  %v1474_v42 = vrot.slane %v1472_v38, 3  ;;  %v3791_v3 = vld [vmem:[%s3932_s8 + $0x28] sm:$0xf8]   ;;  %v3795_v13 = vld [vmem:[%s4235_s1 + $0x118] sm:$0xff]   ;;  %v1881_v15 = vrot.slane %v3796_v12, 3 }
  0x24   : > { %3503 = vmatmul.mubr.msk.bf16.vlgmr.msra.gmra.mrb[8].mxu0 %vm290_vm0, %v474_v34  ;;  %3538 = vmatprep.subr.bf16.mxu1 %v3753_v44  ;;  %v3778_v34 = vld [vmem:[%s4235_s1 + $0xc8] sm:$0xff]   ;;  %v1784_v7 = vrot.slane %v3791_v3, 3 }
  0x25   : > { %3515 = vmatpush3.bf16.msra.mxu0 %v3742_v30  ;;  %3518 = vmatprep.mubr.msk.bf16.mxu0 %vm290_vm0, %v681_v43  ;;  %v1373_v30 = vrot.slane %v3775_v26, 3  ;;  %v3794_v11 = vld [vmem:[%s4235_s1 + $0x108] sm:$0xff]  }
  0x26   : > { %3516 = vmatprep.subr.bf16.mxu0 %v3746_v39  ;;  %3527 = vmatmul.mubr.msk.bf16.vlgmr.msra.gmra.mrb[4].mxu1 %vm290_vm0, %v3752_v46  ;;  %v3820_v3 = vld [vmem:[%s3932_s8 + $0x4] sm:$0xfc]  }
  0x27   : > { %3539 = vmatpush3.bf16.msra.mxu1 %v3753_v44  ;;  %3542 = vmatprep.mubr.msk.bf16.mxu1 %vm290_vm0, %v971_v4  ;;  %v1375_v33 = vsel %vm1275_vm3, %v1373_v30, %v1374_v31  ;;  %v3783_v44 = vld [vmem:[%s3932_s8 + $0x14] sm:$0xf8]   ;;  %v3792_v4 = vld [vmem:[%s3932_s8 + $0x30] sm:$0x7f]  }
  0x28   : > { %3540 = vmatprep.subr.bf16.mxu1 %v3755_v48  ;;  %v1583_v50 = vshrl.u32 %v3783_v44, 16  ;;  %v1586_v51 = vshll.u32 %v3783_v44, 16  ;;  %v1785_v8 = vrot.slane %v3792_v4, 3  ;;  %v3821_v4 = vld [vmem:[%s3932_s8 + $0xc] sm:$0x7f]  }
  0x29   : > { %3517 = vmatpush3.bf16.msra.mxu0 %v3746_v39  ;;  %v1475_v39 = vshll.u32 %v3780_v35, 16 }
  0x2a   : > { %3530 = vmatprep.subr.bf16.mxu0 %v3750_v45  ;;  %v1585_v56 = vrot.slane %v1583_v50, 3  ;;  %v3808_v50 = vld [vmem:[%s3932_s8 + $0x34] ss:$0 sps:$4 sm:$0xff]  }
  0x2b   : > { %3541 = vmatpush3.bf16.msra.mxu1 %v3755_v48  ;;  %v1477_v43 = vrot.slane %v1475_v39, 4  ;;  %v3784_v48 = vld [vmem:[%s3932_s8 + $0x1c] sm:$0xff]  }
  0x2c   : > { %3519 = vmatmul.mubr.msk.bf16.vlgmr.msra.gmra.mrb[12].mxu0 %vm290_vm0, %v680_v41  ;;  %3554 = vmatprep.subr.bf16.mxu1 %v3761_v54  ;;  %v1483_v41 = vshll.u32 %v3781_v37, 16  ;;  %v1591_v53 = vshrl.u32 %v3784_v48, 16  ;;  %v3803_v37 = vld [vmem:[%s4235_s1 + $0x138] sm:$0xff]  }
  0x2d   : > { %3531 = vmatpush3.bf16.msra.mxu0 %v3750_v45  ;;  %3534 = vmatprep.mubr.msk.bf16.mxu0 %vm290_vm0, %v3756_v49  ;;  %v1482_v45 = vrot.slane %v1480_v40, 3  ;;  %v1478_v49 = vor.u32 %v1477_v43, %v1474_v42  ;;  %v3806_v40 = vld [vmem:[%s4235_s1 + $0x140] sm:$0xff]  }
  0x2e   : > { %3532 = vmatprep.subr.bf16.mxu0 %v3754_v47  ;;  %3543 = vmatmul.mubr.msk.bf16.vlgmr.msra.gmra.mrb[8].mxu1 %vm290_vm0, %v974_v0  ;;  %v1485_v46 = vrot.slane %v1483_v41, 4  ;;  %v1593_v59 = vrot.slane %v1591_v53, 3  ;;  %v3811_v53 = vld [vmem:[%s4235_s1 + $0x158] sm:$0xff]  }
  0x2f   : > { %3555 = vmatpush3.bf16.msra.mxu1 %v3761_v54  ;;  %3558 = vmatprep.mubr.msk.bf16.mxu1 %vm290_vm0, %v1180_v19  ;;  %v1594_v54 = vshll.u32 %v3784_v48, 16  ;;  %v3799_v19 = vld [vmem:[%s3932_s8 + $0x28] sm:$0xf8]  }
  0x30   : > { %3556 = vmatprep.subr.bf16.mxu1 %v3763_v5  ;;  %v1486_v52 = vor.u32 %v1485_v46, %v1482_v45  ;;  %v1979_v24 = vshrl.u32 %v3799_v19, 16  ;;  %v3807_v46 = vld [vmem:[%s3932_s8 + $0x2c] sm:$0xff]  }
  0x31   : > { %3533 = vmatpush3.bf16.msra.mxu0 %v3754_v47  ;;  %v3782_v47 = vld [vmem:[%s4235_s1 + $0xe0] sm:$0xff]   ;;  %v1596_v60 = vrot.slane %v1594_v54, 4 }
  0x32   : > { %3546 = vmatprep.subr.bf16.mxu0 %v3758_v58  ;;  %v1981_v30 = vrot.slane %v1979_v24, 3  ;;  %v3812_v54 = vld [vmem:[%s3932_s8 + $0x4] sm:$0xfc]  }
  0x33   : > { %3557 = vmatpush3.bf16.msra.mxu1 %v3763_v5  ;;  %v1597_v0 = vor.u32 %v1596_v60, %v1593_v59  ;;  %v3789_v5 = vld [vmem:[%s3932_s8 + $0xc] ss:$0 sps:$4 sm:$0xff]   ;;  %v3815_v59 = vld [vmem:[%s3932_s8 + $0x18] sm:$0xfc]   ;;  %v3816_v60 = vld [vmem:[%s3932_s8 + $0x20] sm:$0x3f]  }
  0x34   : > { %3535 = vmatmul.mubr.msk.bf16.vlgmr.msra.gmra.mrb[16].mxu0 %vm290_vm0, %v3757_v57  ;;  %3570 = vmatprep.subr.bf16.mxu1 %v3769_v14  ;;  %v1588_v57 = vrot.slane %v1586_v51, 4  ;;  %v3810_v51 = vld [vmem:[%s4235_s1 + $0x148] sm:$0xff]  }
  0x35   : > { %3547 = vmatpush3.bf16.msra.mxu0 %v3758_v58  ;;  %3550 = vmatprep.mubr.msk.bf16.mxu0 %vm290_vm0, %v1080_v17  ;;  %v1487_v58 = vsel %vm1470_vm4, %v1478_v49, %v1486_v52  ;;  %v3809_v49 = vld [vmem:[%s4235_s1 + $0x150] sm:$0xff]  }
  0x36   : > { %3548 = vmatprep.subr.bf16.mxu0 %v3762_v1  ;;  %3559 = vmatmul.mubr.msk.bf16.vlgmr.msra.gmra.mrb[12].mxu1 %vm290_vm0, %v1179_v16  ;;  %v1589_v61 = vor.u32 %v1588_v57, %v1585_v56  ;;  %v3798_v16 = vld [vmem:[%s4235_s1 + $0x120] sm:$0xff]   ;;  %v2292_v57 = vrot.slane %v3812_v54, 2 }
  0x37   : > { %3571 = vmatpush3.bf16.msra.mxu1 %v3769_v14  ;;  %3574 = vmatprep.mubr.msk.bf16.mxu1 %vm290_vm0, %v1375_v33  ;;  %v3797_v14 = vld [vmem:[%s3932_s8 + $0x44] sm:$0x7f]   ;;  %v3804_v33 = vld [vmem:[%s3932_s8 + $0x3c] sm:$0xf8]  }
  0x38   : > { %3572 = vmatprep.subr.bf16.mxu1 %v3771_v23  ;;  %v1598_v2 = vsel %vm1470_vm4, %v1589_v61, %v1597_v0  ;;  %v1882_v17 = vrot.slane %v3797_v14, 3  ;;  %v2090_v38 = vshrl.u32 %v3804_v33, 16  ;;  %v2093_v39 = vshll.u32 %v3804_v33, 16  ;;  %v3814_v56 = vld [vmem:[%s4235_s1 + $0x160] sm:$0xff]  }
  0x39   : > { %3549 = vmatpush3.bf16.msra.mxu0 %v3762_v1  ;;  %v3787_v1 = vld [vmem:[%s4235_s1 + $0xf8] sm:$0xff]  }
  0x3a   : > { %3562 = vmatprep.subr.bf16.mxu0 %v3766_v10  ;;  %v2092_v44 = vrot.slane %v2090_v38, 3  ;;  %v2095_v45 = vrot.slane %v2093_v39, 4  ;;  %v3829_v38 = vld [vmem:[%s4237_s3 + $0x8] sm:$0xff]   ;;  %v3830_v39 = vld [vmem:[%s4237_s3 + $0x10] sm:$0xff]  }
  0x3b   : > { %3573 = vmatpush3.bf16.msra.mxu1 %v3771_v23  ;;  %v3801_v23 = vld [vmem:[%s4235_s1 + $0x130] sm:$0xff]  }
  0x3c   : > { %3551 = vmatmul.mubr.msk.bf16.vlgmr.msra.gmra.mrb[20].mxu0 %vm290_vm0, %v1083_v18  ;;  %3586 = vmatprep.subr.bf16.mxu1 %v3777_v32  ;;  %v3800_v18 = vld [vmem:[%s3932_s8 + $0x30] sm:$0xff]   ;;  %v2096_v48 = vor.u32 %v2095_v45, %v2092_v44  ;;  %v3835_v44 = vld [vmem:[%s4237_s3 + $0x38] sm:$0xff]  }
  0x3d   : > { %3563 = vmatpush3.bf16.msra.mxu0 %v3766_v10  ;;  %3566 = vmatprep.mubr.msk.bf16.mxu0 %vm290_vm0, %v1278_v28  ;;  %v1786_v10 = vsel %vm1275_vm3, %v1784_v7, %v1785_v8  ;;  %v1987_v21 = vshrl.u32 %v3800_v18, 16  ;;  %v1990_v22 = vshll.u32 %v3800_v18, 16  ;;  %v3802_v28 = vld [vmem:[%s4235_s1 + $0x128] sm:$0xff]   ;;  %v2491_v7 = vshll.u32 %v3820_v3, 16 }
  0x3e   : > { %3564 = vmatprep.subr.bf16.mxu0 %v3770_v20  ;;  %3575 = vmatmul.mubr.msk.bf16.vlgmr.msra.gmra.mrb[16].mxu1 %vm290_vm0, %v1374_v31 }
  0x3f   : > { %3587 = vmatpush3.bf16.msra.mxu1 %v3777_v32  ;;  %3590 = vmatprep.mubr.msk.bf16.mxu1 %vm290_vm0, %v1598_v2  ;;  %v1989_v26 = vrot.slane %v1987_v21, 3  ;;  %v1992_v27 = vrot.slane %v1990_v22, 4  ;;  %v3818_v2 = vld [vmem:[%s4235_s1 + $0x168] sm:$0xff]   ;;  %v2493_v12 = vrot.slane %v2491_v7, 3 }
  0x40   : > { %3588 = vmatprep.subr.bf16.mxu1 %v3779_v36 }
  0x41   : > { %3565 = vmatpush3.bf16.msra.mxu0 %v3770_v20  ;;  %v1883_v20 = vsel %vm1275_vm3, %v1881_v15, %v1882_v17  ;;  %v1993_v32 = vor.u32 %v1992_v27, %v1989_v26  ;;  %v3823_v15 = vld [vmem:[%s3932_s8 + $0x18] sm:$0xfc]   ;;  %v3825_v27 = vld [vmem:[%s4235_s1 + $0x188] sm:$0xff]  }
  0x42   : > { %3578 = vmatprep.subr.bf16.mxu0 %v3774_v29 }
  0x43   : > { %3589 = vmatpush3.bf16.msra.mxu1 %v3779_v36 }
  0x44   : > { %3567 = vmatmul.mubr.msk.bf16.vlgmr.msra.gmra.mrb[24].mxu0 %vm290_vm0, %v1277_v25  ;;  %3602 = vmatprep.subr.bf16.mxu1 %v3785_v55  ;;  %v1982_v25 = vshll.u32 %v3799_v19, 16  ;;  %v2599_v19 = vshrl.u32 %v3823_v15, 16 }
  0x45   : > { %3579 = vmatpush3.bf16.msra.mxu0 %v3774_v29  ;;  %3582 = vmatprep.mubr.msk.bf16.mxu0 %vm290_vm0, %v1487_v58  ;;  %v3805_v29 = vld [vmem:[%s3932_s8 + $0x44] sm:$0xff]  }
  0x46   : > { %3580 = vmatprep.subr.bf16.mxu0 %v3778_v34  ;;  %3591 = vmatmul.mubr.msk.bf16.vlgmr.msra.gmra.mrb[20].mxu1 %vm290_vm0, %v1597_v0  ;;  %v1984_v31 = vrot.slane %v1982_v25, 4  ;;  %v2098_v35 = vshrl.u32 %v3805_v29, 16  ;;  %v2101_v36 = vshll.u32 %v3805_v29, 16  ;;  %v3817_v0 = vld [vmem:[%s4235_s1 + $0x170] sm:$0xff]   ;;  %v2601_v24 = vrot.slane %v2599_v19, 2 }
  0x47   : > { %3603 = vmatpush3.bf16.msra.mxu1 %v3785_v55  ;;  %3606 = vmatprep.mubr.msk.bf16.mxu1 %vm290_vm0, %v1786_v10  ;;  %v3813_v55 = vld [vmem:[%s3932_s8 + $0xc] sm:$0x3f]   ;;  %v2499_v10 = vshll.u32 %v3821_v4, 16 }
  0x48   : > { %3604 = vmatprep.subr.bf16.mxu1 %v3787_v1  ;;  %v2100_v42 = vrot.slane %v2098_v35, 3  ;;  %v2103_v43 = vrot.slane %v2101_v36, 4  ;;  %v2293_v58 = vrot.slane %v3813_v55, 2 }
  0x49   : > { %3581 = vmatpush3.bf16.msra.mxu0 %v3778_v34  ;;  %v1985_v34 = vor.u32 %v1984_v31, %v1981_v30  ;;  %v2501_v14 = vrot.slane %v2499_v10, 3  ;;  %v3827_v30 = vld [vmem:[%s3932_s8 + $0xc] sm:$0x7f]  }
  0x4a   : > { %3594 = vmatprep.subr.bf16.mxu0 %v3782_v47  ;;  %v2294_v61 = vsel %vm2291_vm5, %v2292_v57, %v2293_v58 }
  0x4b   : > { %3605 = vmatpush3.bf16.msra.mxu1 %v3787_v1  ;;  %v1994_v41 = vsel %vm1470_vm4, %v1985_v34, %v1993_v32  ;;  %v2710_v34 = vrot.slane %v3827_v30, 3 }
  0x4c   : > { %3583 = vmatmul.mubr.msk.bf16.vlgmr.msra.gmra.mrb[28].mxu0 %vm290_vm0, %v1486_v52  ;;  %3618 = vmatprep.subr.bf16.mxu1 %v3793_v9 }
  0x4d   : > { %3595 = vmatpush3.bf16.msra.mxu0 %v3782_v47  ;;  %3598 = vmatprep.mubr.msk.bf16.mxu0 %vm290_vm0, %v3788_v63  ;;  %v2104_v47 = vor.u32 %v2103_v43, %v2100_v42  ;;  %v2390_v63 = vrot.slane %v3816_v60, 2  ;;  %v3833_v42 = vld [vmem:[%s4237_s3 + $0x28] sm:$0xff]   ;;  %v3834_v43 = vld [vmem:[%s4237_s3 + $0x30] sm:$0xff]  }
  0x4e   : > { %3596 = vmatprep.subr.bf16.mxu0 %v3786_v62  ;;  %3607 = vmatmul.mubr.msk.bf16.vlgmr.msra.gmra.mrb[24].mxu1 %vm290_vm0, %v1785_v8  ;;  %v3822_v8 = vld [vmem:[%s4235_s1 + $0x180] sm:$0xff]  }
  0x4f   : > { %3619 = vmatpush3.bf16.msra.mxu1 %v3793_v9  ;;  %3622 = vmatprep.mubr.msk.bf16.mxu1 %vm290_vm0, %v1994_v41  ;;  %v2105_v52 = vsel %vm1470_vm4, %v2096_v48, %v2104_v47  ;;  %v2496_v9 = vshrl.u32 %v3821_v4, 16  ;;  %v3832_v41 = vld [vmem:[%s4237_s3 + $0x20] sm:$0xff]  }
  0x50   : > { %3620 = vmatprep.subr.bf16.mxu1 %v3795_v13 }
  0x51   : > { %3597 = vmatpush3.bf16.msra.mxu0 %v3786_v62  ;;  %v2389_v62 = vrot.slane %v3815_v59, 2 }
  0x52   : > { %3610 = vmatprep.subr.bf16.mxu0 %v3790_v6 }
  0x53   : > { %3621 = vmatpush3.bf16.msra.mxu1 %v3795_v13  ;;  %v2391_v1 = vsel %vm2291_vm5, %v2389_v62, %v2390_v63  ;;  %v2498_v13 = vrot.slane %v2496_v9, 2 }
  0x54   : > { %3599 = vmatmul.mubr.msk.bf16.vlgmr.msra.gmra.mrb[32].mxu0 %vm290_vm0, %v3789_v5  ;;  %3634 = vmatprep.subr.bf16.mxu1 %v3801_v23  ;;  %v3819_v5 = vld [vmem:[%s4235_s1 + $0x178] sm:$0xff]  }
  0x55   : > { %3611 = vmatpush3.bf16.msra.mxu0 %v3790_v6  ;;  %3614 = vmatprep.mubr.msk.bf16.mxu0 %vm290_vm0, %v1883_v20  ;;  %v2488_v6 = vshrl.u32 %v3820_v3, 16  ;;  %v2502_v18 = vor.u32 %v2501_v14, %v2498_v13  ;;  %v2602_v20 = vshll.u32 %v3823_v15, 16 }
  0x56   : > { %3612 = vmatprep.subr.bf16.mxu0 %v3794_v11  ;;  %3623 = vmatmul.mubr.msk.bf16.vlgmr.msra.gmra.mrb[28].mxu1 %vm290_vm0, %v1993_v32 }
  0x57   : > { %3635 = vmatpush3.bf16.msra.mxu1 %v3801_v23  ;;  %3638 = vmatprep.mubr.msk.bf16.mxu1 %vm290_vm0, %v3807_v46  ;;  %v2604_v25 = vrot.slane %v2602_v20, 3 }
  0x58   : > { %3636 = vmatprep.subr.bf16.mxu1 %v3803_v37 }
  0x59   : > { %3613 = vmatpush3.bf16.msra.mxu0 %v3794_v11  ;;  %v2490_v11 = vrot.slane %v2488_v6, 2  ;;  %v2605_v31 = vor.u32 %v2604_v25, %v2601_v24 }
  0x5a   : > { %3626 = vmatprep.subr.bf16.mxu0 %v3798_v16 }
  0x5b   : > { %3637 = vmatpush3.bf16.msra.mxu1 %v3803_v37  ;;  %v3828_v37 = vld [vmem:[%s4237_s3] sm:$0xff]  }
  0x5c   : > { %3615 = vmatmul.mubr.msk.bf16.vlgmr.msra.gmra.mrb[36].mxu0 %vm290_vm0, %v1882_v17  ;;  %3650 = vmatprep.subr.bf16.mxu1 %v3809_v49  ;;  %v2494_v17 = vor.u32 %v2493_v12, %v2490_v11 }
  0x5d   : > { %3627 = vmatpush3.bf16.msra.mxu0 %v3798_v16  ;;  %3630 = vmatprep.mubr.msk.bf16.mxu0 %vm290_vm0, %v2105_v52  ;;  %v3824_v16 = vld [vmem:[%s3932_s8 + $0x20] sm:$0x7f]  }
  0x5e   : > { %3628 = vmatprep.subr.bf16.mxu0 %v3802_v28  ;;  %3639 = vmatmul.mubr.msk.bf16.vlgmr.msra.gmra.mrb[32].mxu1 %vm290_vm0, %v3808_v50  ;;  %v2607_v21 = vshrl.u32 %v3824_v16, 16  ;;  %v2610_v22 = vshll.u32 %v3824_v16, 16  ;;  %v2503_v23 = vsel %vm2486_vm6, %v2494_v17, %v2502_v18 }
  0x5f   : > { %3651 = vmatpush3.bf16.msra.mxu1 %v3809_v49  ;;  %3654 = vmatprep.mubr.msk.bf16.mxu1 %vm290_vm0, %v2391_v1 }
  0x60   : > { %3652 = vmatprep.subr.bf16.mxu1 %v3811_v53  ;;  %v2609_v26 = vrot.slane %v2607_v21, 2  ;;  %v2612_v29 = vrot.slane %v2610_v22, 3 }
  0x61   : > { %3629 = vmatpush3.bf16.msra.mxu0 %v3802_v28  ;;  %v3826_v28 = vld [vmem:[%s3932_s8 + $0x4] sm:$0xf8]  }
  0x62   : > { %3642 = vmatprep.subr.bf16.mxu0 %v3806_v40  ;;  %v2709_v32 = vrot.slane %v3826_v28, 3  ;;  %v2613_v33 = vor.u32 %v2612_v29, %v2609_v26 }
  0x63   : > { %3653 = vmatpush3.bf16.msra.mxu1 %v3811_v53 }
  0x64   : > { %3631 = vmatmul.mubr.msk.bf16.vlgmr.msra.gmra.mrb[40].mxu0 %vm290_vm0, %v2104_v47  ;;  %3666 = vmatprep.subr.bf16.mxu1 %v3817_v0  ;;  %v2614_v35 = vsel %vm2486_vm6, %v2605_v31, %v2613_v33  ;;  %v2711_v36 = vsel %vm1275_vm3, %v2709_v32, %v2710_v34 }
  0x65   : > { %3643 = vmatpush3.bf16.msra.mxu0 %v3806_v40  ;;  %3646 = vmatprep.mubr.msk.bf16.mxu0 %vm290_vm0, %v2294_v61  ;;  %v3831_v40 = vld [vmem:[%s4237_s3 + $0x18] sm:$0xff]  }
  0x66   : > { %3644 = vmatprep.subr.bf16.mxu0 %v3810_v51  ;;  %3655 = vmatmul.mubr.msk.bf16.vlgmr.msra.gmra.mrb[36].mxu1 %vm290_vm0, %v2390_v63 }
  0x67   : > { %3667 = vmatpush3.bf16.msra.mxu1 %v3817_v0  ;;  %3670 = vmatprep.mubr.msk.bf16.mxu1 %vm290_vm0, %v2614_v35 }
  0x68   : > { %3668 = vmatprep.subr.bf16.mxu1 %v3819_v5 }
  0x69   : > { %3645 = vmatpush3.bf16.msra.mxu0 %v3810_v51 }
  0x6a   : > { %3658 = vmatprep.subr.bf16.mxu0 %v3814_v56 }
  0x6b   : > { %3669 = vmatpush3.bf16.msra.mxu1 %v3819_v5 }
  0x6c   : > { %3647 = vmatmul.mubr.msk.bf16.vlgmr.msra.gmra.mrb[44].mxu0 %vm290_vm0, %v2293_v58  ;;  %3682 = vmatprep.subr.bf16.mxu1 %v3828_v37 }
  0x6d   : > { %3659 = vmatpush3.bf16.msra.mxu0 %v3814_v56  ;;  %3662 = vmatprep.mubr.msk.bf16.mxu0 %vm290_vm0, %v2503_v23 }
  0x6e   : > { %3660 = vmatprep.subr.bf16.mxu0 %v3818_v2  ;;  %3671 = vmatmul.mubr.msk.bf16.vlgmr.msra.gmra.mrb[40].mxu1 %vm290_vm0, %v2613_v33 }
  0x6f   : > { %3683 = vmatpush3.bf16.msra.mxu1 %v3828_v37 }
  0x70   : > { %3684 = vmatprep.subr.bf16.mxu1 %v3829_v38 }
  0x71   : > { %3661 = vmatpush3.bf16.msra.mxu0 %v3818_v2 }
  0x72   : > { %3674 = vmatprep.subr.bf16.mxu0 %v3822_v8 }
  0x73   : > { %3685 = vmatpush3.bf16.msra.mxu1 %v3829_v38 }
  0x74   : > { %3663 = vmatmul.mubr.msk.bf16.vlgmr.msra.gmra.mrb[48].mxu0 %vm290_vm0, %v2502_v18  ;;  %3686 = vmatprep.subr.bf16.mxu1 %v3830_v39 }
  0x75   : > { %3675 = vmatpush3.bf16.msra.mxu0 %v3822_v8  ;;  %3678 = vmatprep.mubr.msk.bf16.mxu0 %vm290_vm0, %v2711_v36 }
  0x76   : > { %3676 = vmatprep.subr.bf16.mxu0 %v3825_v27 }
  0x77   : > { %3687 = vmatpush3.bf16.msra.mxu1 %v3830_v39 }
  0x78   : > { %3688 = vmatprep.subr.bf16.mxu1 %v3831_v40 }
  0x79   : > { %3677 = vmatpush3.bf16.msra.mxu0 %v3825_v27 }
  0x7b   : > { %3689 = vmatpush3.bf16.msra.mxu1 %v3831_v40 }
  0x7c   : > { %3679 = vmatmul.mubr.msk.bf16.vlgmr.msra.gmra.mrb[52].mxu0 %vm290_vm0, %v2710_v34  ;;  %3690 = vmatprep.subr.bf16.mxu1 %v3832_v41 }
  0x7f   : > { %3691 = vmatpush3.bf16.msra.mxu1 %v3832_v41 }
  0x80   : > { %3692 = vmatprep.subr.bf16.mxu1 %v3833_v42 }
  0x83   : > { %3693 = vmatpush3.bf16.msra.mxu1 %v3833_v42 }
  0x84   : > { %3694 = vmatprep.subr.bf16.mxu1 %v3834_v43 }
  0x87   : > { %3695 = vmatpush3.bf16.msra.mxu1 %v3834_v43 }
  0x88   : > { %3696 = vmatprep.subr.bf16.mxu1 %v3835_v44 }
  0x8b   : > { %3697 = vmatpush3.bf16.msra.mxu1 %v3835_v44 }
  0xe7   : > { %v3488_v45 = vpop.f32.mrb[0].mxu0 }
  0xe8   : > { %v331_v46 = vpop.f32.mrb[1].mxu0 }
  0xe9   : > { %v3489_v47 = vpop.f32.mrb[2].mxu0 }
  0xea   : > { %v334_v48 = vpop.f32.mrb[3].mxu0 }
  0xef   : > { %v3496_v49 = vpop.f32.mrb[4].mxu0 }
  0xf0   : > { %v436_v50 = vadd.f32 %v3496_v49, %v3488_v45  ;;  %v417_v51 = vpop.f32.mrb[5].mxu0 }
  0xf1   : > { %v434_v52 = vadd.f32 %v417_v51, %v331_v46  ;;  %v3497_v53 = vpop.f32.mrb[6].mxu0  ;;  %v3512_v56 = vpop.f32.mrb[0].mxu1 }
  0xf2   : > { %v420_v54 = vpop.f32.mrb[7].mxu0  ;;  %v636_v58 = vpop.f32.mrb[1].mxu1 }
  0xf3   : > { %v435_v55 = vadd.f32 %v420_v54, %v334_v48  ;;  %v3513_v61 = vpop.f32.mrb[2].mxu1 }
  0xf4   : > { %v639_v0 = vpop.f32.mrb[3].mxu1 }
  0xf7   : > { %v3504_v57 = vpop.f32.mrb[8].mxu0 }
  0xf8   : > { %v546_v59 = vadd.f32 %v3504_v57, %v436_v50  ;;  %v527_v60 = vpop.f32.mrb[9].mxu0 }
  0xf9   : > { %v544_v62 = vadd.f32 %v527_v60, %v434_v52  ;;  %v3505_v63 = vpop.f32.mrb[10].mxu0  ;;  %v3528_v6 = vpop.f32.mrb[4].mxu1 }
  0xfa   : > { %v655_v1 = vadd.f32 %v3512_v56, %v546_v59  ;;  %v530_v2 = vpop.f32.mrb[11].mxu0  ;;  %v826_v8 = vpop.f32.mrb[5].mxu1 }
  0xfb   : > { %v545_v3 = vadd.f32 %v530_v2, %v435_v55  ;;  %v653_v4 = vadd.f32 %v636_v58, %v544_v62  ;;  %v3529_v11 = vpop.f32.mrb[6].mxu1 }
  0xfc   : > { %v829_v14 = vpop.f32.mrb[7].mxu1 }
  0xfd   : > { %v654_v5 = vadd.f32 %v639_v0, %v545_v3 }
  0xff   : > { %v3520_v7 = vpop.f32.mrb[12].mxu0 }
 0x100   : > { %v753_v9 = vadd.f32 %v3520_v7, %v655_v1  ;;  %v734_v10 = vpop.f32.mrb[13].mxu0 }
 0x101   : > { %v751_v12 = vadd.f32 %v734_v10, %v653_v4  ;;  %v3521_v13 = vpop.f32.mrb[14].mxu0  ;;  %v3544_v21 = vpop.f32.mrb[8].mxu1 }
 0x102   : > { %v845_v15 = vadd.f32 %v3528_v6, %v753_v9  ;;  %v737_v16 = vpop.f32.mrb[15].mxu0  ;;  %v1027_v24 = vpop.f32.mrb[9].mxu1 }
 0x103   : > { %v752_v17 = vadd.f32 %v737_v16, %v654_v5  ;;  %v843_v18 = vadd.f32 %v826_v8, %v751_v12  ;;  %v3545_v27 = vpop.f32.mrb[10].mxu1 }
 0x104   : > { %v1030_v30 = vpop.f32.mrb[11].mxu1 }
 0x105   : > { %v844_v19 = vadd.f32 %v829_v14, %v752_v17 }
 0x107   : > { %v3536_v20 = vpop.f32.mrb[16].mxu0 }
 0x108   : > { %v937_v22 = vadd.f32 %v3536_v20, %v845_v15  ;;  %v918_v23 = vpop.f32.mrb[17].mxu0 }
 0x109   : > { %v935_v25 = vadd.f32 %v918_v23, %v843_v18  ;;  %v3537_v26 = vpop.f32.mrb[18].mxu0  ;;  %v3560_v35 = vpop.f32.mrb[12].mxu1 }
 0x10a   : > { %v1046_v28 = vadd.f32 %v3544_v21, %v937_v22  ;;  %v921_v29 = vpop.f32.mrb[19].mxu0  ;;  %v1233_v38 = vpop.f32.mrb[13].mxu1 }
 0x10b   : > { %v936_v31 = vadd.f32 %v921_v29, %v844_v19  ;;  %v1044_v32 = vadd.f32 %v1027_v24, %v935_v25  ;;  %v3561_v41 = vpop.f32.mrb[14].mxu1 }
 0x10c   : > { %v1236_v44 = vpop.f32.mrb[15].mxu1 }
 0x10d   : > { %v1045_v33 = vadd.f32 %v1030_v30, %v936_v31 }
 0x10f   : > { %v3552_v34 = vpop.f32.mrb[20].mxu0 }
 0x110   : > { %v1155_v36 = vadd.f32 %v3552_v34, %v1046_v28  ;;  %v1136_v37 = vpop.f32.mrb[21].mxu0 }
 0x111   : > { %v1153_v39 = vadd.f32 %v1136_v37, %v1044_v32  ;;  %v3553_v40 = vpop.f32.mrb[22].mxu0  ;;  %v3576_v49 = vpop.f32.mrb[16].mxu1 }
 0x112   : > { %v1252_v42 = vadd.f32 %v3560_v35, %v1155_v36  ;;  %v1139_v43 = vpop.f32.mrb[23].mxu0  ;;  %v1428_v52 = vpop.f32.mrb[17].mxu1 }
 0x113   : > { %v1154_v45 = vadd.f32 %v1139_v43, %v1045_v33  ;;  %v1250_v46 = vadd.f32 %v1233_v38, %v1153_v39  ;;  %v3577_v55 = vpop.f32.mrb[18].mxu1 }
 0x114   : > { %v1431_v58 = vpop.f32.mrb[19].mxu1 }
 0x115   : > { %v1251_v47 = vadd.f32 %v1236_v44, %v1154_v45 }
 0x117   : > { %v3568_v48 = vpop.f32.mrb[24].mxu0 }
 0x118   : > { %v1350_v50 = vadd.f32 %v3568_v48, %v1252_v42  ;;  %v1331_v51 = vpop.f32.mrb[25].mxu0 }
 0x119   : > { %v1348_v53 = vadd.f32 %v1331_v51, %v1250_v46  ;;  %v3569_v54 = vpop.f32.mrb[26].mxu0  ;;  %v3592_v3 = vpop.f32.mrb[20].mxu1 }
 0x11a   : > { %v1447_v56 = vadd.f32 %v3576_v49, %v1350_v50  ;;  %v1334_v57 = vpop.f32.mrb[27].mxu0  ;;  %v1651_v7 = vpop.f32.mrb[21].mxu1 }
 0x11b   : > { %v1349_v59 = vadd.f32 %v1334_v57, %v1251_v47  ;;  %v1445_v60 = vadd.f32 %v1428_v52, %v1348_v53  ;;  %v3593_v9 = vpop.f32.mrb[22].mxu1 }
 0x11c   : > { %v1654_v10 = vpop.f32.mrb[23].mxu1 }
 0x11d   : > { %v1446_v61 = vadd.f32 %v1431_v58, %v1349_v59 }
 0x11f   : > { %v3584_v62 = vpop.f32.mrb[28].mxu0 }
 0x120   : > { %v1559_v63 = vadd.f32 %v3584_v62, %v1447_v56  ;;  %v1540_v0 = vpop.f32.mrb[29].mxu0 }
 0x121   : > { %v1557_v1 = vadd.f32 %v1540_v0, %v1445_v60  ;;  %v3585_v2 = vpop.f32.mrb[30].mxu0  ;;  %v3608_v17 = vpop.f32.mrb[24].mxu1 }
 0x122   : > { %v1543_v4 = vpop.f32.mrb[31].mxu0  ;;  %v1670_v5 = vadd.f32 %v3592_v3, %v1559_v63  ;;  %v1839_v21 = vpop.f32.mrb[25].mxu1 }
 0x123   : > { %v1558_v6 = vadd.f32 %v1543_v4, %v1446_v61  ;;  %v1668_v8 = vadd.f32 %v1651_v7, %v1557_v1  ;;  %v3609_v23 = vpop.f32.mrb[26].mxu1 }
 0x124   : > { %v1842_v24 = vpop.f32.mrb[27].mxu1 }
 0x125   : > { %v1669_v11 = vadd.f32 %v1654_v10, %v1558_v6 }
 0x127   : > { %v3600_v12 = vpop.f32.mrb[32].mxu0 }
 0x128   : > { %v1761_v13 = vadd.f32 %v3600_v12, %v1670_v5  ;;  %v1742_v14 = vpop.f32.mrb[33].mxu0 }
 0x129   : > { %v1759_v15 = vadd.f32 %v1742_v14, %v1668_v8  ;;  %v3601_v16 = vpop.f32.mrb[34].mxu0  ;;  %v3624_v32 = vpop.f32.mrb[28].mxu1 }
 0x12a   : > { %v1745_v18 = vpop.f32.mrb[35].mxu0  ;;  %v1858_v19 = vadd.f32 %v3608_v17, %v1761_v13  ;;  %v2047_v35 = vpop.f32.mrb[29].mxu1 }
 0x12b   : > { %v1760_v20 = vadd.f32 %v1745_v18, %v1669_v11  ;;  %v1856_v22 = vadd.f32 %v1839_v21, %v1759_v15  ;;  %v3625_v37 = vpop.f32.mrb[30].mxu1  ;;  %v3349_v18 = vld [vmem:[%s4236_s2] ss:$0 sm:$0xff] }
 0x12c   : > { %v2050_v38 = vpop.f32.mrb[31].mxu1 }
 0x12d   : > { %v1857_v25 = vadd.f32 %v1842_v24, %v1760_v20 }
 0x12f   : > { %v3616_v26 = vpop.f32.mrb[36].mxu0 }
 0x130   : > { %v1955_v27 = vadd.f32 %v3616_v26, %v1858_v19  ;;  %v1936_v28 = vpop.f32.mrb[37].mxu0 }
 0x131   : > { %v1953_v29 = vadd.f32 %v1936_v28, %v1856_v22  ;;  %v3617_v30 = vpop.f32.mrb[38].mxu0  ;;  %v3640_v45 = vpop.f32.mrb[32].mxu1 }
 0x132   : > { %v1939_v31 = vpop.f32.mrb[39].mxu0  ;;  %v2066_v34 = vadd.f32 %v3624_v32, %v1955_v27  ;;  %v2249_v49 = vpop.f32.mrb[33].mxu1 }
 0x133   : > { %v1954_v33 = vadd.f32 %v1939_v31, %v1857_v25  ;;  %v2064_v36 = vadd.f32 %v2047_v35, %v1953_v29  ;;  %v3641_v51 = vpop.f32.mrb[34].mxu1 }
 0x134   : > { %v2252_v52 = vpop.f32.mrb[35].mxu1 }
 0x135   : > { %v2065_v39 = vadd.f32 %v2050_v38, %v1954_v33 }
 0x137   : > { %v3632_v40 = vpop.f32.mrb[40].mxu0 }
 0x138   : > { %v2177_v41 = vadd.f32 %v3632_v40, %v2066_v34  ;;  %v2158_v42 = vpop.f32.mrb[41].mxu0  ;;  %v3350_v34 = vld [vmem:[%s4238_s4] ss:$0 sm:$0xff] }
 0x139   : > { %v2175_v43 = vadd.f32 %v2158_v42, %v2064_v36  ;;  %v3633_v44 = vpop.f32.mrb[42].mxu0  ;;  %v3656_v59 = vpop.f32.mrb[36].mxu1 }
 0x13a   : > { %v2161_v46 = vpop.f32.mrb[43].mxu0  ;;  %v2268_v47 = vadd.f32 %v3640_v45, %v2177_v41  ;;  %v2444_v63 = vpop.f32.mrb[37].mxu1 }
 0x13b   : > { %v2176_v48 = vadd.f32 %v2161_v46, %v2065_v39  ;;  %v2266_v50 = vadd.f32 %v2249_v49, %v2175_v43  ;;  %v3657_v1 = vpop.f32.mrb[38].mxu1 }
 0x13c   : > { %v2447_v2 = vpop.f32.mrb[39].mxu1 }
 0x13d   : > { %v2267_v53 = vadd.f32 %v2252_v52, %v2176_v48 }
 0x13f   : > { %v3648_v54 = vpop.f32.mrb[44].mxu0 }
 0x140   : > { %v2366_v55 = vadd.f32 %v3648_v54, %v2268_v47  ;;  %v2347_v56 = vpop.f32.mrb[45].mxu0 }
 0x141   : > { %v2364_v57 = vadd.f32 %v2347_v56, %v2266_v50  ;;  %v3649_v58 = vpop.f32.mrb[46].mxu0  ;;  %v3672_v11 = vpop.f32.mrb[40].mxu1 }
 0x142   : > { %v2350_v60 = vpop.f32.mrb[47].mxu0  ;;  %v2463_v61 = vadd.f32 %v3656_v59, %v2366_v55  ;;  %v2667_v13 = vpop.f32.mrb[41].mxu1 }
 0x143   : > { %v2365_v62 = vadd.f32 %v2350_v60, %v2267_v53  ;;  %v2461_v0 = vadd.f32 %v2444_v63, %v2364_v57  ;;  %v3673_v15 = vpop.f32.mrb[42].mxu1 }
 0x144   : > { %v2670_v16 = vpop.f32.mrb[43].mxu1 }
 0x145   : > { %v2462_v3 = vadd.f32 %v2447_v2, %v2365_v62 }
 0x147   : > { %v3664_v4 = vpop.f32.mrb[48].mxu0 }
 0x148   : > { %v2575_v5 = vadd.f32 %v3664_v4, %v2463_v61  ;;  %v2556_v6 = vpop.f32.mrb[49].mxu0 }
 0x149   : > { %v2573_v7 = vadd.f32 %v2556_v6, %v2461_v0  ;;  %v3665_v8 = vpop.f32.mrb[50].mxu0 }
 0x14a   : > { %v2559_v9 = vpop.f32.mrb[51].mxu0  ;;  %v2686_v12 = vadd.f32 %v3672_v11, %v2575_v5 }
 0x14b   : > { %v2574_v10 = vadd.f32 %v2559_v9, %v2462_v3  ;;  %v2684_v14 = vadd.f32 %v2667_v13, %v2573_v7 }
 0x14d   : > { %v2685_v19 = vadd.f32 %v2670_v16, %v2574_v10 }
 0x14f   : > { %v3680_v17 = vpop.f32.mrb[52].mxu0 }
 0x150   : > { %v2783_v20 = vadd.f32 %v3680_v17, %v2686_v12  ;;  %v2764_v21 = vpop.f32.mrb[53].mxu0 }
 0x151   : > { %v2781_v22 = vadd.f32 %v2764_v21, %v2684_v14  ;;  %v3681_v23 = vpop.f32.mrb[54].mxu0 }
 0x152   : > { %v2799_v24 = vadd.f32 %v3349_v18, %v2783_v20  ;;  %v2767_v25 = vpop.f32.mrb[55].mxu0 }
 0x153   : > { %v2797_v26 = vadd.f32 %v3349_v18, %v2781_v22  ;;  %v2782_v27 = vadd.f32 %v2767_v25, %v2685_v19 }
 0x154   : > { %v2802_v29 = vmul.f32 %v2799_v24, %v2799_v24 }
 0x155   : > { %v2798_v28 = vadd.f32 %v3349_v18, %v2782_v27  ;;  %v2800_v30 = vmul.f32 %v2797_v26, %v2797_v26 }
 0x156   : > { %v2804_v33 = vpack.c.bf16 %v2802_v29, %v2802_v29 }
 0x157   : > { %v2801_v31 = vmul.f32 %v2798_v28, %v2798_v28 }
 0x159   : > { %v2803_v32 = vpack.c.bf16 %v2801_v31, %v2800_v30 }
 0x15b   : > { %3698 = vmatprep.mubr.bf16.mxu1 %v2803_v32 }
 0x15c   : > { %3699 = vmatmul.mubr.bf16.vlgmr.msra.gmra.mrb[44].mxu1 %v2804_v33 }
 0x22f   : > { %v3700_v35 = vpop.f32.mrb[44].mxu1 }
 0x230   : > { %v2919_v36 = vadd.f32 %v3700_v35, %v3350_v34  ;;  %v2910_v37 = vpop.f32.mrb[45].mxu1 }
 0x231   : > { %v2911_v38 = vadd.f32 %v3350_v34, %v2910_v37  ;;  %v3701_v39 = vpop.f32.mrb[46].mxu1 }
 0x232   : > { %3836 = vrsqrt.f32 %v2919_v36  ;;  %v2913_v40 = vpop.f32.mrb[47].mxu1 }
 0x233   : > { %3838 = vrsqrt.f32 %v2911_v38  ;;  %v2914_v41 = vadd.f32 %v3350_v34, %v2913_v40 }
 0x235   : > { %3840 = vrsqrt.f32 %v2914_v41 }
 0x23c   : > { %v3837_v42 = vpop.eup %3836 }
 0x23d   : > { %v3839_v43 = vpop.eup %3838  ;;  %v2929_v44 = vmul.f32 %v3837_v42, %v2799_v24 }
 0x23e   : > { %v2927_v47 = vmul.f32 %v3839_v43, %v2797_v26 }
 0x23f   : > { %v3841_v45 = vpop.eup %3840  ;;  %v3366_v46 = vpack.c.bf16 %v2929_v44, %v2929_v44 }
 0x240   : > { %v2928_v48 = vmul.f32 %v3841_v45, %v2798_v28 }
 0x241   : > { %2945 = vst [vmem:[%s260_s26 + $0x8] sm:$0xf] %v3366_v46 }
 0x242   : > { %v3370_v49 = vpack.c.bf16 %v2928_v48, %v2927_v47 }
 0x244   : > { %3371 = vst [vmem:[%s260_s26] sm:$0xff] %v3370_v49  }
 0x245 PF: > { %s15_s20 = sadd.s32 1, %s3864_s20   ;;  %s4240_s18 = smov %s3860_s19 }
 0x246   : > { %p12_p5 = scmp.ge.s32.totalorder %s15_s20, 4   ;;  %s4241_s19 = smov %s4243_s21 }
 0x248   :  { %14 = sbr.rel (!%p12_p5) target bundleno = 2 (0x2), region = 97 }

// kernel: ir_encoder_forward.5
= control target key start
LH: loop header
LB: loop body
LE: loop exit
PB: predicated region body
PF: predicated region fallthrough
CT: control target
= control target key end

     0   :  { %s6370_s18 = smov 0   ;;  %s6372_s19 = smov 0   ;;  %s6946_s0 = inlined_call_operand.vmem [shape: bf16[2,2,4,86,32], index: 0, kind: input, shape index: {}]   ;;  %s6947_s1 = inlined_call_operand.vmem [shape: bf16[25,32,128], index: 1, kind: input, shape index: {}]   ;;  %s6948_s2 = inlined_call_operand.vmem [shape: f32[1,128], index: 2, kind: input, shape index: {}]   ;;  %s6949_s3 = inlined_call_operand.vmem [shape: bf16[128,128], index: 3, kind: input, shape index: {}]   ;;  %s6950_s4 = inlined_call_operand.vmem [shape: f32[1,128], index: 4, kind: input, shape index: {}]   ;;  %s6951_s5 = inlined_call_operand.vmem [shape: bf16[2,128,128], index: 5, kind: output, shape index: {}]  }
   0x1   :  { %s6374_s20 = smov 0   ;;  %s6376_s21 = smov 0  }
   0x2   :  { %s6378_s22 = smov 0  }
   0x3 LB: > { %s24_s23 = sadd.s32 1, %s6330_s20  ;;  %s27_s24 = sadd.s32 1, %s6334_s21  ;;  %s6338_s22 = sphi %s6378_s22, %s15_s22   ;;  %s6334_s21 = sphi %s6376_s21, %s6955_s21   ;;  %s6330_s20 = sphi %s6374_s20, %s6954_s20   ;;  %s6326_s19 = sphi %s6372_s19, %s6953_s19   ;;  %s6322_s18 = sphi %s6370_s18, %s6952_s18  }
   0x4   : > { %p25_p0 = scmp.ge.s32.totalorder %s24_s23, 2  ;;  %p4821_p1 = scmp.ge.s32.totalorder %s6338_s22, 1 }
   0x5   : > { %p207_p2 = scmp.lt.s32.totalorder %s6338_s22, 5 }
   0x6   : > { %s6957_s23 = smov (%p25_p0, %s24_s23), 0  ;;  %s6959_s24 = smov (!%p25_p0, %s27_s24), %s6334_s21 }
   0x7   : > { %p208_p3 = pnand %p4821_p1, %p207_p2  ;;  %p29_p4 = scmp.ge.s32.totalorder %s6959_s24, 2 }
   0x8   : > { %v6105_v0 = vld [vmem:[%s6947_s1] sm:$0xff] (!%p208_p3)   ;;  %p243_p5 = scmp.lt.s32.totalorder (!%p208_p3), %s6326_s19, 1  ;;  %v6106_v1 = vld [vmem:[%s6947_s1 + $0xb0] sm:$0xff] (!%p208_p3)   ;;  %p245_p6 = scmp.lt.s32.totalorder (!%p208_p3), %s6322_s18, 1  ;;  %v6107_v2 = vld [vmem:[%s6947_s1 + $0x8] sm:$0xff] (!%p208_p3)   ;;  %vm307_vm0 = vcmask (!%p208_p3), 261120  }
   0x9   : > { %s6961_s24 = smov (%p29_p4, %s6959_s24), 0  ;;  %211 = sbr.rel (%p208_p3) target bundleno = 703 (0x2bf), region = 40 }
   0xa   : > { %5547 = vmatprep.subr.bf16.mxu1 (!%p208_p3), %v6105_v0  ;;  %5679 = vmatprep.subr.bf16.mxu0 (!%p208_p3), %v6106_v1  ;;  %v6108_v3 = vld [vmem:[%s6947_s1 + $0xb8] sm:$0xff] (!%p208_p3)   ;;  %v6113_v4 = vld [vmem:[%s6947_s1 + $0xc0] sm:$0xff] (!%p208_p3)   ;;  %v6117_v5 = vld [vmem:[%s6947_s1 + $0x10] sm:$0xff] (!%p208_p3)   ;;  %vm950_vm1 = vcmask (!%p208_p3), 1046528   ;;  %vm2253_vm2 = vsmask.f32 (!%p208_p3), 6400 }
   0xb   : > { %5548 = vmatpush3.bf16.msra.mxu1 (!%p208_p3), %v6105_v0  ;;  %5680 = vmatpush3.bf16.msra.mxu0 (!%p208_p3), %v6106_v1  ;;  %v6121_v6 = vld [vmem:[%s6947_s1 + $0x18] sm:$0xff] (!%p208_p3)   ;;  %v6119_v14 = vld [vmem:[%s6947_s1 + $0xc8] sm:$0xff] (!%p208_p3)   ;;  %v6126_v25 = vld [vmem:[%s6947_s1 + $0xd0] sm:$0xff] (!%p208_p3)   ;;  %vm577_vm3 = vsmask.f32 (!%p208_p3), 7424  ;;  %vm2642_vm4 = vcmask (!%p208_p3), 1045504  }
   0xc   : > { %5549 = vmatprep.subr.bf16.mxu1 (!%p208_p3), %v6107_v2  ;;  %5681 = vmatprep.subr.bf16.mxu0 (!%p208_p3), %v6108_v3  ;;  %v6130_v43 = vld [vmem:[%s6947_s1 + $0x20] sm:$0xff] (!%p208_p3)   ;;  %v6132_v55 = vld [vmem:[%s6947_s1 + $0xd8] sm:$0xff] (!%p208_p3)   ;;  %v6134_v59 = vld [vmem:[%s6947_s1 + $0x28] sm:$0xff] (!%p208_p3)   ;;  %vm3985_vm5 = vsmask.f32 (!%p208_p3), 5376  ;;  %vm4374_vm6 = vcmask (!%p208_p3), 1044480  }
   0xd   : > { %s4823_s7 = sshll.u32 (!%p208_p3), %s6322_s18, 3 }
   0xe   : > { %p255_p7 = scmp.lt.s32.totalorder (!%p208_p3), %s4823_s7, 15 }
   0xf   : > { %5550 = vmatpush3.bf16.msra.mxu1 (!%p208_p3), %v6107_v2  ;;  %5682 = vmatpush3.bf16.msra.mxu0 (!%p208_p3), %v6108_v3 }
  0x10   : > { %s6963_s19 = smov (!%p243_p5, %s6326_s19), 1  ;;  %5559 = vmatprep.subr.bf16.mxu1 %v6117_v5  ;;  %5691 = vmatprep.subr.bf16.mxu0 %v6113_v4  ;;  %s6965_s7 = smov (!%p255_p7, %s4823_s7), 15 }
  0x11   : > { %s246_s8 = scalar_select %p245_p6, %s6322_s18, 1 }
  0x12   : > { %s6064_s9 = smul.u32 88, %s6963_s19 }
  0x13   : > { %s6063_s12 = smul.u32 44, %s246_s8  ;;  %s4824_s8 = sshll.u32 %s6963_s19, 4 }
  0x14   : > { %s258_s18 = sadd.s32 %s4824_s8, %s6965_s7 }
  0x15   : > { %s249_s15 = sadd.s32 %s6064_s9, %s6063_s12 }
  0x16   : > { %s4822_s16 = sshll.u32 %s249_s15, 2 }
  0x17   : > { %s6428_s26 = scalar_lea.vmem %s6946_s0, %s4822_s16 }
  0x18   : > { %v6109_v7 = vld [vmem:[%s6428_s26] sm:$0xff]   ;;  %v6110_v8 = vld [vmem:[%s6428_s26 + $0x8] sm:$0xff]   ;;  %v6111_v9 = vld [vmem:[%s6428_s26 + $0x30] sm:$0xfe]  }
  0x19   : > { %5551 = vmatprep.mubr.msk.bf16.mxu1 %vm307_vm0, %v6109_v7  ;;  %v6112_v10 = vld [vmem:[%s6428_s26 + $0x38] sm:$0xff]   ;;  %v6114_v11 = vld [vmem:[%s6428_s26 + $0x40] sm:$0xff]   ;;  %v2094_v12 = vrot.slane %v6111_v9, 1  ;;  %v6115_v16 = vld [vmem:[%s6428_s26 + $0x10] sm:$0xff]  }
  0x1a   : > { %5552 = vmatmul.mubr.msk.bf16.vlgmr.msra.gmra.mrb[0].mxu1 %vm307_vm0, %v6110_v8  ;;  %v2095_v13 = vrot.slane %v6112_v10, 1  ;;  %v2097_v15 = vrot.slane %v6114_v11, 1  ;;  %v6116_v18 = vld [vmem:[%s6428_s26 + $0x18] sm:$0xff]   ;;  %v6118_v20 = vld [vmem:[%s6428_s26 + $0x48] sm:$0xff]   ;;  %v6135_v60 = vld [vmem:[%s6428_s26] sm:$0xff]  }
  0x1b   : > { %5560 = vmatpush3.bf16.msra.mxu1 %v6117_v5  ;;  %5555 = vmatprep.mubr.msk.bf16.mxu1 %vm307_vm0, %v6115_v16  ;;  %v6120_v21 = vld [vmem:[%s6428_s26 + $0x50] ss:$0 sps:$4 sm:$0x11]   ;;  %v2099_v23 = vrot.slane %v6118_v20, 1  ;;  %v6124_v27 = vld [vmem:[%s6428_s26 + $0x4] sm:$0xfe]  }
  0x1c   : > { %5561 = vmatprep.subr.bf16.mxu1 %v6121_v6  ;;  %v2096_v17 = vsel %vm950_vm1, %v2094_v12, %v2095_v13  ;;  %v2098_v19 = vsel %vm950_vm1, %v2095_v13, %v2097_v15  ;;  %v6122_v22 = vld [vmem:[%s6428_s26 + $0x2c] sm:$0xff]   ;;  %v2101_v24 = vrot.slane %v6120_v21, 1  ;;  %v6123_v28 = vld [vmem:[%s6428_s26 + $0x34] sm:$0xff]   ;;  %v2255_v31 = vshrl.u32 %v6124_v27, 16  ;;  %v6128_v34 = vld [vmem:[%s6428_s26 + $0x3c] sm:$0xff]  }
  0x1d   : > { %5683 = vmatprep.mubr.msk.bf16.mxu0 %vm307_vm0, %v2096_v17  ;;  %v2100_v26 = vsel %vm950_vm1, %v2097_v15, %v2099_v23  ;;  %v6125_v29 = vld [vmem:[%s6428_s26 + $0xc] sm:$0xff]   ;;  %v2258_v32 = vshll.u32 %v6124_v27, 16  ;;  %v6127_v33 = vld [vmem:[%s6428_s26 + $0x14] sm:$0xff]   ;;  %v6131_v48 = vld [vmem:[%s6428_s26 + $0x1c] sm:$0xff]   ;;  %v579_v2 = vshrl.u32 %v6135_v60, 16 }
  0x1e   : > { %5684 = vmatmul.mubr.msk.bf16.vlgmr.msra.gmra.mrb[0].mxu0 %vm307_vm0, %v2098_v19  ;;  %v2102_v30 = vsel %vm950_vm1, %v2099_v23, %v2101_v24  ;;  %v2263_v35 = vshrl.u32 %v6125_v29, 16  ;;  %v2266_v36 = vshll.u32 %v6125_v29, 16  ;;  %v2257_v37 = vrot.slane %v2255_v31, 1  ;;  %v6133_v50 = vld [vmem:[%s6428_s26 + $0x24] ss:$0 sps:$4 sm:$0x33]  }
  0x1f   : > { %5562 = vmatpush3.bf16.msra.mxu1 %v6121_v6  ;;  %5692 = vmatpush3.bf16.msra.mxu0 %v6113_v4  ;;  %v2260_v38 = vrot.slane %v2258_v32, 2  ;;  %v2272_v39 = vshrl.u32 %v6127_v33, 16  ;;  %v2275_v40 = vshll.u32 %v6127_v33, 16  ;;  %v6129_v52 = vld [vmem:[%s6428_s26 + $0x44] sm:$0xff]   ;;  %v2281_v53 = vshrl.u32 %v6131_v48, 16  ;;  %v6137_v5 = vld [vmem:[%s6428_s26 + $0x10] sm:$0xff]  }
  0x20   : > { %5693 = vmatprep.subr.bf16.mxu0 %v6119_v14  ;;  %5687 = vmatprep.mubr.msk.bf16.mxu0 %vm307_vm0, %v2100_v26  ;;  %v2265_v41 = vrot.slane %v2263_v35, 1  ;;  %v2268_v42 = vrot.slane %v2266_v36, 2  ;;  %v2284_v54 = vshll.u32 %v6131_v48, 16  ;;  %v2290_v57 = vshrl.u32 %v6133_v50, 16  ;;  %v6136_v1 = vld [vmem:[%s6428_s26 + $0x8] sm:$0xff]   ;;  %v6141_v23 = vld [vmem:[%s6428_s26 + $0x40] sm:$0xff]  }
  0x21   : > { %v2261_v44 = vor.u32 %v2260_v38, %v2257_v37  ;;  %v2274_v45 = vrot.slane %v2272_v39, 1  ;;  %v2277_v46 = vrot.slane %v2275_v40, 2  ;;  %5571 = vmatprep.subr.bf16.mxu1 %v6130_v43  ;;  %v2293_v58 = vshll.u32 %v6133_v50, 16  ;;  %v6138_v13 = vld [vmem:[%s6428_s26 + $0x30] sm:$0xfe]   ;;  %v6142_v26 = vld [vmem:[%s6428_s26 + $0x18] sm:$0xff]  }
  0x22   : > { %5556 = vmatmul.mubr.msk.bf16.gmra.mrb[4].mxu1 %vm307_vm0, %v6116_v18  ;;  %v2269_v47 = vor.u32 %v2268_v42, %v2265_v41  ;;  %v2283_v61 = vrot.slane %v2281_v53, 1  ;;  %v2286_v62 = vrot.slane %v2284_v54, 2  ;;  %v2292_v63 = vrot.slane %v2290_v57, 1  ;;  %v6140_v18 = vld [vmem:[%s6947_s1 + $0xe0] sm:$0xff]   ;;  %v6144_v31 = vld [vmem:[%s6947_s1 + $0x30] sm:$0xff]   ;;  %v6145_v40 = vld [vmem:[%s6428_s26 + $0x48] sm:$0xff]  }
  0x23   : > { %5563 = vmatprep.mubr.msk.bf16.mxu1 %vm307_vm0, %v6122_v22  ;;  %5694 = vmatpush3.bf16.msra.mxu0 %v6119_v14  ;;  %v2278_v49 = vor.u32 %v2277_v46, %v2274_v45  ;;  %v2295_v0 = vrot.slane %v2293_v58, 2  ;;  %v581_v4 = vshll.u32 %v6135_v60, 16  ;;  %v586_v7 = vshll.u32 %v6136_v1, 16  ;;  %v6139_v14 = vld [vmem:[%s6428_s26 + $0x38] sm:$0xff]   ;;  %v6146_v54 = vld [vmem:[%s6947_s1 + $0xe8] sm:$0xff]  }
  0x24   : > { %5703 = vmatprep.subr.bf16.mxu0 %v6126_v25  ;;  %v2270_v51 = vsel %vm2253_vm2, %v2261_v44, %v2269_v47  ;;  %v2287_v3 = vor.u32 %v2286_v62, %v2283_v61  ;;  %v590_v8 = vshrl.u32 %v6136_v1, 16  ;;  %v594_v11 = vshll.u32 %v6137_v5, 16  ;;  %v6143_v38 = vld [vmem:[%s6428_s26 + $0x20] ss:$0 sps:$4 sm:$0x11]   ;;  %v6150_v1 = vld [vmem:[%s6428_s26 + $0x34] sm:$0xff]  }
  0x25   : > { %v2279_v56 = vsel %vm2253_vm2, %v2269_v47, %v2278_v49  ;;  %v2296_v6 = vor.u32 %v2295_v0, %v2292_v63  ;;  %v583_v10 = vrot.slane %v581_v4, 1  ;;  %v588_v12 = vrot.slane %v586_v7, 1  ;;  %v6147_v58 = vld [vmem:[%s6428_s26 + $0x50] ss:$0 sps:$4 sm:$0x33]  }
  0x26   : > { %5688 = vmatmul.mubr.msk.bf16.gmra.mrb[4].mxu0 %vm307_vm0, %v2102_v30  ;;  %v2288_v9 = vsel %vm2253_vm2, %v2278_v49, %v2287_v3  ;;  %v596_v17 = vrot.slane %v594_v11, 1  ;;  %v2449_v20 = vshrl.u32 %v6138_v13, 16  ;;  %v2452_v21 = vshll.u32 %v6138_v13, 16  ;;  %v6149_v0 = vld [vmem:[%s6428_s26 + $0x2c] sm:$0xff]  }
  0x27   : > { %5695 = vmatprep.mubr.msk.bf16.mxu0 %vm307_vm0, %v2270_v51  ;;  %v2297_v15 = vsel %vm2253_vm2, %v2287_v3, %v2296_v6  ;;  %v584_v16 = vor.u32 %v583_v10, %v579_v2  ;;  %v592_v19 = vor.u32 %v590_v8, %v588_v12  ;;  %v2457_v22 = vshrl.u32 %v6139_v14, 16  ;;  %v6153_v6 = vld [vmem:[%s6428_s26 + $0xc] sm:$0xff]  }
  0x28   : > { %v2454_v29 = vrot.slane %v2452_v21, 2  ;;  %v2466_v33 = vshrl.u32 %v6141_v23, 16  ;;  %v598_v35 = vshrl.u32 %v6137_v5, 16  ;;  %v602_v37 = vshll.u32 %v6142_v26, 16  ;;  %v6151_v5 = vld [vmem:[%s6428_s26 + $0x3c] sm:$0xff]  }
  0x29   : > { %v589_v24 = vsel %vm577_vm3, %v584_v16, %v588_v12  ;;  %v597_v27 = vsel %vm577_vm3, %v592_v19, %v596_v17  ;;  %v2459_v30 = vrot.slane %v2457_v22, 1  ;;  %v606_v39 = vshrl.u32 %v6142_v26, 16  ;;  %v6152_v16 = vld [vmem:[%s6428_s26 + $0x4] sm:$0xfc]   ;;  %v6154_v19 = vld [vmem:[%s6947_s1 + $0xf0] sm:$0xff]  }
  0x2a   : > { %5564 = vmatmul.mubr.msk.bf16.vlgmr.msra.gmra.mrb[0].mxu1 %vm307_vm0, %v6123_v28  ;;  %v2451_v28 = vrot.slane %v2449_v20, 1  ;;  %v2468_v42 = vrot.slane %v2466_v33, 1  ;;  %v600_v44 = vor.u32 %v598_v35, %v596_v17  ;;  %v604_v45 = vrot.slane %v602_v37, 1  ;;  %v6158_v35 = vld [vmem:[%s6947_s1 + $0x40] sm:$0xff]  }
  0x2b   : > { %5567 = vmatprep.mubr.msk.bf16.mxu1 %vm307_vm0, %v6128_v34  ;;  %5572 = vmatpush3.bf16.msra.mxu1 %v6130_v43  ;;  %v2469_v34 = vshll.u32 %v6141_v23, 16  ;;  %v610_v46 = vshll.u32 %v6143_v38, 16  ;;  %v2475_v49 = vshrl.u32 %v6145_v40, 16  ;;  %v2478_v50 = vshll.u32 %v6145_v40, 16  ;;  %v6155_v23 = vld [vmem:[%s6428_s26 + $0x14] sm:$0xff]   ;;  %v6159_v37 = vld [vmem:[%s6428_s26 + $0x1c] sm:$0xff]  }
  0x2c   : > { %5573 = vmatprep.subr.bf16.mxu1 %v6134_v59  ;;  %v2455_v36 = vor.u32 %v2454_v29, %v2451_v28  ;;  %v605_v51 = vsel %vm577_vm3, %v600_v44, %v604_v45  ;;  %v2484_v62 = vshrl.u32 %v6147_v58, 16  ;;  %v2487_v63 = vshll.u32 %v6147_v58, 16  ;;  %v6160_v40 = vld [vmem:[%s6947_s1 + $0xf8] sm:$0xff]   ;;  %v6161_v44 = vld [vmem:[%s6428_s26 + $0x24] ss:$0 sps:$4 sm:$0x33]  }
  0x2d   : > { %v2471_v43 = vrot.slane %v2469_v34, 2  ;;  %v612_v53 = vrot.slane %v610_v46, 1  ;;  %v2480_v57 = vrot.slane %v2478_v50, 2  ;;  %v765_v7 = vshrl.u32 %v6149_v0, 16  ;;  %v6163_v50 = vld [vmem:[%s6428_s26] sm:$0xfe]  }
  0x2e   : > { %5696 = vmatmul.mubr.msk.bf16.vlgmr.msra.gmra.mrb[0].mxu0 %vm307_vm0, %v2279_v56  ;;  %v2477_v56 = vrot.slane %v2475_v49, 1  ;;  %v2486_v3 = vrot.slane %v2484_v62, 1  ;;  %v2489_v4 = vrot.slane %v2487_v63, 2  ;;  %v767_v8 = vshll.u32 %v6149_v0, 16  ;;  %v6164_v49 = vld [vmem:[%s6428_s26 + $0x8] sm:$0xff]   ;;  %v6170_v63 = vld [vmem:[%s6428_s26 + $0x18] sm:$0xff]  }
  0x2f   : > { %5574 = vmatpush3.bf16.msra.mxu1 %v6134_v59  ;;  %5704 = vmatpush3.bf16.msra.mxu0 %v6126_v25  ;;  %v2460_v25 = vshll.u32 %v6139_v14, 16  ;;  %v2472_v48 = vor.u32 %v2471_v43, %v2468_v42  ;;  %v6148_v59 = vld [vmem:[%s6947_s1 + $0x38] sm:$0xff]   ;;  %v776_v10 = vshrl.u32 %v6150_v1, 16  ;;  %v780_v12 = vshll.u32 %v6151_v5, 16 }
  0x30   : > { %5705 = vmatprep.subr.bf16.mxu0 %v6132_v55  ;;  %5699 = vmatprep.mubr.msk.bf16.mxu0 %vm307_vm0, %v2288_v9  ;;  %v2481_v61 = vor.u32 %v2480_v57, %v2477_v56  ;;  %v772_v9 = vshll.u32 %v6150_v1, 16  ;;  %v2490_v11 = vor.u32 %v2489_v4, %v2486_v3  ;;  %v2644_v13 = vrot.slane %v6153_v6, 2  ;;  %v6166_v56 = vld [vmem:[%s6428_s26 + $0x5c] sm:$0xfe]   ;;  %v6172_v1 = vld [vmem:[%s6947_s1 + $0x50] sm:$0xff]  }
  0x31   : > { %v2462_v32 = vrot.slane %v2460_v25, 2  ;;  %5583 = vmatprep.subr.bf16.mxu1 %v6144_v31  ;;  %v769_v14 = vrot.slane %v767_v8, 1  ;;  %v2643_v22 = vrot.slane %v6152_v16, 2  ;;  %v784_v25 = vshrl.u32 %v6151_v5, 16  ;;  %v6168_v57 = vld [vmem:[%s6947_s1 + $0x100] sm:$0xff]  }
  0x32   : > { %5568 = vmatmul.mubr.msk.bf16.gmra.mrb[4].mxu1 %vm307_vm0, %v6129_v52  ;;  %v608_v52 = vor.u32 %v606_v39, %v604_v45  ;;  %v2482_v2 = vsel %vm2253_vm2, %v2472_v48, %v2481_v61  ;;  %v2491_v17 = vsel %vm2253_vm2, %v2481_v61, %v2490_v11  ;;  %v2646_v29 = vrot.slane %v6155_v23, 2  ;;  %v6162_v45 = vld [vmem:[%s6947_s1 + $0x48] sm:$0xff]   ;;  %v6171_v5 = vld [vmem:[%s6428_s26 + $0x20] ss:$0 sps:$4 sm:$0x11]   ;;  %v6176_v11 = vld [vmem:[%s6947_s1 + $0x58] sm:$0xff]  }
  0x33   : > { %5706 = vmatpush3.bf16.msra.mxu0 %v6132_v55  ;;  %5575 = vmatprep.mubr.msk.bf16.mxu1 %vm307_vm0, %v589_v24  ;;  %v2463_v41 = vor.u32 %v2462_v32, %v2459_v30  ;;  %v770_v20 = vor.u32 %v769_v14, %v765_v7  ;;  %v6156_v24 = vld [vmem:[%s6428_s26 + $0x44] sm:$0xff]   ;;  %v2645_v28 = vsel %vm2642_vm4, %v2643_v22, %v2644_v13  ;;  %v6157_v30 = vld [vmem:[%s6428_s26 + $0x4c] ss:$0 sps:$4 sm:$0x11]   ;;  %v2648_v43 = vrot.slane %v6159_v37, 2  ;;  %v6173_v7 = vld [vmem:[%s6428_s26 + $0x74] sm:$0xff]  }
  0x34   : > { %5715 = vmatprep.subr.bf16.mxu0 %v6140_v18  ;;  %v613_v60 = vsel %vm577_vm3, %v608_v52, %v612_v53  ;;  %v788_v32 = vshll.u32 %v6156_v24, 16  ;;  %v792_v33 = vshrl.u32 %v6156_v24, 16  ;;  %v796_v34 = vshll.u32 %v6157_v30, 16  ;;  %v6165_v52 = vld [vmem:[%s6428_s26 + $0x10] sm:$0xff]   ;;  %v6178_v24 = vld [vmem:[%s6428_s26 + $0x60] sm:$0xff]  }
  0x35   : > { %v2464_v47 = vsel %vm2253_vm2, %v2455_v36, %v2463_v41  ;;  %v2473_v55 = vsel %vm2253_vm2, %v2463_v41, %v2472_v48  ;;  %v2647_v38 = vsel %vm2642_vm4, %v2644_v13, %v2646_v29  ;;  %v2650_v48 = vrot.slane %v6161_v44, 2  ;;  %v6169_v61 = vld [vmem:[%s6428_s26 + $0x6c] sm:$0xff]   ;;  %v6192_v37 = vld [vmem:[%s6428_s26 + $0x5c] sm:$0xfe]  }
  0x36   : > { %5700 = vmatmul.mubr.msk.bf16.gmra.mrb[4].mxu0 %vm307_vm0, %v2297_v15  ;;  %v774_v15 = vrot.slane %v772_v9, 1  ;;  %v790_v36 = vrot.slane %v788_v32, 1  ;;  %v798_v39 = vrot.slane %v796_v34, 1  ;;  %v951_v53 = vrot.slane %v6163_v50, 1  ;;  %v6174_v13 = vld [vmem:[%s6947_s1 + $0x108] sm:$0xff]   ;;  %v6187_v34 = vld [vmem:[%s6947_s1 + $0x118] sm:$0xff]  }
  0x37   : > { %5707 = vmatprep.mubr.msk.bf16.mxu0 %vm307_vm0, %v2464_v47  ;;  %v2649_v47 = vsel %vm2642_vm4, %v2646_v29, %v2648_v43  ;;  %v2651_v58 = vsel %vm2642_vm4, %v2648_v43, %v2650_v48  ;;  %v2802_v62 = vrot.slane %v6166_v56, 1  ;;  %v2805_v0 = vrot.slane %v6169_v61, 1  ;;  %v6175_v9 = vld [vmem:[%s6428_s26 + $0x7c] ss:$0 sps:$4 sm:$0x11]   ;;  %v6183_v29 = vld [vmem:[%s6428_s26 + $0x68] sm:$0xff]  }
  0x38   : > { %v778_v21 = vor.u32 %v776_v10, %v774_v15  ;;  %v775_v26 = vsel %vm577_vm3, %v770_v20, %v774_v15  ;;  %v794_v42 = vor.u32 %v792_v33, %v790_v36  ;;  %v956_v4 = vrot.slane %v6170_v63, 1  ;;  %v6177_v15 = vld [vmem:[%s6428_s26 + $0x58] sm:$0xff]   ;;  %v6181_v20 = vld [vmem:[%s6947_s1 + $0x110] sm:$0xff]   ;;  %v6188_v33 = vld [vmem:[%s6428_s26 + $0xa8] ss:$0 sps:$4 sm:$0x11]  }
  0x39   : > { %v958_v8 = vrot.slane %v6171_v5, 1  ;;  %v2807_v10 = vrot.slane %v6173_v7, 1  ;;  %v6191_v61 = vld [vmem:[%s6428_s26 + $0x8c] sm:$0xff]   ;;  %v6196_v63 = vld [vmem:[%s6428_s26 + $0x94] sm:$0xff]  }
  0x3a   : > { %5576 = vmatmul.mubr.msk.bf16.vlgmr.msra.gmra.mrb[0].mxu1 %vm307_vm0, %v597_v27  ;;  %v799_v46 = vsel %vm577_vm3, %v794_v42, %v798_v39  ;;  %v3124_v42 = vshll.u32 %v6192_v37, 16 }
  0x3b   : > { %5584 = vmatpush3.bf16.msra.mxu1 %v6144_v31  ;;  %5579 = vmatprep.mubr.msk.bf16.mxu1 %vm307_vm0, %v605_v51  ;;  %v952_v51 = vrot.slane %v6164_v49, 1  ;;  %v2808_v14 = vsel %vm950_vm1, %v2805_v0, %v2807_v10  ;;  %v959_v16 = vsel %vm950_vm1, %v956_v4, %v958_v8 }
  0x3c   : > { %5585 = vmatprep.subr.bf16.mxu1 %v6148_v59  ;;  %v3126_v48 = vrot.slane %v3124_v42, 2 }
  0x3e   : > { %5708 = vmatmul.mubr.msk.bf16.vlgmr.msra.gmra.mrb[0].mxu0 %vm307_vm0, %v2473_v55  ;;  %v954_v55 = vrot.slane %v6165_v52, 1 }
  0x3f   : > { %5716 = vmatpush3.bf16.msra.mxu0 %v6140_v18  ;;  %5586 = vmatpush3.bf16.msra.mxu1 %v6148_v59  ;;  %v782_v18 = vrot.slane %v780_v12, 1  ;;  %v953_v59 = vsel %vm950_vm1, %v951_v53, %v952_v51 }
  0x40   : > { %5717 = vmatprep.subr.bf16.mxu0 %v6146_v54  ;;  %5711 = vmatprep.mubr.msk.bf16.mxu0 %vm307_vm0, %v2482_v2  ;;  %v955_v2 = vsel %vm950_vm1, %v952_v51, %v954_v55  ;;  %v957_v6 = vsel %vm950_vm1, %v954_v55, %v956_v4  ;;  %v6194_v51 = vld [vmem:[%s6947_s1 + $0x120] sm:$0xff]   ;;  %v6203_v4 = vld [vmem:[%s6428_s26 + $0x58] sm:$0xff]  }
  0x41   : > { %v783_v27 = vsel %vm577_vm3, %v778_v21, %v782_v18  ;;  %v786_v31 = vor.u32 %v784_v25, %v782_v18  ;;  %5595 = vmatprep.subr.bf16.mxu1 %v6158_v35  ;;  %v6180_v18 = vld [vmem:[%s6428_s26 + $0x90] sm:$0xff]   ;;  %v6182_v25 = vld [vmem:[%s6428_s26 + $0x98] sm:$0xff]  }
  0x42   : > { %5580 = vmatmul.mubr.msk.bf16.gmra.mrb[4].mxu1 %vm307_vm0, %v613_v60  ;;  %v2962_v22 = vrot.slane %v6180_v18, 1  ;;  %v2964_v30 = vrot.slane %v6182_v25, 1 }
  0x43   : > { %5718 = vmatpush3.bf16.msra.mxu0 %v6146_v54  ;;  %5587 = vmatprep.mubr.msk.bf16.mxu1 %vm307_vm0, %v775_v26  ;;  %v791_v41 = vsel %vm577_vm3, %v786_v31, %v790_v36  ;;  %v6167_v54 = vld [vmem:[%s6428_s26 + $0x64] sm:$0xff]   ;;  %v6184_v36 = vld [vmem:[%s6428_s26 + $0x70] sm:$0xff]  }
  0x44   : > { %5727 = vmatprep.subr.bf16.mxu0 %v6154_v19  ;;  %v2803_v60 = vrot.slane %v6167_v54, 1  ;;  %v6189_v31 = vld [vmem:[%s6947_s1 + $0x68] sm:$0xff]  }
  0x46   : > { %5712 = vmatmul.mubr.msk.bf16.gmra.mrb[4].mxu0 %vm307_vm0, %v2491_v17  ;;  %v2804_v3 = vsel %vm950_vm1, %v2802_v62, %v2803_v60  ;;  %v2806_v12 = vsel %vm950_vm1, %v2803_v60, %v2805_v0  ;;  %v6179_v17 = vld [vmem:[%s6428_s26 + $0x88] sm:$0xfe]  }
  0x47   : > { %5719 = vmatprep.mubr.msk.bf16.mxu0 %vm307_vm0, %v2645_v28  ;;  %v2961_v21 = vrot.slane %v6179_v17, 1  ;;  %v6186_v28 = vld [vmem:[%s6428_s26 + $0xa0] sm:$0xff]   ;;  %v6200_v17 = vld [vmem:[%s6947_s1 + $0x128] sm:$0xff]  }
  0x48   : > { %v2966_v32 = vrot.slane %v6186_v28, 1 }
  0x49   : > { %v2963_v26 = vsel %vm950_vm1, %v2961_v21, %v2962_v22 }
  0x4a   : > { %5588 = vmatmul.mubr.msk.bf16.vlgmr.msra.gmra.mrb[0].mxu1 %vm307_vm0, %v783_v27  ;;  %v6185_v27 = vld [vmem:[%s6947_s1 + $0x60] sm:$0xff]   ;;  %v2967_v39 = vsel %vm950_vm1, %v2964_v30, %v2966_v32 }
  0x4b   : > { %5596 = vmatpush3.bf16.msra.mxu1 %v6158_v35  ;;  %5591 = vmatprep.mubr.msk.bf16.mxu1 %vm307_vm0, %v791_v41  ;;  %v2965_v35 = vsel %vm950_vm1, %v2962_v22, %v2964_v30  ;;  %v3121_v41 = vshrl.u32 %v6192_v37, 16  ;;  %v6197_v22 = vld [vmem:[%s6428_s26 + $0x9c] sm:$0xff]  }
  0x4c   : > { %5597 = vmatprep.subr.bf16.mxu1 %v6162_v45 }
  0x4e   : > { %5720 = vmatmul.mubr.msk.bf16.vlgmr.msra.gmra.mrb[0].mxu0 %vm307_vm0, %v2647_v38  ;;  %v6193_v38 = vld [vmem:[%s6428_s26 + $0x64] sm:$0xff]  }
  0x4f   : > { %5728 = vmatpush3.bf16.msra.mxu0 %v6154_v19  ;;  %5723 = vmatprep.mubr.msk.bf16.mxu0 %vm307_vm0, %v2649_v47  ;;  %v2809_v19 = vrot.slane %v6175_v9, 1  ;;  %v3129_v43 = vshrl.u32 %v6193_v38, 16  ;;  %v3132_v44 = vshll.u32 %v6193_v38, 16  ;;  %v3123_v47 = vrot.slane %v3121_v41, 1 }
  0x50   : > { %5729 = vmatprep.subr.bf16.mxu0 %v6160_v40  ;;  %5598 = vmatpush3.bf16.msra.mxu1 %v6162_v45  ;;  %v2968_v45 = vrot.slane %v6188_v33, 1 }
  0x51   : > { %5607 = vmatprep.subr.bf16.mxu1 %v6172_v1  ;;  %v2810_v23 = vsel %vm950_vm1, %v2807_v10, %v2809_v19  ;;  %v3131_v49 = vrot.slane %v3129_v43, 1  ;;  %v3134_v50 = vrot.slane %v3132_v44, 2  ;;  %v3127_v54 = vor.u32 %v3126_v48, %v3123_v47 }
  0x52   : > { %5592 = vmatmul.mubr.msk.bf16.gmra.mrb[4].mxu1 %vm307_vm0, %v799_v46  ;;  %v6195_v46 = vld [vmem:[%s6428_s26 + $0x6c] sm:$0xff]   ;;  %v2969_v60 = vsel %vm950_vm1, %v2966_v32, %v2968_v45  ;;  %v6212_v45 = vld [vmem:[%s6947_s1 + $0x80] sm:$0xff]  }
  0x53   : > { %5730 = vmatpush3.bf16.msra.mxu0 %v6160_v40  ;;  %5599 = vmatprep.mubr.msk.bf16.mxu1 %vm307_vm0, %v953_v59  ;;  %v6190_v40 = vld [vmem:[%s6428_s26 + $0x84] sm:$0xff]   ;;  %v3138_v52 = vshrl.u32 %v6195_v46, 16  ;;  %v3141_v53 = vshll.u32 %v6195_v46, 16  ;;  %v3135_v55 = vor.u32 %v3134_v50, %v3131_v49  ;;  %v6199_v59 = vld [vmem:[%s6428_s26 + $0x74] sm:$0xff]  }
  0x54   : > { %5739 = vmatprep.subr.bf16.mxu0 %v6168_v57  ;;  %v3147_v0 = vshrl.u32 %v6199_v59, 16  ;;  %v6213_v50 = vld [vmem:[%s6428_s26 + $0xa0] sm:$0xff]  }
  0x55   : > { %v3140_v56 = vrot.slane %v3138_v52, 1  ;;  %v3136_v62 = vsel %vm2253_vm2, %v3127_v54, %v3135_v55  ;;  %v6211_v54 = vld [vmem:[%s6428_s26 + $0x78] ss:$0 sps:$4 sm:$0x11]  }
  0x56   : > { %5724 = vmatmul.mubr.msk.bf16.gmra.mrb[4].mxu0 %vm307_vm0, %v2651_v58  ;;  %v6198_v58 = vld [vmem:[%s6947_s1 + $0x70] sm:$0xff]   ;;  %v3149_v5 = vrot.slane %v3147_v0, 1 }
  0x57   : > { %5731 = vmatprep.mubr.msk.bf16.mxu0 %vm307_vm0, %v2804_v3  ;;  %v6202_v3 = vld [vmem:[%s6947_s1 + $0x78] sm:$0xff]  }
  0x5a   : > { %5600 = vmatmul.mubr.msk.bf16.vlgmr.msra.gmra.mrb[0].mxu1 %vm307_vm0, %v955_v2  ;;  %v6201_v2 = vld [vmem:[%s6428_s26 + $0x7c] ss:$0 sps:$4 sm:$0x33]  }
  0x5b   : > { %5603 = vmatprep.mubr.msk.bf16.mxu1 %vm307_vm0, %v957_v6  ;;  %5608 = vmatpush3.bf16.msra.mxu1 %v6172_v1  ;;  %v3150_v1 = vshll.u32 %v6199_v59, 16  ;;  %v3156_v8 = vshrl.u32 %v6201_v2, 16  ;;  %v3159_v9 = vshll.u32 %v6201_v2, 16 }
  0x5c   : > { %5609 = vmatprep.subr.bf16.mxu1 %v6176_v11 }
  0x5d   : > { %v3152_v6 = vrot.slane %v3150_v1, 2  ;;  %v1436_v1 = vshll.u32 %v6211_v54, 16 }
  0x5e   : > { %5732 = vmatmul.mubr.msk.bf16.vlgmr.msra.gmra.mrb[0].mxu0 %vm307_vm0, %v2806_v12  ;;  %v1405_v12 = vshrl.u32 %v6203_v4, 16 }
  0x5f   : > { %5610 = vmatpush3.bf16.msra.mxu1 %v6176_v11  ;;  %5740 = vmatpush3.bf16.msra.mxu0 %v6168_v57  ;;  %v3143_v57 = vrot.slane %v3141_v53, 2  ;;  %v3153_v10 = vor.u32 %v3152_v6, %v3149_v5  ;;  %v6204_v11 = vld [vmem:[%s6428_s26 + $0x60] sm:$0xff]   ;;  %v6216_v5 = vld [vmem:[%s6947_s1 + $0x88] sm:$0xff]  }
  0x60   : > { %5735 = vmatprep.mubr.msk.bf16.mxu0 %vm307_vm0, %v2808_v14  ;;  %5741 = vmatprep.subr.bf16.mxu0 %v6174_v13  ;;  %v6205_v14 = vld [vmem:[%s6428_s26 + $0x68] sm:$0xff]   ;;  %v1412_v19 = vshll.u32 %v6204_v11, 16 }
  0x61   : > { %5619 = vmatprep.subr.bf16.mxu1 %v6185_v27  ;;  %v3144_v7 = vor.u32 %v3143_v57, %v3140_v56  ;;  %v1420_v25 = vshll.u32 %v6205_v14, 16  ;;  %v1424_v44 = vshrl.u32 %v6205_v14, 16  ;;  %v6219_v14 = vld [vmem:[%s6428_s26 + $0x94] sm:$0xff]  }
  0x62   : > { %5604 = vmatmul.mubr.msk.bf16.gmra.mrb[4].mxu1 %vm307_vm0, %v959_v16  ;;  %v3161_v16 = vrot.slane %v3159_v9, 2  ;;  %v1414_v28 = vrot.slane %v1412_v19, 1  ;;  %v6217_v9 = vld [vmem:[%s6428_s26 + $0x84] sm:$0xff]  }
  0x63   : > { %5611 = vmatprep.mubr.msk.bf16.mxu1 %vm307_vm0, %v6177_v15  ;;  %5742 = vmatpush3.bf16.msra.mxu0 %v6174_v13  ;;  %v1407_v13 = vshll.u32 %v6203_v4, 16  ;;  %v3158_v15 = vrot.slane %v3156_v8, 1  ;;  %v3145_v21 = vsel %vm2253_vm2, %v3135_v55, %v3144_v7  ;;  %v6215_v4 = vld [vmem:[%s6428_s26 + $0xa8] ss:$0 sps:$4 sm:$0x33]  }
  0x64   : > { %5751 = vmatprep.subr.bf16.mxu0 %v6181_v20  ;;  %v3353_v8 = vshll.u32 %v6215_v4, 16 }
  0x65   : > { %v1409_v18 = vrot.slane %v1407_v13, 1  ;;  %v1438_v13 = vrot.slane %v1436_v1, 1  ;;  %v6234_v1 = vld [vmem:[%s6428_s26 + $0x8] sm:$0xfc]  }
  0x66   : > { %5736 = vmatmul.mubr.msk.bf16.gmra.mrb[4].mxu0 %vm307_vm0, %v2810_v23  ;;  %v3154_v23 = vsel %vm2253_vm2, %v3144_v7, %v3153_v10  ;;  %v3350_v7 = vshrl.u32 %v6215_v4, 16 }
  0x67   : > { %5743 = vmatprep.mubr.msk.bf16.mxu0 %vm307_vm0, %v2963_v26  ;;  %v3162_v26 = vor.u32 %v3161_v16, %v3158_v15  ;;  %v3355_v16 = vrot.slane %v3353_v8, 2  ;;  %v6240_v8 = vld [vmem:[%s6947_s1 + $0xa0] sm:$0xff]  }
  0x68   : > { %v3352_v15 = vrot.slane %v3350_v7, 1 }
  0x69   : > { %v3163_v41 = vsel %vm2253_vm2, %v3153_v10, %v3162_v26  ;;  %v6218_v10 = vld [vmem:[%s6428_s26 + $0x8c] sm:$0xff]  }
  0x6a   : > { %5612 = vmatmul.mubr.msk.bf16.vlgmr.msra.gmra.mrb[0].mxu1 %vm307_vm0, %v6178_v24  ;;  %v1416_v24 = vshrl.u32 %v6204_v11, 16 }
  0x6b   : > { %5615 = vmatprep.mubr.msk.bf16.mxu1 %vm307_vm0, %v6183_v29  ;;  %5620 = vmatpush3.bf16.msra.mxu1 %v6185_v27  ;;  %v1410_v27 = vor.u32 %v1409_v18, %v1405_v12  ;;  %v6206_v29 = vld [vmem:[%s6428_s26 + $0x88] sm:$0xfe]   ;;  %v1593_v18 = vshll.u32 %v6217_v9, 16 }
  0x6c   : > { %5621 = vmatprep.subr.bf16.mxu1 %v6189_v31  ;;  %v3315_v33 = vshrl.u32 %v6206_v29, 16 }
  0x6e   : > { %5744 = vmatmul.mubr.msk.bf16.vlgmr.msra.gmra.mrb[0].mxu0 %vm307_vm0, %v2965_v35  ;;  %v6674_v35 = vld [vmem:[%s6947_s1 + $0x130] sm:$0xff]   ;;  %v3317_v42 = vrot.slane %v3315_v33, 1 }
  0x6f   : > { %5622 = vmatpush3.bf16.msra.mxu1 %v6189_v31  ;;  %5752 = vmatpush3.bf16.msra.mxu0 %v6181_v20  ;;  %v6207_v20 = vld [vmem:[%s6428_s26 + $0x90] sm:$0xff]   ;;  %v1422_v31 = vrot.slane %v1420_v25, 1  ;;  %v1602_v25 = vshrl.u32 %v6218_v10, 16 }
  0x70   : > { %5747 = vmatprep.mubr.msk.bf16.mxu0 %vm307_vm0, %v2967_v39  ;;  %5753 = vmatprep.subr.bf16.mxu0 %v6187_v34  ;;  %v3323_v30 = vshrl.u32 %v6207_v20, 16  ;;  %v3326_v32 = vshll.u32 %v6207_v20, 16  ;;  %v6209_v39 = vld [vmem:[%s6428_s26 + $0x98] sm:$0xff]  }
  0x71   : > { %5631 = vmatprep.subr.bf16.mxu1 %v6198_v58  ;;  %v3332_v47 = vshrl.u32 %v6209_v39, 16  ;;  %v3335_v48 = vshll.u32 %v6209_v39, 16  ;;  %v1426_v53 = vor.u32 %v1424_v44, %v1422_v31  ;;  %v6214_v20 = vld [vmem:[%s6947_s1 + $0x138] sm:$0xff]   ;;  %v1610_v39 = vshrl.u32 %v6219_v14, 16 }
  0x72   : > { %5616 = vmatmul.mubr.msk.bf16.gmra.mrb[4].mxu1 %vm307_vm0, %v6184_v36  ;;  %v1415_v36 = vsel %vm577_vm3, %v1410_v27, %v1414_v28  ;;  %v3325_v37 = vrot.slane %v3323_v30, 1  ;;  %v3328_v38 = vrot.slane %v3326_v32, 2  ;;  %v3356_v32 = vor.u32 %v3355_v16, %v3352_v15 }
  0x73   : > { %5623 = vmatprep.mubr.msk.bf16.mxu1 %vm307_vm0, %v6190_v40  ;;  %5754 = vmatpush3.bf16.msra.mxu0 %v6187_v34  ;;  %v3318_v34 = vshll.u32 %v6206_v29, 16  ;;  %v6210_v40 = vld [vmem:[%s6428_s26 + $0x70] sm:$0xff]   ;;  %v3334_v55 = vrot.slane %v3332_v47, 1  ;;  %v3337_v56 = vrot.slane %v3335_v48, 2  ;;  %v6220_v29 = vld [vmem:[%s6428_s26 + $0x5c] sm:$0xfc]  }
  0x74   : > { %5763 = vmatprep.subr.bf16.mxu0 %v6194_v51  ;;  %v3329_v46 = vor.u32 %v3328_v38, %v3325_v37  ;;  %v1428_v49 = vshll.u32 %v6210_v40, 16  ;;  %v6224_v38 = vld [vmem:[%s6428_s26 + $0x9c] sm:$0xff]  }
  0x75   : > { %v3320_v43 = vrot.slane %v3318_v34, 2  ;;  %v3338_v0 = vor.u32 %v3337_v56, %v3334_v55  ;;  %v3508_v34 = vrot.slane %v6220_v29, 2  ;;  %v1614_v44 = vshll.u32 %v6224_v38, 16  ;;  %v6232_v55 = vld [vmem:[%s6428_s26 + $0x60] sm:$0xff]  }
  0x76   : > { %5748 = vmatmul.mubr.msk.bf16.gmra.mrb[4].mxu0 %vm307_vm0, %v2969_v60  ;;  %v1430_v57 = vrot.slane %v1428_v49, 1  ;;  %v3344_v60 = vshll.u32 %v6213_v50, 16  ;;  %v6229_v56 = vld [vmem:[%s6428_s26 + $0x7c] ss:$0 sps:$4 sm:$0x33]  }
  0x77   : > { %5755 = vmatprep.mubr.msk.bf16.mxu0 %vm307_vm0, %v3136_v62  ;;  %v3321_v52 = vor.u32 %v3320_v43, %v3317_v42  ;;  %v3339_v11 = vsel %vm2253_vm2, %v3329_v46, %v3338_v0  ;;  %v1616_v47 = vrot.slane %v1614_v44, 1  ;;  %v6251_v44 = vld [vmem:[%s6428_s26 + $0x44] sm:$0xff]  }
  0x78   : > { %v3346_v2 = vrot.slane %v3344_v60, 2  ;;  %v6228_v60 = vld [vmem:[%s6947_s1 + $0x148] sm:$0xff]  }
  0x79   : > { %v3330_v59 = vsel %vm2253_vm2, %v3321_v52, %v3329_v46  ;;  %v6227_v46 = vld [vmem:[%s6428_s26 + $0x74] sm:$0xff]  }
  0x7a   : > { %5624 = vmatmul.mubr.msk.bf16.vlgmr.msra.gmra.mrb[0].mxu1 %vm307_vm0, %v6191_v61  ;;  %v1432_v61 = vshrl.u32 %v6210_v40, 16  ;;  %v6230_v52 = vld [vmem:[%s6947_s1 + $0x98] sm:$0xff]   ;;  %v3513_v54 = vrot.slane %v6227_v46, 2 }
  0x7b   : > { %5627 = vmatprep.mubr.msk.bf16.mxu1 %vm307_vm0, %v6196_v63  ;;  %5632 = vmatpush3.bf16.msra.mxu1 %v6198_v58  ;;  %v3341_v58 = vshrl.u32 %v6213_v50, 16  ;;  %v1618_v50 = vshrl.u32 %v6224_v38, 16  ;;  %v6250_v38 = vld [vmem:[%s6947_s1 + $0x160] sm:$0xff]  }
  0x7c   : > { %5633 = vmatprep.subr.bf16.mxu1 %v6202_v3  ;;  %v1434_v12 = vor.u32 %v1432_v61, %v1430_v57 }
  0x7d   : > { %v3343_v62 = vrot.slane %v3341_v58, 1  ;;  %v1620_v58 = vor.u32 %v1618_v50, %v1616_v47  ;;  %v6257_v50 = vld [vmem:[%s6428_s26 + $0x8] sm:$0xfc]  }
  0x7e   : > { %5756 = vmatmul.mubr.msk.bf16.vlgmr.msra.gmra.mrb[0].mxu0 %vm307_vm0, %v3145_v21  ;;  %v1598_v21 = vshll.u32 %v6218_v10, 16  ;;  %v1439_v26 = vsel %vm577_vm3, %v1434_v12, %v1438_v13  ;;  %v6237_v13 = vld [vmem:[%s6428_s26 + $0x18] sm:$0xff]  }
  0x7f   : > { %5634 = vmatpush3.bf16.msra.mxu1 %v6202_v3  ;;  %5764 = vmatpush3.bf16.msra.mxu0 %v6194_v51  ;;  %v1418_v51 = vor.u32 %v1416_v24, %v1414_v28  ;;  %v1431_v3 = vsel %vm577_vm3, %v1426_v53, %v1430_v57  ;;  %v3347_v6 = vor.u32 %v3346_v2, %v3343_v62  ;;  %v1595_v24 = vrot.slane %v1593_v18, 1  ;;  %v6231_v57 = vld [vmem:[%s6428_s26 + $0x58] sm:$0xfe]   ;;  %v6235_v2 = vld [vmem:[%s6428_s26 + $0x10] sm:$0xff]   ;;  %v6241_v18 = vld [vmem:[%s6428_s26 + $0x20] sm:$0xff]  }
  0x80   : > { %5759 = vmatprep.mubr.msk.bf16.mxu0 %vm307_vm0, %v3154_v23  ;;  %5765 = vmatprep.subr.bf16.mxu0 %v6200_v17  ;;  %v6221_v23 = vld [vmem:[%s6428_s26 + $0x64] sm:$0xff]   ;;  %v1600_v27 = vrot.slane %v1598_v21, 1  ;;  %v1776_v62 = vrot.slane %v6231_v57, 1  ;;  %v3668_v10 = vrot.slane %v6235_v2, 2  ;;  %v3670_v21 = vrot.slane %v6237_v13, 2 }
  0x81   : > { %5643 = vmatprep.subr.bf16.mxu1 %v6212_v45  ;;  %v1423_v63 = vsel %vm577_vm3, %v1418_v51, %v1422_v31  ;;  %v3348_v19 = vsel %vm2253_vm2, %v3338_v0, %v3347_v6  ;;  %v3509_v30 = vrot.slane %v6221_v23, 2  ;;  %v6222_v31 = vld [vmem:[%s6947_s1 + $0x140] sm:$0xff]   ;;  %v3357_v42 = vsel %vm2253_vm2, %v3347_v6, %v3356_v32 }
  0x82   : > { %5628 = vmatmul.mubr.msk.bf16.gmra.mrb[4].mxu1 %vm307_vm0, %v6197_v22  ;;  %v1606_v22 = vshll.u32 %v6219_v14, 16  ;;  %v1604_v40 = vor.u32 %v1602_v25, %v1600_v27  ;;  %v3515_v6 = vrot.slane %v6229_v56, 2  ;;  %v3672_v25 = vrot.slane %v6241_v18, 2  ;;  %v6249_v32 = vld [vmem:[%s6428_s26 + $0x3c] sm:$0xff]   ;;  %v6264_v18 = vld [vmem:[%s6428_s26 + $0x34] sm:$0xfc]  }
  0x83   : > { %5635 = vmatprep.mubr.msk.bf16.mxu1 %vm307_vm0, %v1415_v36  ;;  %5766 = vmatpush3.bf16.msra.mxu0 %v6200_v17  ;;  %v1591_v17 = vshrl.u32 %v6217_v9, 16  ;;  %v6223_v36 = vld [vmem:[%s6428_s26 + $0x6c] sm:$0xff]   ;;  %v3667_v9 = vrot.slane %v6234_v1, 2 }
  0x84   : > { %5775 = vmatprep.subr.bf16.mxu0 %v6674_v35  ;;  %v1608_v28 = vrot.slane %v1606_v22, 1  ;;  %v3511_v49 = vrot.slane %v6223_v36, 2  ;;  %v3516_v14 = vsel %vm2642_vm4, %v3513_v54, %v3515_v6  ;;  %v6246_v22 = vld [vmem:[%s6428_s26 + $0xc] sm:$0xff]   ;;  %v6247_v36 = vld [vmem:[%s6428_s26 + $0x14] sm:$0xff]  }
  0x85   : > { %v1596_v33 = vor.u32 %v1595_v24, %v1591_v17  ;;  %v3669_v16 = vsel %vm2642_vm4, %v3667_v9, %v3668_v10  ;;  %v6239_v17 = vld [vmem:[%s6428_s26 + $0x78] ss:$0 sps:$4 sm:$0x11]   ;;  %v6245_v24 = vld [vmem:[%s6428_s26 + $0x4] sm:$0xfe]   ;;  %v1936_v29 = vrot.slane %v6246_v22, 1 }
  0x86   : > { %5760 = vmatmul.mubr.msk.bf16.gmra.mrb[4].mxu0 %vm307_vm0, %v3163_v41  ;;  %v6225_v41 = vld [vmem:[%s6428_s26 + $0xa4] ss:$0 sps:$4 sm:$0x11]   ;;  %v1612_v43 = vor.u32 %v1610_v39, %v1608_v28  ;;  %v1609_v48 = vsel %vm577_vm3, %v1604_v40, %v1608_v28  ;;  %v3512_v61 = vsel %vm2642_vm4, %v3509_v30, %v3511_v49  ;;  %v3514_v0 = vsel %vm2642_vm4, %v3511_v49, %v3513_v54  ;;  %v6243_v28 = vld [vmem:[%s6428_s26 + $0x28] ss:$0 sps:$4 sm:$0x33]  }
  0x87   : > { %5767 = vmatprep.mubr.msk.bf16.mxu0 %vm307_vm0, %v3330_v59  ;;  %v1601_v37 = vsel %vm577_vm3, %v1596_v33, %v1600_v27  ;;  %v1622_v51 = vshll.u32 %v6225_v41, 16  ;;  %v6242_v27 = vld [vmem:[%s6947_s1 + $0x158] sm:$0xff]   ;;  %v3673_v33 = vsel %vm2642_vm4, %v3670_v21, %v3672_v25  ;;  %v3674_v39 = vrot.slane %v6243_v28, 2  ;;  %v6259_v9 = vld [vmem:[%s6947_s1 + $0x170] sm:$0xff]  }
  0x88   : > { %v1617_v53 = vsel %vm577_vm3, %v1612_v43, %v1616_v47  ;;  %v6252_v41 = vld [vmem:[%s6428_s26 + $0x1c] sm:$0xff]   ;;  %v1938_v43 = vrot.slane %v6247_v36, 1  ;;  %v6254_v47 = vld [vmem:[%s6428_s26 + $0x4c] sm:$0xff]   ;;  %v4181_v28 = vshrl.u32 %v6264_v18, 16 }
  0x89   : > { %v1624_v59 = vrot.slane %v1622_v51, 1  ;;  %v1940_v46 = vrot.slane %v6252_v41, 1  ;;  %v6253_v51 = vld [vmem:[%s6428_s26 + $0x24] ss:$0 sps:$4 sm:$0x11]  }
  0x8a   : > { %5636 = vmatmul.mubr.msk.bf16.vlgmr.msra.gmra.mrb[0].mxu1 %vm307_vm0, %v1423_v63  ;;  %v1777_v63 = vrot.slane %v6232_v55, 1  ;;  %v3831_v55 = vrot.slane %v6254_v47, 2 }
  0x8b   : > { %5639 = vmatprep.mubr.msk.bf16.mxu1 %vm307_vm0, %v1431_v3  ;;  %5644 = vmatpush3.bf16.msra.mxu1 %v6212_v45  ;;  %v3510_v45 = vsel %vm2642_vm4, %v3508_v34, %v3509_v30  ;;  %v6233_v3 = vld [vmem:[%s6428_s26 + $0x68] sm:$0xff]   ;;  %v1625_v4 = vsel %vm577_vm3, %v1620_v58, %v1624_v59  ;;  %v3671_v30 = vsel %vm2642_vm4, %v3668_v10, %v3670_v21  ;;  %v6248_v34 = vld [vmem:[%s6428_s26 + $0x34] sm:$0xfc]   ;;  %v3987_v58 = vshrl.u32 %v6257_v50, 16 }
  0x8c   : > { %5645 = vmatprep.subr.bf16.mxu1 %v6216_v5  ;;  %v1778_v7 = vsel %vm950_vm1, %v1776_v62, %v1777_v63  ;;  %v1779_v12 = vrot.slane %v6233_v3, 1  ;;  %v1941_v54 = vsel %vm950_vm1, %v1938_v43, %v1940_v46  ;;  %v3990_v59 = vshll.u32 %v6257_v50, 16  ;;  %v6255_v62 = vld [vmem:[%s6947_s1 + $0x168] sm:$0xff]  }
  0x8d   : > { %v3989_v3 = vrot.slane %v3987_v58, 2 }
  0x8e   : > { %5768 = vmatmul.mubr.msk.bf16.vlgmr.msra.gmra.mrb[0].mxu0 %vm307_vm0, %v3339_v11  ;;  %v6236_v11 = vld [vmem:[%s6947_s1 + $0x150] sm:$0xff]  }
  0x8f   : > { %5646 = vmatpush3.bf16.msra.mxu1 %v6216_v5  ;;  %5776 = vmatpush3.bf16.msra.mxu0 %v6674_v35  ;;  %v6226_v35 = vld [vmem:[%s6947_s1 + $0x90] sm:$0xff]  }
  0x90   : > { %5771 = vmatprep.mubr.msk.bf16.mxu0 %vm307_vm0, %v3348_v19  ;;  %5777 = vmatprep.subr.bf16.mxu0 %v6214_v20  ;;  %v6238_v5 = vld [vmem:[%s6428_s26 + $0x70] sm:$0xff]   ;;  %v6244_v19 = vld [vmem:[%s6947_s1 + $0xa8] sm:$0xff]  }
  0x91   : > { %5655 = vmatprep.subr.bf16.mxu1 %v6226_v35  ;;  %v1781_v15 = vrot.slane %v6238_v5, 1 }
  0x92   : > { %5640 = vmatmul.mubr.msk.bf16.gmra.mrb[4].mxu1 %vm307_vm0, %v1439_v26  ;;  %v1783_v26 = vrot.slane %v6239_v17, 1  ;;  %v6265_v17 = vld [vmem:[%s6428_s26 + $0x3c] sm:$0xff]  }
  0x93   : > { %5647 = vmatprep.mubr.msk.bf16.mxu1 %vm307_vm0, %v1601_v37  ;;  %5778 = vmatpush3.bf16.msra.mxu0 %v6214_v20  ;;  %v1780_v20 = vsel %vm950_vm1, %v1777_v63, %v1779_v12  ;;  %v1782_v23 = vsel %vm950_vm1, %v1779_v12, %v1781_v15  ;;  %v6260_v63 = vld [vmem:[%s6428_s26 + $0x18] sm:$0xff]  }
  0x94   : > { %5787 = vmatprep.subr.bf16.mxu0 %v6222_v31  ;;  %v1784_v37 = vsel %vm950_vm1, %v1781_v15, %v1783_v26  ;;  %v4004_v10 = vshrl.u32 %v6260_v63, 16 }
  0x96   : > { %5772 = vmatmul.mubr.msk.bf16.gmra.mrb[4].mxu0 %vm307_vm0, %v3357_v42  ;;  %v3827_v42 = vrot.slane %v6249_v32, 2  ;;  %v6267_v32 = vld [vmem:[%s6428_s26 + $0x44] sm:$0xff]  }
  0x97   : > { %5779 = vmatprep.mubr.msk.bf16.mxu0 %vm307_vm0, %v3510_v45  ;;  %v3675_v45 = vsel %vm2642_vm4, %v3672_v25, %v3674_v39 }
  0x9a   : > { %5648 = vmatmul.mubr.msk.bf16.vlgmr.msra.gmra.mrb[0].mxu1 %vm307_vm0, %v1609_v48  ;;  %v6258_v48 = vld [vmem:[%s6428_s26 + $0x10] sm:$0xff]  }
  0x9b   : > { %5651 = vmatprep.mubr.msk.bf16.mxu1 %vm307_vm0, %v1617_v53  ;;  %5656 = vmatpush3.bf16.msra.mxu1 %v6226_v35  ;;  %v3826_v35 = vrot.slane %v6248_v34, 2  ;;  %v3829_v53 = vrot.slane %v6251_v44, 2  ;;  %v3995_v56 = vshrl.u32 %v6258_v48, 16  ;;  %v3998_v57 = vshll.u32 %v6258_v48, 16 }
  0x9c   : > { %5657 = vmatprep.subr.bf16.mxu1 %v6230_v52  ;;  %v4201_v44 = vshll.u32 %v6267_v32, 16 }
  0x9d   : > { %v3828_v49 = vsel %vm2642_vm4, %v3826_v35, %v3827_v42  ;;  %v3830_v1 = vsel %vm2642_vm4, %v3827_v42, %v3829_v53  ;;  %v3832_v2 = vsel %vm2642_vm4, %v3829_v53, %v3831_v55  ;;  %v3997_v5 = vrot.slane %v3995_v56, 2  ;;  %v6268_v35 = vld [vmem:[%s6428_s26 + $0x4c] sm:$0xff]  }
  0x9e   : > { %5780 = vmatmul.mubr.msk.bf16.vlgmr.msra.gmra.mrb[0].mxu0 %vm307_vm0, %v3512_v61  ;;  %v6256_v61 = vld [vmem:[%s6428_s26 + $0x54] ss:$0 sps:$4 sm:$0x33]   ;;  %v4000_v6 = vrot.slane %v3998_v57, 3  ;;  %v4207_v50 = vshrl.u32 %v6268_v35, 16 }
  0x9f   : > { %5658 = vmatpush3.bf16.msra.mxu1 %v6230_v52  ;;  %5788 = vmatpush3.bf16.msra.mxu0 %v6222_v31  ;;  %v1935_v31 = vrot.slane %v6245_v24, 1  ;;  %v1939_v52 = vsel %vm950_vm1, %v1936_v29, %v1938_v43  ;;  %v4198_v43 = vshrl.u32 %v6267_v32, 16 }
  0xa0   : > { %5783 = vmatprep.mubr.msk.bf16.mxu0 %vm307_vm0, %v3514_v0  ;;  %5789 = vmatprep.subr.bf16.mxu0 %v6228_v60  ;;  %v6261_v0 = vld [vmem:[%s6428_s26 + $0x20] sm:$0xff]   ;;  %v4209_v57 = vrot.slane %v4207_v50, 2 }
  0xa1   : > { %5667 = vmatprep.subr.bf16.mxu1 %v6240_v8  ;;  %v1937_v40 = vsel %vm950_vm1, %v1935_v31, %v1936_v29  ;;  %v4013_v12 = vshrl.u32 %v6261_v0, 16  ;;  %v4016_v13 = vshll.u32 %v6261_v0, 16  ;;  %v4192_v29 = vshll.u32 %v6265_v17, 16 }
  0xa2   : > { %5652 = vmatmul.mubr.msk.bf16.gmra.mrb[4].mxu1 %vm307_vm0, %v1625_v4  ;;  %v3992_v4 = vrot.slane %v3990_v59, 3  ;;  %v4200_v53 = vrot.slane %v4198_v43, 2 }
  0xa3   : > { %5659 = vmatprep.mubr.msk.bf16.mxu1 %vm307_vm0, %v1778_v7  ;;  %5790 = vmatpush3.bf16.msra.mxu0 %v6228_v60  ;;  %v1942_v60 = vrot.slane %v6253_v51, 1  ;;  %v4015_v22 = vrot.slane %v4013_v12, 2  ;;  %v4194_v39 = vrot.slane %v4192_v29, 3  ;;  %v4210_v51 = vshll.u32 %v6268_v35, 16  ;;  %v6274_v12 = vld [vmem:[%s6428_s26 + $0x20] sm:$0xff]  }
  0xa4   : > { %5799 = vmatprep.subr.bf16.mxu0 %v6236_v11  ;;  %v3993_v15 = vor.u32 %v3992_v4, %v3989_v3  ;;  %v6269_v3 = vld [vmem:[%s6947_s1 + $0x188] sm:$0xff]  }
  0xa5   : > { %v1943_v7 = vsel %vm950_vm1, %v1940_v46, %v1942_v60  ;;  %v4212_v58 = vrot.slane %v4210_v51, 3  ;;  %v6271_v4 = vld [vmem:[%s6428_s26 + $0x8] sm:$0xf8]  }
  0xa6   : > { %5784 = vmatmul.mubr.msk.bf16.gmra.mrb[4].mxu0 %vm307_vm0, %v3516_v14  ;;  %v6263_v14 = vld [vmem:[%s6428_s26 + $0x28] ss:$0 sps:$4 sm:$0x77]  }
  0xa7   : > { %5791 = vmatprep.mubr.msk.bf16.mxu0 %vm307_vm0, %v3669_v16  ;;  %v4001_v16 = vor.u32 %v4000_v6, %v3997_v5  ;;  %v4022_v24 = vshrl.u32 %v6263_v14, 16  ;;  %v4025_v26 = vshll.u32 %v6263_v14, 16  ;;  %v6272_v5 = vld [vmem:[%s6428_s26 + $0x10] sm:$0xff]   ;;  %v4380_v14 = vrot.slane %v6274_v12, 3 }
  0xa9   : > { %v4002_v25 = vsel %vm3985_vm5, %v3993_v15, %v4001_v16  ;;  %v4024_v34 = vrot.slane %v4022_v24, 2  ;;  %v4027_v36 = vrot.slane %v4025_v26, 3  ;;  %v6280_v24 = vld [vmem:[%s6949_s3 + $0x20] sm:$0xff]   ;;  %v6282_v26 = vld [vmem:[%s6949_s3 + $0x30] sm:$0xff]  }
  0xaa   : > { %5660 = vmatmul.mubr.msk.bf16.vlgmr.msra.gmra.mrb[0].mxu1 %vm307_vm0, %v1780_v20  ;;  %v4006_v20 = vrot.slane %v4004_v10, 2  ;;  %v6273_v10 = vld [vmem:[%s6428_s26 + $0x18] sm:$0xff]  }
  0xab   : > { %5663 = vmatprep.mubr.msk.bf16.mxu1 %vm307_vm0, %v1782_v23  ;;  %5668 = vmatpush3.bf16.msra.mxu1 %v6240_v8  ;;  %v3833_v8 = vrot.slane %v6256_v61, 2  ;;  %v4018_v23 = vrot.slane %v4016_v13, 3  ;;  %v4028_v46 = vor.u32 %v4027_v36, %v4024_v34  ;;  %v4378_v13 = vrot.slane %v6273_v10, 3 }
  0xac   : > { %5669 = vmatprep.subr.bf16.mxu1 %v6244_v19 }
  0xae   : > { %5792 = vmatmul.mubr.msk.bf16.vlgmr.msra.gmra.mrb[0].mxu0 %vm307_vm0, %v3671_v30  ;;  %v4184_v30 = vshll.u32 %v6264_v18, 16 }
  0xaf   : > { %5670 = vmatpush3.bf16.msra.mxu1 %v6244_v19  ;;  %5800 = vmatpush3.bf16.msra.mxu0 %v6236_v11  ;;  %v4007_v11 = vshll.u32 %v6260_v63, 16  ;;  %v3834_v19 = vsel %vm2642_vm4, %v3831_v55, %v3833_v8  ;;  %v6270_v55 = vld [vmem:[%s6428_s26 + $0x54] ss:$0 sps:$4 sm:$0x77]   ;;  %v4376_v8 = vrot.slane %v6272_v5, 3 }
  0xb0   : > { %5795 = vmatprep.mubr.msk.bf16.mxu0 %vm307_vm0, %v3673_v33  ;;  %5801 = vmatprep.subr.bf16.mxu0 %v6242_v27  ;;  %v4019_v33 = vor.u32 %v4018_v23, %v4015_v22  ;;  %v4186_v41 = vrot.slane %v4184_v30, 3  ;;  %v4216_v60 = vshrl.u32 %v6270_v55, 16  ;;  %v4219_v61 = vshll.u32 %v6270_v55, 16  ;;  %v6278_v22 = vld [vmem:[%s6949_s3 + $0x10] sm:$0xff]   ;;  %v6279_v23 = vld [vmem:[%s6949_s3 + $0x18] sm:$0xff]  }
  0xb1   : > { %v4009_v21 = vrot.slane %v4007_v11, 3  ;;  %v4379_v15 = vsel %vm4374_vm6, %v4376_v8, %v4378_v13 }
  0xb2   : > { %5664 = vmatmul.mubr.msk.bf16.gmra.mrb[4].mxu1 %vm307_vm0, %v1784_v37  ;;  %v4183_v37 = vrot.slane %v4181_v28, 2  ;;  %v4218_v0 = vrot.slane %v4216_v60, 2 }
  0xb3   : > { %5671 = vmatprep.mubr.msk.bf16.mxu1 %vm307_vm0, %v1937_v40  ;;  %5802 = vmatpush3.bf16.msra.mxu0 %v6242_v27  ;;  %v4189_v27 = vshrl.u32 %v6265_v17, 16  ;;  %v4010_v31 = vor.u32 %v4009_v21, %v4006_v20  ;;  %v6262_v40 = vld [vmem:[%s6947_s1 + $0x178] sm:$0xff]   ;;  %v4381_v17 = vsel %vm4374_vm6, %v4378_v13, %v4380_v14  ;;  %v6276_v20 = vld [vmem:[%s6949_s3] sm:$0xff]   ;;  %v6277_v21 = vld [vmem:[%s6949_s3 + $0x8] sm:$0xff]  }
  0xb4   : > { %5811 = vmatprep.subr.bf16.mxu0 %v6250_v38  ;;  %v4187_v47 = vor.u32 %v4186_v41, %v4183_v37  ;;  %5847 = vmatprep.subr.bf16.mxu1 %v6276_v20 }
  0xb5   : > { %v4011_v42 = vsel %vm3985_vm5, %v4001_v16, %v4010_v31  ;;  %v6275_v16 = vld [vmem:[%s6428_s26 + $0x28] ss:$0 sps:$4 sm:$0x77]   ;;  %s4825_s26 = sshll.u32 %s258_s18, 2 }
  0xb6   : > { %5796 = vmatmul.mubr.msk.bf16.gmra.mrb[4].mxu0 %vm307_vm0, %v3675_v45  ;;  %v4020_v45 = vsel %vm3985_vm5, %v4010_v31, %v4019_v33  ;;  %v4382_v18 = vrot.slane %v6275_v16, 3  ;;  %s260_s10 = scalar_lea.vmem %s6951_s5, %s4825_s26 }
  0xb7   : > { %5803 = vmatprep.mubr.msk.bf16.mxu0 %vm307_vm0, %v3828_v49  ;;  %v6266_v49 = vld [vmem:[%s6947_s1 + $0x180] sm:$0xff]  }
  0xba   : > { %5672 = vmatmul.mubr.msk.bf16.vlgmr.msra.gmra.mrb[0].mxu1 %vm307_vm0, %v1939_v52  ;;  %v4029_v52 = vsel %vm3985_vm5, %v4019_v33, %v4028_v46 }
  0xbb   : > { %5675 = vmatprep.mubr.msk.bf16.mxu1 %vm307_vm0, %v1941_v54  ;;  %v4203_v54 = vrot.slane %v4201_v44, 3  ;;  %5848 = vmatpush3.bf16.msra.mxu1 %v6276_v20 }
  0xbc   : > { %5849 = vmatprep.subr.bf16.mxu1 %v6277_v21 }
  0xbd   : > { %v4204_v59 = vor.u32 %v4203_v54, %v4200_v53 }
  0xbe   : > { %5804 = vmatmul.mubr.msk.bf16.vlgmr.msra.gmra.mrb[0].mxu0 %vm307_vm0, %v3830_v1  ;;  %v4221_v1 = vrot.slane %v4219_v61, 3 }
  0xbf   : > { %5812 = vmatpush3.bf16.msra.mxu0 %v6250_v38  ;;  %5807 = vmatprep.mubr.msk.bf16.mxu0 %vm307_vm0, %v3832_v2  ;;  %v4191_v38 = vrot.slane %v4189_v27, 2  ;;  %v6283_v27 = vld [vmem:[%s6949_s3 + $0x38] sm:$0xff]  }
  0xc0   : > { %5813 = vmatprep.subr.bf16.mxu0 %v6255_v62  ;;  %v4222_v6 = vor.u32 %v4221_v1, %v4218_v0  ;;  %5850 = vmatpush3.bf16.msra.mxu1 %v6277_v21 }
  0xc1   : > { %v4195_v48 = vor.u32 %v4194_v39, %v4191_v38  ;;  %5851 = vmatprep.subr.bf16.mxu1 %v6278_v22  ;;  %v5334_v39 = vld [vmem:[%s6948_s2] ss:$0 sm:$0xff] }
  0xc2   : > { %5676 = vmatmul.mubr.msk.bf16.gmra.mrb[4].mxu1 %vm307_vm0, %v1943_v7  ;;  %v4375_v7 = vrot.slane %v6271_v4, 3 }
  0xc3   : > { %5814 = vmatpush3.bf16.msra.mxu0 %v6255_v62  ;;  %v4196_v56 = vsel %vm3985_vm5, %v4187_v47, %v4195_v48  ;;  %v4213_v62 = vor.u32 %v4212_v58, %v4209_v57  ;;  %v4205_v63 = vsel %vm3985_vm5, %v4195_v48, %v4204_v59 }
  0xc4   : > { %5823 = vmatprep.subr.bf16.mxu0 %v6259_v9  ;;  %v4377_v11 = vsel %vm4374_vm6, %v4375_v7, %v4376_v8  ;;  %5852 = vmatpush3.bf16.msra.mxu1 %v6278_v22 }
  0xc5   : > { %v4214_v2 = vsel %vm3985_vm5, %v4204_v59, %v4213_v62  ;;  %5853 = vmatprep.subr.bf16.mxu1 %v6279_v23 }
  0xc6   : > { %5808 = vmatmul.mubr.msk.bf16.gmra.mrb[4].mxu0 %vm307_vm0, %v3834_v19  ;;  %v4383_v19 = vsel %vm4374_vm6, %v4380_v14, %v4382_v18 }
  0xc7   : > { %5815 = vmatprep.mubr.msk.bf16.mxu0 %vm307_vm0, %v4002_v25  ;;  %v6281_v25 = vld [vmem:[%s6949_s3 + $0x28] sm:$0xff]  }
  0xc8   : > { %5854 = vmatpush3.bf16.msra.mxu1 %v6279_v23 }
  0xc9   : > { %5855 = vmatprep.subr.bf16.mxu1 %v6280_v24 }
  0xcc   : > { %5856 = vmatpush3.bf16.msra.mxu1 %v6280_v24 }
  0xcd   : > { %5857 = vmatprep.subr.bf16.mxu1 %v6281_v25 }
  0xce   : > { %5816 = vmatmul.mubr.msk.bf16.vlgmr.msra.gmra.mrb[0].mxu0 %vm307_vm0, %v4011_v42 }
  0xcf   : > { %5824 = vmatpush3.bf16.msra.mxu0 %v6259_v9  ;;  %5819 = vmatprep.mubr.msk.bf16.mxu0 %vm307_vm0, %v4020_v45  ;;  %v4223_v9 = vsel %vm3985_vm5, %v4213_v62, %v4222_v6 }
  0xd0   : > { %5825 = vmatprep.subr.bf16.mxu0 %v6262_v40  ;;  %5858 = vmatpush3.bf16.msra.mxu1 %v6281_v25 }
  0xd1   : > { %5859 = vmatprep.subr.bf16.mxu1 %v6282_v26 }
  0xd3   : > { %5826 = vmatpush3.bf16.msra.mxu0 %v6262_v40 }
  0xd4   : > { %5835 = vmatprep.subr.bf16.mxu0 %v6266_v49  ;;  %5860 = vmatpush3.bf16.msra.mxu1 %v6282_v26 }
  0xd5   : > { %5861 = vmatprep.subr.bf16.mxu1 %v6283_v27 }
  0xd6   : > { %5820 = vmatmul.mubr.msk.bf16.gmra.mrb[4].mxu0 %vm307_vm0, %v4029_v52 }
  0xd7   : > { %5827 = vmatprep.mubr.msk.bf16.mxu0 %vm307_vm0, %v4196_v56 }
  0xd8   : > { %5862 = vmatpush3.bf16.msra.mxu1 %v6283_v27 }
  0xde   : > { %5828 = vmatmul.mubr.msk.bf16.vlgmr.msra.gmra.mrb[0].mxu0 %vm307_vm0, %v4205_v63 }
  0xdf   : > { %5836 = vmatpush3.bf16.msra.mxu0 %v6266_v49  ;;  %5831 = vmatprep.mubr.msk.bf16.mxu0 %vm307_vm0, %v4214_v2 }
  0xe0   : > { %5837 = vmatprep.subr.bf16.mxu0 %v6269_v3 }
  0xe3   : > { %5838 = vmatpush3.bf16.msra.mxu0 %v6269_v3 }
  0xe6   : > { %5832 = vmatmul.mubr.msk.bf16.gmra.mrb[4].mxu0 %vm307_vm0, %v4223_v9  ;;  %v5335_v9 = vld [vmem:[%s6950_s4] ss:$0 sm:$0xff] }
  0xe7   : > { %5839 = vmatprep.mubr.msk.bf16.mxu0 %vm307_vm0, %v4377_v11 }
  0xee   : > { %5840 = vmatmul.mubr.msk.bf16.vlgmr.msra.gmra.mrb[0].mxu0 %vm307_vm0, %v4379_v15 }
  0xef   : > { %5843 = vmatprep.mubr.msk.bf16.mxu0 %vm307_vm0, %v4381_v17 }
  0xf6   : > { %5844 = vmatmul.mubr.msk.bf16.gmra.mrb[4].mxu0 %vm307_vm0, %v4383_v19 }
 0x18d   : > { %v5673_v28 = vpop.f32.mrb[0].mxu1 }
 0x18e   : > { %v2002_v29 = vpop.f32.mrb[1].mxu1 }
 0x18f   : > { %v5674_v30 = vpop.f32.mrb[2].mxu1 }
 0x190   : > { %v2005_v31 = vpop.f32.mrb[3].mxu1 }
 0x195   : > { %v5677_v32 = vpop.f32.mrb[4].mxu1 }
 0x196   : > { %v2018_v33 = vpop.f32.mrb[5].mxu1 }
 0x197   : > { %v5678_v34 = vpop.f32.mrb[6].mxu1 }
 0x198   : > { %v2021_v36 = vpop.f32.mrb[7].mxu1 }
 0x1c1   : > { %v5841_v37 = vpop.f32.mrb[0].mxu0 }
 0x1c2   : > { %v5871_v38 = vadd.f32 %v5841_v37, %v5673_v28  ;;  %v4442_v40 = vpop.f32.mrb[1].mxu0 }
 0x1c3   : > { %v5872_v41 = vadd.f32 %v4442_v40, %v2002_v29  ;;  %v5842_v35 = vpop.f32.mrb[2].mxu0 }
 0x1c4   : > { %v5873_v42 = vadd.f32 %v5842_v35, %v5674_v30  ;;  %v4445_v43 = vpop.f32.mrb[3].mxu0  ;;  %v6900_v46 = vadd.f32 %v5871_v38, %v5334_v39 }
 0x1c5   : > { %v6898_v44 = vadd.f32 %v5872_v41, %v5334_v39  ;;  %v5874_v45 = vadd.f32 %v4445_v43, %v2005_v31 }
 0x1c6   : > { %v6902_v47 = vadd.f32 %v5873_v42, %v5334_v39  ;;  %v4522_v53 = vmul.f32 %v6900_v46, %v6900_v46 }
 0x1c7   : > { %v6904_v48 = vadd.f32 %v5874_v45, %v5334_v39  ;;  %v4520_v50 = vmul.f32 %v6898_v44, %v6898_v44 }
 0x1c8   : > { %v4523_v49 = vmul.f32 %v6902_v47, %v6902_v47 }
 0x1c9   : > { %v4521_v51 = vmul.f32 %v6904_v48, %v6904_v48  ;;  %v5845_v52 = vpop.f32.mrb[4].mxu0 }
 0x1ca   : > { %v5875_v54 = vadd.f32 %v5845_v52, %v5677_v32  ;;  %v4458_v55 = vpop.f32.mrb[5].mxu0  ;;  %v4529_v59 = vpack.c.bf16 %v4523_v49, %v4522_v53 }
 0x1cb   : > { %v5876_v56 = vadd.f32 %v4458_v55, %v2018_v33  ;;  %v5846_v57 = vpop.f32.mrb[6].mxu0  ;;  %v4528_v58 = vpack.c.bf16 %v4521_v51, %v4520_v50 }
 0x1cc   : > { %v5877_v60 = vadd.f32 %v5846_v57, %v5678_v34  ;;  %v4461_v61 = vpop.f32.mrb[7].mxu0  ;;  %v4518_v0 = vadd.f32 %v5875_v54, %v5334_v39 }
 0x1cd   : > { %v6914_v62 = vadd.f32 %v5876_v56, %v5334_v39  ;;  %v5878_v63 = vadd.f32 %v4461_v61, %v2021_v36  ;;  %5863 = vmatprep.mubr.bf16.mxu1 %v4528_v58 }
 0x1ce   : > { %v4519_v1 = vadd.f32 %v5877_v60, %v5334_v39  ;;  %5864 = vmatmul.mubr.bf16.vlgmr.msra.gmra.mrb[8].mxu1 %v4529_v59  ;;  %v4526_v6 = vmul.f32 %v4518_v0, %v4518_v0 }
 0x1cf   : > { %v4517_v2 = vadd.f32 %v5878_v63, %v5334_v39  ;;  %v4524_v4 = vmul.f32 %v6914_v62, %v6914_v62 }
 0x1d0   : > { %v4527_v3 = vmul.f32 %v4519_v1, %v4519_v1 }
 0x1d1   : > { %v4525_v5 = vmul.f32 %v4517_v2, %v4517_v2 }
 0x1d2   : > { %v4531_v8 = vpack.c.bf16 %v4527_v3, %v4526_v6 }
 0x1d3   : > { %v4530_v7 = vpack.c.bf16 %v4525_v5, %v4524_v4 }
 0x1d5   : > { %5867 = vmatprep.mubr.bf16.mxu1 %v4530_v7 }
 0x1d6   : > { %5868 = vmatmul.mubr.bf16.gmra.mrb[12].mxu1 %v4531_v8 }
 0x2a1   : > { %v5865_v10 = vpop.f32.mrb[8].mxu1 }
 0x2a2   : > { %v4646_v11 = vadd.f32 %v5865_v10, %v5335_v9  ;;  %v4637_v12 = vpop.f32.mrb[9].mxu1 }
 0x2a3   : > { %v4638_v13 = vadd.f32 %v5335_v9, %v4637_v12  ;;  %v5866_v14 = vpop.f32.mrb[10].mxu1 }
 0x2a4   : > { %6284 = vrsqrt.f32 %v4646_v11  ;;  %v4649_v15 = vadd.f32 %v5866_v14, %v5335_v9  ;;  %v4640_v16 = vpop.f32.mrb[11].mxu1 }
 0x2a5   : > { %6286 = vrsqrt.f32 %v4638_v13  ;;  %v4641_v17 = vadd.f32 %v5335_v9, %v4640_v16 }
 0x2a6   : > { %6288 = vrsqrt.f32 %v4649_v15 }
 0x2a7   : > { %6290 = vrsqrt.f32 %v4641_v17 }
 0x2a9   : > { %v5869_v18 = vpop.f32.mrb[12].mxu1 }
 0x2aa   : > { %v4662_v19 = vadd.f32 %v5869_v18, %v5335_v9  ;;  %v4653_v20 = vpop.f32.mrb[13].mxu1 }
 0x2ab   : > { %v4654_v21 = vadd.f32 %v5335_v9, %v4653_v20  ;;  %v5870_v22 = vpop.f32.mrb[14].mxu1 }
 0x2ac   : > { %6292 = vrsqrt.f32 %v4662_v19  ;;  %v4665_v23 = vadd.f32 %v5870_v22, %v5335_v9  ;;  %v4656_v24 = vpop.f32.mrb[15].mxu1 }
 0x2ad   : > { %6294 = vrsqrt.f32 %v4654_v21  ;;  %v4657_v25 = vadd.f32 %v5335_v9, %v4656_v24 }
 0x2ae   : > { %v6285_v26 = vpop.eup %6284  ;;  %6296 = vrsqrt.f32 %v4665_v23 }
 0x2af   : > { %v6287_v27 = vpop.eup %6286  ;;  %6298 = vrsqrt.f32 %v4657_v25  ;;  %v4678_v30 = vmul.f32 %v6285_v26, %v6900_v46 }
 0x2b0   : > { %v6289_v28 = vpop.eup %6288  ;;  %v4676_v32 = vmul.f32 %v6287_v27, %v6898_v44 }
 0x2b1   : > { %v6291_v29 = vpop.eup %6290  ;;  %v4679_v31 = vmul.f32 %v6289_v28, %v6902_v47 }
 0x2b2   : > { %v4677_v33 = vmul.f32 %v6291_v29, %v6904_v48 }
 0x2b3   : > { %v5370_v34 = vpack.c.bf16 %v4679_v31, %v4678_v30 }
 0x2b4   : > { %v5365_v36 = vpack.c.bf16 %v4677_v33, %v4676_v32 }
 0x2b5   : > { %5382 = vst [vmem:[%s260_s10 + $0x8] sm:$0xff] %v5370_v34  }
 0x2b6   : > { %v6293_v37 = vpop.eup %6292  ;;  %5366 = vst [vmem:[%s260_s10] sm:$0xff] %v5365_v36  }
 0x2b7   : > { %v6295_v38 = vpop.eup %6294  ;;  %v4682_v41 = vmul.f32 %v6293_v37, %v4518_v0 }
 0x2b8   : > { %v6297_v39 = vpop.eup %6296  ;;  %v4680_v42 = vmul.f32 %v6295_v38, %v6914_v62 }
 0x2b9   : > { %v6299_v40 = vpop.eup %6298  ;;  %v4683_v35 = vmul.f32 %v6297_v39, %v4519_v1 }
 0x2ba   : > { %v4681_v43 = vmul.f32 %v6299_v40, %v4517_v2 }
 0x2bb   : > { %v5380_v44 = vpack.c.bf16 %v4683_v35, %v4682_v41 }
 0x2bc   : > { %v5375_v45 = vpack.c.bf16 %v4681_v43, %v4680_v42 }
 0x2bd   : > { %5384 = vst [vmem:[%s260_s10 + $0x18] sm:$0xff] %v5380_v44  }
 0x2be   : > { %5383 = vst [vmem:[%s260_s10 + $0x10] sm:$0xff] %v5375_v45  }
 0x2bf PF: > { %s15_s22 = sadd.s32 1, %s6338_s22   ;;  %s6952_s18 = smov %s6330_s20 }
 0x2c0   : > { %p12_p8 = scmp.ge.s32.totalorder %s15_s22, 6   ;;  %s6953_s19 = smov %s6334_s21 }
 0x2c1   : > { %s6954_s20 = smov %s6957_s23  ;;  %s6955_s21 = smov %s6961_s24 }
 0x2c2   :  { %14 = sbr.rel (!%p12_p8) target bundleno = 3 (0x3), region = 97 }

// kernel: ir_encoder_forward.7
= control target key start
LH: loop header
LB: loop body
LE: loop exit
PB: predicated region body
PF: predicated region fallthrough
CT: control target
= control target key end

     0   :  { %s2738_s12 = smov 0   ;;  %s2740_s13 = smov 0   ;;  %s3080_s0 = inlined_call_operand.vmem [shape: bf16[2,1,4,18,32], index: 0, kind: input, shape index: {}]   ;;  %s3081_s1 = inlined_call_operand.vmem [shape: bf16[25,32,128], index: 1, kind: input, shape index: {}]   ;;  %s3082_s2 = inlined_call_operand.vmem [shape: f32[1,128], index: 2, kind: input, shape index: {}]   ;;  %s3083_s3 = inlined_call_operand.vmem [shape: bf16[2,8,128], index: 3, kind: output, shape index: {}]  }
   0x1   :  { %s2742_s14 = smov 0  }
   0x2 LB: > { %s25_s15 = sadd.s32 1, %s2710_s13  ;;  %p2097_p0 = scmp.ge.s32.totalorder %s2714_s14, 1  ;;  %s2714_s14 = sphi %s2742_s14, %s13_s14   ;;  %s2710_s13 = sphi %s2740_s13, %s3085_s13   ;;  %s2706_s12 = sphi %s2738_s12, %s3084_s12  }
   0x3   : > { %p27_p1 = scmp.ge.s32.totalorder %s25_s15, 2  ;;  %p157_p2 = scmp.lt.s32.totalorder %s2714_s14, 3 }
   0x5   : > { %s3087_s15 = smov (%p27_p1, %s25_s15), 0  ;;  %p158_p3 = pnand %p2097_p0, %p157_p2 }
   0x6   : > { %v2623_v0 = vld [vmem:[%s3081_s1] sm:$0xff] (!%p158_p3)   ;;  %v2716_v1 = vmov (!%p158_p3), 0.0   ;;  %v2624_v2 = vld [vmem:[%s3081_s1 + $0x10] sm:$0xff] (!%p158_p3)   ;;  %v2625_v3 = vld [vmem:[%s3081_s1 + $0x8] sm:$0xff] (!%p158_p3)   ;;  %vm2717_vm0 = vmmov (!%p158_p3), 0   ;;  %p187_p4 = scmp.lt.s32.totalorder (!%p158_p3), %s2706_s12, 1 }
   0x7   : > { %161 = sbr.rel (%p158_p3) target bundleno = 334 (0x14e), region = 32  ;;  %2396 = vmatprep.subr.bf16.mxu0 (!%p158_p3), %v2716_v1  ;;  %2404 = vmatprep.subr.bf16.mxu1 (!%p158_p3), %v2716_v1  ;;  %v2626_v4 = vld [vmem:[%s3081_s1 + $0x18] sm:$0xff] (!%p158_p3)   ;;  %v2627_v5 = vld [vmem:[%s3081_s1 + $0x20] sm:$0xff] (!%p158_p3)   ;;  %vm221_vm1 = vcmask (!%p158_p3), 261120   ;;  %v2628_v6 = vld [vmem:[%s3081_s1 + $0x30] sm:$0xff] (!%p158_p3)  }
   0x8   : > { %2397 = vmatpush3.bf16.msra.mxu0 (!%p158_p3), %v2623_v0  ;;  %2400 = vmatprep.mubr.msk.bf16.mxu0 (!%p158_p3), %vm2717_vm0, %v2716_v1  ;;  %v2629_v9 = vld [vmem:[%s3081_s1 + $0x28] sm:$0xff] (!%p158_p3)   ;;  %v2630_v10 = vld [vmem:[%s3081_s1 + $0x38] sm:$0xff] (!%p158_p3)   ;;  %v2632_v18 = vld [vmem:[%s3081_s1 + $0x40] sm:$0xff] (!%p158_p3)  }
   0x9   : > { %2405 = vmatpush3.bf16.msra.mxu1 (!%p158_p3), %v2624_v2  ;;  %2398 = vmatprep.subr.bf16.mxu0 (!%p158_p3), %v2716_v1  ;;  %v2634_v21 = vld [vmem:[%s3081_s1 + $0x50] sm:$0xff] (!%p158_p3)   ;;  %v2635_v24 = vld [vmem:[%s3081_s1 + $0x48] sm:$0xff] (!%p158_p3)   ;;  %v2636_v25 = vld [vmem:[%s3081_s1 + $0x58] sm:$0xff] (!%p158_p3)  }
   0xa   : > { %2406 = vmatprep.subr.bf16.mxu1 (!%p158_p3), %v2716_v1  ;;  %2408 = vmatprep.mubr.msk.bf16.mxu1 (!%p158_p3), %vm2717_vm0, %v2716_v1  ;;  %v2638_v28 = vld [vmem:[%s3081_s1 + $0x60] sm:$0xff] (!%p158_p3)   ;;  %v2639_v30 = vld [vmem:[%s3081_s1 + $0x70] sm:$0xff] (!%p158_p3)   ;;  %v2640_v32 = vld [vmem:[%s3081_s1 + $0x68] sm:$0xff] (!%p158_p3)  }
   0xb   : > { %v2641_v36 = vld [vmem:[%s3081_s1 + $0x78] sm:$0xff] (!%p158_p3)   ;;  %v2642_v39 = vld [vmem:[%s3081_s1 + $0x80] sm:$0xff] (!%p158_p3)   ;;  %v2644_v41 = vld [vmem:[%s3081_s1 + $0x90] sm:$0xff] (!%p158_p3)  }
   0xc   : > { %2399 = vmatpush3.bf16.msra.mxu0 (!%p158_p3), %v2625_v3  ;;  %v2645_v42 = vld [vmem:[%s3081_s1 + $0x88] sm:$0xff] (!%p158_p3)   ;;  %v2646_v45 = vld [vmem:[%s3081_s1 + $0x98] sm:$0xff] (!%p158_p3)   ;;  %v2648_v48 = vld [vmem:[%s3081_s1 + $0xa0] sm:$0xff] (!%p158_p3)  }
   0xd   : > { %2407 = vmatpush3.bf16.msra.mxu1 (!%p158_p3), %v2626_v4  ;;  %2412 = vmatprep.subr.bf16.mxu0 (!%p158_p3), %v2716_v1  ;;  %v2650_v50 = vld [vmem:[%s3081_s1 + $0xb0] sm:$0xff] (!%p158_p3)   ;;  %v2651_v55 = vld [vmem:[%s3081_s1 + $0xa8] sm:$0xff] (!%p158_p3)   ;;  %v2652_v56 = vld [vmem:[%s3081_s1 + $0xb8] sm:$0xff] (!%p158_p3)  }
   0xe   : > { %s3089_s12 = smov (!%p187_p4, %s2706_s12), 1  ;;  %2420 = vmatprep.subr.bf16.mxu1 %v2716_v1  ;;  %v2654_v58 = vld [vmem:[%s3081_s1 + $0xc0] sm:$0xff]   ;;  %v2656_v0 = vld [vmem:[%s3081_s1 + $0xd0] sm:$0xff]   ;;  %v2657_v2 = vld [vmem:[%s3081_s1 + $0xc8] sm:$0xff]  }
   0xf   : > { %s2596_s24 = smul.u32 48, %s3089_s12  ;;  %s2099_s6 = sshll.u32 %s3089_s12, 2 }
  0x10   : > { %s202_s9 = scalar_lea.vmem %s3083_s3, %s2099_s6 }
  0x11   : > { %s2789_s4 = scalar_lea.vmem %s3080_s0, %s2596_s24 }
  0x12   : > { %v204_v7 = vld [vmem:[%s2789_s4] sm:$0xf]  ;;  %v2103_v8 = vld [vmem:[%s2789_s4 + $0xc] sm:$0xf]  ;;  %v2643_v27 = vld [vmem:[%s2789_s4 + $0x18] sm:$0x1f]  }
  0x13   : > { %2401 = vmatmul.mubr.msk.bf16.vlgmr.msra.gmra.mrb[0].mxu0 %vm221_vm1, %v204_v7  ;;  %2409 = vmatmul.mubr.msk.bf16.vlgmr.msra.gmra.mrb[0].mxu1 %vm221_vm1, %v2103_v8  ;;  %v2631_v11 = vld [vmem:[%s2789_s4] sm:$0x1f]   ;;  %v2633_v12 = vld [vmem:[%s2789_s4 + $0xc] sm:$0x1f]   ;;  %v2137_v29 = vld [vmem:[%s2789_s4 + $0x18] sm:$0xf] }
  0x14   : > { %2413 = vmatpush3.bf16.msra.mxu0 %v2627_v5  ;;  %2421 = vmatpush3.bf16.msra.mxu1 %v2628_v6  ;;  %v344_v13 = vshrl.u32 %v2631_v11, 16  ;;  %v346_v14 = vshll.u32 %v2631_v11, 16  ;;  %v421_v15 = vshrl.u32 %v2633_v12, 16  ;;  %v423_v16 = vshll.u32 %v2633_v12, 16  ;;  %v2637_v23 = vld [vmem:[%s2789_s4] sm:$0x1e]  }
  0x15   : > { %2414 = vmatprep.subr.bf16.mxu0 %v2716_v1  ;;  %2422 = vmatprep.subr.bf16.mxu1 %v2716_v1  ;;  %v497_v26 = vrot.slane %v2637_v23, 1  ;;  %v701_v31 = vshll.u32 %v2643_v27, 16  ;;  %v699_v33 = vshrl.u32 %v2643_v27, 16  ;;  %v2647_v35 = vld [vmem:[%s2789_s4 + $0x24] sm:$0x1f]   ;;  %v2658_v7 = vld [vmem:[%s3081_s1 + $0xd8] sm:$0xff]  }
  0x16   : > { %2416 = vmatprep.mubr.msk.bf16.mxu0 %vm2717_vm0, %v2716_v1  ;;  %2424 = vmatprep.mubr.msk.bf16.mxu1 %vm2717_vm0, %v2716_v1  ;;  %v348_v17 = vrot.slane %v346_v14, 1  ;;  %v425_v19 = vrot.slane %v423_v16, 1  ;;  %v2145_v37 = vld [vmem:[%s2789_s4 + $0x24] sm:$0xf]  ;;  %v778_v38 = vshll.u32 %v2647_v35, 16  ;;  %v776_v43 = vshrl.u32 %v2647_v35, 16 }
  0x17   : > { %v703_v34 = vrot.slane %v701_v31, 1  ;;  %v2649_v46 = vld [vmem:[%s2789_s4 + $0x18] sm:$0x1e]   ;;  %v2653_v51 = vld [vmem:[%s2789_s4] sm:$0x3c]   ;;  %v2662_v11 = vld [vmem:[%s3081_s1 + $0xf0] sm:$0xff]  }
  0x18   : > { %2415 = vmatpush3.bf16.msra.mxu0 %v2629_v9  ;;  %2423 = vmatpush3.bf16.msra.mxu1 %v2630_v10  ;;  %v349_v20 = vor.u32 %v348_v17, %v344_v13  ;;  %v426_v22 = vor.u32 %v425_v19, %v421_v15  ;;  %v780_v44 = vrot.slane %v778_v38, 1  ;;  %v852_v49 = vrot.slane %v2649_v46, 1  ;;  %v2655_v52 = vld [vmem:[%s2789_s4 + $0xc] sm:$0x3c]   ;;  %v2659_v53 = vld [vmem:[%s2789_s4] sm:$0x7c]  }
  0x19   : > { %2428 = vmatprep.subr.bf16.mxu0 %v2716_v1  ;;  %2436 = vmatprep.subr.bf16.mxu1 %v2716_v1  ;;  %v704_v40 = vor.u32 %v703_v34, %v699_v33  ;;  %v2661_v54 = vld [vmem:[%s2789_s4 + $0xc] sm:$0x7c]   ;;  %v923_v57 = vrot.slane %v2653_v51, 2  ;;  %v994_v59 = vrot.slane %v2655_v52, 2  ;;  %v1066_v60 = vshrl.u32 %v2659_v53, 16  ;;  %v2660_v9 = vld [vmem:[%s3081_s1 + $0xe0] sm:$0xff]  }
  0x1a   : > { %v781_v47 = vor.u32 %v780_v44, %v776_v43  ;;  %v1069_v61 = vshll.u32 %v2659_v53, 16  ;;  %v1144_v62 = vshrl.u32 %v2661_v54, 16  ;;  %v1147_v63 = vshll.u32 %v2661_v54, 16  ;;  %v2665_v12 = vld [vmem:[%s2789_s4] sm:$0x78]   ;;  %v2663_v15 = vld [vmem:[%s3081_s1 + $0xe8] sm:$0xff]  }
  0x1b   : > { %2417 = vmatmul.mubr.msk.bf16.vlgmr.msra.gmra.mrb[4].mxu0 %vm221_vm1, %v349_v20  ;;  %2425 = vmatmul.mubr.msk.bf16.vlgmr.msra.gmra.mrb[4].mxu1 %vm221_vm1, %v426_v22  ;;  %v1068_v3 = vrot.slane %v1066_v60, 2  ;;  %v2667_v13 = vld [vmem:[%s2789_s4 + $0x18] sm:$0x3c]   ;;  %v2666_v17 = vld [vmem:[%s3081_s1 + $0x100] sm:$0xff]   ;;  %v2668_v22 = vld [vmem:[%s3081_s1 + $0x110] sm:$0xff]  }
  0x1c   : > { %2429 = vmatpush3.bf16.msra.mxu0 %v2632_v18  ;;  %2437 = vmatpush3.bf16.msra.mxu1 %v2634_v21  ;;  %v1071_v4 = vrot.slane %v1069_v61, 3  ;;  %v1146_v5 = vrot.slane %v1144_v62, 2  ;;  %v1149_v6 = vrot.slane %v1147_v63, 3  ;;  %v2673_v14 = vld [vmem:[%s2789_s4 + $0x18] sm:$0x7c]   ;;  %v1221_v18 = vrot.slane %v2665_v12, 3 }
  0x1d   : > { %2430 = vmatprep.subr.bf16.mxu0 %v2716_v1  ;;  %2438 = vmatprep.subr.bf16.mxu1 %v2716_v1  ;;  %v2664_v16 = vld [vmem:[%s3081_s1 + $0xf8] sm:$0xff]   ;;  %v1292_v19 = vrot.slane %v2667_v13, 2  ;;  %v1435_v20 = vshrl.u32 %v2673_v14, 16  ;;  %v1438_v21 = vshll.u32 %v2673_v14, 16  ;;  %v2669_v23 = vld [vmem:[%s3081_s1 + $0x108] sm:$0xff]   ;;  %v2674_v34 = vld [vmem:[%s3081_s1 + $0x130] sm:$0xff]  }
  0x1e   : > { %2432 = vmatprep.mubr.msk.bf16.mxu0 %vm2717_vm0, %v2716_v1  ;;  %2440 = vmatprep.mubr.msk.bf16.mxu1 %vm2717_vm0, %v2716_v1  ;;  %v1072_v8 = vor.u32 %v1071_v4, %v1068_v3  ;;  %v1150_v10 = vor.u32 %v1149_v6, %v1146_v5  ;;  %v2679_v38 = vld [vmem:[%s2789_s4 + $0x18] sm:$0x78]   ;;  %v2680_v43 = vld [vmem:[%s3081_s1 + $0x150] sm:$0xff]   ;;  %v2687_v44 = vld [vmem:[%s2789_s4 + $0x4] sm:$0x1f]  }
  0x1f   : > { %v1440_v27 = vrot.slane %v1438_v21, 3  ;;  %v2689_v46 = vld [vmem:[%s2789_s4 + $0x10] sm:$0x1f]   ;;  %v1790_v54 = vshrl.u32 %v2687_v44, 16  ;;  %v2688_v61 = vld [vmem:[%s3081_s1 + $0x180] sm:$0xff]  }
  0x20   : > { %2431 = vmatpush3.bf16.msra.mxu0 %v2635_v24  ;;  %2439 = vmatpush3.bf16.msra.mxu1 %v2636_v25  ;;  %v2671_v24 = vld [vmem:[%s2789_s4 + $0x24] sm:$0x3c]   ;;  %v1869_v51 = vshll.u32 %v2689_v46, 16  ;;  %v2284_v52 = vld [vmem:[%s2789_s4 + $0x10] sm:$0xf] }
  0x21   : > { %2444 = vmatprep.subr.bf16.mxu0 %v2716_v1  ;;  %2452 = vmatprep.subr.bf16.mxu1 %v2716_v1  ;;  %v2677_v25 = vld [vmem:[%s2789_s4 + $0x24] sm:$0x7c]   ;;  %v2684_v53 = vld [vmem:[%s3081_s1 + $0x170] sm:$0xff]  }
  0x22   : > { %v1516_v31 = vshll.u32 %v2677_v25, 16  ;;  %v2691_v63 = vld [vmem:[%s2789_s4 + $0x4] sm:$0x1e]  }
  0x23   : > { %2433 = vmatmul.mubr.msk.bf16.vlgmr.msra.gmra.mrb[8].mxu0 %vm221_vm1, %v497_v26  ;;  %2441 = vmatmul.mubr.msk.bf16.vlgmr.msra.gmra.mrb[8].mxu1 %vm221_vm1, %v2137_v29  ;;  %v1437_v26 = vrot.slane %v1435_v20, 2  ;;  %v1363_v29 = vrot.slane %v2671_v24, 2 }
  0x24   : > { %2445 = vmatpush3.bf16.msra.mxu0 %v2638_v28  ;;  %2453 = vmatpush3.bf16.msra.mxu1 %v2639_v30  ;;  %v2670_v28 = vld [vmem:[%s3081_s1 + $0x118] sm:$0xff]   ;;  %v1513_v30 = vshrl.u32 %v2677_v25, 16 }
  0x25   : > { %2446 = vmatprep.subr.bf16.mxu0 %v2716_v1  ;;  %2454 = vmatprep.subr.bf16.mxu1 %v2716_v1  ;;  %v1441_v33 = vor.u32 %v1440_v27, %v1437_v26 }
  0x26   : > { %2448 = vmatprep.mubr.msk.bf16.mxu0 %vm2717_vm0, %v2716_v1  ;;  %2456 = vmatprep.mubr.msk.bf16.mxu1 %vm2717_vm0, %v2716_v1  ;;  %v1515_v35 = vrot.slane %v1513_v30, 2 }
  0x28   : > { %2447 = vmatpush3.bf16.msra.mxu0 %v2640_v32  ;;  %2455 = vmatpush3.bf16.msra.mxu1 %v2641_v36  ;;  %v2672_v32 = vld [vmem:[%s3081_s1 + $0x120] sm:$0xff]   ;;  %v1518_v36 = vrot.slane %v1516_v31, 3 }
  0x29   : > { %2460 = vmatprep.subr.bf16.mxu0 %v2716_v1  ;;  %2468 = vmatprep.subr.bf16.mxu1 %v2716_v1 }
  0x2b   : > { %2449 = vmatmul.mubr.msk.bf16.vlgmr.msra.gmra.mrb[12].mxu0 %vm221_vm1, %v2145_v37  ;;  %2457 = vmatmul.mubr.msk.bf16.vlgmr.msra.gmra.mrb[12].mxu1 %vm221_vm1, %v704_v40  ;;  %v2675_v37 = vld [vmem:[%s3081_s1 + $0x128] sm:$0xff]   ;;  %v1519_v40 = vor.u32 %v1518_v36, %v1515_v35 }
  0x2c   : > { %2461 = vmatpush3.bf16.msra.mxu0 %v2642_v39  ;;  %2469 = vmatpush3.bf16.msra.mxu1 %v2644_v41  ;;  %v2676_v39 = vld [vmem:[%s3081_s1 + $0x138] sm:$0xff]   ;;  %v2678_v41 = vld [vmem:[%s3081_s1 + $0x140] sm:$0xff]  }
  0x2d   : > { %2462 = vmatprep.subr.bf16.mxu0 %v2716_v1  ;;  %2470 = vmatprep.subr.bf16.mxu1 %v2716_v1 }
  0x2e   : > { %2464 = vmatprep.mubr.msk.bf16.mxu0 %vm2717_vm0, %v2716_v1  ;;  %2472 = vmatprep.mubr.msk.bf16.mxu1 %vm2717_vm0, %v2716_v1 }
  0x30   : > { %2463 = vmatpush3.bf16.msra.mxu0 %v2645_v42  ;;  %2471 = vmatpush3.bf16.msra.mxu1 %v2646_v45  ;;  %v1590_v42 = vrot.slane %v2679_v38, 3  ;;  %v2681_v45 = vld [vmem:[%s3081_s1 + $0x148] sm:$0xff]  }
  0x31   : > { %2476 = vmatprep.subr.bf16.mxu0 %v2716_v1  ;;  %2484 = vmatprep.subr.bf16.mxu1 %v2716_v1 }
  0x33   : > { %2465 = vmatmul.mubr.msk.bf16.vlgmr.msra.gmra.mrb[16].mxu0 %vm221_vm1, %v781_v47  ;;  %2473 = vmatmul.mubr.msk.bf16.vlgmr.msra.gmra.mrb[16].mxu1 %vm221_vm1, %v852_v49  ;;  %v2682_v47 = vld [vmem:[%s3081_s1 + $0x158] sm:$0xff]   ;;  %v1649_v49 = vld [vmem:[%s2789_s4 + $0x4] sm:$0xf] }
  0x34   : > { %2477 = vmatpush3.bf16.msra.mxu0 %v2648_v48  ;;  %2485 = vmatpush3.bf16.msra.mxu1 %v2650_v50  ;;  %v1792_v48 = vshll.u32 %v2687_v44, 16  ;;  %v2683_v50 = vld [vmem:[%s3081_s1 + $0x160] sm:$0xff]  }
  0x35   : > { %2478 = vmatprep.subr.bf16.mxu0 %v2716_v1  ;;  %2486 = vmatprep.subr.bf16.mxu1 %v2716_v1 }
  0x36   : > { %2480 = vmatprep.mubr.msk.bf16.mxu0 %vm2717_vm0, %v2716_v1  ;;  %2488 = vmatprep.mubr.msk.bf16.mxu1 %vm2717_vm0, %v2716_v1 }
  0x38   : > { %2479 = vmatpush3.bf16.msra.mxu0 %v2651_v55  ;;  %2487 = vmatpush3.bf16.msra.mxu1 %v2652_v56  ;;  %v1794_v55 = vrot.slane %v1792_v48, 1  ;;  %v2685_v56 = vld [vmem:[%s3081_s1 + $0x168] sm:$0xff]  }
  0x39   : > { %2492 = vmatprep.subr.bf16.mxu0 %v2716_v1  ;;  %2500 = vmatprep.subr.bf16.mxu1 %v2716_v1 }
  0x3a   : > { %v1795_v60 = vor.u32 %v1794_v55, %v1790_v54 }
  0x3b   : > { %2481 = vmatmul.mubr.msk.bf16.vlgmr.msra.gmra.mrb[20].mxu0 %vm221_vm1, %v923_v57  ;;  %2489 = vmatmul.mubr.msk.bf16.vlgmr.msra.gmra.mrb[20].mxu1 %vm221_vm1, %v994_v59  ;;  %v1867_v57 = vshrl.u32 %v2689_v46, 16  ;;  %v2686_v59 = vld [vmem:[%s3081_s1 + $0x178] sm:$0xff]  }
  0x3c   : > { %2493 = vmatpush3.bf16.msra.mxu0 %v2654_v58  ;;  %2501 = vmatpush3.bf16.msra.mxu1 %v2656_v0  ;;  %v1871_v58 = vrot.slane %v1869_v51, 1  ;;  %v2690_v0 = vld [vmem:[%s3081_s1 + $0x188] sm:$0xff]  }
  0x3d   : > { %2494 = vmatprep.subr.bf16.mxu0 %v2716_v1  ;;  %2502 = vmatprep.subr.bf16.mxu1 %v2716_v1 }
  0x3e   : > { %2496 = vmatprep.mubr.msk.bf16.mxu0 %vm2717_vm0, %v2716_v1  ;;  %2504 = vmatprep.mubr.msk.bf16.mxu1 %vm2717_vm0, %v2716_v1  ;;  %v1872_v62 = vor.u32 %v1871_v58, %v1867_v57 }
  0x40   : > { %2495 = vmatpush3.bf16.msra.mxu0 %v2657_v2  ;;  %2503 = vmatpush3.bf16.msra.mxu1 %v2658_v7  ;;  %v1943_v2 = vrot.slane %v2691_v63, 1 }
  0x41   : > { %2508 = vmatprep.subr.bf16.mxu0 %v2716_v1  ;;  %2516 = vmatprep.subr.bf16.mxu1 %v2716_v1 }
  0x43   : > { %2497 = vmatmul.mubr.msk.bf16.vlgmr.msra.gmra.mrb[24].mxu0 %vm221_vm1, %v1072_v8  ;;  %2505 = vmatmul.mubr.msk.bf16.vlgmr.msra.gmra.mrb[24].mxu1 %vm221_vm1, %v1150_v10 }
  0x44   : > { %2509 = vmatpush3.bf16.msra.mxu0 %v2660_v9  ;;  %2517 = vmatpush3.bf16.msra.mxu1 %v2662_v11 }
  0x45   : > { %2510 = vmatprep.subr.bf16.mxu0 %v2716_v1  ;;  %2518 = vmatprep.subr.bf16.mxu1 %v2716_v1 }
  0x46   : > { %2512 = vmatprep.mubr.msk.bf16.mxu0 %vm2717_vm0, %v2716_v1  ;;  %2520 = vmatprep.mubr.msk.bf16.mxu1 %vm2717_vm0, %v2716_v1 }
  0x48   : > { %2511 = vmatpush3.bf16.msra.mxu0 %v2663_v15  ;;  %2519 = vmatpush3.bf16.msra.mxu1 %v2664_v16 }
  0x49   : > { %2524 = vmatprep.subr.bf16.mxu0 %v2716_v1  ;;  %2532 = vmatprep.subr.bf16.mxu1 %v2716_v1 }
  0x4b   : > { %2513 = vmatmul.mubr.msk.bf16.vlgmr.msra.gmra.mrb[28].mxu0 %vm221_vm1, %v1221_v18  ;;  %2521 = vmatmul.mubr.msk.bf16.vlgmr.msra.gmra.mrb[28].mxu1 %vm221_vm1, %v1292_v19 }
  0x4c   : > { %2525 = vmatpush3.bf16.msra.mxu0 %v2666_v17  ;;  %2533 = vmatpush3.bf16.msra.mxu1 %v2668_v22 }
  0x4d   : > { %2526 = vmatprep.subr.bf16.mxu0 %v2716_v1  ;;  %2534 = vmatprep.subr.bf16.mxu1 %v2716_v1 }
  0x4e   : > { %2528 = vmatprep.mubr.msk.bf16.mxu0 %vm2717_vm0, %v2716_v1  ;;  %2536 = vmatprep.mubr.msk.bf16.mxu1 %vm2717_vm0, %v2716_v1 }
  0x50   : > { %2527 = vmatpush3.bf16.msra.mxu0 %v2669_v23  ;;  %2535 = vmatpush3.bf16.msra.mxu1 %v2670_v28 }
  0x51   : > { %2540 = vmatprep.subr.bf16.mxu0 %v2716_v1  ;;  %2548 = vmatprep.subr.bf16.mxu1 %v2716_v1 }
  0x53   : > { %2529 = vmatmul.mubr.msk.bf16.vlgmr.msra.gmra.mrb[32].mxu0 %vm221_vm1, %v1363_v29  ;;  %2537 = vmatmul.mubr.msk.bf16.vlgmr.msra.gmra.mrb[32].mxu1 %vm221_vm1, %v1441_v33 }
  0x54   : > { %2541 = vmatpush3.bf16.msra.mxu0 %v2672_v32  ;;  %2549 = vmatpush3.bf16.msra.mxu1 %v2674_v34 }
  0x55   : > { %2542 = vmatprep.subr.bf16.mxu0 %v2716_v1  ;;  %2550 = vmatprep.subr.bf16.mxu1 %v2716_v1 }
  0x56   : > { %2544 = vmatprep.mubr.msk.bf16.mxu0 %vm2717_vm0, %v2716_v1  ;;  %2552 = vmatprep.mubr.msk.bf16.mxu1 %vm2717_vm0, %v2716_v1 }
  0x58   : > { %2543 = vmatpush3.bf16.msra.mxu0 %v2675_v37  ;;  %2551 = vmatpush3.bf16.msra.mxu1 %v2676_v39 }
  0x59   : > { %2556 = vmatprep.subr.bf16.mxu0 %v2716_v1  ;;  %2564 = vmatprep.subr.bf16.mxu1 %v2716_v1 }
  0x5b   : > { %2545 = vmatmul.mubr.msk.bf16.vlgmr.msra.gmra.mrb[36].mxu0 %vm221_vm1, %v1519_v40  ;;  %2553 = vmatmul.mubr.msk.bf16.vlgmr.msra.gmra.mrb[36].mxu1 %vm221_vm1, %v1590_v42 }
  0x5c   : > { %2557 = vmatpush3.bf16.msra.mxu0 %v2678_v41  ;;  %2565 = vmatpush3.bf16.msra.mxu1 %v2680_v43 }
  0x5d   : > { %2558 = vmatprep.subr.bf16.mxu0 %v2716_v1  ;;  %2566 = vmatprep.subr.bf16.mxu1 %v2716_v1 }
  0x5e   : > { %2560 = vmatprep.mubr.msk.bf16.mxu0 %vm2717_vm0, %v2716_v1  ;;  %2568 = vmatprep.mubr.msk.bf16.mxu1 %vm2717_vm0, %v2716_v1 }
  0x60   : > { %2559 = vmatpush3.bf16.msra.mxu0 %v2681_v45  ;;  %2567 = vmatpush3.bf16.msra.mxu1 %v2682_v47 }
  0x61   : > { %2572 = vmatprep.subr.bf16.mxu0 %v2716_v1  ;;  %2580 = vmatprep.subr.bf16.mxu1 %v2716_v1 }
  0x63   : > { %2561 = vmatmul.mubr.msk.bf16.vlgmr.msra.gmra.mrb[40].mxu0 %vm221_vm1, %v1649_v49  ;;  %2569 = vmatmul.mubr.msk.bf16.vlgmr.msra.gmra.mrb[40].mxu1 %vm221_vm1, %v2284_v52 }
  0x64   : > { %2573 = vmatpush3.bf16.msra.mxu0 %v2683_v50  ;;  %2581 = vmatpush3.bf16.msra.mxu1 %v2684_v53 }
  0x65   : > { %2574 = vmatprep.subr.bf16.mxu0 %v2716_v1  ;;  %2582 = vmatprep.subr.bf16.mxu1 %v2716_v1 }
  0x66   : > { %2576 = vmatprep.mubr.msk.bf16.mxu0 %vm2717_vm0, %v2716_v1  ;;  %2584 = vmatprep.mubr.msk.bf16.mxu1 %vm2717_vm0, %v2716_v1 }
  0x68   : > { %2575 = vmatpush3.bf16.msra.mxu0 %v2685_v56  ;;  %2583 = vmatpush3.bf16.msra.mxu1 %v2686_v59 }
  0x69   : > { %2588 = vmatprep.subr.bf16.mxu0 %v2716_v1 }
  0x6b   : > { %2577 = vmatmul.mubr.msk.bf16.vlgmr.msra.gmra.mrb[44].mxu0 %vm221_vm1, %v1795_v60  ;;  %2585 = vmatmul.mubr.msk.bf16.vlgmr.msra.gmra.mrb[44].mxu1 %vm221_vm1, %v1872_v62 }
  0x6c   : > { %2589 = vmatpush3.bf16.msra.mxu0 %v2688_v61  ;;  %2592 = vmatprep.mubr.msk.bf16.mxu0 %vm2717_vm0, %v2716_v1 }
  0x6d   : > { %2590 = vmatprep.subr.bf16.mxu0 %v2716_v1 }
  0x70   : > { %2591 = vmatpush3.bf16.msra.mxu0 %v2690_v0 }
  0x73   : > { %2593 = vmatmul.mubr.msk.bf16.vlgmr.msra.gmra.mrb[48].mxu0 %vm221_vm1, %v1943_v2 }
  0xe6   : > { %v259_v3 = vpop.f32.mrb[0].mxu0  ;;  %v322_v4 = vpop.f32.mrb[0].mxu1 }
  0xe7   : > { %v2402_v5 = vpop.f32.mrb[1].mxu0  ;;  %v329_v6 = vadd.f32 %v322_v4, %v259_v3  ;;  %v2410_v7 = vpop.f32.mrb[1].mxu1 }
  0xe8   : > { %v262_v8 = vpop.f32.mrb[2].mxu0  ;;  %v325_v9 = vpop.f32.mrb[2].mxu1 }
  0xe9   : > { %v2403_v10 = vpop.f32.mrb[3].mxu0  ;;  %v2411_v11 = vpop.f32.mrb[3].mxu1 }
  0xee   : > { %v399_v12 = vpop.f32.mrb[4].mxu0  ;;  %v476_v15 = vpop.f32.mrb[4].mxu1 }
  0xef   : > { %v406_v13 = vadd.f32 %v399_v12, %v329_v6  ;;  %v2418_v14 = vpop.f32.mrb[5].mxu0  ;;  %v2426_v17 = vpop.f32.mrb[5].mxu1 }
  0xf0   : > { %v402_v16 = vpop.f32.mrb[6].mxu0  ;;  %v479_v19 = vpop.f32.mrb[6].mxu1 }
  0xf1   : > { %v483_v1 = vadd.f32 %v476_v15, %v406_v13  ;;  %v2419_v18 = vpop.f32.mrb[7].mxu0  ;;  %v2427_v20 = vpop.f32.mrb[7].mxu1 }
  0xf6   : > { %v547_v21 = vpop.f32.mrb[8].mxu0  ;;  %v612_v24 = vpop.f32.mrb[8].mxu1 }
  0xf7   : > { %v554_v22 = vadd.f32 %v547_v21, %v483_v1  ;;  %v2434_v23 = vpop.f32.mrb[9].mxu0  ;;  %v2442_v26 = vpop.f32.mrb[9].mxu1 }
  0xf8   : > { %v550_v25 = vpop.f32.mrb[10].mxu0  ;;  %v615_v29 = vpop.f32.mrb[10].mxu1 }
  0xf9   : > { %v619_v27 = vadd.f32 %v612_v24, %v554_v22  ;;  %v2435_v28 = vpop.f32.mrb[11].mxu0  ;;  %v2443_v30 = vpop.f32.mrb[11].mxu1 }
  0xfe   : > { %v677_v31 = vpop.f32.mrb[12].mxu0  ;;  %v754_v34 = vpop.f32.mrb[12].mxu1 }
  0xff   : > { %v684_v32 = vadd.f32 %v677_v31, %v619_v27  ;;  %v2450_v33 = vpop.f32.mrb[13].mxu0  ;;  %v2458_v36 = vpop.f32.mrb[13].mxu1 }
 0x100   : > { %v680_v35 = vpop.f32.mrb[14].mxu0  ;;  %v757_v39 = vpop.f32.mrb[14].mxu1 }
 0x101   : > { %v761_v37 = vadd.f32 %v754_v34, %v684_v32  ;;  %v2451_v38 = vpop.f32.mrb[15].mxu0  ;;  %v2459_v40 = vpop.f32.mrb[15].mxu1 }
 0x106   : > { %v831_v41 = vpop.f32.mrb[16].mxu0  ;;  %v902_v44 = vpop.f32.mrb[16].mxu1 }
 0x107   : > { %v838_v42 = vadd.f32 %v831_v41, %v761_v37  ;;  %v2466_v43 = vpop.f32.mrb[17].mxu0  ;;  %v2474_v46 = vpop.f32.mrb[17].mxu1 }
 0x108   : > { %v834_v45 = vpop.f32.mrb[18].mxu0  ;;  %v905_v49 = vpop.f32.mrb[18].mxu1 }
 0x109   : > { %v909_v47 = vadd.f32 %v902_v44, %v838_v42  ;;  %v2467_v48 = vpop.f32.mrb[19].mxu0  ;;  %v2475_v50 = vpop.f32.mrb[19].mxu1 }
 0x10e   : > { %v973_v51 = vpop.f32.mrb[20].mxu0  ;;  %v1044_v54 = vpop.f32.mrb[20].mxu1 }
 0x10f   : > { %v980_v52 = vadd.f32 %v973_v51, %v909_v47  ;;  %v2482_v53 = vpop.f32.mrb[21].mxu0  ;;  %v2490_v56 = vpop.f32.mrb[21].mxu1 }
 0x110   : > { %v976_v55 = vpop.f32.mrb[22].mxu0  ;;  %v1047_v59 = vpop.f32.mrb[22].mxu1 }
 0x111   : > { %v1051_v57 = vadd.f32 %v1044_v54, %v980_v52  ;;  %v2483_v58 = vpop.f32.mrb[23].mxu0  ;;  %v2491_v60 = vpop.f32.mrb[23].mxu1 }
 0x112   : > { %v2318_v58 = vld [vmem:[%s3082_s2] ss:$0 sm:$0xff] }
 0x116   : > { %v1122_v61 = vpop.f32.mrb[24].mxu0  ;;  %v1200_v0 = vpop.f32.mrb[24].mxu1 }
 0x117   : > { %v1129_v62 = vadd.f32 %v1122_v61, %v1051_v57  ;;  %v2498_v63 = vpop.f32.mrb[25].mxu0  ;;  %v2506_v3 = vpop.f32.mrb[25].mxu1 }
 0x118   : > { %v1125_v2 = vpop.f32.mrb[26].mxu0  ;;  %v1203_v6 = vpop.f32.mrb[26].mxu1 }
 0x119   : > { %v1207_v4 = vadd.f32 %v1200_v0, %v1129_v62  ;;  %v2499_v5 = vpop.f32.mrb[27].mxu0  ;;  %v2507_v7 = vpop.f32.mrb[27].mxu1 }
 0x11e   : > { %v1271_v8 = vpop.f32.mrb[28].mxu0  ;;  %v1342_v11 = vpop.f32.mrb[28].mxu1 }
 0x11f   : > { %v1278_v9 = vadd.f32 %v1271_v8, %v1207_v4  ;;  %v2514_v10 = vpop.f32.mrb[29].mxu0  ;;  %v2522_v13 = vpop.f32.mrb[29].mxu1 }
 0x120   : > { %v1274_v12 = vpop.f32.mrb[30].mxu0  ;;  %v1345_v16 = vpop.f32.mrb[30].mxu1 }
 0x121   : > { %v1349_v14 = vadd.f32 %v1342_v11, %v1278_v9  ;;  %v2515_v15 = vpop.f32.mrb[31].mxu0  ;;  %v2523_v17 = vpop.f32.mrb[31].mxu1 }
 0x126   : > { %v1413_v1 = vpop.f32.mrb[32].mxu0  ;;  %v1491_v20 = vpop.f32.mrb[32].mxu1 }
 0x127   : > { %v1420_v18 = vadd.f32 %v1413_v1, %v1349_v14  ;;  %v2530_v19 = vpop.f32.mrb[33].mxu0  ;;  %v2538_v22 = vpop.f32.mrb[33].mxu1 }
 0x128   : > { %v1416_v21 = vpop.f32.mrb[34].mxu0  ;;  %v1494_v25 = vpop.f32.mrb[34].mxu1 }
 0x129   : > { %v1498_v23 = vadd.f32 %v1491_v20, %v1420_v18  ;;  %v2531_v24 = vpop.f32.mrb[35].mxu0  ;;  %v2539_v26 = vpop.f32.mrb[35].mxu1 }
 0x12e   : > { %v1569_v27 = vpop.f32.mrb[36].mxu0  ;;  %v1640_v30 = vpop.f32.mrb[36].mxu1 }
 0x12f   : > { %v1576_v28 = vadd.f32 %v1569_v27, %v1498_v23  ;;  %v2546_v29 = vpop.f32.mrb[37].mxu0  ;;  %v2554_v32 = vpop.f32.mrb[37].mxu1 }
 0x130   : > { %v1572_v31 = vpop.f32.mrb[38].mxu0  ;;  %v1643_v35 = vpop.f32.mrb[38].mxu1 }
 0x131   : > { %v1647_v33 = vadd.f32 %v1640_v30, %v1576_v28  ;;  %v2547_v34 = vpop.f32.mrb[39].mxu0  ;;  %v2555_v36 = vpop.f32.mrb[39].mxu1 }
 0x136   : > { %v1704_v37 = vpop.f32.mrb[40].mxu0  ;;  %v1768_v40 = vpop.f32.mrb[40].mxu1 }
 0x137   : > { %v1711_v38 = vadd.f32 %v1704_v37, %v1647_v33  ;;  %v2562_v39 = vpop.f32.mrb[41].mxu0  ;;  %v2570_v42 = vpop.f32.mrb[41].mxu1 }
 0x138   : > { %v1707_v41 = vpop.f32.mrb[42].mxu0  ;;  %v1771_v45 = vpop.f32.mrb[42].mxu1 }
 0x139   : > { %v1775_v43 = vadd.f32 %v1768_v40, %v1711_v38  ;;  %v2563_v44 = vpop.f32.mrb[43].mxu0  ;;  %v2571_v46 = vpop.f32.mrb[43].mxu1 }
 0x13e   : > { %v1845_v47 = vpop.f32.mrb[44].mxu0  ;;  %v1922_v50 = vpop.f32.mrb[44].mxu1 }
 0x13f   : > { %v1852_v48 = vadd.f32 %v1845_v47, %v1775_v43  ;;  %v2578_v49 = vpop.f32.mrb[45].mxu0  ;;  %v2586_v52 = vpop.f32.mrb[45].mxu1 }
 0x140   : > { %v1848_v51 = vpop.f32.mrb[46].mxu0  ;;  %v1925_v55 = vpop.f32.mrb[46].mxu1 }
 0x141   : > { %v1929_v53 = vadd.f32 %v1922_v50, %v1852_v48  ;;  %v2579_v54 = vpop.f32.mrb[47].mxu0  ;;  %v2587_v56 = vpop.f32.mrb[47].mxu1 }
 0x146   : > { %v1993_v57 = vpop.f32.mrb[48].mxu0 }
 0x147   : > { %v2000_v59 = vadd.f32 %v1993_v57, %v1929_v53  ;;  %v2594_v60 = vpop.f32.mrb[49].mxu0 }
 0x148   : > { %v1996_v61 = vpop.f32.mrb[50].mxu0 }
 0x149   : > { %v2010_v62 = vadd.f32 %v2318_v58, %v2000_v59  ;;  %v2595_v63 = vpop.f32.mrb[51].mxu0 }
 0x14b   : > { %v2011_v0 = vpack.c.bf16 %v2010_v62, %v2010_v62 }
 0x14d   : > { %2012 = vst [vmem:[%s202_s9] sm:$0xf] %v2011_v0 }
 0x14e PF: > { %s13_s14 = sadd.s32 1, %s2714_s14   ;;  %s3084_s12 = smov %s2710_s13 }
 0x14f   : > { %p10_p5 = scmp.ge.s32.totalorder %s13_s14, 4   ;;  %s3085_s13 = smov %s3087_s15 }
 0x151   :  { %12 = sbr.rel (!%p10_p5) target bundleno = 2 (0x2), region = 89 }

</bundles_post_ra>
